<compile_context>
chip_gen: v7x
topology: tpu7x:2x2x1
jax: 0.10.0
libtpu: 0.0.40
codegen_flags: <defaults>
</compile_context>

<pallas_src>
import functools

import jax
import jax.numpy as jnp
from jax.experimental import pallas as pl
from jax.experimental.pallas import tpu as pltpu


_VMEM_LIMIT = 32 * 1024 * 1024  # explicit scoped-VMEM limit; safe on v5e/v6e/v7x


# --------------------------------------------------------------------------------------
# Pallas GEMM kernel:  out = relu?(A @ W + b)
#   A: (TM, K) bf16, W: (K, N) bf16 (VMEM-resident across the grid), b: (1, N) f32
# --------------------------------------------------------------------------------------

def _mm_bias_kernel(a_ref, w_ref, b_ref, o_ref, *, relu):
    acc = jnp.dot(a_ref[...], w_ref[...], preferred_element_type=jnp.float32)
    acc = acc + b_ref[...]                       # f32 epilogue (VPU-friendly on v5e too)
    if relu:
        acc = jnp.maximum(acc, 0.0)
    o_ref[...] = acc.astype(o_ref.dtype)


def pallas_matmul_bias(a, w, b2d, *, relu, out_dtype, tm_max=512):
    """relu?(a @ w + b) on the MXU.  a: (M, K) bf16, w: (K, N) bf16, b2d: (1, N) f32."""
    M, K = a.shape
    Kw, N = w.shape
    assert K == Kw
    TM = M if M <= tm_max else tm_max            # small layers: one full-M block
    grid = (pl.cdiv(M, TM),)                     # partial last block is masked by Pallas
    kernel = functools.partial(_mm_bias_kernel, relu=relu)
    return pl.pallas_call(
        kernel,
        out_shape=jax.ShapeDtypeStruct((M, N), out_dtype),
        grid=grid,
        in_specs=[
            pl.BlockSpec((TM, K), lambda i: (i, 0)),   # K == full dim: no host padding
            pl.BlockSpec((K, N), lambda i: (0, 0)),    # weight stays resident
            pl.BlockSpec((1, N), lambda i: (0, 0)),
        ],
        out_specs=pl.BlockSpec((TM, N), lambda i: (i, 0)),
        compiler_params=pltpu.CompilerParams(
            dimension_semantics=("parallel",),
            vmem_limit_bytes=_VMEM_LIMIT,
        ),
    )(a, w, b2d)


# --------------------------------------------------------------------------------------
# conv = single-op patch extraction (data movement only) + Pallas GEMM
# --------------------------------------------------------------------------------------

def _patches_nhwc(x, ksize, strides):
    """im2col via one XLA data-movement op.  Output feature order is (Cin, Kh, Kw),
    matching the flatten order of PyTorch Conv2d weights (Cout, Cin, Kh, Kw)."""
    return jax.lax.conv_general_dilated_patches(
        x, filter_shape=ksize, window_strides=strides, padding="VALID",
        dimension_numbers=("NHWC", "HWIO", "NHWC"))


def conv2d_relu(x, w_mat, b2d, ksize, strides):
    """x: (B,H,W,Cin) bf16 NHWC; w_mat: (Cin*Kh*Kw, Cout) bf16; b2d: (1,Cout) f32."""
    p = _patches_nhwc(x, ksize, strides)                  # (B, Ho, Wo, Cin*Kh*Kw)
    B, Ho, Wo, K = p.shape
    out = pallas_matmul_bias(p.reshape(B * Ho * Wo, K), w_mat, b2d,
                             relu=True, out_dtype=jnp.bfloat16)
    return out.reshape(B, Ho, Wo, -1)                     # NHWC, bf16


# --------------------------------------------------------------------------------------
# Fused tail: conv3 (3x3, stride 1) + ReLU + flatten + lin1 + ReLU + lin2 in one kernel.
# conv3 patches come in position-major (P, B, K3); lin1 weight is pre-split per conv3
# spatial position as (P, 64, 512) in NHWC flatten order, so the flatten is implicit.
# --------------------------------------------------------------------------------------

def _tail_kernel(p3_ref, w3_ref, b3_ref, w1_ref, b1_ref, w2_ref, b2_ref, o_ref):
    n_pos = w1_ref.shape[0]
    bsz = p3_ref.shape[1]
    n1 = w1_ref.shape[2]
    acc = jnp.zeros((bsz, n1), jnp.float32)
    for p in range(n_pos):                                # static, fully unrolled (P=20)
        h3 = jnp.dot(p3_ref[p], w3_ref[...], preferred_element_type=jnp.float32)
        h3 = jnp.maximum(h3 + b3_ref[...], 0.0)           # relu(conv3) at position p
        acc = acc + jnp.dot(h3.astype(w1_ref.dtype), w1_ref[p],
                            preferred_element_type=jnp.float32)
    h1 = jnp.maximum(acc + b1_ref[...], 0.0)              # relu(lin1)
    out = jnp.dot(h1.astype(w2_ref.dtype), w2_ref[...],
                  preferred_element_type=jnp.float32) + b2_ref[...]
    o_ref[...] = out.astype(o_ref.dtype)


def fused_tail(x2, w3_mat, b3_2d, w1r, b1_2d, w2t, b2_2d):
    """x2: conv2 output, (B, H2, W2, 64) bf16 NHWC.  Returns (B, 2) f32."""
    p3 = _patches_nhwc(x2, (3, 3), (1, 1))                # (B, Ho, Wo, 576)
    B, Ho, Wo, K3 = p3.shape
    P = Ho * Wo                                           # 20 spatial positions
    p3 = p3.reshape(B, P, K3).transpose(1, 0, 2)          # (P, B, K3) position-major
    C3 = w3_mat.shape[1]
    N1 = w1r.shape[2]
    N2 = w2t.shape[1]
    return pl.pallas_call(
        _tail_kernel,
        out_shape=jax.ShapeDtypeStruct((B, N2), jnp.float32),
        grid=(1,),
        in_specs=[
            pl.BlockSpec((P, B, K3), lambda i: (0, 0, 0)),
            pl.BlockSpec((K3, C3), lambda i: (0, 0)),
            pl.BlockSpec((1, C3), lambda i: (0, 0)),
            pl.BlockSpec((P, C3, N1), lambda i: (0, 0, 0)),
            pl.BlockSpec((1, N1), lambda i: (0, 0)),
            pl.BlockSpec((N1, N2), lambda i: (0, 0)),
            pl.BlockSpec((1, N2), lambda i: (0, 0)),
        ],
        out_specs=pl.BlockSpec((B, N2), lambda i: (0, 0)),
        compiler_params=pltpu.CompilerParams(
            dimension_semantics=("arbitrary",),
            vmem_limit_bytes=_VMEM_LIMIT,
        ),
    )(p3, w3_mat, b3_2d, w1r, b1_2d, w2t, b2_2d)


# --------------------------------------------------------------------------------------
# Parameters (PyTorch layout) + one-time repack into GEMM-ready layout
# --------------------------------------------------------------------------------------

def init_params(key):
    def uinit(k, shape, fan_in):
        bound = 1.0 / jnp.sqrt(jnp.float32(fan_in))
        return jax.random.uniform(k, shape, jnp.float32, -bound, bound)

    ks = jax.random.split(key, 12)
    return {
        "conv0_w": uinit(ks[0], (16, 3, 12, 12), 3 * 12 * 12),
        "conv0_b": uinit(ks[1], (16,), 3 * 12 * 12),
        "conv1_w": uinit(ks[2], (32, 16, 8, 8), 16 * 8 * 8),
        "conv1_b": uinit(ks[3], (32,), 16 * 8 * 8),
        "conv2_w": uinit(ks[4], (64, 32, 4, 4), 32 * 4 * 4),
        "conv2_b": uinit(ks[5], (64,), 32 * 4 * 4),
        "conv3_w": uinit(ks[6], (64, 64, 3, 3), 64 * 3 * 3),
        "conv3_b": uinit(ks[7], (64,), 64 * 3 * 3),
        "lin1_w": uinit(ks[8], (512, 1280), 1280),
        "lin1_b": uinit(ks[9], (512,), 1280),
        "lin2_w": uinit(ks[10], (2, 512), 512),
        "lin2_b": uinit(ks[11], (2,), 512),
    }


def prepare_params(p):
    """One-time repack: GEMM-ready (K, N) bf16 weights, f32 (1, N) biases,
    lin1 permuted from NCHW flatten (c,h,w) to NHWC flatten (h,w,c)."""
    def conv_mat(w):   # (Cout, Cin, Kh, Kw) -> (Cin*Kh*Kw, Cout), matches patch order
        return jnp.asarray(w.reshape(w.shape[0], -1).T, jnp.bfloat16)

    def bias2d(b):
        return jnp.asarray(b.reshape(1, -1), jnp.float32)

    w1r = (p["lin1_w"].reshape(512, 64, 4, 5).transpose(2, 3, 1, 0)
           .reshape(4 * 5, 64, 512)).astype(jnp.bfloat16)        # (P, 64, 512)
    return {
        "w0": conv_mat(p["conv0_w"]), "b0": bias2d(p["conv0_b"]),
        "w1": conv_mat(p["conv1_w"]), "b1": bias2d(p["conv1_b"]),
        "w2": conv_mat(p["conv2_w"]), "b2": bias2d(p["conv2_b"]),
        "w3": conv_mat(p["conv3_w"]), "b3": bias2d(p["conv3_b"]),
        "w_l1": w1r, "b_l1": bias2d(p["lin1_b"]),
        "w_l2": jnp.asarray(p["lin2_w"].T, jnp.bfloat16), "b_l2": bias2d(p["lin2_b"]),
    }


@jax.jit
def simple_atari_net(prep, x):
    """x: (B, 3, H, W) float32 NCHW (PyTorch convention). Returns (B, 2) float32."""
    x = jnp.transpose(x.astype(jnp.bfloat16), (0, 2, 3, 1))       # -> NHWC once, bf16
    x = conv2d_relu(x, prep["w0"], prep["b0"], (12, 12), (2, 8))  # (B, 60, 68, 16)
    x = conv2d_relu(x, prep["w1"], prep["b1"], (8, 8), (4, 4))    # (B, 14, 16, 32)
    x = conv2d_relu(x, prep["w2"], prep["b2"], (4, 4), (2, 2))    # (B, 6, 7, 64)
    return fused_tail(x, prep["w3"], prep["b3"],                  # conv3+lin1+lin2 fused
                      prep["w_l1"], prep["b_l1"], prep["w_l2"], prep["b_l2"])


if __name__ == "__main__":
    key = jax.random.PRNGKey(0)
    pkey, xkey = jax.random.split(key)
    params = init_params(pkey)
    prep = prepare_params(params)

    # (130, 548) is the smallest spatial size for which the conv stack ends at a
    # (64, 4, 5) map -> 1280 features, as required by the module's hard-coded view(-1, 1280).
    x = jax.random.normal(xkey, (2, 3, 130, 548), dtype=jnp.float32)

    out = simple_atari_net(prep, x)
    out = jax.block_until_ready(out)
    assert out.shape == (2, 2), out.shape
    assert bool(jnp.all(jnp.isfinite(out)))
    print("KERNEL_OK")
</pallas_src>

<mosaic_0001>
module attributes {stable_mosaic.version = 11 : i64} {
  func.func @_mm_bias_kernel(%arg0: i32, %arg1: memref<512x432xbf16, #tpu.memory_space<vmem>>, %arg2: memref<432x16xbf16, #tpu.memory_space<vmem>>, %arg3: memref<1x16xf32, #tpu.memory_space<vmem>>, %arg4: memref<512x16xbf16, #tpu.memory_space<vmem>>) attributes {dimension_semantics = [#tpu.dimension_semantics<parallel>], iteration_bounds = array<i64: 16>, scalar_prefetch = 0 : i64, scratch_operands = 0 : i64, tpu.core_type = #tpu.core_type<tc>, window_params = [{transform_indices = @transform_0, window_bounds = array<i64: 512, 432>}, {pipeline_mode = #tpu.pipeline_mode<synchronous>, transform_indices = @transform_1, window_bounds = array<i64: 432, 16>}, {pipeline_mode = #tpu.pipeline_mode<synchronous>, transform_indices = @transform_2, window_bounds = array<i64: 1, 16>}, {transform_indices = @transform_3, window_bounds = array<i64: 512, 16>}]} {
    %c0 = arith.constant 0 : index
    %c0_0 = arith.constant 0 : index
    %0 = vector.load %arg1[%c0, %c0_0] : memref<512x432xbf16, #tpu.memory_space<vmem>>, vector<512x432xbf16>
    %c0_1 = arith.constant 0 : index
    %c0_2 = arith.constant 0 : index
    %1 = vector.load %arg2[%c0_1, %c0_2] : memref<432x16xbf16, #tpu.memory_space<vmem>>, vector<432x16xbf16>
    %cst = arith.constant dense<0.000000e+00> : vector<512x16xf32>
    %2 = tpu.matmul %0, %1, %cst {dimension_numbers = #tpu.dot_dimension_numbers<[1], [0], [0], [1], [0, 0, 1, 1], [], []>} : vector<512x432xbf16>, vector<432x16xbf16>, vector<512x16xf32> -> vector<512x16xf32>
    %c0_3 = arith.constant 0 : index
    %c0_4 = arith.constant 0 : index
    %3 = vector.load %arg3[%c0_3, %c0_4] : memref<1x16xf32, #tpu.memory_space<vmem>>, vector<1x16xf32>
    %4 = vector.broadcast %3 : vector<1x16xf32> to vector<512x16xf32>
    %5 = arith.addf %2, %4 : vector<512x16xf32>
    %cst_5 = arith.constant 0.000000e+00 : f32
    %6 = vector.broadcast %cst_5 : f32 to vector<512x16xf32>
    %7 = arith.maximumf %5, %6 : vector<512x16xf32>
    %8 = arith.truncf %7 : vector<512x16xf32> to vector<512x16xbf16>
    %c0_6 = arith.constant 0 : index
    %c0_7 = arith.constant 0 : index
    %9 = vector.load %arg4[%c0_6, %c0_7] : memref<512x16xbf16, #tpu.memory_space<vmem>>, vector<512x16xbf16>
    tpu.vector_store %arg4[%c0_6, %c0_7], %8 {strides = array<i32>} : memref<512x16xbf16, #tpu.memory_space<vmem>>, vector<512x16xbf16>,
    return
  }
  func.func @transform_0(%arg0: i32) -> (i32, i32) {
    %c0_i32 = arith.constant 0 : i32
    %c0_i32_0 = arith.constant 0 : i32
    return %arg0, %c0_i32 : i32, i32
  }
  func.func @transform_1(%arg0: i32) -> (i32, i32) {
    %c0_i32 = arith.constant 0 : i32
    %c0_i32_0 = arith.constant 0 : i32
    %c0_i32_1 = arith.constant 0 : i32
    return %c0_i32, %c0_i32_0 : i32, i32
  }
  func.func @transform_2(%arg0: i32) -> (i32, i32) {
    %c0_i32 = arith.constant 0 : i32
    %c0_i32_0 = arith.constant 0 : i32
    %c0_i32_1 = arith.constant 0 : i32
    return %c0_i32, %c0_i32_0 : i32, i32
  }
  func.func @transform_3(%arg0: i32) -> (i32, i32) {
    %c0_i32 = arith.constant 0 : i32
    %c0_i32_0 = arith.constant 0 : i32
    return %arg0, %c0_i32 : i32, i32
  }
}

module attributes {stable_mosaic.version = 11 : i64} {
  func.func @_mm_bias_kernel(%arg0: i32, %arg1: memref<448x1024xbf16, #tpu.memory_space<vmem>>, %arg2: memref<1024x32xbf16, #tpu.memory_space<vmem>>, %arg3: memref<1x32xf32, #tpu.memory_space<vmem>>, %arg4: memref<448x32xbf16, #tpu.memory_space<vmem>>) attributes {dimension_semantics = [#tpu.dimension_semantics<parallel>], iteration_bounds = array<i64: 1>, scalar_prefetch = 0 : i64, scratch_operands = 0 : i64, tpu.core_type = #tpu.core_type<tc>, window_params = [{transform_indices = @transform_0, window_bounds = array<i64: 448, 1024>}, {pipeline_mode = #tpu.pipeline_mode<synchronous>, transform_indices = @transform_1, window_bounds = array<i64: 1024, 32>}, {pipeline_mode = #tpu.pipeline_mode<synchronous>, transform_indices = @transform_2, window_bounds = array<i64: 1, 32>}, {transform_indices = @transform_3, window_bounds = array<i64: 448, 32>}]} {
    %c0 = arith.constant 0 : index
    %c0_0 = arith.constant 0 : index
    %0 = vector.load %arg1[%c0, %c0_0] : memref<448x1024xbf16, #tpu.memory_space<vmem>>, vector<448x1024xbf16>
    %c0_1 = arith.constant 0 : index
    %c0_2 = arith.constant 0 : index
    %1 = vector.load %arg2[%c0_1, %c0_2] : memref<1024x32xbf16, #tpu.memory_space<vmem>>, vector<1024x32xbf16>
    %cst = arith.constant dense<0.000000e+00> : vector<448x32xf32>
    %2 = tpu.matmul %0, %1, %cst {dimension_numbers = #tpu.dot_dimension_numbers<[1], [0], [0], [1], [0, 0, 1, 1], [], []>} : vector<448x1024xbf16>, vector<1024x32xbf16>, vector<448x32xf32> -> vector<448x32xf32>
    %c0_3 = arith.constant 0 : index
    %c0_4 = arith.constant 0 : index
    %3 = vector.load %arg3[%c0_3, %c0_4] : memref<1x32xf32, #tpu.memory_space<vmem>>, vector<1x32xf32>
    %4 = vector.broadcast %3 : vector<1x32xf32> to vector<448x32xf32>
    %5 = arith.addf %2, %4 : vector<448x32xf32>
    %cst_5 = arith.constant 0.000000e+00 : f32
    %6 = vector.broadcast %cst_5 : f32 to vector<448x32xf32>
    %7 = arith.maximumf %5, %6 : vector<448x32xf32>
    %8 = arith.truncf %7 : vector<448x32xf32> to vector<448x32xbf16>
    %c0_6 = arith.constant 0 : index
    %c0_7 = arith.constant 0 : index
    %9 = vector.load %arg4[%c0_6, %c0_7] : memref<448x32xbf16, #tpu.memory_space<vmem>>, vector<448x32xbf16>
    tpu.vector_store %arg4[%c0_6, %c0_7], %8 {strides = array<i32>} : memref<448x32xbf16, #tpu.memory_space<vmem>>, vector<448x32xbf16>,
    return
  }
  func.func @transform_0(%arg0: i32) -> (i32, i32) {
    %c0_i32 = arith.constant 0 : i32
    %c0_i32_0 = arith.constant 0 : i32
    return %arg0, %c0_i32 : i32, i32
  }
  func.func @transform_1(%arg0: i32) -> (i32, i32) {
    %c0_i32 = arith.constant 0 : i32
    %c0_i32_0 = arith.constant 0 : i32
    %c0_i32_1 = arith.constant 0 : i32
    return %c0_i32, %c0_i32_0 : i32, i32
  }
  func.func @transform_2(%arg0: i32) -> (i32, i32) {
    %c0_i32 = arith.constant 0 : i32
    %c0_i32_0 = arith.constant 0 : i32
    %c0_i32_1 = arith.constant 0 : i32
    return %c0_i32, %c0_i32_0 : i32, i32
  }
  func.func @transform_3(%arg0: i32) -> (i32, i32) {
    %c0_i32 = arith.constant 0 : i32
    %c0_i32_0 = arith.constant 0 : i32
    return %arg0, %c0_i32 : i32, i32
  }
}

module attributes {stable_mosaic.version = 11 : i64} {
  func.func @_mm_bias_kernel(%arg0: i32, %arg1: memref<84x512xbf16, #tpu.memory_space<vmem>>, %arg2: memref<512x64xbf16, #tpu.memory_space<vmem>>, %arg3: memref<1x64xf32, #tpu.memory_space<vmem>>, %arg4: memref<84x64xbf16, #tpu.memory_space<vmem>>) attributes {dimension_semantics = [#tpu.dimension_semantics<parallel>], iteration_bounds = array<i64: 1>, scalar_prefetch = 0 : i64, scratch_operands = 0 : i64, tpu.core_type = #tpu.core_type<tc>, window_params = [{transform_indices = @transform_0, window_bounds = array<i64: 84, 512>}, {pipeline_mode = #tpu.pipeline_mode<synchronous>, transform_indices = @transform_1, window_bounds = array<i64: 512, 64>}, {pipeline_mode = #tpu.pipeline_mode<synchronous>, transform_indices = @transform_2, window_bounds = array<i64: 1, 64>}, {transform_indices = @transform_3, window_bounds = array<i64: 84, 64>}]} {
    %c0 = arith.constant 0 : index
    %c0_0 = arith.constant 0 : index
    %0 = vector.load %arg1[%c0, %c0_0] : memref<84x512xbf16, #tpu.memory_space<vmem>>, vector<84x512xbf16>
    %c0_1 = arith.constant 0 : index
    %c0_2 = arith.constant 0 : index
    %1 = vector.load %arg2[%c0_1, %c0_2] : memref<512x64xbf16, #tpu.memory_space<vmem>>, vector<512x64xbf16>
    %cst = arith.constant dense<0.000000e+00> : vector<84x64xf32>
    %2 = tpu.matmul %0, %1, %cst {dimension_numbers = #tpu.dot_dimension_numbers<[1], [0], [0], [1], [0, 0, 1, 1], [], []>} : vector<84x512xbf16>, vector<512x64xbf16>, vector<84x64xf32> -> vector<84x64xf32>
    %c0_3 = arith.constant 0 : index
    %c0_4 = arith.constant 0 : index
    %3 = vector.load %arg3[%c0_3, %c0_4] : memref<1x64xf32, #tpu.memory_space<vmem>>, vector<1x64xf32>
    %4 = vector.broadcast %3 : vector<1x64xf32> to vector<84x64xf32>
    %5 = arith.addf %2, %4 : vector<84x64xf32>
    %cst_5 = arith.constant 0.000000e+00 : f32
    %6 = vector.broadcast %cst_5 : f32 to vector<84x64xf32>
    %7 = arith.maximumf %5, %6 : vector<84x64xf32>
    %8 = arith.truncf %7 : vector<84x64xf32> to vector<84x64xbf16>
    %c0_6 = arith.constant 0 : index
    %c0_7 = arith.constant 0 : index
    %9 = vector.load %arg4[%c0_6, %c0_7] : memref<84x64xbf16, #tpu.memory_space<vmem>>, vector<84x64xbf16>
    tpu.vector_store %arg4[%c0_6, %c0_7], %8 {strides = array<i32>} : memref<84x64xbf16, #tpu.memory_space<vmem>>, vector<84x64xbf16>,
    return
  }
  func.func @transform_0(%arg0: i32) -> (i32, i32) {
    %c0_i32 = arith.constant 0 : i32
    %c0_i32_0 = arith.constant 0 : i32
    return %arg0, %c0_i32 : i32, i32
  }
  func.func @transform_1(%arg0: i32) -> (i32, i32) {
    %c0_i32 = arith.constant 0 : i32
    %c0_i32_0 = arith.constant 0 : i32
    %c0_i32_1 = arith.constant 0 : i32
    return %c0_i32, %c0_i32_0 : i32, i32
  }
  func.func @transform_2(%arg0: i32) -> (i32, i32) {
    %c0_i32 = arith.constant 0 : i32
    %c0_i32_0 = arith.constant 0 : i32
    %c0_i32_1 = arith.constant 0 : i32
    return %c0_i32, %c0_i32_0 : i32, i32
  }
  func.func @transform_3(%arg0: i32) -> (i32, i32) {
    %c0_i32 = arith.constant 0 : i32
    %c0_i32_0 = arith.constant 0 : i32
    return %arg0, %c0_i32 : i32, i32
  }
}

module attributes {stable_mosaic.version = 11 : i64} {
  func.func @_tail_kernel(%arg0: i32, %arg1: memref<20x2x576xbf16, #tpu.memory_space<vmem>>, %arg2: memref<576x64xbf16, #tpu.memory_space<vmem>>, %arg3: memref<1x64xf32, #tpu.memory_space<vmem>>, %arg4: memref<20x64x512xbf16, #tpu.memory_space<vmem>>, %arg5: memref<1x512xf32, #tpu.memory_space<vmem>>, %arg6: memref<512x2xbf16, #tpu.memory_space<vmem>>, %arg7: memref<1x2xf32, #tpu.memory_space<vmem>>, %arg8: memref<2x2xf32, #tpu.memory_space<vmem>>) attributes {dimension_semantics = [#tpu.dimension_semantics<arbitrary>], iteration_bounds = array<i64: 1>, scalar_prefetch = 0 : i64, scratch_operands = 0 : i64, tpu.core_type = #tpu.core_type<tc>, window_params = [{pipeline_mode = #tpu.pipeline_mode<synchronous>, transform_indices = @transform_0, window_bounds = array<i64: 20, 2, 576>}, {pipeline_mode = #tpu.pipeline_mode<synchronous>, transform_indices = @transform_1, window_bounds = array<i64: 576, 64>}, {pipeline_mode = #tpu.pipeline_mode<synchronous>, transform_indices = @transform_2, window_bounds = array<i64: 1, 64>}, {pipeline_mode = #tpu.pipeline_mode<synchronous>, transform_indices = @transform_3, window_bounds = array<i64: 20, 64, 512>}, {pipeline_mode = #tpu.pipeline_mode<synchronous>, transform_indices = @transform_4, window_bounds = array<i64: 1, 512>}, {pipeline_mode = #tpu.pipeline_mode<synchronous>, transform_indices = @transform_5, window_bounds = array<i64: 512, 2>}, {pipeline_mode = #tpu.pipeline_mode<synchronous>, transform_indices = @transform_6, window_bounds = array<i64: 1, 2>}, {pipeline_mode = #tpu.pipeline_mode<synchronous>, transform_indices = @transform_7, window_bounds = array<i64: 2, 2>}]} {
    %cst = arith.constant 0.000000e+00 : f32
    %0 = vector.broadcast %cst : f32 to vector<2x512xf32>
    %c0 = arith.constant 0 : index
    %c0_0 = arith.constant 0 : index
    %c0_1 = arith.constant 0 : index
    %1 = vector.load %arg1[%c0, %c0_0, %c0_1] : memref<20x2x576xbf16, #tpu.memory_space<vmem>>, vector<1x2x576xbf16>
    %2 = vector.shape_cast %1 : vector<1x2x576xbf16> to vector<2x576xbf16>
    %c0_2 = arith.constant 0 : index
    %c0_3 = arith.constant 0 : index
    %3 = vector.load %arg2[%c0_2, %c0_3] : memref<576x64xbf16, #tpu.memory_space<vmem>>, vector<576x64xbf16>
    %cst_4 = arith.constant dense<0.000000e+00> : vector<2x64xf32>
    %4 = tpu.matmul %2, %3, %cst_4 {dimension_numbers = #tpu.dot_dimension_numbers<[1], [0], [0], [1], [0, 0, 1, 1], [], []>} : vector<2x576xbf16>, vector<576x64xbf16>, vector<2x64xf32> -> vector<2x64xf32>
    %c0_5 = arith.constant 0 : index
    %c0_6 = arith.constant 0 : index
    %5 = vector.load %arg3[%c0_5, %c0_6] : memref<1x64xf32, #tpu.memory_space<vmem>>, vector<1x64xf32>
    %6 = vector.broadcast %5 : vector<1x64xf32> to vector<2x64xf32>
    %7 = arith.addf %4, %6 : vector<2x64xf32>
    %cst_7 = arith.constant 0.000000e+00 : f32
    %8 = vector.broadcast %cst_7 : f32 to vector<2x64xf32>
    %9 = arith.maximumf %7, %8 : vector<2x64xf32>
    %10 = arith.truncf %9 : vector<2x64xf32> to vector<2x64xbf16>
    %c0_8 = arith.constant 0 : index
    %c0_9 = arith.constant 0 : index
    %c0_10 = arith.constant 0 : index
    %11 = vector.load %arg4[%c0_8, %c0_9, %c0_10] : memref<20x64x512xbf16, #tpu.memory_space<vmem>>, vector<1x64x512xbf16>
    %12 = vector.shape_cast %11 : vector<1x64x512xbf16> to vector<64x512xbf16>
    %cst_11 = arith.constant dense<0.000000e+00> : vector<2x512xf32>
    %13 = tpu.matmul %10, %12, %cst_11 {dimension_numbers = #tpu.dot_dimension_numbers<[1], [0], [0], [1], [0, 0, 1, 1], [], []>} : vector<2x64xbf16>, vector<64x512xbf16>, vector<2x512xf32> -> vector<2x512xf32>
    %14 = arith.addf %0, %13 : vector<2x512xf32>
    %c1 = arith.constant 1 : index
    %c0_12 = arith.constant 0 : index
    %c0_13 = arith.constant 0 : index
    %15 = vector.load %arg1[%c1, %c0_12, %c0_13] : memref<20x2x576xbf16, #tpu.memory_space<vmem>>, vector<1x2x576xbf16>
    %16 = vector.shape_cast %15 : vector<1x2x576xbf16> to vector<2x576xbf16>
    %c0_14 = arith.constant 0 : index
    %c0_15 = arith.constant 0 : index
    %17 = vector.load %arg2[%c0_14, %c0_15] : memref<576x64xbf16, #tpu.memory_space<vmem>>, vector<576x64xbf16>
    %cst_16 = arith.constant dense<0.000000e+00> : vector<2x64xf32>
    %18 = tpu.matmul %16, %17, %cst_16 {dimension_numbers = #tpu.dot_dimension_numbers<[1], [0], [0], [1], [0, 0, 1, 1], [], []>} : vector<2x576xbf16>, vector<576x64xbf16>, vector<2x64xf32> -> vector<2x64xf32>
    %c0_17 = arith.constant 0 : index
    %c0_18 = arith.constant 0 : index
    %19 = vector.load %arg3[%c0_17, %c0_18] : memref<1x64xf32, #tpu.memory_space<vmem>>, vector<1x64xf32>
    %20 = vector.broadcast %19 : vector<1x64xf32> to vector<2x64xf32>
    %21 = arith.addf %18, %20 : vector<2x64xf32>
    %cst_19 = arith.constant 0.000000e+00 : f32
    %22 = vector.broadcast %cst_19 : f32 to vector<2x64xf32>
    %23 = arith.maximumf %21, %22 : vector<2x64xf32>
    %24 = arith.truncf %23 : vector<2x64xf32> to vector<2x64xbf16>
    %c1_20 = arith.constant 1 : index
    %c0_21 = arith.constant 0 : index
    %c0_22 = arith.constant 0 : index
    %25 = vector.load %arg4[%c1_20, %c0_21, %c0_22] : memref<20x64x512xbf16, #tpu.memory_space<vmem>>, vector<1x64x512xbf16>
    %26 = vector.shape_cast %25 : vector<1x64x512xbf16> to vector<64x512xbf16>
    %cst_23 = arith.constant dense<0.000000e+00> : vector<2x512xf32>
    %27 = tpu.matmul %24, %26, %cst_23 {dimension_numbers = #tpu.dot_dimension_numbers<[1], [0], [0], [1], [0, 0, 1, 1], [], []>} : vector<2x64xbf16>, vector<64x512xbf16>, vector<2x512xf32> -> vector<2x512xf32>
    %28 = arith.addf %14, %27 : vector<2x512xf32>
    %c2 = arith.constant 2 : index
    %c0_24 = arith.constant 0 : index
    %c0_25 = arith.constant 0 : index
    %29 = vector.load %arg1[%c2, %c0_24, %c0_25] : memref<20x2x576xbf16, #tpu.memory_space<vmem>>, vector<1x2x576xbf16>
    %30 = vector.shape_cast %29 : vector<1x2x576xbf16> to vector<2x576xbf16>
    %c0_26 = arith.constant 0 : index
    %c0_27 = arith.constant 0 : index
    %31 = vector.load %arg2[%c0_26, %c0_27] : memref<576x64xbf16, #tpu.memory_space<vmem>>, vector<576x64xbf16>
    %cst_28 = arith.constant dense<0.000000e+00> : vector<2x64xf32>
    %32 = tpu.matmul %30, %31, %cst_28 {dimension_numbers = #tpu.dot_dimension_numbers<[1], [0], [0], [1], [0, 0, 1, 1], [], []>} : vector<2x576xbf16>, vector<576x64xbf16>, vector<2x64xf32> -> vector<2x64xf32>
    %c0_29 = arith.constant 0 : index
    %c0_30 = arith.constant 0 : index
    %33 = vector.load %arg3[%c0_29, %c0_30] : memref<1x64xf32, #tpu.memory_space<vmem>>, vector<1x64xf32>
    %34 = vector.broadcast %33 : vector<1x64xf32> to vector<2x64xf32>
    %35 = arith.addf %32, %34 : vector<2x64xf32>
    %cst_31 = arith.constant 0.000000e+00 : f32
    %36 = vector.broadcast %cst_31 : f32 to vector<2x64xf32>
    %37 = arith.maximumf %35, %36 : vector<2x64xf32>
    %38 = arith.truncf %37 : vector<2x64xf32> to vector<2x64xbf16>
    %c2_32 = arith.constant 2 : index
    %c0_33 = arith.constant 0 : index
    %c0_34 = arith.constant 0 : index
    %39 = vector.load %arg4[%c2_32, %c0_33, %c0_34] : memref<20x64x512xbf16, #tpu.memory_space<vmem>>, vector<1x64x512xbf16>
    %40 = vector.shape_cast %39 : vector<1x64x512xbf16> to vector<64x512xbf16>
    %cst_35 = arith.constant dense<0.000000e+00> : vector<2x512xf32>
    %41 = tpu.matmul %38, %40, %cst_35 {dimension_numbers = #tpu.dot_dimension_numbers<[1], [0], [0], [1], [0, 0, 1, 1], [], []>} : vector<2x64xbf16>, vector<64x512xbf16>, vector<2x512xf32> -> vector<2x512xf32>
    %42 = arith.addf %28, %41 : vector<2x512xf32>
    %c3 = arith.constant 3 : index
    %c0_36 = arith.constant 0 : index
    %c0_37 = arith.constant 0 : index
    %43 = vector.load %arg1[%c3, %c0_36, %c0_37] : memref<20x2x576xbf16, #tpu.memory_space<vmem>>, vector<1x2x576xbf16>
    %44 = vector.shape_cast %43 : vector<1x2x576xbf16> to vector<2x576xbf16>
    %c0_38 = arith.constant 0 : index
    %c0_39 = arith.constant 0 : index
    %45 = vector.load %arg2[%c0_38, %c0_39] : memref<576x64xbf16, #tpu.memory_space<vmem>>, vector<576x64xbf16>
    %cst_40 = arith.constant dense<0.000000e+00> : vector<2x64xf32>
    %46 = tpu.matmul %44, %45, %cst_40 {dimension_numbers = #tpu.dot_dimension_numbers<[1], [0], [0], [1], [0, 0, 1, 1], [], []>} : vector<2x576xbf16>, vector<576x64xbf16>, vector<2x64xf32> -> vector<2x64xf32>
    %c0_41 = arith.constant 0 : index
    %c0_42 = arith.constant 0 : index
    %47 = vector.load %arg3[%c0_41, %c0_42] : memref<1x64xf32, #tpu.memory_space<vmem>>, vector<1x64xf32>
    %48 = vector.broadcast %47 : vector<1x64xf32> to vector<2x64xf32>
    %49 = arith.addf %46, %48 : vector<2x64xf32>
    %cst_43 = arith.constant 0.000000e+00 : f32
    %50 = vector.broadcast %cst_43 : f32 to vector<2x64xf32>
    %51 = arith.maximumf %49, %50 : vector<2x64xf32>
    %52 = arith.truncf %51 : vector<2x64xf32> to vector<2x64xbf16>
    %c3_44 = arith.constant 3 : index
    %c0_45 = arith.constant 0 : index
    %c0_46 = arith.constant 0 : index
    %53 = vector.load %arg4[%c3_44, %c0_45, %c0_46] : memref<20x64x512xbf16, #tpu.memory_space<vmem>>, vector<1x64x512xbf16>
    %54 = vector.shape_cast %53 : vector<1x64x512xbf16> to vector<64x512xbf16>
    %cst_47 = arith.constant dense<0.000000e+00> : vector<2x512xf32>
    %55 = tpu.matmul %52, %54, %cst_47 {dimension_numbers = #tpu.dot_dimension_numbers<[1], [0], [0], [1], [0, 0, 1, 1], [], []>} : vector<2x64xbf16>, vector<64x512xbf16>, vector<2x512xf32> -> vector<2x512xf32>
    %56 = arith.addf %42, %55 : vector<2x512xf32>
    %c4 = arith.constant 4 : index
    %c0_48 = arith.constant 0 : index
    %c0_49 = arith.constant 0 : index
    %57 = vector.load %arg1[%c4, %c0_48, %c0_49] : memref<20x2x576xbf16, #tpu.memory_space<vmem>>, vector<1x2x576xbf16>
    %58 = vector.shape_cast %57 : vector<1x2x576xbf16> to vector<2x576xbf16>
    %c0_50 = arith.constant 0 : index
    %c0_51 = arith.constant 0 : index
    %59 = vector.load %arg2[%c0_50, %c0_51] : memref<576x64xbf16, #tpu.memory_space<vmem>>, vector<576x64xbf16>
    %cst_52 = arith.constant dense<0.000000e+00> : vector<2x64xf32>
    %60 = tpu.matmul %58, %59, %cst_52 {dimension_numbers = #tpu.dot_dimension_numbers<[1], [0], [0], [1], [0, 0, 1, 1], [], []>} : vector<2x576xbf16>, vector<576x64xbf16>, vector<2x64xf32> -> vector<2x64xf32>
    %c0_53 = arith.constant 0 : index
    %c0_54 = arith.constant 0 : index
    %61 = vector.load %arg3[%c0_53, %c0_54] : memref<1x64xf32, #tpu.memory_space<vmem>>, vector<1x64xf32>
    %62 = vector.broadcast %61 : vector<1x64xf32> to vector<2x64xf32>
    %63 = arith.addf %60, %62 : vector<2x64xf32>
    %cst_55 = arith.constant 0.000000e+00 : f32
    %64 = vector.broadcast %cst_55 : f32 to vector<2x64xf32>
    %65 = arith.maximumf %63, %64 : vector<2x64xf32>
    %66 = arith.truncf %65 : vector<2x64xf32> to vector<2x64xbf16>
    %c4_56 = arith.constant 4 : index
    %c0_57 = arith.constant 0 : index
    %c0_58 = arith.constant 0 : index
    %67 = vector.load %arg4[%c4_56, %c0_57, %c0_58] : memref<20x64x512xbf16, #tpu.memory_space<vmem>>, vector<1x64x512xbf16>
    %68 = vector.shape_cast %67 : vector<1x64x512xbf16> to vector<64x512xbf16>
    %cst_59 = arith.constant dense<0.000000e+00> : vector<2x512xf32>
    %69 = tpu.matmul %66, %68, %cst_59 {dimension_numbers = #tpu.dot_dimension_numbers<[1], [0], [0], [1], [0, 0, 1, 1], [], []>} : vector<2x64xbf16>, vector<64x512xbf16>, vector<2x512xf32> -> vector<2x512xf32>
    %70 = arith.addf %56, %69 : vector<2x512xf32>
    %c5 = arith.constant 5 : index
    %c0_60 = arith.constant 0 : index
    %c0_61 = arith.constant 0 : index
    %71 = vector.load %arg1[%c5, %c0_60, %c0_61] : memref<20x2x576xbf16, #tpu.memory_space<vmem>>, vector<1x2x576xbf16>
    %72 = vector.shape_cast %71 : vector<1x2x576xbf16> to vector<2x576xbf16>
    %c0_62 = arith.constant 0 : index
    %c0_63 = arith.constant 0 : index
    %73 = vector.load %arg2[%c0_62, %c0_63] : memref<576x64xbf16, #tpu.memory_space<vmem>>, vector<576x64xbf16>
    %cst_64 = arith.constant dense<0.000000e+00> : vector<2x64xf32>
    %74 = tpu.matmul %72, %73, %cst_64 {dimension_numbers = #tpu.dot_dimension_numbers<[1], [0], [0], [1], [0, 0, 1, 1], [], []>} : vector<2x576xbf16>, vector<576x64xbf16>, vector<2x64xf32> -> vector<2x64xf32>
    %c0_65 = arith.constant 0 : index
    %c0_66 = arith.constant 0 : index
    %75 = vector.load %arg3[%c0_65, %c0_66] : memref<1x64xf32, #tpu.memory_space<vmem>>, vector<1x64xf32>
    %76 = vector.broadcast %75 : vector<1x64xf32> to vector<2x64xf32>
    %77 = arith.addf %74, %76 : vector<2x64xf32>
    %cst_67 = arith.constant 0.000000e+00 : f32
    %78 = vector.broadcast %cst_67 : f32 to vector<2x64xf32>
    %79 = arith.maximumf %77, %78 : vector<2x64xf32>
    %80 = arith.truncf %79 : vector<2x64xf32> to vector<2x64xbf16>
    %c5_68 = arith.constant 5 : index
    %c0_69 = arith.constant 0 : index
    %c0_70 = arith.constant 0 : index
    %81 = vector.load %arg4[%c5_68, %c0_69, %c0_70] : memref<20x64x512xbf16, #tpu.memory_space<vmem>>, vector<1x64x512xbf16>
    %82 = vector.shape_cast %81 : vector<1x64x512xbf16> to vector<64x512xbf16>
    %cst_71 = arith.constant dense<0.000000e+00> : vector<2x512xf32>
    %83 = tpu.matmul %80, %82, %cst_71 {dimension_numbers = #tpu.dot_dimension_numbers<[1], [0], [0], [1], [0, 0, 1, 1], [], []>} : vector<2x64xbf16>, vector<64x512xbf16>, vector<2x512xf32> -> vector<2x512xf32>
    %84 = arith.addf %70, %83 : vector<2x512xf32>
    %c6 = arith.constant 6 : index
    %c0_72 = arith.constant 0 : index
    %c0_73 = arith.constant 0 : index
    %85 = vector.load %arg1[%c6, %c0_72, %c0_73] : memref<20x2x576xbf16, #tpu.memory_space<vmem>>, vector<1x2x576xbf16>
    %86 = vector.shape_cast %85 : vector<1x2x576xbf16> to vector<2x576xbf16>
    %c0_74 = arith.constant 0 : index
    %c0_75 = arith.constant 0 : index
    %87 = vector.load %arg2[%c0_74, %c0_75] : memref<576x64xbf16, #tpu.memory_space<vmem>>, vector<576x64xbf16>
    %cst_76 = arith.constant dense<0.000000e+00> : vector<2x64xf32>
    %88 = tpu.matmul %86, %87, %cst_76 {dimension_numbers = #tpu.dot_dimension_numbers<[1], [0], [0], [1], [0, 0, 1, 1], [], []>} : vector<2x576xbf16>, vector<576x64xbf16>, vector<2x64xf32> -> vector<2x64xf32>
    %c0_77 = arith.constant 0 : index
    %c0_78 = arith.constant 0 : index
    %89 = vector.load %arg3[%c0_77, %c0_78] : memref<1x64xf32, #tpu.memory_space<vmem>>, vector<1x64xf32>
    %90 = vector.broadcast %89 : vector<1x64xf32> to vector<2x64xf32>
    %91 = arith.addf %88, %90 : vector<2x64xf32>
    %cst_79 = arith.constant 0.000000e+00 : f32
    %92 = vector.broadcast %cst_79 : f32 to vector<2x64xf32>
    %93 = arith.maximumf %91, %92 : vector<2x64xf32>
    %94 = arith.truncf %93 : vector<2x64xf32> to vector<2x64xbf16>
    %c6_80 = arith.constant 6 : index
    %c0_81 = arith.constant 0 : index
    %c0_82 = arith.constant 0 : index
    %95 = vector.load %arg4[%c6_80, %c0_81, %c0_82] : memref<20x64x512xbf16, #tpu.memory_space<vmem>>, vector<1x64x512xbf16>
    %96 = vector.shape_cast %95 : vector<1x64x512xbf16> to vector<64x512xbf16>
    %cst_83 = arith.constant dense<0.000000e+00> : vector<2x512xf32>
    %97 = tpu.matmul %94, %96, %cst_83 {dimension_numbers = #tpu.dot_dimension_numbers<[1], [0], [0], [1], [0, 0, 1, 1], [], []>} : vector<2x64xbf16>, vector<64x512xbf16>, vector<2x512xf32> -> vector<2x512xf32>
    %98 = arith.addf %84, %97 : vector<2x512xf32>
    %c7 = arith.constant 7 : index
    %c0_84 = arith.constant 0 : index
    %c0_85 = arith.constant 0 : index
    %99 = vector.load %arg1[%c7, %c0_84, %c0_85] : memref<20x2x576xbf16, #tpu.memory_space<vmem>>, vector<1x2x576xbf16>
    %100 = vector.shape_cast %99 : vector<1x2x576xbf16> to vector<2x576xbf16>
    %c0_86 = arith.constant 0 : index
    %c0_87 = arith.constant 0 : index
    %101 = vector.load %arg2[%c0_86, %c0_87] : memref<576x64xbf16, #tpu.memory_space<vmem>>, vector<576x64xbf16>
    %cst_88 = arith.constant dense<0.000000e+00> : vector<2x64xf32>
    %102 = tpu.matmul %100, %101, %cst_88 {dimension_numbers = #tpu.dot_dimension_numbers<[1], [0], [0], [1], [0, 0, 1, 1], [], []>} : vector<2x576xbf16>, vector<576x64xbf16>, vector<2x64xf32> -> vector<2x64xf32>
    %c0_89 = arith.constant 0 : index
    %c0_90 = arith.constant 0 : index
    %103 = vector.load %arg3[%c0_89, %c0_90] : memref<1x64xf32, #tpu.memory_space<vmem>>, vector<1x64xf32>
    %104 = vector.broadcast %103 : vector<1x64xf32> to vector<2x64xf32>
    %105 = arith.addf %102, %104 : vector<2x64xf32>
    %cst_91 = arith.constant 0.000000e+00 : f32
    %106 = vector.broadcast %cst_91 : f32 to vector<2x64xf32>
    %107 = arith.maximumf %105, %106 : vector<2x64xf32>
    %108 = arith.truncf %107 : vector<2x64xf32> to vector<2x64xbf16>
    %c7_92 = arith.constant 7 : index
    %c0_93 = arith.constant 0 : index
    %c0_94 = arith.constant 0 : index
    %109 = vector.load %arg4[%c7_92, %c0_93, %c0_94] : memref<20x64x512xbf16, #tpu.memory_space<vmem>>, vector<1x64x512xbf16>
    %110 = vector.shape_cast %109 : vector<1x64x512xbf16> to vector<64x512xbf16>
    %cst_95 = arith.constant dense<0.000000e+00> : vector<2x512xf32>
    %111 = tpu.matmul %108, %110, %cst_95 {dimension_numbers = #tpu.dot_dimension_numbers<[1], [0], [0], [1], [0, 0, 1, 1], [], []>} : vector<2x64xbf16>, vector<64x512xbf16>, vector<2x512xf32> -> vector<2x512xf32>
    %112 = arith.addf %98, %111 : vector<2x512xf32>
    %c8 = arith.constant 8 : index
    %c0_96 = arith.constant 0 : index
    %c0_97 = arith.constant 0 : index
    %113 = vector.load %arg1[%c8, %c0_96, %c0_97] : memref<20x2x576xbf16, #tpu.memory_space<vmem>>, vector<1x2x576xbf16>
    %114 = vector.shape_cast %113 : vector<1x2x576xbf16> to vector<2x576xbf16>
    %c0_98 = arith.constant 0 : index
    %c0_99 = arith.constant 0 : index
    %115 = vector.load %arg2[%c0_98, %c0_99] : memref<576x64xbf16, #tpu.memory_space<vmem>>, vector<576x64xbf16>
    %cst_100 = arith.constant dense<0.000000e+00> : vector<2x64xf32>
    %116 = tpu.matmul %114, %115, %cst_100 {dimension_numbers = #tpu.dot_dimension_numbers<[1], [0], [0], [1], [0, 0, 1, 1], [], []>} : vector<2x576xbf16>, vector<576x64xbf16>, vector<2x64xf32> -> vector<2x64xf32>
    %c0_101 = arith.constant 0 : index
    %c0_102 = arith.constant 0 : index
    %117 = vector.load %arg3[%c0_101, %c0_102] : memref<1x64xf32, #tpu.memory_space<vmem>>, vector<1x64xf32>
    %118 = vector.broadcast %117 : vector<1x64xf32> to vector<2x64xf32>
    %119 = arith.addf %116, %118 : vector<2x64xf32>
    %cst_103 = arith.constant 0.000000e+00 : f32
    %120 = vector.broadcast %cst_103 : f32 to vector<2x64xf32>
    %121 = arith.maximumf %119, %120 : vector<2x64xf32>
    %122 = arith.truncf %121 : vector<2x64xf32> to vector<2x64xbf16>
    %c8_104 = arith.constant 8 : index
    %c0_105 = arith.constant 0 : index
    %c0_106 = arith.constant 0 : index
    %123 = vector.load %arg4[%c8_104, %c0_105, %c0_106] : memref<20x64x512xbf16, #tpu.memory_space<vmem>>, vector<1x64x512xbf16>
    %124 = vector.shape_cast %123 : vector<1x64x512xbf16> to vector<64x512xbf16>
    %cst_107 = arith.constant dense<0.000000e+00> : vector<2x512xf32>
    %125 = tpu.matmul %122, %124, %cst_107 {dimension_numbers = #tpu.dot_dimension_numbers<[1], [0], [0], [1], [0, 0, 1, 1], [], []>} : vector<2x64xbf16>, vector<64x512xbf16>, vector<2x512xf32> -> vector<2x512xf32>
    %126 = arith.addf %112, %125 : vector<2x512xf32>
    %c9 = arith.constant 9 : index
    %c0_108 = arith.constant 0 : index
    %c0_109 = arith.constant 0 : index
    %127 = vector.load %arg1[%c9, %c0_108, %c0_109] : memref<20x2x576xbf16, #tpu.memory_space<vmem>>, vector<1x2x576xbf16>
    %128 = vector.shape_cast %127 : vector<1x2x576xbf16> to vector<2x576xbf16>
    %c0_110 = arith.constant 0 : index
    %c0_111 = arith.constant 0 : index
    %129 = vector.load %arg2[%c0_110, %c0_111] : memref<576x64xbf16, #tpu.memory_space<vmem>>, vector<576x64xbf16>
    %cst_112 = arith.constant dense<0.000000e+00> : vector<2x64xf32>
    %130 = tpu.matmul %128, %129, %cst_112 {dimension_numbers = #tpu.dot_dimension_numbers<[1], [0], [0], [1], [0, 0, 1, 1], [], []>} : vector<2x576xbf16>, vector<576x64xbf16>, vector<2x64xf32> -> vector<2x64xf32>
    %c0_113 = arith.constant 0 : index
    %c0_114 = arith.constant 0 : index
    %131 = vector.load %arg3[%c0_113, %c0_114] : memref<1x64xf32, #tpu.memory_space<vmem>>, vector<1x64xf32>
    %132 = vector.broadcast %131 : vector<1x64xf32> to vector<2x64xf32>
    %133 = arith.addf %130, %132 : vector<2x64xf32>
    %cst_115 = arith.constant 0.000000e+00 : f32
    %134 = vector.broadcast %cst_115 : f32 to vector<2x64xf32>
    %135 = arith.maximumf %133, %134 : vector<2x64xf32>
    %136 = arith.truncf %135 : vector<2x64xf32> to vector<2x64xbf16>
    %c9_116 = arith.constant 9 : index
    %c0_117 = arith.constant 0 : index
    %c0_118 = arith.constant 0 : index
    %137 = vector.load %arg4[%c9_116, %c0_117, %c0_118] : memref<20x64x512xbf16, #tpu.memory_space<vmem>>, vector<1x64x512xbf16>
    %138 = vector.shape_cast %137 : vector<1x64x512xbf16> to vector<64x512xbf16>
    %cst_119 = arith.constant dense<0.000000e+00> : vector<2x512xf32>
    %139 = tpu.matmul %136, %138, %cst_119 {dimension_numbers = #tpu.dot_dimension_numbers<[1], [0], [0], [1], [0, 0, 1, 1], [], []>} : vector<2x64xbf16>, vector<64x512xbf16>, vector<2x512xf32> -> vector<2x512xf32>
    %140 = arith.addf %126, %139 : vector<2x512xf32>
    %c10 = arith.constant 10 : index
    %c0_120 = arith.constant 0 : index
    %c0_121 = arith.constant 0 : index
    %141 = vector.load %arg1[%c10, %c0_120, %c0_121] : memref<20x2x576xbf16, #tpu.memory_space<vmem>>, vector<1x2x576xbf16>
    %142 = vector.shape_cast %141 : vector<1x2x576xbf16> to vector<2x576xbf16>
    %c0_122 = arith.constant 0 : index
    %c0_123 = arith.constant 0 : index
    %143 = vector.load %arg2[%c0_122, %c0_123] : memref<576x64xbf16, #tpu.memory_space<vmem>>, vector<576x64xbf16>
    %cst_124 = arith.constant dense<0.000000e+00> : vector<2x64xf32>
    %144 = tpu.matmul %142, %143, %cst_124 {dimension_numbers = #tpu.dot_dimension_numbers<[1], [0], [0], [1], [0, 0, 1, 1], [], []>} : vector<2x576xbf16>, vector<576x64xbf16>, vector<2x64xf32> -> vector<2x64xf32>
    %c0_125 = arith.constant 0 : index
    %c0_126 = arith.constant 0 : index
    %145 = vector.load %arg3[%c0_125, %c0_126] : memref<1x64xf32, #tpu.memory_space<vmem>>, vector<1x64xf32>
    %146 = vector.broadcast %145 : vector<1x64xf32> to vector<2x64xf32>
    %147 = arith.addf %144, %146 : vector<2x64xf32>
    %cst_127 = arith.constant 0.000000e+00 : f32
    %148 = vector.broadcast %cst_127 : f32 to vector<2x64xf32>
    %149 = arith.maximumf %147, %148 : vector<2x64xf32>
    %150 = arith.truncf %149 : vector<2x64xf32> to vector<2x64xbf16>
    %c10_128 = arith.constant 10 : index
    %c0_129 = arith.constant 0 : index
    %c0_130 = arith.constant 0 : index
    %151 = vector.load %arg4[%c10_128, %c0_129, %c0_130] : memref<20x64x512xbf16, #tpu.memory_space<vmem>>, vector<1x64x512xbf16>
    %152 = vector.shape_cast %151 : vector<1x64x512xbf16> to vector<64x512xbf16>
    %cst_131 = arith.constant dense<0.000000e+00> : vector<2x512xf32>
    %153 = tpu.matmul %150, %152, %cst_131 {dimension_numbers = #tpu.dot_dimension_numbers<[1], [0], [0], [1], [0, 0, 1, 1], [], []>} : vector<2x64xbf16>, vector<64x512xbf16>, vector<2x512xf32> -> vector<2x512xf32>
    %154 = arith.addf %140, %153 : vector<2x512xf32>
    %c11 = arith.constant 11 : index
    %c0_132 = arith.constant 0 : index
    %c0_133 = arith.constant 0 : index
    %155 = vector.load %arg1[%c11, %c0_132, %c0_133] : memref<20x2x576xbf16, #tpu.memory_space<vmem>>, vector<1x2x576xbf16>
    %156 = vector.shape_cast %155 : vector<1x2x576xbf16> to vector<2x576xbf16>
    %c0_134 = arith.constant 0 : index
    %c0_135 = arith.constant 0 : index
    %157 = vector.load %arg2[%c0_134, %c0_135] : memref<576x64xbf16, #tpu.memory_space<vmem>>, vector<576x64xbf16>
    %cst_136 = arith.constant dense<0.000000e+00> : vector<2x64xf32>
    %158 = tpu.matmul %156, %157, %cst_136 {dimension_numbers = #tpu.dot_dimension_numbers<[1], [0], [0], [1], [0, 0, 1, 1], [], []>} : vector<2x576xbf16>, vector<576x64xbf16>, vector<2x64xf32> -> vector<2x64xf32>
    %c0_137 = arith.constant 0 : index
    %c0_138 = arith.constant 0 : index
    %159 = vector.load %arg3[%c0_137, %c0_138] : memref<1x64xf32, #tpu.memory_space<vmem>>, vector<1x64xf32>
    %160 = vector.broadcast %159 : vector<1x64xf32> to vector<2x64xf32>
    %161 = arith.addf %158, %160 : vector<2x64xf32>
    %cst_139 = arith.constant 0.000000e+00 : f32
    %162 = vector.broadcast %cst_139 : f32 to vector<2x64xf32>
    %163 = arith.maximumf %161, %162 : vector<2x64xf32>
    %164 = arith.truncf %163 : vector<2x64xf32> to vector<2x64xbf16>
    %c11_140 = arith.constant 11 : index
    %c0_141 = arith.constant 0 : index
    %c0_142 = arith.constant 0 : index
    %165 = vector.load %arg4[%c11_140, %c0_141, %c0_142] : memref<20x64x512xbf16, #tpu.memory_space<vmem>>, vector<1x64x512xbf16>
    %166 = vector.shape_cast %165 : vector<1x64x512xbf16> to vector<64x512xbf16>
    %cst_143 = arith.constant dense<0.000000e+00> : vector<2x512xf32>
    %167 = tpu.matmul %164, %166, %cst_143 {dimension_numbers = #tpu.dot_dimension_numbers<[1], [0], [0], [1], [0, 0, 1, 1], [], []>} : vector<2x64xbf16>, vector<64x512xbf16>, vector<2x512xf32> -> vector<2x512xf32>
    %168 = arith.addf %154, %167 : vector<2x512xf32>
    %c12 = arith.constant 12 : index
    %c0_144 = arith.constant 0 : index
    %c0_145 = arith.constant 0 : index
    %169 = vector.load %arg1[%c12, %c0_144, %c0_145] : memref<20x2x576xbf16, #tpu.memory_space<vmem>>, vector<1x2x576xbf16>
    %170 = vector.shape_cast %169 : vector<1x2x576xbf16> to vector<2x576xbf16>
    %c0_146 = arith.constant 0 : index
    %c0_147 = arith.constant 0 : index
    %171 = vector.load %arg2[%c0_146, %c0_147] : memref<576x64xbf16, #tpu.memory_space<vmem>>, vector<576x64xbf16>
    %cst_148 = arith.constant dense<0.000000e+00> : vector<2x64xf32>
    %172 = tpu.matmul %170, %171, %cst_148 {dimension_numbers = #tpu.dot_dimension_numbers<[1], [0], [0], [1], [0, 0, 1, 1], [], []>} : vector<2x576xbf16>, vector<576x64xbf16>, vector<2x64xf32> -> vector<2x64xf32>
    %c0_149 = arith.constant 0 : index
    %c0_150 = arith.constant 0 : index
    %173 = vector.load %arg3[%c0_149, %c0_150] : memref<1x64xf32, #tpu.memory_space<vmem>>, vector<1x64xf32>
    %174 = vector.broadcast %173 : vector<1x64xf32> to vector<2x64xf32>
    %175 = arith.addf %172, %174 : vector<2x64xf32>
    %cst_151 = arith.constant 0.000000e+00 : f32
    %176 = vector.broadcast %cst_151 : f32 to vector<2x64xf32>
    %177 = arith.maximumf %175, %176 : vector<2x64xf32>
    %178 = arith.truncf %177 : vector<2x64xf32> to vector<2x64xbf16>
    %c12_152 = arith.constant 12 : index
    %c0_153 = arith.constant 0 : index
    %c0_154 = arith.constant 0 : index
    %179 = vector.load %arg4[%c12_152, %c0_153, %c0_154] : memref<20x64x512xbf16, #tpu.memory_space<vmem>>, vector<1x64x512xbf16>
    %180 = vector.shape_cast %179 : vector<1x64x512xbf16> to vector<64x512xbf16>
    %cst_155 = arith.constant dense<0.000000e+00> : vector<2x512xf32>
    %181 = tpu.matmul %178, %180, %cst_155 {dimension_numbers = #tpu.dot_dimension_numbers<[1], [0], [0], [1], [0, 0, 1, 1], [], []>} : vector<2x64xbf16>, vector<64x512xbf16>, vector<2x512xf32> -> vector<2x512xf32>
    %182 = arith.addf %168, %181 : vector<2x512xf32>
    %c13 = arith.constant 13 : index
    %c0_156 = arith.constant 0 : index
    %c0_157 = arith.constant 0 : index
    %183 = vector.load %arg1[%c13, %c0_156, %c0_157] : memref<20x2x576xbf16, #tpu.memory_space<vmem>>, vector<1x2x576xbf16>
    %184 = vector.shape_cast %183 : vector<1x2x576xbf16> to vector<2x576xbf16>
    %c0_158 = arith.constant 0 : index
    %c0_159 = arith.constant 0 : index
    %185 = vector.load %arg2[%c0_158, %c0_159] : memref<576x64xbf16, #tpu.memory_space<vmem>>, vector<576x64xbf16>
    %cst_160 = arith.constant dense<0.000000e+00> : vector<2x64xf32>
    %186 = tpu.matmul %184, %185, %cst_160 {dimension_numbers = #tpu.dot_dimension_numbers<[1], [0], [0], [1], [0, 0, 1, 1], [], []>} : vector<2x576xbf16>, vector<576x64xbf16>, vector<2x64xf32> -> vector<2x64xf32>
    %c0_161 = arith.constant 0 : index
    %c0_162 = arith.constant 0 : index
    %187 = vector.load %arg3[%c0_161, %c0_162] : memref<1x64xf32, #tpu.memory_space<vmem>>, vector<1x64xf32>
    %188 = vector.broadcast %187 : vector<1x64xf32> to vector<2x64xf32>
    %189 = arith.addf %186, %188 : vector<2x64xf32>
    %cst_163 = arith.constant 0.000000e+00 : f32
    %190 = vector.broadcast %cst_163 : f32 to vector<2x64xf32>
    %191 = arith.maximumf %189, %190 : vector<2x64xf32>
    %192 = arith.truncf %191 : vector<2x64xf32> to vector<2x64xbf16>
    %c13_164 = arith.constant 13 : index
    %c0_165 = arith.constant 0 : index
    %c0_166 = arith.constant 0 : index
    %193 = vector.load %arg4[%c13_164, %c0_165, %c0_166] : memref<20x64x512xbf16, #tpu.memory_space<vmem>>, vector<1x64x512xbf16>
    %194 = vector.shape_cast %193 : vector<1x64x512xbf16> to vector<64x512xbf16>
    %cst_167 = arith.constant dense<0.000000e+00> : vector<2x512xf32>
    %195 = tpu.matmul %192, %194, %cst_167 {dimension_numbers = #tpu.dot_dimension_numbers<[1], [0], [0], [1], [0, 0, 1, 1], [], []>} : vector<2x64xbf16>, vector<64x512xbf16>, vector<2x512xf32> -> vector<2x512xf32>
    %196 = arith.addf %182, %195 : vector<2x512xf32>
    %c14 = arith.constant 14 : index
    %c0_168 = arith.constant 0 : index
    %c0_169 = arith.constant 0 : index
    %197 = vector.load %arg1[%c14, %c0_168, %c0_169] : memref<20x2x576xbf16, #tpu.memory_space<vmem>>, vector<1x2x576xbf16>
    %198 = vector.shape_cast %197 : vector<1x2x576xbf16> to vector<2x576xbf16>
    %c0_170 = arith.constant 0 : index
    %c0_171 = arith.constant 0 : index
    %199 = vector.load %arg2[%c0_170, %c0_171] : memref<576x64xbf16, #tpu.memory_space<vmem>>, vector<576x64xbf16>
    %cst_172 = arith.constant dense<0.000000e+00> : vector<2x64xf32>
    %200 = tpu.matmul %198, %199, %cst_172 {dimension_numbers = #tpu.dot_dimension_numbers<[1], [0], [0], [1], [0, 0, 1, 1], [], []>} : vector<2x576xbf16>, vector<576x64xbf16>, vector<2x64xf32> -> vector<2x64xf32>
    %c0_173 = arith.constant 0 : index
    %c0_174 = arith.constant 0 : index
    %201 = vector.load %arg3[%c0_173, %c0_174] : memref<1x64xf32, #tpu.memory_space<vmem>>, vector<1x64xf32>
    %202 = vector.broadcast %201 : vector<1x64xf32> to vector<2x64xf32>
    %203 = arith.addf %200, %202 : vector<2x64xf32>
    %cst_175 = arith.constant 0.000000e+00 : f32
    %204 = vector.broadcast %cst_175 : f32 to vector<2x64xf32>
    %205 = arith.maximumf %203, %204 : vector<2x64xf32>
    %206 = arith.truncf %205 : vector<2x64xf32> to vector<2x64xbf16>
    %c14_176 = arith.constant 14 : index
    %c0_177 = arith.constant 0 : index
    %c0_178 = arith.constant 0 : index
    %207 = vector.load %arg4[%c14_176, %c0_177, %c0_178] : memref<20x64x512xbf16, #tpu.memory_space<vmem>>, vector<1x64x512xbf16>
    %208 = vector.shape_cast %207 : vector<1x64x512xbf16> to vector<64x512xbf16>
    %cst_179 = arith.constant dense<0.000000e+00> : vector<2x512xf32>
    %209 = tpu.matmul %206, %208, %cst_179 {dimension_numbers = #tpu.dot_dimension_numbers<[1], [0], [0], [1], [0, 0, 1, 1], [], []>} : vector<2x64xbf16>, vector<64x512xbf16>, vector<2x512xf32> -> vector<2x512xf32>
    %210 = arith.addf %196, %209 : vector<2x512xf32>
    %c15 = arith.constant 15 : index
    %c0_180 = arith.constant 0 : index
    %c0_181 = arith.constant 0 : index
    %211 = vector.load %arg1[%c15, %c0_180, %c0_181] : memref<20x2x576xbf16, #tpu.memory_space<vmem>>, vector<1x2x576xbf16>
    %212 = vector.shape_cast %211 : vector<1x2x576xbf16> to vector<2x576xbf16>
    %c0_182 = arith.constant 0 : index
    %c0_183 = arith.constant 0 : index
    %213 = vector.load %arg2[%c0_182, %c0_183] : memref<576x64xbf16, #tpu.memory_space<vmem>>, vector<576x64xbf16>
    %cst_184 = arith.constant dense<0.000000e+00> : vector<2x64xf32>
    %214 = tpu.matmul %212, %213, %cst_184 {dimension_numbers = #tpu.dot_dimension_numbers<[1], [0], [0], [1], [0, 0, 1, 1], [], []>} : vector<2x576xbf16>, vector<576x64xbf16>, vector<2x64xf32> -> vector<2x64xf32>
    %c0_185 = arith.constant 0 : index
    %c0_186 = arith.constant 0 : index
    %215 = vector.load %arg3[%c0_185, %c0_186] : memref<1x64xf32, #tpu.memory_space<vmem>>, vector<1x64xf32>
    %216 = vector.broadcast %215 : vector<1x64xf32> to vector<2x64xf32>
    %217 = arith.addf %214, %216 : vector<2x64xf32>
    %cst_187 = arith.constant 0.000000e+00 : f32
    %218 = vector.broadcast %cst_187 : f32 to vector<2x64xf32>
    %219 = arith.maximumf %217, %218 : vector<2x64xf32>
    %220 = arith.truncf %219 : vector<2x64xf32> to vector<2x64xbf16>
    %c15_188 = arith.constant 15 : index
    %c0_189 = arith.constant 0 : index
    %c0_190 = arith.constant 0 : index
    %221 = vector.load %arg4[%c15_188, %c0_189, %c0_190] : memref<20x64x512xbf16, #tpu.memory_space<vmem>>, vector<1x64x512xbf16>
    %222 = vector.shape_cast %221 : vector<1x64x512xbf16> to vector<64x512xbf16>
    %cst_191 = arith.constant dense<0.000000e+00> : vector<2x512xf32>
    %223 = tpu.matmul %220, %222, %cst_191 {dimension_numbers = #tpu.dot_dimension_numbers<[1], [0], [0], [1], [0, 0, 1, 1], [], []>} : vector<2x64xbf16>, vector<64x512xbf16>, vector<2x512xf32> -> vector<2x512xf32>
    %224 = arith.addf %210, %223 : vector<2x512xf32>
    %c16 = arith.constant 16 : index
    %c0_192 = arith.constant 0 : index
    %c0_193 = arith.constant 0 : index
    %225 = vector.load %arg1[%c16, %c0_192, %c0_193] : memref<20x2x576xbf16, #tpu.memory_space<vmem>>, vector<1x2x576xbf16>
    %226 = vector.shape_cast %225 : vector<1x2x576xbf16> to vector<2x576xbf16>
    %c0_194 = arith.constant 0 : index
    %c0_195 = arith.constant 0 : index
    %227 = vector.load %arg2[%c0_194, %c0_195] : memref<576x64xbf16, #tpu.memory_space<vmem>>, vector<576x64xbf16>
    %cst_196 = arith.constant dense<0.000000e+00> : vector<2x64xf32>
    %228 = tpu.matmul %226, %227, %cst_196 {dimension_numbers = #tpu.dot_dimension_numbers<[1], [0], [0], [1], [0, 0, 1, 1], [], []>} : vector<2x576xbf16>, vector<576x64xbf16>, vector<2x64xf32> -> vector<2x64xf32>
    %c0_197 = arith.constant 0 : index
    %c0_198 = arith.constant 0 : index
    %229 = vector.load %arg3[%c0_197, %c0_198] : memref<1x64xf32, #tpu.memory_space<vmem>>, vector<1x64xf32>
    %230 = vector.broadcast %229 : vector<1x64xf32> to vector<2x64xf32>
    %231 = arith.addf %228, %230 : vector<2x64xf32>
    %cst_199 = arith.constant 0.000000e+00 : f32
    %232 = vector.broadcast %cst_199 : f32 to vector<2x64xf32>
    %233 = arith.maximumf %231, %232 : vector<2x64xf32>
    %234 = arith.truncf %233 : vector<2x64xf32> to vector<2x64xbf16>
    %c16_200 = arith.constant 16 : index
    %c0_201 = arith.constant 0 : index
    %c0_202 = arith.constant 0 : index
    %235 = vector.load %arg4[%c16_200, %c0_201, %c0_202] : memref<20x64x512xbf16, #tpu.memory_space<vmem>>, vector<1x64x512xbf16>
    %236 = vector.shape_cast %235 : vector<1x64x512xbf16> to vector<64x512xbf16>
    %cst_203 = arith.constant dense<0.000000e+00> : vector<2x512xf32>
    %237 = tpu.matmul %234, %236, %cst_203 {dimension_numbers = #tpu.dot_dimension_numbers<[1], [0], [0], [1], [0, 0, 1, 1], [], []>} : vector<2x64xbf16>, vector<64x512xbf16>, vector<2x512xf32> -> vector<2x512xf32>
    %238 = arith.addf %224, %237 : vector<2x512xf32>
    %c17 = arith.constant 17 : index
    %c0_204 = arith.constant 0 : index
    %c0_205 = arith.constant 0 : index
    %239 = vector.load %arg1[%c17, %c0_204, %c0_205] : memref<20x2x576xbf16, #tpu.memory_space<vmem>>, vector<1x2x576xbf16>
    %240 = vector.shape_cast %239 : vector<1x2x576xbf16> to vector<2x576xbf16>
    %c0_206 = arith.constant 0 : index
    %c0_207 = arith.constant 0 : index
    %241 = vector.load %arg2[%c0_206, %c0_207] : memref<576x64xbf16, #tpu.memory_space<vmem>>, vector<576x64xbf16>
    %cst_208 = arith.constant dense<0.000000e+00> : vector<2x64xf32>
    %242 = tpu.matmul %240, %241, %cst_208 {dimension_numbers = #tpu.dot_dimension_numbers<[1], [0], [0], [1], [0, 0, 1, 1], [], []>} : vector<2x576xbf16>, vector<576x64xbf16>, vector<2x64xf32> -> vector<2x64xf32>
    %c0_209 = arith.constant 0 : index
    %c0_210 = arith.constant 0 : index
    %243 = vector.load %arg3[%c0_209, %c0_210] : memref<1x64xf32, #tpu.memory_space<vmem>>, vector<1x64xf32>
    %244 = vector.broadcast %243 : vector<1x64xf32> to vector<2x64xf32>
    %245 = arith.addf %242, %244 : vector<2x64xf32>
    %cst_211 = arith.constant 0.000000e+00 : f32
    %246 = vector.broadcast %cst_211 : f32 to vector<2x64xf32>
    %247 = arith.maximumf %245, %246 : vector<2x64xf32>
    %248 = arith.truncf %247 : vector<2x64xf32> to vector<2x64xbf16>
    %c17_212 = arith.constant 17 : index
    %c0_213 = arith.constant 0 : index
    %c0_214 = arith.constant 0 : index
    %249 = vector.load %arg4[%c17_212, %c0_213, %c0_214] : memref<20x64x512xbf16, #tpu.memory_space<vmem>>, vector<1x64x512xbf16>
    %250 = vector.shape_cast %249 : vector<1x64x512xbf16> to vector<64x512xbf16>
    %cst_215 = arith.constant dense<0.000000e+00> : vector<2x512xf32>
    %251 = tpu.matmul %248, %250, %cst_215 {dimension_numbers = #tpu.dot_dimension_numbers<[1], [0], [0], [1], [0, 0, 1, 1], [], []>} : vector<2x64xbf16>, vector<64x512xbf16>, vector<2x512xf32> -> vector<2x512xf32>
    %252 = arith.addf %238, %251 : vector<2x512xf32>
    %c18 = arith.constant 18 : index
    %c0_216 = arith.constant 0 : index
    %c0_217 = arith.constant 0 : index
    %253 = vector.load %arg1[%c18, %c0_216, %c0_217] : memref<20x2x576xbf16, #tpu.memory_space<vmem>>, vector<1x2x576xbf16>
    %254 = vector.shape_cast %253 : vector<1x2x576xbf16> to vector<2x576xbf16>
    %c0_218 = arith.constant 0 : index
    %c0_219 = arith.constant 0 : index
    %255 = vector.load %arg2[%c0_218, %c0_219] : memref<576x64xbf16, #tpu.memory_space<vmem>>, vector<576x64xbf16>
    %cst_220 = arith.constant dense<0.000000e+00> : vector<2x64xf32>
    %256 = tpu.matmul %254, %255, %cst_220 {dimension_numbers = #tpu.dot_dimension_numbers<[1], [0], [0], [1], [0, 0, 1, 1], [], []>} : vector<2x576xbf16>, vector<576x64xbf16>, vector<2x64xf32> -> vector<2x64xf32>
    %c0_221 = arith.constant 0 : index
    %c0_222 = arith.constant 0 : index
    %257 = vector.load %arg3[%c0_221, %c0_222] : memref<1x64xf32, #tpu.memory_space<vmem>>, vector<1x64xf32>
    %258 = vector.broadcast %257 : vector<1x64xf32> to vector<2x64xf32>
    %259 = arith.addf %256, %258 : vector<2x64xf32>
    %cst_223 = arith.constant 0.000000e+00 : f32
    %260 = vector.broadcast %cst_223 : f32 to vector<2x64xf32>
    %261 = arith.maximumf %259, %260 : vector<2x64xf32>
    %262 = arith.truncf %261 : vector<2x64xf32> to vector<2x64xbf16>
    %c18_224 = arith.constant 18 : index
    %c0_225 = arith.constant 0 : index
    %c0_226 = arith.constant 0 : index
    %263 = vector.load %arg4[%c18_224, %c0_225, %c0_226] : memref<20x64x512xbf16, #tpu.memory_space<vmem>>, vector<1x64x512xbf16>
    %264 = vector.shape_cast %263 : vector<1x64x512xbf16> to vector<64x512xbf16>
    %cst_227 = arith.constant dense<0.000000e+00> : vector<2x512xf32>
    %265 = tpu.matmul %262, %264, %cst_227 {dimension_numbers = #tpu.dot_dimension_numbers<[1], [0], [0], [1], [0, 0, 1, 1], [], []>} : vector<2x64xbf16>, vector<64x512xbf16>, vector<2x512xf32> -> vector<2x512xf32>
    %266 = arith.addf %252, %265 : vector<2x512xf32>
    %c19 = arith.constant 19 : index
    %c0_228 = arith.constant 0 : index
    %c0_229 = arith.constant 0 : index
    %267 = vector.load %arg1[%c19, %c0_228, %c0_229] : memref<20x2x576xbf16, #tpu.memory_space<vmem>>, vector<1x2x576xbf16>
    %268 = vector.shape_cast %267 : vector<1x2x576xbf16> to vector<2x576xbf16>
    %c0_230 = arith.constant 0 : index
    %c0_231 = arith.constant 0 : index
    %269 = vector.load %arg2[%c0_230, %c0_231] : memref<576x64xbf16, #tpu.memory_space<vmem>>, vector<576x64xbf16>
    %cst_232 = arith.constant dense<0.000000e+00> : vector<2x64xf32>
    %270 = tpu.matmul %268, %269, %cst_232 {dimension_numbers = #tpu.dot_dimension_numbers<[1], [0], [0], [1], [0, 0, 1, 1], [], []>} : vector<2x576xbf16>, vector<576x64xbf16>, vector<2x64xf32> -> vector<2x64xf32>
    %c0_233 = arith.constant 0 : index
    %c0_234 = arith.constant 0 : index
    %271 = vector.load %arg3[%c0_233, %c0_234] : memref<1x64xf32, #tpu.memory_space<vmem>>, vector<1x64xf32>
    %272 = vector.broadcast %271 : vector<1x64xf32> to vector<2x64xf32>
    %273 = arith.addf %270, %272 : vector<2x64xf32>
    %cst_235 = arith.constant 0.000000e+00 : f32
    %274 = vector.broadcast %cst_235 : f32 to vector<2x64xf32>
    %275 = arith.maximumf %273, %274 : vector<2x64xf32>
    %276 = arith.truncf %275 : vector<2x64xf32> to vector<2x64xbf16>
    %c19_236 = arith.constant 19 : index
    %c0_237 = arith.constant 0 : index
    %c0_238 = arith.constant 0 : index
    %277 = vector.load %arg4[%c19_236, %c0_237, %c0_238] : memref<20x64x512xbf16, #tpu.memory_space<vmem>>, vector<1x64x512xbf16>
    %278 = vector.shape_cast %277 : vector<1x64x512xbf16> to vector<64x512xbf16>
    %cst_239 = arith.constant dense<0.000000e+00> : vector<2x512xf32>
    %279 = tpu.matmul %276, %278, %cst_239 {dimension_numbers = #tpu.dot_dimension_numbers<[1], [0], [0], [1], [0, 0, 1, 1], [], []>} : vector<2x64xbf16>, vector<64x512xbf16>, vector<2x512xf32> -> vector<2x512xf32>
    %280 = arith.addf %266, %279 : vector<2x512xf32>
    %c0_240 = arith.constant 0 : index
    %c0_241 = arith.constant 0 : index
    %281 = vector.load %arg5[%c0_240, %c0_241] : memref<1x512xf32, #tpu.memory_space<vmem>>, vector<1x512xf32>
    %282 = vector.broadcast %281 : vector<1x512xf32> to vector<2x512xf32>
    %283 = arith.addf %280, %282 : vector<2x512xf32>
    %cst_242 = arith.constant 0.000000e+00 : f32
    %284 = vector.broadcast %cst_242 : f32 to vector<2x512xf32>
    %285 = arith.maximumf %283, %284 : vector<2x512xf32>
    %286 = arith.truncf %285 : vector<2x512xf32> to vector<2x512xbf16>
    %c0_243 = arith.constant 0 : index
    %c0_244 = arith.constant 0 : index
    %287 = vector.load %arg6[%c0_243, %c0_244] : memref<512x2xbf16, #tpu.memory_space<vmem>>, vector<512x2xbf16>
    %cst_245 = arith.constant dense<0.000000e+00> : vector<2x2xf32>
    %288 = tpu.matmul %286, %287, %cst_245 {dimension_numbers = #tpu.dot_dimension_numbers<[1], [0], [0], [1], [0, 0, 1, 1], [], []>} : vector<2x512xbf16>, vector<512x2xbf16>, vector<2x2xf32> -> vector<2x2xf32>
    %c0_246 = arith.constant 0 : index
    %c0_247 = arith.constant 0 : index
    %289 = vector.load %arg7[%c0_246, %c0_247] : memref<1x2xf32, #tpu.memory_space<vmem>>, vector<1x2xf32>
    %290 = vector.broadcast %289 : vector<1x2xf32> to vector<2x2xf32>
    %291 = arith.addf %288, %290 : vector<2x2xf32>
    %c0_248 = arith.constant 0 : index
    %c0_249 = arith.constant 0 : index
    %292 = vector.load %arg8[%c0_248, %c0_249] : memref<2x2xf32, #tpu.memory_space<vmem>>, vector<2x2xf32>
    tpu.vector_store %arg8[%c0_248, %c0_249], %291 {strides = array<i32>} : memref<2x2xf32, #tpu.memory_space<vmem>>, vector<2x2xf32>,
    return
  }
  func.func @transform_0(%arg0: i32) -> (i32, i32, i32) {
    %c0_i32 = arith.constant 0 : i32
    %c0_i32_0 = arith.constant 0 : i32
    %c0_i32_1 = arith.constant 0 : i32
    %c0_i32_2 = arith.constant 0 : i32
    return %c0_i32, %c0_i32_0, %c0_i32_1 : i32, i32, i32
  }
  func.func @transform_1(%arg0: i32) -> (i32, i32) {
    %c0_i32 = arith.constant 0 : i32
    %c0_i32_0 = arith.constant 0 : i32
    %c0_i32_1 = arith.constant 0 : i32
    return %c0_i32, %c0_i32_0 : i32, i32
  }
  func.func @transform_2(%arg0: i32) -> (i32, i32) {
    %c0_i32 = arith.constant 0 : i32
    %c0_i32_0 = arith.constant 0 : i32
    %c0_i32_1 = arith.constant 0 : i32
    return %c0_i32, %c0_i32_0 : i32, i32
  }
  func.func @transform_3(%arg0: i32) -> (i32, i32, i32) {
    %c0_i32 = arith.constant 0 : i32
    %c0_i32_0 = arith.constant 0 : i32
    %c0_i32_1 = arith.constant 0 : i32
    %c0_i32_2 = arith.constant 0 : i32
    return %c0_i32, %c0_i32_0, %c0_i32_1 : i32, i32, i32
  }
  func.func @transform_4(%arg0: i32) -> (i32, i32) {
    %c0_i32 = arith.constant 0 : i32
    %c0_i32_0 = arith.constant 0 : i32
    %c0_i32_1 = arith.constant 0 : i32
    return %c0_i32, %c0_i32_0 : i32, i32
  }
  func.func @transform_5(%arg0: i32) -> (i32, i32) {
    %c0_i32 = arith.constant 0 : i32
    %c0_i32_0 = arith.constant 0 : i32
    %c0_i32_1 = arith.constant 0 : i32
    return %c0_i32, %c0_i32_0 : i32, i32
  }
  func.func @transform_6(%arg0: i32) -> (i32, i32) {
    %c0_i32 = arith.constant 0 : i32
    %c0_i32_0 = arith.constant 0 : i32
    %c0_i32_1 = arith.constant 0 : i32
    return %c0_i32, %c0_i32_0 : i32, i32
  }
  func.func @transform_7(%arg0: i32) -> (i32, i32) {
    %c0_i32 = arith.constant 0 : i32
    %c0_i32_0 = arith.constant 0 : i32
    %c0_i32_1 = arith.constant 0 : i32
    return %c0_i32, %c0_i32_0 : i32, i32
  }
}

</mosaic_0001>

<bundles_post_ra>
// kernel: simple_atari_net.4
= control target key start
LH: loop header
LB: loop body
LE: loop exit
PB: predicated region body
PF: predicated region fallthrough
CT: control target
= control target key end

     0   :  { %s3577_s12 = smov 0   ;;  %s3579_s13 = smov 0   ;;  %s4288_s0 = inlined_call_operand.vmem [shape: bf16[8160,432], index: 0, kind: input, shape index: {}]   ;;  %s4289_s1 = inlined_call_operand.vmem [shape: bf16[432,16], index: 1, kind: input, shape index: {}]   ;;  %s4290_s2 = inlined_call_operand.vmem [shape: f32[1,16], index: 2, kind: input, shape index: {}]   ;;  %s4291_s3 = inlined_call_operand.vmem [shape: bf16[8160,16], index: 3, kind: output, shape index: {}]  }
   0x1   :  { %s3581_s14 = smov 0  }
   0x2 LB: > { %s3590_s15 = sadd.s32 4294967295, %s3522_s14   ;;  %s3592_s16 = sadd.s32 1, %s3522_s14   ;;  %s3522_s14 = sphi %s3581_s14, %s4298_s14   ;;  %s3518_s13 = sphi %s3579_s13, %s4297_s13   ;;  %s3514_s12 = sphi %s3577_s12, %s4296_s12  }
   0x3   : > { %s85_s17 = ssub.s32 %s3522_s14, %s3592_s16  ;;  %s88_s18 = sadd.s32 1, %s3518_s13 }
   0x4   : > { %p86_p0 = scmp.eq.s32.totalorder %s85_s17, 0  ;;  %p98_p1 = scmp.ne.s32.totalorder %s3518_s13, %s3514_s12 }
   0x5   : > { %p99_p2 = scmp.eq.s32.totalorder %s3590_s15, 15  ;;  %p2689_p3 = scmp.ge.s32.totalorder %s3522_s14, 1 }
   0x6   : > { %s3600_s19 = scalar_select %p86_p0, %s3518_s13, %s88_s18  }
   0x7   : > { %p3602_p4 = por %p99_p2, %p98_p1  ;;  %p149_p5 = scmp.lt.s32.totalorder %s3522_s14, 17 }
   0x9   : > { %p150_p6 = pnand %p2689_p3, %p149_p5 }
   0xa   : > { %v3248_v0 = vld [vmem:[%s4289_s1] sm:$0xff] (!%p150_p6)   ;;  %v3556_v1 = vmov (!%p150_p6), 0   ;;  %v3249_v2 = vld [vmem:[%s4289_s1 + $0x8] sm:$0xff] (!%p150_p6)   ;;  %v3250_v4 = vld [vmem:[%s4289_s1 + $0x10] sm:$0xff] (!%p150_p6)   ;;  %s3634_s8 = sshll.u32 (!%p150_p6), %s3590_s15, 6  ;;  %vm1160_vm0 = vcmask (!%p150_p6), 392192  }
   0xb   : > { %153 = sbr.rel (%p150_p6) target bundleno = 637 (0x27d), region = 32  ;;  %1257 = vmatprep.subr.bf16.mxu1 (!%p150_p6), %v3556_v1  ;;  %1546 = vmatprep.subr.bf16.mxu0 (!%p150_p6), %v3556_v1  ;;  %v3253_v3 = vld [vmem:[%s4289_s1 + $0x80] sm:$0xff] (!%p150_p6)   ;;  %v3255_v5 = vld [vmem:[%s4289_s1 + $0x88] sm:$0xff] (!%p150_p6)   ;;  %v3251_v6 = vld [vmem:[%s4289_s1 + $0x18] sm:$0xff] (!%p150_p6)   ;;  %p184_p7 = scmp.lt.s32.totalorder (!%p150_p6), %s3634_s8, 1019  ;;  %vm2155_vm1 = vcmask (!%p150_p6), 125952  }
   0xc   : > { %1258 = vmatpush1.bf16.msra.mxu1 (!%p150_p6), %v3248_v0  ;;  %1547 = vmatpush1.bf16.msra.mxu0 (!%p150_p6), %v3253_v3  ;;  %v3257_v7 = vld [vmem:[%s4289_s1 + $0x90] sm:$0xff] (!%p150_p6)   ;;  %v3252_v8 = vld [vmem:[%s4289_s1 + $0x20] sm:$0xff] (!%p150_p6)   ;;  %v3259_v9 = vld [vmem:[%s4289_s1 + $0x98] sm:$0xff] (!%p150_p6)   ;;  %s175_s23 = sand.u32 (!%p150_p6), 1, %s3514_s12  }
   0xd   : > { %1259 = vmatprep.subr.bf16.mxu1 (!%p150_p6), %v3556_v1  ;;  %1548 = vmatprep.subr.bf16.mxu0 (!%p150_p6), %v3556_v1  ;;  %v3254_v10 = vld [vmem:[%s4289_s1 + $0x28] sm:$0xff] (!%p150_p6)   ;;  %v3261_v11 = vld [vmem:[%s4289_s1 + $0xa0] sm:$0xff] (!%p150_p6)   ;;  %v3256_v12 = vld [vmem:[%s4289_s1 + $0x30] sm:$0xff] (!%p150_p6)   ;;  %s2690_s24 = sshll.u32 (!%p150_p6), %s175_s23, 8 }
   0xe   : > { %v3263_v13 = vld [vmem:[%s4289_s1 + $0xa8] sm:$0xff] (!%p150_p6)   ;;  %v3258_v14 = vld [vmem:[%s4289_s1 + $0x38] sm:$0xff] (!%p150_p6)   ;;  %v3265_v15 = vld [vmem:[%s4289_s1 + $0xb0] sm:$0xff] (!%p150_p6)   ;;  %s3881_s12 = scalar_lea.vmem (!%p150_p6), [#allocation2], %s2690_s24  }
   0xf   : > { %v3260_v18 = vld [vmem:[%s4289_s1 + $0x40] sm:$0xff] (!%p150_p6)   ;;  %v3267_v19 = vld [vmem:[%s4289_s1 + $0xb8] sm:$0xff] (!%p150_p6)   ;;  %v3262_v20 = vld [vmem:[%s4289_s1 + $0x48] sm:$0xff] (!%p150_p6)  }
  0x10   : > { %1260 = vmatpush1.bf16.msra.mxu1 (!%p150_p6), %v3249_v2  ;;  %1549 = vmatpush1.bf16.msra.mxu0 (!%p150_p6), %v3255_v5  ;;  %v3269_v21 = vld [vmem:[%s4289_s1 + $0xc0] sm:$0xff] (!%p150_p6)   ;;  %v3264_v22 = vld [vmem:[%s4289_s1 + $0x50] sm:$0xff] (!%p150_p6)   ;;  %v3271_v23 = vld [vmem:[%s4289_s1 + $0xc8] sm:$0xff] (!%p150_p6)  }
  0x11   : > { %1261 = vmatprep.subr.bf16.mxu1 (!%p150_p6), %v3556_v1  ;;  %1550 = vmatprep.subr.bf16.mxu0 (!%p150_p6), %v3556_v1  ;;  %v3266_v24 = vld [vmem:[%s4289_s1 + $0x58] sm:$0xff] (!%p150_p6)   ;;  %v3273_v25 = vld [vmem:[%s4289_s1 + $0xd0] sm:$0xff] (!%p150_p6)   ;;  %v3268_v26 = vld [vmem:[%s4289_s1 + $0x60] sm:$0xff] (!%p150_p6)  }
  0x12   : > { %s185_s21 = scalar_select %p184_p7, %s3634_s8, 1019  ;;  %v3270_v29 = vld [vmem:[%s4289_s1 + $0x68] sm:$0xff]   ;;  %v3272_v30 = vld [vmem:[%s4289_s1 + $0x70] sm:$0xff]   ;;  %v3274_v33 = vld [vmem:[%s4289_s1 + $0x78] sm:$0xff]  }
  0x13   : > { %s3028_s27 = sshll.u32 (%p3602_p4), %s3590_s15, 8 }
  0x14   : > { %1262 = vmatpush1.bf16.msra.mxu1 %v3250_v4  ;;  %1551 = vmatpush1.bf16.msra.mxu0 %v3257_v7  ;;  %s2963_s26 = sshll.u32 %s185_s21, 4  ;;  %s4096_s30 = scalar_lea.vmem (%p3602_p4), %s4291_s3, %s3028_s27  }
  0x15   : > { %1263 = vmatprep.subr.bf16.mxu1 %v3556_v1  ;;  %1552 = vmatprep.subr.bf16.mxu0 %v3556_v1  ;;  %s3666_s4 = scalar_lea.vmem %s4288_s0, %s2963_s26  ;;  %s2228_s26 = ssub.s32 (%p3602_p4), 1020, %s3634_s8 }
  0x16   : > { %v3277_v16 = vld [vmem:[%s3666_s4 + $0xc] ss:$16 sps:$4 sm:$0xff]   ;;  %v3280_v17 = vld [vmem:[%s3666_s4 + $0x4] ss:$16 sps:$4 sm:$0xff]   ;;  %v3275_v27 = vld [vmem:[%s3666_s4 + $0x8] ss:$16 sps:$4 sm:$0xff]  }
  0x17   : > { %2850 = vmatprep.mubr.msk.bf16.mxu0 %vm1160_vm0, %v3277_v16  ;;  %1289 = vmatprep.mubr.bf16.mxu1 %v3280_v17  ;;  %v3281_v28 = vld [vmem:[%s3666_s4 + $0x2c] ss:$16 sps:$4 sm:$0xff]   ;;  %v3285_v31 = vld [vmem:[%s3666_s4 + $0x28] ss:$16 sps:$4 sm:$0xff]   ;;  %v3278_v34 = vld [vmem:[%s3666_s4] ss:$16 sps:$4 sm:$0xff]  }
  0x18   : > { %1264 = vmatpush1.bf16.msra.mxu1 %v3251_v6  ;;  %1553 = vmatpush1.bf16.msra.mxu0 %v3259_v9  ;;  %v3287_v32 = vld [vmem:[%s3666_s4 + $0x4c] ss:$16 sps:$4 sm:$0xff]   ;;  %v3283_v35 = vld [vmem:[%s3666_s4 + $0x24] ss:$16 sps:$4 sm:$0xff]   ;;  %v3291_v36 = vld [vmem:[%s3666_s4 + $0x48] ss:$16 sps:$4 sm:$0xff]  }
  0x19   : > { %1265 = vmatprep.subr.bf16.mxu1 %v3556_v1  ;;  %1554 = vmatprep.subr.bf16.mxu0 %v3556_v1  ;;  %v3293_v37 = vld [vmem:[%s3666_s4 + $0x6c] ss:$16 sps:$4 sm:$0xff]   ;;  %v3286_v38 = vld [vmem:[%s3666_s4 + $0x20] ss:$16 sps:$4 sm:$0xff]   ;;  %v3289_v39 = vld [vmem:[%s3666_s4 + $0x44] ss:$16 sps:$4 sm:$0xff]  }
  0x1a   : > { %v3297_v40 = vld [vmem:[%s3666_s4 + $0x68] ss:$16 sps:$4 sm:$0xff]   ;;  %v3299_v41 = vld [vmem:[%s3666_s4 + $0x8c] ss:$16 sps:$4 sm:$0xff]   ;;  %v3292_v42 = vld [vmem:[%s3666_s4 + $0x40] ss:$16 sps:$4 sm:$0xff]  }
  0x1b   : > { %v3295_v43 = vld [vmem:[%s3666_s4 + $0x64] ss:$16 sps:$4 sm:$0xff]   ;;  %v3303_v44 = vld [vmem:[%s3666_s4 + $0x88] ss:$16 sps:$4 sm:$0xff]   ;;  %v3305_v45 = vld [vmem:[%s3666_s4 + $0xac] ss:$16 sps:$4 sm:$0xff]  }
  0x1c   : > { %1266 = vmatpush1.bf16.msra.mxu1 %v3252_v8  ;;  %1555 = vmatpush1.bf16.msra.mxu0 %v3261_v11  ;;  %v3298_v46 = vld [vmem:[%s3666_s4 + $0x60] ss:$16 sps:$4 sm:$0xff]   ;;  %v3301_v47 = vld [vmem:[%s3666_s4 + $0x84] ss:$16 sps:$4 sm:$0xff]   ;;  %v3309_v48 = vld [vmem:[%s3666_s4 + $0xa8] ss:$16 sps:$4 sm:$0xff]  }
  0x1d   : > { %1267 = vmatprep.subr.bf16.mxu1 %v3556_v1  ;;  %1556 = vmatprep.subr.bf16.mxu0 %v3556_v1  ;;  %v3311_v49 = vld [vmem:[%s3666_s4 + $0xcc] ss:$16 sps:$4 sm:$0xff]   ;;  %v3304_v50 = vld [vmem:[%s3666_s4 + $0x80] ss:$16 sps:$4 sm:$0xff]   ;;  %v3307_v51 = vld [vmem:[%s3666_s4 + $0xa4] ss:$16 sps:$4 sm:$0xff]  }
  0x1e   : > { %v3315_v52 = vld [vmem:[%s3666_s4 + $0xc8] ss:$16 sps:$4 sm:$0xff]   ;;  %v3317_v53 = vld [vmem:[%s3666_s4 + $0xec] ss:$16 sps:$4 sm:$0xff]   ;;  %v3310_v54 = vld [vmem:[%s3666_s4 + $0xa0] ss:$16 sps:$4 sm:$0xff]  }
  0x1f   : > { %v3313_v55 = vld [vmem:[%s3666_s4 + $0xc4] ss:$16 sps:$4 sm:$0xff]   ;;  %v3321_v56 = vld [vmem:[%s3666_s4 + $0xe8] ss:$16 sps:$4 sm:$0xff]   ;;  %v3323_v57 = vld [vmem:[%s3666_s4 + $0x10c] ss:$16 sps:$4 sm:$0xff]  }
  0x20   : > { %1268 = vmatpush1.bf16.msra.mxu1 %v3254_v10  ;;  %1557 = vmatpush1.bf16.msra.mxu0 %v3263_v13  ;;  %v3316_v58 = vld [vmem:[%s3666_s4 + $0xc0] ss:$16 sps:$4 sm:$0xff]   ;;  %v3319_v59 = vld [vmem:[%s3666_s4 + $0xe4] ss:$16 sps:$4 sm:$0xff]   ;;  %v3327_v60 = vld [vmem:[%s3666_s4 + $0x108] ss:$16 sps:$4 sm:$0xff]  }
  0x21   : > { %1269 = vmatprep.subr.bf16.mxu1 %v3556_v1  ;;  %1558 = vmatprep.subr.bf16.mxu0 %v3556_v1  ;;  %v3329_v61 = vld [vmem:[%s3666_s4 + $0x12c] ss:$16 sps:$4 sm:$0xff]   ;;  %v3322_v62 = vld [vmem:[%s3666_s4 + $0xe0] ss:$16 sps:$4 sm:$0xff]   ;;  %v3325_v63 = vld [vmem:[%s3666_s4 + $0x104] ss:$16 sps:$4 sm:$0xff]  }
  0x22   : > { %v3333_v0 = vld [vmem:[%s3666_s4 + $0x128] ss:$16 sps:$4 sm:$0xff]   ;;  %v3328_v2 = vld [vmem:[%s3666_s4 + $0x100] ss:$16 sps:$4 sm:$0xff]   ;;  %v3331_v3 = vld [vmem:[%s3666_s4 + $0x124] ss:$16 sps:$4 sm:$0xff]  }
  0x23   : > { %v3339_v4 = vld [vmem:[%s3666_s4 + $0x148] ss:$16 sps:$4 sm:$0xff]   ;;  %v3341_v5 = vld [vmem:[%s3666_s4 + $0x16c] ss:$16 sps:$4 sm:$0xff]   ;;  %v3334_v6 = vld [vmem:[%s3666_s4 + $0x120] ss:$16 sps:$4 sm:$0xff]  }
  0x24   : > { %1270 = vmatpush1.bf16.msra.mxu1 %v3256_v12  ;;  %1559 = vmatpush1.bf16.msra.mxu0 %v3265_v15  ;;  %v3337_v7 = vld [vmem:[%s3666_s4 + $0x144] ss:$16 sps:$4 sm:$0xff]   ;;  %v3345_v8 = vld [vmem:[%s3666_s4 + $0x168] ss:$16 sps:$4 sm:$0xff]   ;;  %v3347_v9 = vld [vmem:[%s3666_s4 + $0x18c] ss:$16 sps:$4 sm:$0xff]  }
  0x25   : > { %1271 = vmatprep.subr.bf16.mxu1 %v3556_v1  ;;  %1560 = vmatprep.subr.bf16.mxu0 %v3556_v1  ;;  %v3340_v10 = vld [vmem:[%s3666_s4 + $0x140] ss:$16 sps:$4 sm:$0xff]   ;;  %v3343_v11 = vld [vmem:[%s3666_s4 + $0x164] ss:$16 sps:$4 sm:$0xff]   ;;  %v3351_v12 = vld [vmem:[%s3666_s4 + $0x188] ss:$16 sps:$4 sm:$0xff]  }
  0x26   : > { %v3353_v13 = vld [vmem:[%s3666_s4 + $0x1ac] ss:$16 sps:$4 sm:$0xff]   ;;  %v3349_v15 = vld [vmem:[%s3666_s4 + $0x184] ss:$16 sps:$4 sm:$0xff]   ;;  %v3357_v16 = vld [vmem:[%s3666_s4 + $0x1a8] ss:$16 sps:$4 sm:$0xff]  }
  0x27   : > { %v3359_v17 = vld [vmem:[%s3666_s4 + $0x1cc] ss:$16 sps:$4 sm:$0xff]   ;;  %p2229_p8 = scmp.lt.s32.totalorder (%p3602_p4), %s2228_s26, 64 }
  0x28   : > { %1272 = vmatpush1.bf16.msra.mxu1 %v3258_v14  ;;  %1561 = vmatpush1.bf16.msra.mxu0 %v3267_v19  ;;  %v3346_v14 = vld [vmem:[%s3666_s4 + $0x160] ss:$16 sps:$4 sm:$0xff]   ;;  %v3355_v19 = vld [vmem:[%s3666_s4 + $0x1a4] ss:$16 sps:$4 sm:$0xff]  }
  0x29   : > { %1273 = vmatprep.subr.bf16.mxu1 %v3556_v1  ;;  %1562 = vmatprep.subr.bf16.mxu0 %v3556_v1 }
  0x2c   : > { %1274 = vmatpush1.bf16.msra.mxu1 %v3260_v18  ;;  %1563 = vmatpush1.bf16.msra.mxu0 %v3269_v21  ;;  %v3352_v18 = vld [vmem:[%s3666_s4 + $0x180] ss:$16 sps:$4 sm:$0xff]   ;;  %v3365_v21 = vld [vmem:[%s3666_s4 + $0x1ec] ss:$16 sps:$4 sm:$0xff]  }
  0x2d   : > { %1275 = vmatprep.subr.bf16.mxu1 %v3556_v1  ;;  %1564 = vmatprep.subr.bf16.mxu0 %v3556_v1 }
  0x30   : > { %1276 = vmatpush1.bf16.msra.mxu1 %v3262_v20  ;;  %1565 = vmatpush1.bf16.msra.mxu0 %v3271_v23  ;;  %v3363_v20 = vld [vmem:[%s3666_s4 + $0x1c8] ss:$16 sps:$4 sm:$0xff]   ;;  %v3361_v23 = vld [vmem:[%s3666_s4 + $0x1c4] ss:$16 sps:$4 sm:$0xff]  }
  0x31   : > { %1277 = vmatprep.subr.bf16.mxu1 %v3556_v1  ;;  %1566 = vmatprep.subr.bf16.mxu0 %v3556_v1 }
  0x34   : > { %1278 = vmatpush1.bf16.msra.mxu1 %v3264_v22  ;;  %1567 = vmatpush1.bf16.msra.mxu0 %v3273_v25  ;;  %v3358_v22 = vld [vmem:[%s3666_s4 + $0x1a0] ss:$16 sps:$4 sm:$0xff]   ;;  %v3371_v25 = vld [vmem:[%s3666_s4 + $0x20c] ss:$16 sps:$4 sm:$0xff]  }
  0x35   : > { %1279 = vmatprep.subr.bf16.mxu1 %v3556_v1 }
  0x37   : > { %1579 = vmatmul.mubr.bf16.vlgmr.msra.gmra.mrb[0].mxu0 %v3275_v27  ;;  %v3367_v27 = vld [vmem:[%s3666_s4 + $0x1e4] ss:$16 sps:$4 sm:$0xff]  }
  0x38   : > { %1280 = vmatpush1.bf16.msra.mxu1 %v3266_v24  ;;  %2851 = vmatprep.mubr.msk.bf16.mxu0 %vm1160_vm0, %v3281_v28  ;;  %v3369_v24 = vld [vmem:[%s3666_s4 + $0x1e8] ss:$16 sps:$4 sm:$0xff]  }
  0x39   : > { %1281 = vmatprep.subr.bf16.mxu1 %v3556_v1  ;;  %v3375_v28 = vld [vmem:[%s3666_s4 + $0x208] ss:$16 sps:$4 sm:$0xff]  }
  0x3c   : > { %1282 = vmatpush1.bf16.msra.mxu1 %v3268_v26  ;;  %v3364_v26 = vld [vmem:[%s3666_s4 + $0x1c0] ss:$16 sps:$4 sm:$0xff]  }
  0x3d   : > { %1283 = vmatprep.subr.bf16.mxu1 %v3556_v1 }
  0x3f   : > { %1587 = vmatmul.mubr.bf16.gmra.mrb[4].mxu0 %v3285_v31  ;;  %v3373_v31 = vld [vmem:[%s3666_s4 + $0x204] ss:$16 sps:$4 sm:$0xff]  }
  0x40   : > { %1284 = vmatpush1.bf16.msra.mxu1 %v3270_v29  ;;  %2852 = vmatprep.mubr.msk.bf16.mxu0 %vm1160_vm0, %v3287_v32  ;;  %v3377_v29 = vld [vmem:[%s3666_s4 + $0x22c] ss:$16 sps:$4 sm:$0xff]   ;;  %v3381_v32 = vld [vmem:[%s3666_s4 + $0x228] ss:$16 sps:$4 sm:$0xff]  }
  0x41   : > { %1285 = vmatprep.subr.bf16.mxu1 %v3556_v1 }
  0x44   : > { %1286 = vmatpush1.bf16.msra.mxu1 %v3272_v30  ;;  %v3370_v30 = vld [vmem:[%s3666_s4 + $0x1e0] ss:$16 sps:$4 sm:$0xff]  }
  0x45   : > { %1287 = vmatprep.subr.bf16.mxu1 %v3556_v1  ;;  %v3335_v1 = vld [vmem:[%s3666_s4 + $0x14c] ss:$16 sps:$4 sm:$0xff]  }
  0x47   : > { %1595 = vmatmul.mubr.bf16.gmra.mrb[8].mxu0 %v3291_v36  ;;  %v3387_v36 = vld [vmem:[%s3666_s4 + $0x248] ss:$16 sps:$4 sm:$0xff]  }
  0x48   : > { %1288 = vmatpush1.bf16.msra.mxu1 %v3274_v33  ;;  %2853 = vmatprep.mubr.msk.bf16.mxu0 %vm1160_vm0, %v3293_v37  ;;  %v3383_v33 = vld [vmem:[%s3666_s4 + $0x24c] ss:$16 sps:$4 sm:$0xff]  }
  0x49   : > { %v3389_v37 = vld [vmem:[%s3666_s4 + $0x26c] ss:$16 sps:$4 sm:$0xff]  }
  0x4b   : > { %1290 = vmatmul.mubr.bf16.vlgmr.msra.gmra.mrb[0].mxu1 %v3278_v34  ;;  %v3376_v34 = vld [vmem:[%s3666_s4 + $0x200] ss:$16 sps:$4 sm:$0xff]  }
  0x4c   : > { %1297 = vmatprep.mubr.bf16.mxu1 %v3283_v35  ;;  %v3379_v35 = vld [vmem:[%s3666_s4 + $0x224] ss:$16 sps:$4 sm:$0xff]  }
  0x4f   : > { %1603 = vmatmul.mubr.bf16.gmra.mrb[12].mxu0 %v3297_v40  ;;  %v3393_v40 = vld [vmem:[%s3666_s4 + $0x268] ss:$16 sps:$4 sm:$0xff]  }
  0x50   : > { %2854 = vmatprep.mubr.msk.bf16.mxu0 %vm1160_vm0, %v3299_v41  ;;  %v3395_v41 = vld [vmem:[%s3666_s4 + $0x28c] ss:$16 sps:$4 sm:$0xff]  }
  0x53   : > { %1298 = vmatmul.mubr.bf16.gmra.mrb[4].mxu1 %v3286_v38  ;;  %v3382_v38 = vld [vmem:[%s3666_s4 + $0x220] ss:$16 sps:$4 sm:$0xff]  }
  0x54   : > { %1305 = vmatprep.mubr.bf16.mxu1 %v3289_v39  ;;  %v3385_v39 = vld [vmem:[%s3666_s4 + $0x244] ss:$16 sps:$4 sm:$0xff]  }
  0x57   : > { %1611 = vmatmul.mubr.bf16.gmra.mrb[16].mxu0 %v3303_v44  ;;  %v3399_v44 = vld [vmem:[%s3666_s4 + $0x288] ss:$16 sps:$4 sm:$0xff]  }
  0x58   : > { %2855 = vmatprep.mubr.msk.bf16.mxu0 %vm1160_vm0, %v3305_v45  ;;  %v3401_v45 = vld [vmem:[%s3666_s4 + $0x2ac] ss:$16 sps:$4 sm:$0xff]  }
  0x5b   : > { %1306 = vmatmul.mubr.bf16.gmra.mrb[8].mxu1 %v3292_v42  ;;  %v3388_v42 = vld [vmem:[%s3666_s4 + $0x240] ss:$16 sps:$4 sm:$0xff]  }
  0x5c   : > { %1313 = vmatprep.mubr.bf16.mxu1 %v3295_v43  ;;  %v3391_v43 = vld [vmem:[%s3666_s4 + $0x264] ss:$16 sps:$4 sm:$0xff]  }
  0x5f   : > { %1619 = vmatmul.mubr.bf16.gmra.mrb[20].mxu0 %v3309_v48  ;;  %v3405_v48 = vld [vmem:[%s3666_s4 + $0x2a8] ss:$16 sps:$4 sm:$0xff]  }
  0x60   : > { %2856 = vmatprep.mubr.msk.bf16.mxu0 %vm1160_vm0, %v3311_v49  ;;  %v3407_v49 = vld [vmem:[%s3666_s4 + $0x2cc] ss:$16 sps:$4 sm:$0xff]  }
  0x63   : > { %1314 = vmatmul.mubr.bf16.gmra.mrb[12].mxu1 %v3298_v46  ;;  %v3394_v46 = vld [vmem:[%s3666_s4 + $0x260] ss:$16 sps:$4 sm:$0xff]  }
  0x64   : > { %1321 = vmatprep.mubr.bf16.mxu1 %v3301_v47  ;;  %v3397_v47 = vld [vmem:[%s3666_s4 + $0x284] ss:$16 sps:$4 sm:$0xff]  }
  0x67   : > { %1627 = vmatmul.mubr.bf16.gmra.mrb[24].mxu0 %v3315_v52  ;;  %v3411_v52 = vld [vmem:[%s3666_s4 + $0x2c8] ss:$16 sps:$4 sm:$0xff]  }
  0x68   : > { %2857 = vmatprep.mubr.msk.bf16.mxu0 %vm1160_vm0, %v3317_v53  ;;  %v3413_v53 = vld [vmem:[%s3666_s4 + $0x2ec] ss:$16 sps:$4 sm:$0xff]  }
  0x6b   : > { %1322 = vmatmul.mubr.bf16.gmra.mrb[16].mxu1 %v3304_v50  ;;  %v3400_v50 = vld [vmem:[%s3666_s4 + $0x280] ss:$16 sps:$4 sm:$0xff]  }
  0x6c   : > { %1329 = vmatprep.mubr.bf16.mxu1 %v3307_v51  ;;  %v3403_v51 = vld [vmem:[%s3666_s4 + $0x2a4] ss:$16 sps:$4 sm:$0xff]  }
  0x6f   : > { %1635 = vmatmul.mubr.bf16.gmra.mrb[28].mxu0 %v3321_v56  ;;  %v3417_v56 = vld [vmem:[%s3666_s4 + $0x2e8] ss:$16 sps:$4 sm:$0xff]  }
  0x70   : > { %2858 = vmatprep.mubr.msk.bf16.mxu0 %vm1160_vm0, %v3323_v57  ;;  %v3419_v57 = vld [vmem:[%s3666_s4 + $0x30c] ss:$16 sps:$4 sm:$0xff]  }
  0x73   : > { %1330 = vmatmul.mubr.bf16.gmra.mrb[20].mxu1 %v3310_v54  ;;  %v3406_v54 = vld [vmem:[%s3666_s4 + $0x2a0] ss:$16 sps:$4 sm:$0xff]  }
  0x74   : > { %1337 = vmatprep.mubr.bf16.mxu1 %v3313_v55  ;;  %v3409_v55 = vld [vmem:[%s3666_s4 + $0x2c4] ss:$16 sps:$4 sm:$0xff]  }
  0x77   : > { %1643 = vmatmul.mubr.bf16.gmra.mrb[32].mxu0 %v3327_v60  ;;  %v3423_v60 = vld [vmem:[%s3666_s4 + $0x308] ss:$16 sps:$4 sm:$0xff]  }
  0x78   : > { %2859 = vmatprep.mubr.msk.bf16.mxu0 %vm1160_vm0, %v3329_v61  ;;  %v3425_v61 = vld [vmem:[%s3666_s4 + $0x32c] ss:$16 sps:$4 sm:$0xff]  }
  0x7b   : > { %1338 = vmatmul.mubr.bf16.gmra.mrb[24].mxu1 %v3316_v58  ;;  %v3412_v58 = vld [vmem:[%s3666_s4 + $0x2c0] ss:$16 sps:$4 sm:$0xff]  }
  0x7c   : > { %1345 = vmatprep.mubr.bf16.mxu1 %v3319_v59  ;;  %v3415_v59 = vld [vmem:[%s3666_s4 + $0x2e4] ss:$16 sps:$4 sm:$0xff]  }
  0x7f   : > { %1651 = vmatmul.mubr.bf16.gmra.mrb[36].mxu0 %v3333_v0  ;;  %v3429_v0 = vld [vmem:[%s3666_s4 + $0x328] ss:$16 sps:$4 sm:$0xff]  }
  0x80   : > { %2860 = vmatprep.mubr.msk.bf16.mxu0 %vm1160_vm0, %v3335_v1  ;;  %v3431_v1 = vld [vmem:[%s3666_s4 + $0x34c] ss:$16 sps:$4 sm:$0xff]  }
  0x83   : > { %1346 = vmatmul.mubr.bf16.gmra.mrb[28].mxu1 %v3322_v62  ;;  %v3418_v62 = vld [vmem:[%s3666_s4 + $0x2e0] ss:$16 sps:$4 sm:$0xff]  }
  0x84   : > { %1353 = vmatprep.mubr.bf16.mxu1 %v3325_v63  ;;  %v3421_v63 = vld [vmem:[%s3666_s4 + $0x304] ss:$16 sps:$4 sm:$0xff]  }
  0x87   : > { %1659 = vmatmul.mubr.bf16.gmra.mrb[40].mxu0 %v3339_v4  ;;  %v3435_v4 = vld [vmem:[%s3666_s4 + $0x348] ss:$16 sps:$4 sm:$0xff]  }
  0x88   : > { %2861 = vmatprep.mubr.msk.bf16.mxu0 %vm1160_vm0, %v3341_v5  ;;  %v3437_v5 = vld [vmem:[%s3666_s4 + $0x36c] ss:$16 sps:$4 sm:$0xff]  }
  0x8b   : > { %1354 = vmatmul.mubr.bf16.gmra.mrb[32].mxu1 %v3328_v2  ;;  %v3424_v2 = vld [vmem:[%s3666_s4 + $0x300] ss:$16 sps:$4 sm:$0xff]  }
  0x8c   : > { %1361 = vmatprep.mubr.bf16.mxu1 %v3331_v3  ;;  %v3427_v3 = vld [vmem:[%s3666_s4 + $0x324] ss:$16 sps:$4 sm:$0xff]  }
  0x8f   : > { %1667 = vmatmul.mubr.bf16.gmra.mrb[44].mxu0 %v3345_v8  ;;  %v3433_v8 = vld [vmem:[%s3666_s4 + $0x344] ss:$16 sps:$4 sm:$0xff]  }
  0x90   : > { %2862 = vmatprep.mubr.msk.bf16.mxu0 %vm1160_vm0, %v3347_v9 }
  0x93   : > { %1362 = vmatmul.mubr.bf16.gmra.mrb[36].mxu1 %v3334_v6  ;;  %v3430_v6 = vld [vmem:[%s3666_s4 + $0x320] ss:$16 sps:$4 sm:$0xff]  }
  0x94   : > { %1369 = vmatprep.mubr.bf16.mxu1 %v3337_v7 }
  0x97   : > { %1675 = vmatmul.mubr.bf16.gmra.mrb[48].mxu0 %v3351_v12  ;;  %v3443_v12 = vld [vmem:[%s3666_s4 + $0x38c] ss:$16 sps:$4 sm:$0xff]  }
  0x98   : > { %2863 = vmatprep.mubr.msk.bf16.mxu0 %vm1160_vm0, %v3353_v13 }
  0x9b   : > { %1370 = vmatmul.mubr.bf16.gmra.mrb[40].mxu1 %v3340_v10  ;;  %v3441_v10 = vld [vmem:[%s3666_s4 + $0x368] ss:$16 sps:$4 sm:$0xff]  }
  0x9c   : > { %1377 = vmatprep.mubr.bf16.mxu1 %v3343_v11 }
  0x9f   : > { %1683 = vmatmul.mubr.bf16.gmra.mrb[52].mxu0 %v3357_v16  ;;  %v3439_v16 = vld [vmem:[%s3666_s4 + $0x364] ss:$16 sps:$4 sm:$0xff]  }
  0xa0   : > { %2864 = vmatprep.mubr.msk.bf16.mxu0 %vm1160_vm0, %v3359_v17 }
  0xa3   : > { %1378 = vmatmul.mubr.bf16.gmra.mrb[44].mxu1 %v3346_v14  ;;  %v3436_v14 = vld [vmem:[%s3666_s4 + $0x340] ss:$16 sps:$4 sm:$0xff]  }
  0xa4   : > { %1385 = vmatprep.mubr.bf16.mxu1 %v3349_v15 }
  0xa7   : > { %1691 = vmatmul.mubr.bf16.gmra.mrb[56].mxu0 %v3363_v20  ;;  %v3449_v20 = vld [vmem:[%s3666_s4 + $0x3ac] ss:$16 sps:$4 sm:$0xff]  }
  0xa8   : > { %2865 = vmatprep.mubr.msk.bf16.mxu0 %vm1160_vm0, %v3365_v21 }
  0xab   : > { %1386 = vmatmul.mubr.bf16.gmra.mrb[48].mxu1 %v3352_v18  ;;  %v3447_v18 = vld [vmem:[%s3666_s4 + $0x388] ss:$16 sps:$4 sm:$0xff]  }
  0xac   : > { %1393 = vmatprep.mubr.bf16.mxu1 %v3355_v19 }
  0xaf   : > { %1699 = vmatmul.mubr.bf16.gmra.mrb[60].mxu0 %v3369_v24 }
  0xb0   : > { %2866 = vmatprep.mubr.msk.bf16.mxu0 %vm1160_vm0, %v3371_v25 }
  0xb3   : > { %1394 = vmatmul.mubr.bf16.gmra.mrb[52].mxu1 %v3358_v22  ;;  %v3870_v22 = vld [vmem:[%s4290_s2] ss:$0 sm:$0xff] }
  0xb4   : > { %1401 = vmatprep.mubr.bf16.mxu1 %v3361_v23 }
  0xb7   : > { %1707 = vmatmul.mubr.bf16.gmra.mrb[64].mxu0 %v3375_v28 }
  0xb8   : > { %2867 = vmatprep.mubr.msk.bf16.mxu0 %vm1160_vm0, %v3377_v29  ;;  %v3445_v29 = vld [vmem:[%s3666_s4 + $0x384] ss:$16 sps:$4 sm:$0xff]  }
  0xbb   : > { %1402 = vmatmul.mubr.bf16.gmra.mrb[56].mxu1 %v3364_v26  ;;  %v3442_v26 = vld [vmem:[%s3666_s4 + $0x360] ss:$16 sps:$4 sm:$0xff]  }
  0xbc   : > { %1409 = vmatprep.mubr.bf16.mxu1 %v3367_v27 }
  0xbf   : > { %1715 = vmatmul.mubr.bf16.gmra.mrb[68].mxu0 %v3381_v32 }
  0xc0   : > { %2868 = vmatprep.mubr.msk.bf16.mxu0 %vm1160_vm0, %v3383_v33 }
  0xc3   : > { %1410 = vmatmul.mubr.bf16.gmra.mrb[60].mxu1 %v3370_v30 }
  0xc4   : > { %1417 = vmatprep.mubr.bf16.mxu1 %v3373_v31  ;;  %v3453_v31 = vld [vmem:[%s3666_s4 + $0x3a8] ss:$16 sps:$4 sm:$0xff]  }
  0xc7   : > { %1723 = vmatmul.mubr.bf16.gmra.mrb[72].mxu0 %v3387_v36  ;;  %v3455_v36 = vld [vmem:[%s3666_s4 + $0x3cc] ss:$16 sps:$4 sm:$0xff]  }
  0xc8   : > { %2869 = vmatprep.mubr.msk.bf16.mxu0 %vm1160_vm0, %v3389_v37 }
  0xcb   : > { %1418 = vmatmul.mubr.bf16.gmra.mrb[64].mxu1 %v3376_v34 }
  0xcc   : > { %1425 = vmatprep.mubr.bf16.mxu1 %v3379_v35 }
  0xcf   : > { %1731 = vmatmul.mubr.bf16.gmra.mrb[76].mxu0 %v3393_v40 }
  0xd0   : > { %2870 = vmatprep.mubr.msk.bf16.mxu0 %vm1160_vm0, %v3395_v41 }
  0xd3   : > { %1426 = vmatmul.mubr.bf16.gmra.mrb[68].mxu1 %v3382_v38 }
  0xd4   : > { %1433 = vmatprep.mubr.bf16.mxu1 %v3385_v39 }
  0xd7   : > { %1739 = vmatmul.mubr.bf16.gmra.mrb[80].mxu0 %v3399_v44 }
  0xd8   : > { %2871 = vmatprep.mubr.msk.bf16.mxu0 %vm1160_vm0, %v3401_v45 }
  0xdb   : > { %1434 = vmatmul.mubr.bf16.gmra.mrb[72].mxu1 %v3388_v42 }
  0xdc   : > { %1441 = vmatprep.mubr.bf16.mxu1 %v3391_v43 }
  0xdf   : > { %1747 = vmatmul.mubr.bf16.gmra.mrb[84].mxu0 %v3405_v48 }
  0xe0   : > { %2872 = vmatprep.mubr.msk.bf16.mxu0 %vm1160_vm0, %v3407_v49  ;;  %v3451_v49 = vld [vmem:[%s3666_s4 + $0x3a4] ss:$16 sps:$4 sm:$0xff]  }
  0xe3   : > { %1442 = vmatmul.mubr.bf16.gmra.mrb[76].mxu1 %v3394_v46  ;;  %v3448_v46 = vld [vmem:[%s3666_s4 + $0x380] ss:$16 sps:$4 sm:$0xff]  }
  0xe4   : > { %1449 = vmatprep.mubr.bf16.mxu1 %v3397_v47 }
  0xe7   : > { %1755 = vmatmul.mubr.bf16.gmra.mrb[88].mxu0 %v3411_v52 }
  0xe8   : > { %2873 = vmatprep.mubr.msk.bf16.mxu0 %vm1160_vm0, %v3413_v53 }
  0xeb   : > { %1450 = vmatmul.mubr.bf16.gmra.mrb[80].mxu1 %v3400_v50 }
  0xec   : > { %1457 = vmatprep.mubr.bf16.mxu1 %v3403_v51  ;;  %v3459_v51 = vld [vmem:[%s3666_s4 + $0x3c8] ss:$16 sps:$4 sm:$0xff]  }
  0xef   : > { %1763 = vmatmul.mubr.bf16.gmra.mrb[92].mxu0 %v3417_v56  ;;  %v3461_v56 = vld [vmem:[%s3666_s4 + $0x3ec] ss:$16 sps:$4 sm:$0xff]  }
  0xf0   : > { %2874 = vmatprep.mubr.msk.bf16.mxu0 %vm1160_vm0, %v3419_v57 }
  0xf3   : > { %1458 = vmatmul.mubr.bf16.gmra.mrb[84].mxu1 %v3406_v54 }
  0xf4   : > { %1465 = vmatprep.mubr.bf16.mxu1 %v3409_v55 }
  0xf7   : > { %1771 = vmatmul.mubr.bf16.gmra.mrb[96].mxu0 %v3423_v60 }
  0xf8   : > { %2875 = vmatprep.mubr.msk.bf16.mxu0 %vm1160_vm0, %v3425_v61 }
  0xfb   : > { %1466 = vmatmul.mubr.bf16.gmra.mrb[88].mxu1 %v3412_v58 }
  0xfc   : > { %1473 = vmatprep.mubr.bf16.mxu1 %v3415_v59 }
  0xff   : > { %1779 = vmatmul.mubr.bf16.gmra.mrb[100].mxu0 %v3429_v0 }
 0x100   : > { %2876 = vmatprep.mubr.msk.bf16.mxu0 %vm1160_vm0, %v3431_v1 }
 0x103   : > { %1474 = vmatmul.mubr.bf16.gmra.mrb[92].mxu1 %v3418_v62 }
 0x104   : > { %1481 = vmatprep.mubr.bf16.mxu1 %v3421_v63 }
 0x107   : > { %1787 = vmatmul.mubr.bf16.gmra.mrb[104].mxu0 %v3435_v4 }
 0x108   : > { %2877 = vmatprep.mubr.msk.bf16.mxu0 %vm1160_vm0, %v3437_v5  ;;  %v3457_v5 = vld [vmem:[%s3666_s4 + $0x3c4] ss:$16 sps:$4 sm:$0xff]  }
 0x10a   : > { %v1580_v7 = vpop.f32.mrb[0].mxu0 }
 0x10b   : > { %1482 = vmatmul.mubr.bf16.gmra.mrb[96].mxu1 %v3424_v2  ;;  %v1582_v9 = vpop.f32.mrb[1].mxu0  ;;  %v3454_v2 = vld [vmem:[%s3666_s4 + $0x3a0] ss:$16 sps:$4 sm:$0xff]  }
 0x10c   : > { %1489 = vmatprep.mubr.bf16.mxu1 %v3427_v3  ;;  %v1583_v11 = vpop.f32.mrb[2].mxu0 }
 0x10d   : > { %v1585_v13 = vpop.f32.mrb[3].mxu0 }
 0x10f   : > { %1795 = vmatmul.mubr.bf16.gmra.mrb[108].mxu0 %v3441_v10 }
 0x110   : > { %2878 = vmatprep.mubr.msk.bf16.mxu0 %vm1160_vm0, %v3443_v12 }
 0x112   : > { %v1588_v15 = vpop.f32.mrb[4].mxu0 }
 0x113   : > { %1490 = vmatmul.mubr.bf16.gmra.mrb[100].mxu1 %v3430_v6  ;;  %v1590_v17 = vpop.f32.mrb[5].mxu0 }
 0x114   : > { %1497 = vmatprep.mubr.bf16.mxu1 %v3433_v8  ;;  %v1591_v19 = vpop.f32.mrb[6].mxu0 }
 0x115   : > { %v1593_v21 = vpop.f32.mrb[7].mxu0 }
 0x116   : > { %v3460_v21 = vld [vmem:[%s3666_s4 + $0x3c0] ss:$16 sps:$4 sm:$0xff]  }
 0x117   : > { %1803 = vmatmul.mubr.bf16.gmra.mrb[112].mxu0 %v3447_v18 }
 0x118   : > { %2879 = vmatprep.mubr.msk.bf16.mxu0 %vm1160_vm0, %v3449_v20 }
 0x11a   : > { %v1596_v27 = vpop.f32.mrb[8].mxu0 }
 0x11b   : > { %1498 = vmatmul.mubr.bf16.gmra.mrb[104].mxu1 %v3436_v14  ;;  %v1598_v30 = vpop.f32.mrb[9].mxu0 }
 0x11c   : > { %1505 = vmatprep.mubr.bf16.mxu1 %v3439_v16  ;;  %v1599_v35 = vpop.f32.mrb[10].mxu0 }
 0x11d   : > { %v1601_v37 = vpop.f32.mrb[11].mxu0 }
 0x11e   : > { %v1291_v23 = vpop.f32.mrb[0].mxu1 }
 0x11f   : > { %v1292_v24 = vadd.f32 %v3870_v22, %v1291_v23  ;;  %v1293_v25 = vpop.f32.mrb[1].mxu1  ;;  %1811 = vmatmul.mubr.bf16.gmra.mrb[116].mxu0 %v3453_v31 }
 0x120   : > { %v1294_v28 = vpop.f32.mrb[2].mxu1  ;;  %2880 = vmatprep.mubr.msk.bf16.mxu0 %vm1160_vm0, %v3455_v36  ;;  %v3463_v25 = vld [vmem:[%s3666_s4 + $0x3e4] ss:$16 sps:$4 sm:$0xff]  }
 0x121   : > { %v1581_v32 = vadd.f32 %v1580_v7, %v1292_v24  ;;  %v1295_v33 = vadd.f32 %v3870_v22, %v1294_v28  ;;  %v1296_v34 = vpop.f32.mrb[3].mxu1  ;;  %v3465_v7 = vld [vmem:[%s3666_s4 + $0x3e8] ss:$16 sps:$4 sm:$0xff]  }
 0x122   : > { %v1604_v47 = vpop.f32.mrb[12].mxu0 }
 0x123   : > { %v1835_v38 = vmax.f32 %v1581_v32, 0.0  ;;  %v1584_v39 = vadd.f32 %v1583_v11, %v1295_v33  ;;  %1506 = vmatmul.mubr.bf16.gmra.mrb[108].mxu1 %v3442_v26  ;;  %v1606_v50 = vpop.f32.mrb[13].mxu0 }
 0x124   : > { %1513 = vmatprep.mubr.bf16.mxu1 %v3445_v29  ;;  %v1607_v55 = vpop.f32.mrb[14].mxu0 }
 0x125   : > { %v2964_v40 = vpack.c.bf16 %v1835_v38, %v1835_v38  ;;  %v1836_v41 = vmax.f32 %v1584_v39, 0.0  ;;  %v1609_v57 = vpop.f32.mrb[15].mxu0 }
 0x126   : > { %v1299_v42 = vpop.f32.mrb[4].mxu1 }
 0x127   : > { %2156 = vst.msk [vmem:[%s3881_s12] sm:$0xf] %vm2155_vm1, %v2964_v40  ;;  %v2965_v43 = vpack.c.bf16 %v1836_v41, %v1836_v41  ;;  %v1300_v44 = vadd.f32 %v3870_v22, %v1299_v42  ;;  %v1301_v45 = vpop.f32.mrb[5].mxu1  ;;  %1819 = vmatmul.mubr.bf16.gmra.mrb[120].mxu0 %v3459_v51  ;;  %v3466_v40 = vld [vmem:[%s3666_s4 + $0x3e0] ss:$16 sps:$4 sm:$0xff]  }
 0x128   : > { %v1302_v48 = vpop.f32.mrb[6].mxu1  ;;  %2881 = vmatprep.mubr.msk.bf16.mxu0 %vm1160_vm0, %v3461_v56 }
 0x129   : > { %2157 = vst.msk [vmem:[%s3881_s12 + $0x4] sm:$0xf] %vm2155_vm1, %v2965_v43  ;;  %v1589_v52 = vadd.f32 %v1588_v15, %v1300_v44  ;;  %v1303_v53 = vadd.f32 %v3870_v22, %v1302_v48  ;;  %v1304_v54 = vpop.f32.mrb[7].mxu1 }
 0x12a   : > { %v1612_v3 = vpop.f32.mrb[16].mxu0 }
 0x12b   : > { %v1837_v58 = vmax.f32 %v1589_v52, 0.0  ;;  %v1592_v59 = vadd.f32 %v1591_v19, %v1303_v53  ;;  %1514 = vmatmul.mubr.bf16.gmra.mrb[112].mxu1 %v3448_v46  ;;  %v1614_v6 = vpop.f32.mrb[17].mxu0 }
 0x12c   : > { %1521 = vmatprep.mubr.bf16.mxu1 %v3451_v49  ;;  %v1615_v11 = vpop.f32.mrb[18].mxu0 }
 0x12d   : > { %v2966_v60 = vpack.c.bf16 %v1837_v58, %v1837_v58  ;;  %v1838_v61 = vmax.f32 %v1592_v59, 0.0  ;;  %v1617_v12 = vpop.f32.mrb[19].mxu0 }
 0x12e   : > { %v1307_v62 = vpop.f32.mrb[8].mxu1 }
 0x12f   : > { %2158 = vst.msk [vmem:[%s3881_s12 + $0x8] sm:$0xf] %vm2155_vm1, %v2966_v60  ;;  %v2967_v63 = vpack.c.bf16 %v1838_v61, %v1838_v61  ;;  %v1308_v0 = vadd.f32 %v3870_v22, %v1307_v62  ;;  %v1309_v1 = vpop.f32.mrb[9].mxu1  ;;  %1827 = vmatmul.mubr.bf16.gmra.mrb[124].mxu0 %v3465_v7 }
 0x130   : > { %v1310_v4 = vpop.f32.mrb[10].mxu1 }
 0x131   : > { %2159 = vst.msk [vmem:[%s3881_s12 + $0xc] sm:$0xf] %vm2155_vm1, %v2967_v63  ;;  %v1597_v8 = vadd.f32 %v1596_v27, %v1308_v0  ;;  %v1311_v9 = vadd.f32 %v3870_v22, %v1310_v4  ;;  %v1312_v10 = vpop.f32.mrb[11].mxu1 }
 0x132   : > { %v1620_v23 = vpop.f32.mrb[20].mxu0 }
 0x133   : > { %v1839_v13 = vmax.f32 %v1597_v8, 0.0  ;;  %v1600_v14 = vadd.f32 %v1599_v35, %v1311_v9  ;;  %1522 = vmatmul.mubr.bf16.gmra.mrb[116].mxu1 %v3454_v2  ;;  %v1622_v26 = vpop.f32.mrb[21].mxu0 }
 0x134   : > { %1529 = vmatprep.mubr.bf16.mxu1 %v3457_v5  ;;  %v1623_v30 = vpop.f32.mrb[22].mxu0 }
 0x135   : > { %v2968_v15 = vpack.c.bf16 %v1839_v13, %v1839_v13  ;;  %v1840_v16 = vmax.f32 %v1600_v14, 0.0  ;;  %v1625_v31 = vpop.f32.mrb[23].mxu0 }
 0x136   : > { %v1315_v17 = vpop.f32.mrb[12].mxu1 }
 0x137   : > { %2160 = vst.msk [vmem:[%s3881_s12 + $0x10] sm:$0xf] %vm2155_vm1, %v2968_v15  ;;  %v2969_v18 = vpack.c.bf16 %v1840_v16, %v1840_v16  ;;  %v1316_v19 = vadd.f32 %v3870_v22, %v1315_v17  ;;  %v1317_v20 = vpop.f32.mrb[13].mxu1 }
 0x138   : > { %v1318_v24 = vpop.f32.mrb[14].mxu1 }
 0x139   : > { %2161 = vst.msk [vmem:[%s3881_s12 + $0x14] sm:$0xf] %vm2155_vm1, %v2969_v18  ;;  %v1605_v27 = vadd.f32 %v1604_v47, %v1316_v19  ;;  %v1319_v28 = vadd.f32 %v3870_v22, %v1318_v24  ;;  %v1320_v29 = vpop.f32.mrb[15].mxu1 }
 0x13a   : > { %v1628_v41 = vpop.f32.mrb[24].mxu0 }
 0x13b   : > { %v1841_v32 = vmax.f32 %v1605_v27, 0.0  ;;  %v1608_v33 = vadd.f32 %v1607_v55, %v1319_v28  ;;  %1530 = vmatmul.mubr.bf16.gmra.mrb[120].mxu1 %v3460_v21  ;;  %v1630_v43 = vpop.f32.mrb[25].mxu0 }
 0x13c   : > { %1537 = vmatprep.mubr.bf16.mxu1 %v3463_v25  ;;  %v1631_v47 = vpop.f32.mrb[26].mxu0 }
 0x13d   : > { %v2970_v34 = vpack.c.bf16 %v1841_v32, %v1841_v32  ;;  %v1842_v35 = vmax.f32 %v1608_v33, 0.0  ;;  %v1633_v48 = vpop.f32.mrb[27].mxu0 }
 0x13e   : > { %v1323_v36 = vpop.f32.mrb[16].mxu1 }
 0x13f   : > { %2162 = vst.msk [vmem:[%s3881_s12 + $0x18] sm:$0xf] %vm2155_vm1, %v2970_v34  ;;  %v2971_v37 = vpack.c.bf16 %v1842_v35, %v1842_v35  ;;  %v1324_v38 = vadd.f32 %v3870_v22, %v1323_v36  ;;  %v1325_v39 = vpop.f32.mrb[17].mxu1 }
 0x140   : > { %v1326_v42 = vpop.f32.mrb[18].mxu1 }
 0x141   : > { %2163 = vst.msk [vmem:[%s3881_s12 + $0x1c] sm:$0xf] %vm2155_vm1, %v2971_v37  ;;  %v1613_v44 = vadd.f32 %v1612_v3, %v1324_v38  ;;  %v1327_v45 = vadd.f32 %v3870_v22, %v1326_v42  ;;  %v1328_v46 = vpop.f32.mrb[19].mxu1 }
 0x142   : > { %v1636_v57 = vpop.f32.mrb[28].mxu0 }
 0x143   : > { %v1843_v49 = vmax.f32 %v1613_v44, 0.0  ;;  %v1616_v50 = vadd.f32 %v1615_v11, %v1327_v45  ;;  %1538 = vmatmul.mubr.bf16.gmra.mrb[124].mxu1 %v3466_v40  ;;  %v1638_v59 = vpop.f32.mrb[29].mxu0 }
 0x144   : > { %v1639_v63 = vpop.f32.mrb[30].mxu0 }
 0x145   : > { %v2972_v51 = vpack.c.bf16 %v1843_v49, %v1843_v49  ;;  %v1844_v52 = vmax.f32 %v1616_v50, 0.0  ;;  %v1641_v0 = vpop.f32.mrb[31].mxu0 }
 0x146   : > { %v1331_v53 = vpop.f32.mrb[20].mxu1 }
 0x147   : > { %2164 = vst.msk [vmem:[%s3881_s12 + $0x20] sm:$0xf] %vm2155_vm1, %v2972_v51  ;;  %v2973_v54 = vpack.c.bf16 %v1844_v52, %v1844_v52  ;;  %v1332_v55 = vadd.f32 %v3870_v22, %v1331_v53  ;;  %v1333_v56 = vpop.f32.mrb[21].mxu1 }
 0x148   : > { %v1334_v58 = vpop.f32.mrb[22].mxu1 }
 0x149   : > { %2165 = vst.msk [vmem:[%s3881_s12 + $0x24] sm:$0xf] %vm2155_vm1, %v2973_v54  ;;  %v1621_v60 = vadd.f32 %v1620_v23, %v1332_v55  ;;  %v1335_v61 = vadd.f32 %v3870_v22, %v1334_v58  ;;  %v1336_v62 = vpop.f32.mrb[23].mxu1 }
 0x14a   : > { %v1644_v9 = vpop.f32.mrb[32].mxu0 }
 0x14b   : > { %v1845_v1 = vmax.f32 %v1621_v60, 0.0  ;;  %v1624_v2 = vadd.f32 %v1623_v30, %v1335_v61  ;;  %v1646_v11 = vpop.f32.mrb[33].mxu0 }
 0x14c   : > { %v1647_v15 = vpop.f32.mrb[34].mxu0 }
 0x14d   : > { %v2974_v3 = vpack.c.bf16 %v1845_v1, %v1845_v1  ;;  %v1846_v4 = vmax.f32 %v1624_v2, 0.0  ;;  %v1649_v16 = vpop.f32.mrb[35].mxu0 }
 0x14e   : > { %v1339_v5 = vpop.f32.mrb[24].mxu1 }
 0x14f   : > { %2166 = vst.msk [vmem:[%s3881_s12 + $0x28] sm:$0xf] %vm2155_vm1, %v2974_v3  ;;  %v2975_v6 = vpack.c.bf16 %v1846_v4, %v1846_v4  ;;  %v1340_v7 = vadd.f32 %v3870_v22, %v1339_v5  ;;  %v1341_v8 = vpop.f32.mrb[25].mxu1 }
 0x150   : > { %v1342_v10 = vpop.f32.mrb[26].mxu1 }
 0x151   : > { %2167 = vst.msk [vmem:[%s3881_s12 + $0x2c] sm:$0xf] %vm2155_vm1, %v2975_v6  ;;  %v1629_v12 = vadd.f32 %v1628_v41, %v1340_v7  ;;  %v1343_v13 = vadd.f32 %v3870_v22, %v1342_v10  ;;  %v1344_v14 = vpop.f32.mrb[27].mxu1 }
 0x152   : > { %v1652_v26 = vpop.f32.mrb[36].mxu0 }
 0x153   : > { %v1847_v17 = vmax.f32 %v1629_v12, 0.0  ;;  %v1632_v18 = vadd.f32 %v1631_v47, %v1343_v13  ;;  %v1654_v28 = vpop.f32.mrb[37].mxu0 }
 0x154   : > { %v1655_v32 = vpop.f32.mrb[38].mxu0 }
 0x155   : > { %v2976_v19 = vpack.c.bf16 %v1847_v17, %v1847_v17  ;;  %v1848_v20 = vmax.f32 %v1632_v18, 0.0  ;;  %v1657_v33 = vpop.f32.mrb[39].mxu0 }
 0x156   : > { %v1347_v21 = vpop.f32.mrb[28].mxu1 }
 0x157   : > { %2168 = vst.msk [vmem:[%s3881_s12 + $0x30] sm:$0xf] %vm2155_vm1, %v2976_v19  ;;  %v2977_v23 = vpack.c.bf16 %v1848_v20, %v1848_v20  ;;  %v1348_v24 = vadd.f32 %v3870_v22, %v1347_v21  ;;  %v1349_v25 = vpop.f32.mrb[29].mxu1 }
 0x158   : > { %v1350_v27 = vpop.f32.mrb[30].mxu1 }
 0x159   : > { %2169 = vst.msk [vmem:[%s3881_s12 + $0x34] sm:$0xf] %vm2155_vm1, %v2977_v23  ;;  %v1637_v29 = vadd.f32 %v1636_v57, %v1348_v24  ;;  %v1351_v30 = vadd.f32 %v3870_v22, %v1350_v27  ;;  %v1352_v31 = vpop.f32.mrb[31].mxu1 }
 0x15a   : > { %v1660_v42 = vpop.f32.mrb[40].mxu0 }
 0x15b   : > { %v1849_v34 = vmax.f32 %v1637_v29, 0.0  ;;  %v1640_v35 = vadd.f32 %v1639_v63, %v1351_v30  ;;  %v1662_v44 = vpop.f32.mrb[41].mxu0 }
 0x15c   : > { %v1663_v48 = vpop.f32.mrb[42].mxu0 }
 0x15d   : > { %v2978_v36 = vpack.c.bf16 %v1849_v34, %v1849_v34  ;;  %v1850_v37 = vmax.f32 %v1640_v35, 0.0  ;;  %v1665_v49 = vpop.f32.mrb[43].mxu0 }
 0x15e   : > { %v1355_v38 = vpop.f32.mrb[32].mxu1 }
 0x15f   : > { %2170 = vst.msk [vmem:[%s3881_s12 + $0x38] sm:$0xf] %vm2155_vm1, %v2978_v36  ;;  %v2979_v39 = vpack.c.bf16 %v1850_v37, %v1850_v37  ;;  %v1356_v40 = vadd.f32 %v3870_v22, %v1355_v38  ;;  %v1357_v41 = vpop.f32.mrb[33].mxu1 }
 0x160   : > { %v1358_v43 = vpop.f32.mrb[34].mxu1 }
 0x161   : > { %2171 = vst.msk [vmem:[%s3881_s12 + $0x3c] sm:$0xf] %vm2155_vm1, %v2979_v39  ;;  %v1645_v45 = vadd.f32 %v1644_v9, %v1356_v40  ;;  %v1359_v46 = vadd.f32 %v3870_v22, %v1358_v43  ;;  %v1360_v47 = vpop.f32.mrb[35].mxu1 }
 0x162   : > { %v1668_v58 = vpop.f32.mrb[44].mxu0 }
 0x163   : > { %v1851_v50 = vmax.f32 %v1645_v45, 0.0  ;;  %v1648_v51 = vadd.f32 %v1647_v15, %v1359_v46  ;;  %v1670_v60 = vpop.f32.mrb[45].mxu0 }
 0x164   : > { %v1671_v0 = vpop.f32.mrb[46].mxu0 }
 0x165   : > { %v2980_v52 = vpack.c.bf16 %v1851_v50, %v1851_v50  ;;  %v1852_v53 = vmax.f32 %v1648_v51, 0.0  ;;  %v1673_v1 = vpop.f32.mrb[47].mxu0 }
 0x166   : > { %v1363_v54 = vpop.f32.mrb[36].mxu1 }
 0x167   : > { %2172 = vst.msk [vmem:[%s3881_s12 + $0x40] sm:$0xf] %vm2155_vm1, %v2980_v52  ;;  %v2981_v55 = vpack.c.bf16 %v1852_v53, %v1852_v53  ;;  %v1364_v56 = vadd.f32 %v3870_v22, %v1363_v54  ;;  %v1365_v57 = vpop.f32.mrb[37].mxu1 }
 0x168   : > { %v1366_v59 = vpop.f32.mrb[38].mxu1 }
 0x169   : > { %2173 = vst.msk [vmem:[%s3881_s12 + $0x44] sm:$0xf] %vm2155_vm1, %v2981_v55  ;;  %v1653_v61 = vadd.f32 %v1652_v26, %v1364_v56  ;;  %v1367_v62 = vadd.f32 %v3870_v22, %v1366_v59  ;;  %v1368_v63 = vpop.f32.mrb[39].mxu1 }
 0x16a   : > { %v1676_v10 = vpop.f32.mrb[48].mxu0 }
 0x16b   : > { %v1853_v2 = vmax.f32 %v1653_v61, 0.0  ;;  %v1656_v3 = vadd.f32 %v1655_v32, %v1367_v62  ;;  %v1678_v12 = vpop.f32.mrb[49].mxu0 }
 0x16c   : > { %v1679_v16 = vpop.f32.mrb[50].mxu0 }
 0x16d   : > { %v2982_v4 = vpack.c.bf16 %v1853_v2, %v1853_v2  ;;  %v1854_v5 = vmax.f32 %v1656_v3, 0.0  ;;  %v1681_v17 = vpop.f32.mrb[51].mxu0 }
 0x16e   : > { %v1371_v6 = vpop.f32.mrb[40].mxu1 }
 0x16f   : > { %2174 = vst.msk [vmem:[%s3881_s12 + $0x48] sm:$0xf] %vm2155_vm1, %v2982_v4  ;;  %v2983_v7 = vpack.c.bf16 %v1854_v5, %v1854_v5  ;;  %v1372_v8 = vadd.f32 %v3870_v22, %v1371_v6  ;;  %v1373_v9 = vpop.f32.mrb[41].mxu1 }
 0x170   : > { %v1374_v11 = vpop.f32.mrb[42].mxu1 }
 0x171   : > { %2175 = vst.msk [vmem:[%s3881_s12 + $0x4c] sm:$0xf] %vm2155_vm1, %v2983_v7  ;;  %v1661_v13 = vadd.f32 %v1660_v42, %v1372_v8  ;;  %v1375_v14 = vadd.f32 %v3870_v22, %v1374_v11  ;;  %v1376_v15 = vpop.f32.mrb[43].mxu1 }
 0x172   : > { %v1684_v27 = vpop.f32.mrb[52].mxu0 }
 0x173   : > { %v1855_v18 = vmax.f32 %v1661_v13, 0.0  ;;  %v1664_v19 = vadd.f32 %v1663_v48, %v1375_v14  ;;  %v1686_v29 = vpop.f32.mrb[53].mxu0 }
 0x174   : > { %v1687_v33 = vpop.f32.mrb[54].mxu0 }
 0x175   : > { %v2984_v20 = vpack.c.bf16 %v1855_v18, %v1855_v18  ;;  %v1856_v21 = vmax.f32 %v1664_v19, 0.0  ;;  %v1689_v34 = vpop.f32.mrb[55].mxu0 }
 0x176   : > { %v1379_v23 = vpop.f32.mrb[44].mxu1 }
 0x177   : > { %2176 = vst.msk [vmem:[%s3881_s12 + $0x50] sm:$0xf] %vm2155_vm1, %v2984_v20  ;;  %v2985_v24 = vpack.c.bf16 %v1856_v21, %v1856_v21  ;;  %v1380_v25 = vadd.f32 %v3870_v22, %v1379_v23  ;;  %v1381_v26 = vpop.f32.mrb[45].mxu1 }
 0x178   : > { %v1382_v28 = vpop.f32.mrb[46].mxu1 }
 0x179   : > { %2177 = vst.msk [vmem:[%s3881_s12 + $0x54] sm:$0xf] %vm2155_vm1, %v2985_v24  ;;  %v1669_v30 = vadd.f32 %v1668_v58, %v1380_v25  ;;  %v1383_v31 = vadd.f32 %v3870_v22, %v1382_v28  ;;  %v1384_v32 = vpop.f32.mrb[47].mxu1 }
 0x17a   : > { %v1692_v43 = vpop.f32.mrb[56].mxu0 }
 0x17b   : > { %v1857_v35 = vmax.f32 %v1669_v30, 0.0  ;;  %v1672_v36 = vadd.f32 %v1671_v0, %v1383_v31  ;;  %v1694_v45 = vpop.f32.mrb[57].mxu0 }
 0x17c   : > { %v1695_v49 = vpop.f32.mrb[58].mxu0 }
 0x17d   : > { %v2986_v37 = vpack.c.bf16 %v1857_v35, %v1857_v35  ;;  %v1858_v38 = vmax.f32 %v1672_v36, 0.0  ;;  %v1697_v50 = vpop.f32.mrb[59].mxu0 }
 0x17e   : > { %v1387_v39 = vpop.f32.mrb[48].mxu1 }
 0x17f   : > { %2178 = vst.msk [vmem:[%s3881_s12 + $0x58] sm:$0xf] %vm2155_vm1, %v2986_v37  ;;  %v2987_v40 = vpack.c.bf16 %v1858_v38, %v1858_v38  ;;  %v1388_v41 = vadd.f32 %v3870_v22, %v1387_v39  ;;  %v1389_v42 = vpop.f32.mrb[49].mxu1 }
 0x180   : > { %v1390_v44 = vpop.f32.mrb[50].mxu1 }
 0x181   : > { %2179 = vst.msk [vmem:[%s3881_s12 + $0x5c] sm:$0xf] %vm2155_vm1, %v2987_v40  ;;  %v1677_v46 = vadd.f32 %v1676_v10, %v1388_v41  ;;  %v1391_v47 = vadd.f32 %v3870_v22, %v1390_v44  ;;  %v1392_v48 = vpop.f32.mrb[51].mxu1 }
 0x182   : > { %v1700_v59 = vpop.f32.mrb[60].mxu0 }
 0x183   : > { %v1859_v51 = vmax.f32 %v1677_v46, 0.0  ;;  %v1680_v52 = vadd.f32 %v1679_v16, %v1391_v47  ;;  %v1702_v61 = vpop.f32.mrb[61].mxu0 }
 0x184   : > { %v1703_v1 = vpop.f32.mrb[62].mxu0 }
 0x185   : > { %v2988_v53 = vpack.c.bf16 %v1859_v51, %v1859_v51  ;;  %v1860_v54 = vmax.f32 %v1680_v52, 0.0  ;;  %v1705_v2 = vpop.f32.mrb[63].mxu0 }
 0x186   : > { %v1395_v55 = vpop.f32.mrb[52].mxu1 }
 0x187   : > { %2180 = vst.msk [vmem:[%s3881_s12 + $0x60] sm:$0xf] %vm2155_vm1, %v2988_v53  ;;  %v2989_v56 = vpack.c.bf16 %v1860_v54, %v1860_v54  ;;  %v1396_v57 = vadd.f32 %v3870_v22, %v1395_v55  ;;  %v1397_v58 = vpop.f32.mrb[53].mxu1 }
 0x188   : > { %v1398_v60 = vpop.f32.mrb[54].mxu1 }
 0x189   : > { %2181 = vst.msk [vmem:[%s3881_s12 + $0x64] sm:$0xf] %vm2155_vm1, %v2989_v56  ;;  %v1685_v62 = vadd.f32 %v1684_v27, %v1396_v57  ;;  %v1399_v63 = vadd.f32 %v3870_v22, %v1398_v60  ;;  %v1400_v0 = vpop.f32.mrb[55].mxu1 }
 0x18a   : > { %v1708_v11 = vpop.f32.mrb[64].mxu0 }
 0x18b   : > { %v1861_v3 = vmax.f32 %v1685_v62, 0.0  ;;  %v1688_v4 = vadd.f32 %v1687_v33, %v1399_v63  ;;  %v1710_v13 = vpop.f32.mrb[65].mxu0 }
 0x18c   : > { %v1711_v17 = vpop.f32.mrb[66].mxu0 }
 0x18d   : > { %v2990_v5 = vpack.c.bf16 %v1861_v3, %v1861_v3  ;;  %v1862_v6 = vmax.f32 %v1688_v4, 0.0  ;;  %v1713_v18 = vpop.f32.mrb[67].mxu0 }
 0x18e   : > { %v1403_v7 = vpop.f32.mrb[56].mxu1 }
 0x18f   : > { %2182 = vst.msk [vmem:[%s3881_s12 + $0x68] sm:$0xf] %vm2155_vm1, %v2990_v5  ;;  %v2991_v8 = vpack.c.bf16 %v1862_v6, %v1862_v6  ;;  %v1404_v9 = vadd.f32 %v3870_v22, %v1403_v7  ;;  %v1405_v10 = vpop.f32.mrb[57].mxu1 }
 0x190   : > { %v1406_v12 = vpop.f32.mrb[58].mxu1 }
 0x191   : > { %2183 = vst.msk [vmem:[%s3881_s12 + $0x6c] sm:$0xf] %vm2155_vm1, %v2991_v8  ;;  %v1693_v14 = vadd.f32 %v1692_v43, %v1404_v9  ;;  %v1407_v15 = vadd.f32 %v3870_v22, %v1406_v12  ;;  %v1408_v16 = vpop.f32.mrb[59].mxu1 }
 0x192   : > { %v1716_v28 = vpop.f32.mrb[68].mxu0 }
 0x193   : > { %v1863_v19 = vmax.f32 %v1693_v14, 0.0  ;;  %v1696_v20 = vadd.f32 %v1695_v49, %v1407_v15  ;;  %v1718_v30 = vpop.f32.mrb[69].mxu0 }
 0x194   : > { %v1719_v34 = vpop.f32.mrb[70].mxu0 }
 0x195   : > { %v2992_v21 = vpack.c.bf16 %v1863_v19, %v1863_v19  ;;  %v1864_v23 = vmax.f32 %v1696_v20, 0.0  ;;  %v1721_v35 = vpop.f32.mrb[71].mxu0 }
 0x196   : > { %v1411_v24 = vpop.f32.mrb[60].mxu1 }
 0x197   : > { %2184 = vst.msk [vmem:[%s3881_s12 + $0x70] sm:$0xf] %vm2155_vm1, %v2992_v21  ;;  %v2993_v25 = vpack.c.bf16 %v1864_v23, %v1864_v23  ;;  %v1412_v26 = vadd.f32 %v3870_v22, %v1411_v24  ;;  %v1413_v27 = vpop.f32.mrb[61].mxu1 }
 0x198   : > { %v1414_v29 = vpop.f32.mrb[62].mxu1 }
 0x199   : > { %2185 = vst.msk [vmem:[%s3881_s12 + $0x74] sm:$0xf] %vm2155_vm1, %v2993_v25  ;;  %v1701_v31 = vadd.f32 %v1700_v59, %v1412_v26  ;;  %v1415_v32 = vadd.f32 %v3870_v22, %v1414_v29  ;;  %v1416_v33 = vpop.f32.mrb[63].mxu1 }
 0x19a   : > { %v1724_v44 = vpop.f32.mrb[72].mxu0 }
 0x19b   : > { %v1865_v36 = vmax.f32 %v1701_v31, 0.0  ;;  %v1704_v37 = vadd.f32 %v1703_v1, %v1415_v32  ;;  %v1726_v46 = vpop.f32.mrb[73].mxu0 }
 0x19c   : > { %v1727_v50 = vpop.f32.mrb[74].mxu0 }
 0x19d   : > { %v2994_v38 = vpack.c.bf16 %v1865_v36, %v1865_v36  ;;  %v1866_v39 = vmax.f32 %v1704_v37, 0.0  ;;  %v1729_v51 = vpop.f32.mrb[75].mxu0 }
 0x19e   : > { %v1419_v40 = vpop.f32.mrb[64].mxu1 }
 0x19f   : > { %2186 = vst.msk [vmem:[%s3881_s12 + $0x78] sm:$0xf] %vm2155_vm1, %v2994_v38  ;;  %v2995_v41 = vpack.c.bf16 %v1866_v39, %v1866_v39  ;;  %v1420_v42 = vadd.f32 %v3870_v22, %v1419_v40  ;;  %v1421_v43 = vpop.f32.mrb[65].mxu1 }
 0x1a0   : > { %v1422_v45 = vpop.f32.mrb[66].mxu1 }
 0x1a1   : > { %2187 = vst.msk [vmem:[%s3881_s12 + $0x7c] sm:$0xf] %vm2155_vm1, %v2995_v41  ;;  %v1709_v47 = vadd.f32 %v1708_v11, %v1420_v42  ;;  %v1423_v48 = vadd.f32 %v3870_v22, %v1422_v45  ;;  %v1424_v49 = vpop.f32.mrb[67].mxu1 }
 0x1a2   : > { %v1732_v60 = vpop.f32.mrb[76].mxu0 }
 0x1a3   : > { %v1867_v52 = vmax.f32 %v1709_v47, 0.0  ;;  %v1712_v53 = vadd.f32 %v1711_v17, %v1423_v48  ;;  %v1734_v62 = vpop.f32.mrb[77].mxu0 }
 0x1a4   : > { %v1735_v2 = vpop.f32.mrb[78].mxu0 }
 0x1a5   : > { %v2996_v54 = vpack.c.bf16 %v1867_v52, %v1867_v52  ;;  %v1868_v55 = vmax.f32 %v1712_v53, 0.0  ;;  %v1737_v3 = vpop.f32.mrb[79].mxu0 }
 0x1a6   : > { %v1427_v56 = vpop.f32.mrb[68].mxu1 }
 0x1a7   : > { %2188 = vst.msk [vmem:[%s3881_s12 + $0x80] sm:$0xf] %vm2155_vm1, %v2996_v54  ;;  %v2997_v57 = vpack.c.bf16 %v1868_v55, %v1868_v55  ;;  %v1428_v58 = vadd.f32 %v3870_v22, %v1427_v56  ;;  %v1429_v59 = vpop.f32.mrb[69].mxu1 }
 0x1a8   : > { %v1430_v61 = vpop.f32.mrb[70].mxu1 }
 0x1a9   : > { %2189 = vst.msk [vmem:[%s3881_s12 + $0x84] sm:$0xf] %vm2155_vm1, %v2997_v57  ;;  %v1717_v63 = vadd.f32 %v1716_v28, %v1428_v58  ;;  %v1431_v0 = vadd.f32 %v3870_v22, %v1430_v61  ;;  %v1432_v1 = vpop.f32.mrb[71].mxu1 }
 0x1aa   : > { %v1740_v12 = vpop.f32.mrb[80].mxu0 }
 0x1ab   : > { %v1869_v4 = vmax.f32 %v1717_v63, 0.0  ;;  %v1720_v5 = vadd.f32 %v1719_v34, %v1431_v0  ;;  %v1742_v14 = vpop.f32.mrb[81].mxu0 }
 0x1ac   : > { %v1743_v18 = vpop.f32.mrb[82].mxu0 }
 0x1ad   : > { %v2998_v6 = vpack.c.bf16 %v1869_v4, %v1869_v4  ;;  %v1870_v7 = vmax.f32 %v1720_v5, 0.0  ;;  %v1745_v19 = vpop.f32.mrb[83].mxu0 }
 0x1ae   : > { %v1435_v8 = vpop.f32.mrb[72].mxu1 }
 0x1af   : > { %2190 = vst.msk [vmem:[%s3881_s12 + $0x88] sm:$0xf] %vm2155_vm1, %v2998_v6  ;;  %v2999_v9 = vpack.c.bf16 %v1870_v7, %v1870_v7  ;;  %v1436_v10 = vadd.f32 %v3870_v22, %v1435_v8  ;;  %v1437_v11 = vpop.f32.mrb[73].mxu1 }
 0x1b0   : > { %v1438_v13 = vpop.f32.mrb[74].mxu1 }
 0x1b1   : > { %2191 = vst.msk [vmem:[%s3881_s12 + $0x8c] sm:$0xf] %vm2155_vm1, %v2999_v9  ;;  %v1725_v15 = vadd.f32 %v1724_v44, %v1436_v10  ;;  %v1439_v16 = vadd.f32 %v3870_v22, %v1438_v13  ;;  %v1440_v17 = vpop.f32.mrb[75].mxu1 }
 0x1b2   : > { %v1748_v29 = vpop.f32.mrb[84].mxu0 }
 0x1b3   : > { %v1871_v20 = vmax.f32 %v1725_v15, 0.0  ;;  %v1728_v21 = vadd.f32 %v1727_v50, %v1439_v16  ;;  %v1750_v31 = vpop.f32.mrb[85].mxu0 }
 0x1b4   : > { %v1751_v35 = vpop.f32.mrb[86].mxu0 }
 0x1b5   : > { %v3000_v23 = vpack.c.bf16 %v1871_v20, %v1871_v20  ;;  %v1872_v24 = vmax.f32 %v1728_v21, 0.0  ;;  %v1753_v36 = vpop.f32.mrb[87].mxu0 }
 0x1b6   : > { %v1443_v25 = vpop.f32.mrb[76].mxu1 }
 0x1b7   : > { %2192 = vst.msk [vmem:[%s3881_s12 + $0x90] sm:$0xf] %vm2155_vm1, %v3000_v23  ;;  %v3001_v26 = vpack.c.bf16 %v1872_v24, %v1872_v24  ;;  %v1444_v27 = vadd.f32 %v3870_v22, %v1443_v25  ;;  %v1445_v28 = vpop.f32.mrb[77].mxu1 }
 0x1b8   : > { %v1446_v30 = vpop.f32.mrb[78].mxu1 }
 0x1b9   : > { %2193 = vst.msk [vmem:[%s3881_s12 + $0x94] sm:$0xf] %vm2155_vm1, %v3001_v26  ;;  %v1733_v32 = vadd.f32 %v1732_v60, %v1444_v27  ;;  %v1447_v33 = vadd.f32 %v3870_v22, %v1446_v30  ;;  %v1448_v34 = vpop.f32.mrb[79].mxu1 }
 0x1ba   : > { %v1756_v45 = vpop.f32.mrb[88].mxu0 }
 0x1bb   : > { %v1873_v37 = vmax.f32 %v1733_v32, 0.0  ;;  %v1736_v38 = vadd.f32 %v1735_v2, %v1447_v33  ;;  %v1758_v47 = vpop.f32.mrb[89].mxu0 }
 0x1bc   : > { %v1759_v51 = vpop.f32.mrb[90].mxu0 }
 0x1bd   : > { %v3002_v39 = vpack.c.bf16 %v1873_v37, %v1873_v37  ;;  %v1874_v40 = vmax.f32 %v1736_v38, 0.0  ;;  %v1761_v52 = vpop.f32.mrb[91].mxu0 }
 0x1be   : > { %v1451_v41 = vpop.f32.mrb[80].mxu1 }
 0x1bf   : > { %2194 = vst.msk [vmem:[%s3881_s12 + $0x98] sm:$0xf] %vm2155_vm1, %v3002_v39  ;;  %v3003_v42 = vpack.c.bf16 %v1874_v40, %v1874_v40  ;;  %v1452_v43 = vadd.f32 %v3870_v22, %v1451_v41  ;;  %v1453_v44 = vpop.f32.mrb[81].mxu1 }
 0x1c0   : > { %v1454_v46 = vpop.f32.mrb[82].mxu1 }
 0x1c1   : > { %2195 = vst.msk [vmem:[%s3881_s12 + $0x9c] sm:$0xf] %vm2155_vm1, %v3003_v42  ;;  %v1741_v48 = vadd.f32 %v1740_v12, %v1452_v43  ;;  %v1455_v49 = vadd.f32 %v3870_v22, %v1454_v46  ;;  %v1456_v50 = vpop.f32.mrb[83].mxu1 }
 0x1c2   : > { %v1764_v61 = vpop.f32.mrb[92].mxu0 }
 0x1c3   : > { %v1875_v53 = vmax.f32 %v1741_v48, 0.0  ;;  %v1744_v54 = vadd.f32 %v1743_v18, %v1455_v49  ;;  %v1766_v63 = vpop.f32.mrb[93].mxu0 }
 0x1c4   : > { %v1767_v3 = vpop.f32.mrb[94].mxu0 }
 0x1c5   : > { %v3004_v55 = vpack.c.bf16 %v1875_v53, %v1875_v53  ;;  %v1876_v56 = vmax.f32 %v1744_v54, 0.0  ;;  %v1769_v4 = vpop.f32.mrb[95].mxu0 }
 0x1c6   : > { %v1459_v57 = vpop.f32.mrb[84].mxu1 }
 0x1c7   : > { %2196 = vst.msk [vmem:[%s3881_s12 + $0xa0] sm:$0xf] %vm2155_vm1, %v3004_v55  ;;  %v3005_v58 = vpack.c.bf16 %v1876_v56, %v1876_v56  ;;  %v1460_v59 = vadd.f32 %v3870_v22, %v1459_v57  ;;  %v1461_v60 = vpop.f32.mrb[85].mxu1 }
 0x1c8   : > { %v1462_v62 = vpop.f32.mrb[86].mxu1 }
 0x1c9   : > { %2197 = vst.msk [vmem:[%s3881_s12 + $0xa4] sm:$0xf] %vm2155_vm1, %v3005_v58  ;;  %v1749_v0 = vadd.f32 %v1748_v29, %v1460_v59  ;;  %v1463_v1 = vadd.f32 %v3870_v22, %v1462_v62  ;;  %v1464_v2 = vpop.f32.mrb[87].mxu1 }
 0x1ca   : > { %v1772_v13 = vpop.f32.mrb[96].mxu0 }
 0x1cb   : > { %v1877_v5 = vmax.f32 %v1749_v0, 0.0  ;;  %v1752_v6 = vadd.f32 %v1751_v35, %v1463_v1  ;;  %v1774_v15 = vpop.f32.mrb[97].mxu0 }
 0x1cc   : > { %v1775_v19 = vpop.f32.mrb[98].mxu0 }
 0x1cd   : > { %v3006_v7 = vpack.c.bf16 %v1877_v5, %v1877_v5  ;;  %v1878_v8 = vmax.f32 %v1752_v6, 0.0  ;;  %v1777_v20 = vpop.f32.mrb[99].mxu0 }
 0x1ce   : > { %v1467_v9 = vpop.f32.mrb[88].mxu1 }
 0x1cf   : > { %2198 = vst.msk [vmem:[%s3881_s12 + $0xa8] sm:$0xf] %vm2155_vm1, %v3006_v7  ;;  %v3007_v10 = vpack.c.bf16 %v1878_v8, %v1878_v8  ;;  %v1468_v11 = vadd.f32 %v3870_v22, %v1467_v9  ;;  %v1469_v12 = vpop.f32.mrb[89].mxu1 }
 0x1d0   : > { %v1470_v14 = vpop.f32.mrb[90].mxu1 }
 0x1d1   : > { %2199 = vst.msk [vmem:[%s3881_s12 + $0xac] sm:$0xf] %vm2155_vm1, %v3007_v10  ;;  %v1757_v16 = vadd.f32 %v1756_v45, %v1468_v11  ;;  %v1471_v17 = vadd.f32 %v3870_v22, %v1470_v14  ;;  %v1472_v18 = vpop.f32.mrb[91].mxu1 }
 0x1d2   : > { %v1780_v30 = vpop.f32.mrb[100].mxu0 }
 0x1d3   : > { %v1879_v21 = vmax.f32 %v1757_v16, 0.0  ;;  %v1760_v23 = vadd.f32 %v1759_v51, %v1471_v17  ;;  %v1782_v32 = vpop.f32.mrb[101].mxu0 }
 0x1d4   : > { %v1783_v36 = vpop.f32.mrb[102].mxu0 }
 0x1d5   : > { %v3008_v24 = vpack.c.bf16 %v1879_v21, %v1879_v21  ;;  %v1880_v25 = vmax.f32 %v1760_v23, 0.0  ;;  %v1785_v37 = vpop.f32.mrb[103].mxu0 }
 0x1d6   : > { %v1475_v26 = vpop.f32.mrb[92].mxu1 }
 0x1d7   : > { %2200 = vst.msk [vmem:[%s3881_s12 + $0xb0] sm:$0xf] %vm2155_vm1, %v3008_v24  ;;  %v3009_v27 = vpack.c.bf16 %v1880_v25, %v1880_v25  ;;  %v1476_v28 = vadd.f32 %v3870_v22, %v1475_v26  ;;  %v1477_v29 = vpop.f32.mrb[93].mxu1 }
 0x1d8   : > { %v1478_v31 = vpop.f32.mrb[94].mxu1  ;;  %v4055_v29 = vld [vmem:[%s4290_s2] ss:$0 sm:$0xff] }
 0x1d9   : > { %2201 = vst.msk [vmem:[%s3881_s12 + $0xb4] sm:$0xf] %vm2155_vm1, %v3009_v27  ;;  %v1765_v33 = vadd.f32 %v1764_v61, %v1476_v28  ;;  %v1479_v34 = vadd.f32 %v3870_v22, %v1478_v31  ;;  %v1480_v35 = vpop.f32.mrb[95].mxu1 }
 0x1da   : > { %v1788_v46 = vpop.f32.mrb[104].mxu0 }
 0x1db   : > { %v1881_v38 = vmax.f32 %v1765_v33, 0.0  ;;  %v1768_v39 = vadd.f32 %v1767_v3, %v1479_v34  ;;  %v1790_v48 = vpop.f32.mrb[105].mxu0 }
 0x1dc   : > { %v1791_v52 = vpop.f32.mrb[106].mxu0 }
 0x1dd   : > { %v3010_v40 = vpack.c.bf16 %v1881_v38, %v1881_v38  ;;  %v1882_v41 = vmax.f32 %v1768_v39, 0.0  ;;  %v1793_v53 = vpop.f32.mrb[107].mxu0 }
 0x1de   : > { %v1483_v42 = vpop.f32.mrb[96].mxu1 }
 0x1df   : > { %2202 = vst.msk [vmem:[%s3881_s12 + $0xb8] sm:$0xf] %vm2155_vm1, %v3010_v40  ;;  %v3011_v43 = vpack.c.bf16 %v1882_v41, %v1882_v41  ;;  %v1484_v44 = vadd.f32 %v3870_v22, %v1483_v42  ;;  %v1485_v45 = vpop.f32.mrb[97].mxu1 }
 0x1e0   : > { %v1486_v47 = vpop.f32.mrb[98].mxu1 }
 0x1e1   : > { %2203 = vst.msk [vmem:[%s3881_s12 + $0xbc] sm:$0xf] %vm2155_vm1, %v3011_v43  ;;  %v1773_v49 = vadd.f32 %v1772_v13, %v1484_v44  ;;  %v1487_v50 = vadd.f32 %v3870_v22, %v1486_v47  ;;  %v1488_v51 = vpop.f32.mrb[99].mxu1 }
 0x1e2   : > { %v1796_v62 = vpop.f32.mrb[108].mxu0 }
 0x1e3   : > { %v1883_v54 = vmax.f32 %v1773_v49, 0.0  ;;  %v1776_v55 = vadd.f32 %v1775_v19, %v1487_v50  ;;  %v1798_v0 = vpop.f32.mrb[109].mxu0 }
 0x1e4   : > { %v1799_v4 = vpop.f32.mrb[110].mxu0 }
 0x1e5   : > { %v3012_v56 = vpack.c.bf16 %v1883_v54, %v1883_v54  ;;  %v1884_v57 = vmax.f32 %v1776_v55, 0.0  ;;  %v1801_v5 = vpop.f32.mrb[111].mxu0 }
 0x1e6   : > { %v1491_v58 = vpop.f32.mrb[100].mxu1 }
 0x1e7   : > { %2204 = vst.msk [vmem:[%s3881_s12 + $0xc0] sm:$0xf] %vm2155_vm1, %v3012_v56  ;;  %v3013_v59 = vpack.c.bf16 %v1884_v57, %v1884_v57  ;;  %v1492_v60 = vadd.f32 %v3870_v22, %v1491_v58  ;;  %v1493_v61 = vpop.f32.mrb[101].mxu1 }
 0x1e8   : > { %v1494_v63 = vpop.f32.mrb[102].mxu1 }
 0x1e9   : > { %2205 = vst.msk [vmem:[%s3881_s12 + $0xc4] sm:$0xf] %vm2155_vm1, %v3013_v59  ;;  %v1781_v1 = vadd.f32 %v1780_v30, %v1492_v60  ;;  %v1495_v2 = vadd.f32 %v3870_v22, %v1494_v63  ;;  %v1496_v3 = vpop.f32.mrb[103].mxu1 }
 0x1ea   : > { %v1804_v14 = vpop.f32.mrb[112].mxu0 }
 0x1eb   : > { %v1885_v6 = vmax.f32 %v1781_v1, 0.0  ;;  %v1784_v7 = vadd.f32 %v1783_v36, %v1495_v2  ;;  %v1806_v16 = vpop.f32.mrb[113].mxu0 }
 0x1ec   : > { %v1807_v20 = vpop.f32.mrb[114].mxu0 }
 0x1ed   : > { %v3014_v8 = vpack.c.bf16 %v1885_v6, %v1885_v6  ;;  %v1886_v9 = vmax.f32 %v1784_v7, 0.0  ;;  %v1809_v21 = vpop.f32.mrb[115].mxu0 }
 0x1ee   : > { %v1499_v10 = vpop.f32.mrb[104].mxu1 }
 0x1ef   : > { %2206 = vst.msk [vmem:[%s3881_s12 + $0xc8] sm:$0xf] %vm2155_vm1, %v3014_v8  ;;  %v3015_v11 = vpack.c.bf16 %v1886_v9, %v1886_v9  ;;  %v1500_v12 = vadd.f32 %v3870_v22, %v1499_v10  ;;  %v1501_v13 = vpop.f32.mrb[105].mxu1 }
 0x1f0   : > { %v1502_v15 = vpop.f32.mrb[106].mxu1 }
 0x1f1   : > { %2207 = vst.msk [vmem:[%s3881_s12 + $0xcc] sm:$0xf] %vm2155_vm1, %v3015_v11  ;;  %v1789_v17 = vadd.f32 %v1788_v46, %v1500_v12  ;;  %v1503_v18 = vadd.f32 %v3870_v22, %v1502_v15  ;;  %v1504_v19 = vpop.f32.mrb[107].mxu1 }
 0x1f2   : > { %v1812_v31 = vpop.f32.mrb[116].mxu0 }
 0x1f3   : > { %v1887_v23 = vmax.f32 %v1789_v17, 0.0  ;;  %v1792_v24 = vadd.f32 %v1791_v52, %v1503_v18  ;;  %v1814_v33 = vpop.f32.mrb[117].mxu0 }
 0x1f4   : > { %v1815_v37 = vpop.f32.mrb[118].mxu0 }
 0x1f5   : > { %v3016_v25 = vpack.c.bf16 %v1887_v23, %v1887_v23  ;;  %v1888_v26 = vmax.f32 %v1792_v24, 0.0  ;;  %v1817_v38 = vpop.f32.mrb[119].mxu0 }
 0x1f6   : > { %v1507_v27 = vpop.f32.mrb[108].mxu1 }
 0x1f7   : > { %2208 = vst.msk [vmem:[%s3881_s12 + $0xd0] sm:$0xf] %vm2155_vm1, %v3016_v25  ;;  %v3017_v28 = vpack.c.bf16 %v1888_v26, %v1888_v26  ;;  %v1508_v30 = vadd.f32 %v4055_v29, %v1507_v27  ;;  %v1509_v22 = vpop.f32.mrb[109].mxu1 }
 0x1f8   : > { %v1510_v32 = vpop.f32.mrb[110].mxu1 }
 0x1f9   : > { %2209 = vst.msk [vmem:[%s3881_s12 + $0xd4] sm:$0xf] %vm2155_vm1, %v3017_v28  ;;  %v1797_v34 = vadd.f32 %v1796_v62, %v1508_v30  ;;  %v1511_v35 = vadd.f32 %v4055_v29, %v1510_v32  ;;  %v1512_v36 = vpop.f32.mrb[111].mxu1 }
 0x1fa   : > { %v1820_v47 = vpop.f32.mrb[120].mxu0 }
 0x1fb   : > { %v1889_v39 = vmax.f32 %v1797_v34, 0.0  ;;  %v1800_v40 = vadd.f32 %v1799_v4, %v1511_v35  ;;  %v1822_v49 = vpop.f32.mrb[121].mxu0 }
 0x1fc   : > { %v1823_v53 = vpop.f32.mrb[122].mxu0 }
 0x1fd   : > { %v3018_v41 = vpack.c.bf16 %v1889_v39, %v1889_v39  ;;  %v1890_v42 = vmax.f32 %v1800_v40, 0.0  ;;  %v1825_v54 = vpop.f32.mrb[123].mxu0 }
 0x1fe   : > { %v1515_v43 = vpop.f32.mrb[112].mxu1 }
 0x1ff   : > { %2210 = vst.msk [vmem:[%s3881_s12 + $0xd8] sm:$0xf] %vm2155_vm1, %v3018_v41  ;;  %v3019_v44 = vpack.c.bf16 %v1890_v42, %v1890_v42  ;;  %v1516_v45 = vadd.f32 %v4055_v29, %v1515_v43  ;;  %v1517_v46 = vpop.f32.mrb[113].mxu1 }
 0x200   : > { %v1518_v48 = vpop.f32.mrb[114].mxu1 }
 0x201   : > { %2211 = vst.msk [vmem:[%s3881_s12 + $0xdc] sm:$0xf] %vm2155_vm1, %v3019_v44  ;;  %v1805_v50 = vadd.f32 %v1804_v14, %v1516_v45  ;;  %v1519_v51 = vadd.f32 %v4055_v29, %v1518_v48  ;;  %v1520_v52 = vpop.f32.mrb[115].mxu1 }
 0x202   : > { %v1828_v63 = vpop.f32.mrb[124].mxu0 }
 0x203   : > { %v1891_v55 = vmax.f32 %v1805_v50, 0.0  ;;  %v1808_v56 = vadd.f32 %v1807_v20, %v1519_v51  ;;  %v1830_v1 = vpop.f32.mrb[125].mxu0 }
 0x204   : > { %v1831_v5 = vpop.f32.mrb[126].mxu0 }
 0x205   : > { %v3020_v57 = vpack.c.bf16 %v1891_v55, %v1891_v55  ;;  %v1892_v58 = vmax.f32 %v1808_v56, 0.0  ;;  %v1833_v6 = vpop.f32.mrb[127].mxu0 }
 0x206   : > { %v1523_v59 = vpop.f32.mrb[116].mxu1 }
 0x207   : > { %2212 = vst.msk [vmem:[%s3881_s12 + $0xe0] sm:$0xf] %vm2155_vm1, %v3020_v57  ;;  %v3021_v60 = vpack.c.bf16 %v1892_v58, %v1892_v58  ;;  %v1524_v61 = vadd.f32 %v4055_v29, %v1523_v59  ;;  %v1525_v62 = vpop.f32.mrb[117].mxu1 }
 0x208   : > { %v1526_v0 = vpop.f32.mrb[118].mxu1 }
 0x209   : > { %2213 = vst.msk [vmem:[%s3881_s12 + $0xe4] sm:$0xf] %vm2155_vm1, %v3021_v60  ;;  %v1813_v2 = vadd.f32 %v1812_v31, %v1524_v61  ;;  %v1527_v3 = vadd.f32 %v4055_v29, %v1526_v0  ;;  %v1528_v4 = vpop.f32.mrb[119].mxu1 }
 0x20b   : > { %v1893_v7 = vmax.f32 %v1813_v2, 0.0  ;;  %v1816_v8 = vadd.f32 %v1815_v37, %v1527_v3 }
 0x20d   : > { %v3022_v9 = vpack.c.bf16 %v1893_v7, %v1893_v7  ;;  %v1894_v10 = vmax.f32 %v1816_v8, 0.0 }
 0x20e   : > { %v1531_v11 = vpop.f32.mrb[120].mxu1 }
 0x20f   : > { %2214 = vst.msk [vmem:[%s3881_s12 + $0xe8] sm:$0xf] %vm2155_vm1, %v3022_v9  ;;  %v3023_v12 = vpack.c.bf16 %v1894_v10, %v1894_v10  ;;  %v1532_v13 = vadd.f32 %v4055_v29, %v1531_v11  ;;  %v1533_v14 = vpop.f32.mrb[121].mxu1 }
 0x210   : > { %v1534_v15 = vpop.f32.mrb[122].mxu1 }
 0x211   : > { %2215 = vst.msk [vmem:[%s3881_s12 + $0xec] sm:$0xf] %vm2155_vm1, %v3023_v12  ;;  %v1821_v16 = vadd.f32 %v1820_v47, %v1532_v13  ;;  %v1535_v17 = vadd.f32 %v4055_v29, %v1534_v15  ;;  %v1536_v18 = vpop.f32.mrb[123].mxu1 }
 0x213   : > { %v1895_v19 = vmax.f32 %v1821_v16, 0.0  ;;  %v1824_v20 = vadd.f32 %v1823_v53, %v1535_v17 }
 0x215   : > { %v3024_v21 = vpack.c.bf16 %v1895_v19, %v1895_v19  ;;  %v1896_v23 = vmax.f32 %v1824_v20, 0.0 }
 0x216   : > { %v1539_v24 = vpop.f32.mrb[124].mxu1 }
 0x217   : > { %2216 = vst.msk [vmem:[%s3881_s12 + $0xf0] sm:$0xf] %vm2155_vm1, %v3024_v21  ;;  %v3025_v25 = vpack.c.bf16 %v1896_v23, %v1896_v23  ;;  %v1540_v26 = vadd.f32 %v4055_v29, %v1539_v24  ;;  %v1541_v27 = vpop.f32.mrb[125].mxu1 }
 0x218   : > { %v1542_v28 = vpop.f32.mrb[126].mxu1 }
 0x219   : > { %2217 = vst.msk [vmem:[%s3881_s12 + $0xf4] sm:$0xf] %vm2155_vm1, %v3025_v25  ;;  %v1829_v30 = vadd.f32 %v1828_v63, %v1540_v26  ;;  %v1543_v22 = vadd.f32 %v4055_v29, %v1542_v28  ;;  %v1544_v31 = vpop.f32.mrb[127].mxu1 }
 0x21b   : > { %v1897_v32 = vmax.f32 %v1829_v30, 0.0  ;;  %v1832_v33 = vadd.f32 %v1831_v5, %v1543_v22  ;;  %2226 = sbr.rel (!%p3602_p4) target bundleno = 637 (0x27d), region = 36 }
 0x21d   : > { %v3026_v34 = vpack.c.bf16 %v1897_v32, %v1897_v32  ;;  %v1898_v35 = vmax.f32 %v1832_v33, 0.0 }
 0x21f   : > { %2218 = vst.msk [vmem:[%s3881_s12 + $0xf8] sm:$0xf] %vm2155_vm1, %v3026_v34  ;;  %v3027_v36 = vpack.c.bf16 %v1898_v35, %v1898_v35 }
 0x221   : > { %2219 = vst.msk [vmem:[%s3881_s12 + $0xfc] sm:$0xf] %vm2155_vm1, %v3027_v36 }
 0x222   : > { %s4300_s26 = smov (!%p2229_p8, %s2228_s26), 64 }
 0x223   : > { %s2948_s5 = sshll.u32 %s4300_s26, 6 }
 0x224   : > { %p2951_p9 = scmp.eq.s32.totalorder %s2948_s5, 0 }
 0x225   : > { %s4102_s6 = sshrl.u32 (!%p2951_p9), %s4300_s26, 6 }
 0x226   : > { %2237 = sbr.rel (%p2951_p9) target bundleno = 637 (0x27d), region = 40  ;;  %p2952_p10 = scmp.le.s32.totalorder (!%p2951_p9), %s4102_s6, 0 }
 0x22d   : > { %2642 = sbr.rel (%p2952_p10) target bundleno = 616 (0x268), region = 112  ;;  %s4293_s15 = smov (!%p2952_p10), %s4096_s30 }
 0x22e   : > { %s4294_s20 = smov (!%p2952_p10), %s3881_s12  ;;  %s4111_s8 = smov (!%p2952_p10), 0  }
 0x22f   : > { %s4113_s7 = smov (!%p2952_p10), 0  }
 0x234 LB: >> { %v2253_v29 = vld [vmem:[%s3530_s20] sm:$0xf]  ;;  %v2255_v37 = vld [vmem:[%s3530_s20 + $0x4] sm:$0xf]  ;;  %v2257_v38 = vld [vmem:[%s3530_s20 + $0x8] sm:$0xf]  ;;  %s3538_s7 = sphi %s4113_s7, %s2247_s7   ;;  %s3534_s8 = sphi %s4111_s8, %s4295_s8   ;;  %s3530_s20 = sphi %s4294_s20, %s2386_s20   ;;  %s3526_s15 = sphi %s4293_s15, %s2387_s15  }
 0x235   : >> { %2254 = vst [vmem:[%s3526_s15] sm:$0xf] %v2253_v29  ;;  %2256 = vst [vmem:[%s3526_s15 + $0x4] sm:$0xf] %v2255_v37  ;;  %v2259_v39 = vld [vmem:[%s3530_s20 + $0xc] sm:$0xf]  ;;  %s2381_s9 = sadd.s32 1, %s3534_s8 }
 0x236   : >> { %2258 = vst [vmem:[%s3526_s15 + $0x8] sm:$0xf] %v2257_v38  ;;  %v2261_v40 = vld [vmem:[%s3530_s20 + $0x10] sm:$0xf]  ;;  %v2263_v41 = vld [vmem:[%s3530_s20 + $0x14] sm:$0xf]  ;;  %p2382_p11 = scmp.ge.s32.totalorder %s2381_s9, %s4102_s6 }
 0x237   : >> { %2260 = vst [vmem:[%s3526_s15 + $0xc] sm:$0xf] %v2259_v39  ;;  %2262 = vst [vmem:[%s3526_s15 + $0x10] sm:$0xf] %v2261_v40  ;;  %v2265_v42 = vld [vmem:[%s3530_s20 + $0x18] sm:$0xf] }
 0x238   : >> { %2264 = vst [vmem:[%s3526_s15 + $0x14] sm:$0xf] %v2263_v41  ;;  %v2267_v43 = vld [vmem:[%s3530_s20 + $0x1c] sm:$0xf]  ;;  %v2269_v44 = vld [vmem:[%s3530_s20 + $0x20] sm:$0xf] }
 0x239   : >> { %2266 = vst [vmem:[%s3526_s15 + $0x18] sm:$0xf] %v2265_v42  ;;  %2268 = vst [vmem:[%s3526_s15 + $0x1c] sm:$0xf] %v2267_v43  ;;  %v2271_v45 = vld [vmem:[%s3530_s20 + $0x24] sm:$0xf] }
 0x23a   : >> { %2270 = vst [vmem:[%s3526_s15 + $0x20] sm:$0xf] %v2269_v44  ;;  %v2273_v46 = vld [vmem:[%s3530_s20 + $0x28] sm:$0xf]  ;;  %v2275_v47 = vld [vmem:[%s3530_s20 + $0x2c] sm:$0xf] }
 0x23b   : >> { %2272 = vst [vmem:[%s3526_s15 + $0x24] sm:$0xf] %v2271_v45  ;;  %2274 = vst [vmem:[%s3526_s15 + $0x28] sm:$0xf] %v2273_v46  ;;  %v2277_v48 = vld [vmem:[%s3530_s20 + $0x30] sm:$0xf] }
 0x23c   : >> { %2276 = vst [vmem:[%s3526_s15 + $0x2c] sm:$0xf] %v2275_v47  ;;  %v2279_v49 = vld [vmem:[%s3530_s20 + $0x34] sm:$0xf]  ;;  %v2281_v50 = vld [vmem:[%s3530_s20 + $0x38] sm:$0xf] }
 0x23d   : >> { %2278 = vst [vmem:[%s3526_s15 + $0x30] sm:$0xf] %v2277_v48  ;;  %2280 = vst [vmem:[%s3526_s15 + $0x34] sm:$0xf] %v2279_v49  ;;  %v2283_v51 = vld [vmem:[%s3530_s20 + $0x3c] sm:$0xf] }
 0x23e   : >> { %2282 = vst [vmem:[%s3526_s15 + $0x38] sm:$0xf] %v2281_v50  ;;  %v2285_v52 = vld [vmem:[%s3530_s20 + $0x40] sm:$0xf]  ;;  %v2287_v53 = vld [vmem:[%s3530_s20 + $0x44] sm:$0xf] }
 0x23f   : >> { %2284 = vst [vmem:[%s3526_s15 + $0x3c] sm:$0xf] %v2283_v51  ;;  %2286 = vst [vmem:[%s3526_s15 + $0x40] sm:$0xf] %v2285_v52  ;;  %v2289_v54 = vld [vmem:[%s3530_s20 + $0x48] sm:$0xf] }
 0x240   : >> { %2288 = vst [vmem:[%s3526_s15 + $0x44] sm:$0xf] %v2287_v53  ;;  %v2291_v55 = vld [vmem:[%s3530_s20 + $0x4c] sm:$0xf]  ;;  %v2293_v56 = vld [vmem:[%s3530_s20 + $0x50] sm:$0xf] }
 0x241   : >> { %2290 = vst [vmem:[%s3526_s15 + $0x48] sm:$0xf] %v2289_v54  ;;  %2292 = vst [vmem:[%s3526_s15 + $0x4c] sm:$0xf] %v2291_v55  ;;  %v2295_v57 = vld [vmem:[%s3530_s20 + $0x54] sm:$0xf] }
 0x242   : >> { %2294 = vst [vmem:[%s3526_s15 + $0x50] sm:$0xf] %v2293_v56  ;;  %v2297_v58 = vld [vmem:[%s3530_s20 + $0x58] sm:$0xf]  ;;  %v2299_v59 = vld [vmem:[%s3530_s20 + $0x5c] sm:$0xf] }
 0x243   : >> { %2296 = vst [vmem:[%s3526_s15 + $0x54] sm:$0xf] %v2295_v57  ;;  %2298 = vst [vmem:[%s3526_s15 + $0x58] sm:$0xf] %v2297_v58  ;;  %v2301_v60 = vld [vmem:[%s3530_s20 + $0x60] sm:$0xf] }
 0x244   : >> { %2300 = vst [vmem:[%s3526_s15 + $0x5c] sm:$0xf] %v2299_v59  ;;  %v2303_v61 = vld [vmem:[%s3530_s20 + $0x64] sm:$0xf]  ;;  %v2305_v62 = vld [vmem:[%s3530_s20 + $0x68] sm:$0xf] }
 0x245   : >> { %2302 = vst [vmem:[%s3526_s15 + $0x60] sm:$0xf] %v2301_v60  ;;  %2304 = vst [vmem:[%s3526_s15 + $0x64] sm:$0xf] %v2303_v61  ;;  %v2307_v63 = vld [vmem:[%s3530_s20 + $0x6c] sm:$0xf] }
 0x246   : >> { %2306 = vst [vmem:[%s3526_s15 + $0x68] sm:$0xf] %v2305_v62  ;;  %v2309_v0 = vld [vmem:[%s3530_s20 + $0x70] sm:$0xf]  ;;  %v2311_v1 = vld [vmem:[%s3530_s20 + $0x74] sm:$0xf] }
 0x247   : >> { %2308 = vst [vmem:[%s3526_s15 + $0x6c] sm:$0xf] %v2307_v63  ;;  %2310 = vst [vmem:[%s3526_s15 + $0x70] sm:$0xf] %v2309_v0  ;;  %v2313_v2 = vld [vmem:[%s3530_s20 + $0x78] sm:$0xf] }
 0x248   : >> { %2312 = vst [vmem:[%s3526_s15 + $0x74] sm:$0xf] %v2311_v1  ;;  %v2315_v3 = vld [vmem:[%s3530_s20 + $0x7c] sm:$0xf]  ;;  %v2317_v4 = vld [vmem:[%s3530_s20 + $0x80] sm:$0xf] }
 0x249   : >> { %2314 = vst [vmem:[%s3526_s15 + $0x78] sm:$0xf] %v2313_v2  ;;  %2316 = vst [vmem:[%s3526_s15 + $0x7c] sm:$0xf] %v2315_v3  ;;  %v2319_v5 = vld [vmem:[%s3530_s20 + $0x84] sm:$0xf] }
 0x24a   : >> { %2318 = vst [vmem:[%s3526_s15 + $0x80] sm:$0xf] %v2317_v4  ;;  %v2321_v6 = vld [vmem:[%s3530_s20 + $0x88] sm:$0xf]  ;;  %v2323_v7 = vld [vmem:[%s3530_s20 + $0x8c] sm:$0xf] }
 0x24b   : >> { %2320 = vst [vmem:[%s3526_s15 + $0x84] sm:$0xf] %v2319_v5  ;;  %2322 = vst [vmem:[%s3526_s15 + $0x88] sm:$0xf] %v2321_v6  ;;  %v2325_v8 = vld [vmem:[%s3530_s20 + $0x90] sm:$0xf] }
 0x24c   : >> { %2324 = vst [vmem:[%s3526_s15 + $0x8c] sm:$0xf] %v2323_v7  ;;  %v2327_v9 = vld [vmem:[%s3530_s20 + $0x94] sm:$0xf]  ;;  %v2329_v10 = vld [vmem:[%s3530_s20 + $0x98] sm:$0xf] }
 0x24d   : >> { %2326 = vst [vmem:[%s3526_s15 + $0x90] sm:$0xf] %v2325_v8  ;;  %2328 = vst [vmem:[%s3526_s15 + $0x94] sm:$0xf] %v2327_v9  ;;  %v2331_v11 = vld [vmem:[%s3530_s20 + $0x9c] sm:$0xf] }
 0x24e   : >> { %2330 = vst [vmem:[%s3526_s15 + $0x98] sm:$0xf] %v2329_v10  ;;  %v2333_v12 = vld [vmem:[%s3530_s20 + $0xa0] sm:$0xf]  ;;  %v2335_v13 = vld [vmem:[%s3530_s20 + $0xa4] sm:$0xf] }
 0x24f   : >> { %2332 = vst [vmem:[%s3526_s15 + $0x9c] sm:$0xf] %v2331_v11  ;;  %2334 = vst [vmem:[%s3526_s15 + $0xa0] sm:$0xf] %v2333_v12  ;;  %v2337_v14 = vld [vmem:[%s3530_s20 + $0xa8] sm:$0xf] }
 0x250   : >> { %2336 = vst [vmem:[%s3526_s15 + $0xa4] sm:$0xf] %v2335_v13  ;;  %v2339_v15 = vld [vmem:[%s3530_s20 + $0xac] sm:$0xf]  ;;  %v2341_v16 = vld [vmem:[%s3530_s20 + $0xb0] sm:$0xf] }
 0x251   : >> { %2338 = vst [vmem:[%s3526_s15 + $0xa8] sm:$0xf] %v2337_v14  ;;  %2340 = vst [vmem:[%s3526_s15 + $0xac] sm:$0xf] %v2339_v15  ;;  %v2343_v17 = vld [vmem:[%s3530_s20 + $0xb4] sm:$0xf] }
 0x252   : >> { %2342 = vst [vmem:[%s3526_s15 + $0xb0] sm:$0xf] %v2341_v16  ;;  %v2345_v18 = vld [vmem:[%s3530_s20 + $0xb8] sm:$0xf]  ;;  %v2347_v19 = vld [vmem:[%s3530_s20 + $0xbc] sm:$0xf] }
 0x253   : >> { %2344 = vst [vmem:[%s3526_s15 + $0xb4] sm:$0xf] %v2343_v17  ;;  %2346 = vst [vmem:[%s3526_s15 + $0xb8] sm:$0xf] %v2345_v18  ;;  %v2349_v20 = vld [vmem:[%s3530_s20 + $0xc0] sm:$0xf] }
 0x254   : >> { %2348 = vst [vmem:[%s3526_s15 + $0xbc] sm:$0xf] %v2347_v19  ;;  %v2351_v21 = vld [vmem:[%s3530_s20 + $0xc4] sm:$0xf]  ;;  %v2353_v23 = vld [vmem:[%s3530_s20 + $0xc8] sm:$0xf] }
 0x255   : >> { %2350 = vst [vmem:[%s3526_s15 + $0xc0] sm:$0xf] %v2349_v20  ;;  %2352 = vst [vmem:[%s3526_s15 + $0xc4] sm:$0xf] %v2351_v21  ;;  %v2355_v24 = vld [vmem:[%s3530_s20 + $0xcc] sm:$0xf] }
 0x256   : >> { %2354 = vst [vmem:[%s3526_s15 + $0xc8] sm:$0xf] %v2353_v23  ;;  %v2357_v25 = vld [vmem:[%s3530_s20 + $0xd0] sm:$0xf]  ;;  %v2359_v26 = vld [vmem:[%s3530_s20 + $0xd4] sm:$0xf] }
 0x257   : >> { %2356 = vst [vmem:[%s3526_s15 + $0xcc] sm:$0xf] %v2355_v24  ;;  %2358 = vst [vmem:[%s3526_s15 + $0xd0] sm:$0xf] %v2357_v25  ;;  %v2361_v27 = vld [vmem:[%s3530_s20 + $0xd8] sm:$0xf] }
 0x258   : >> { %2360 = vst [vmem:[%s3526_s15 + $0xd4] sm:$0xf] %v2359_v26  ;;  %v2363_v28 = vld [vmem:[%s3530_s20 + $0xdc] sm:$0xf]  ;;  %v2365_v30 = vld [vmem:[%s3530_s20 + $0xe0] sm:$0xf] }
 0x259   : >> { %2362 = vst [vmem:[%s3526_s15 + $0xd8] sm:$0xf] %v2361_v27  ;;  %2364 = vst [vmem:[%s3526_s15 + $0xdc] sm:$0xf] %v2363_v28  ;;  %v2367_v22 = vld [vmem:[%s3530_s20 + $0xe4] sm:$0xf] }
 0x25a   : >> { %2366 = vst [vmem:[%s3526_s15 + $0xe0] sm:$0xf] %v2365_v30  ;;  %v2369_v31 = vld [vmem:[%s3530_s20 + $0xe8] sm:$0xf]  ;;  %v2371_v32 = vld [vmem:[%s3530_s20 + $0xec] sm:$0xf] }
 0x25b   : >> { %2368 = vst [vmem:[%s3526_s15 + $0xe4] sm:$0xf] %v2367_v22  ;;  %2370 = vst [vmem:[%s3526_s15 + $0xe8] sm:$0xf] %v2369_v31  ;;  %v2373_v33 = vld [vmem:[%s3530_s20 + $0xf0] sm:$0xf] }
 0x25c   : >> { %2372 = vst [vmem:[%s3526_s15 + $0xec] sm:$0xf] %v2371_v32  ;;  %v2375_v34 = vld [vmem:[%s3530_s20 + $0xf4] sm:$0xf]  ;;  %v2377_v35 = vld [vmem:[%s3530_s20 + $0xf8] sm:$0xf] }
 0x25d   : >> { %2374 = vst [vmem:[%s3526_s15 + $0xf0] sm:$0xf] %v2373_v33  ;;  %2376 = vst [vmem:[%s3526_s15 + $0xf4] sm:$0xf] %v2375_v34  ;;  %v2379_v36 = vld [vmem:[%s3530_s20 + $0xfc] sm:$0xf] }
 0x25e   : >> { %2378 = vst [vmem:[%s3526_s15 + $0xf8] sm:$0xf] %v2377_v35  ;;  %2380 = vst [vmem:[%s3526_s15 + $0xfc] sm:$0xf] %v2379_v36  ;;  %s4302_s9 = smov (%p2382_p11, %s2381_s9), 0  ;;  %s2247_s7 = sadd.s32 1, %s3538_s7  }
 0x25f   : >> { %s2953_s10 = sshll.u32 %s4302_s9, 8  ;;  %p2246_p12 = scmp.ge.s32.totalorder %s2247_s7, %s4102_s6 }
 0x260   : >> { %s2386_s20 = scalar_lea.vmem %s3881_s12, %s2953_s10 [#allocation2]   ;;  %s2387_s15 = scalar_lea.vmem %s4096_s30, %s2953_s10  }
 0x261   : >> { %s4295_s8 = smov %s4302_s9  ;;  %2249 = sbr.rel (!%p2246_p12) target bundleno = 564 (0x234), region = 118 }
 0x268 PF: > { %s4270_s11 = sand.u32 63, %s4300_s26   ;;  %s3029_s14 = sshll.u32 %s4102_s6, 8 }
 0x269   : > { %s2392_s17 = scalar_lea.vmem %s3881_s12, %s3029_s14 [#allocation2]   ;;  %s2394_s18 = scalar_lea.vmem %s4096_s30, %s3029_s14  }
 0x26a   : > { %p2958_p13 = scmp.le.s32.totalorder %s4270_s11, 0 }
 0x26b   : > { %s3540_s21 = smov (!%p2958_p13), %s2394_s18   ;;  %s3544_s22 = smov (!%p2958_p13), %s2392_s17  }
 0x26c   : > { %2656 = sbr.rel (%p2958_p13) target bundleno = 637 (0x27d), region = 123  ;;  %s3548_s23 = smov (!%p2958_p13), 0  }
 0x26d   : > { %s3552_s24 = smov (!%p2958_p13), 0  }
 0x273 LB: >> { %v2404_v29 = vld [vmem:[%s3546_s22] sm:$0xf]  ;;  %s2406_s4 = sadd.s32 1, %s3550_s23  ;;  %s2398_s24 = sadd.s32 1, %s3554_s24   ;;  %s3554_s24 = sphi %s3552_s24, %s2398_s24   ;;  %s3550_s23 = sphi %s3548_s23, %s3549_s23   ;;  %s3546_s22 = sphi %s3544_s22, %s2411_s22   ;;  %s3542_s21 = sphi %s3540_s21, %s2412_s21  }
 0x274   : >> { %2405 = vst [vmem:[%s3542_s21] sm:$0xf] %v2404_v29  ;;  %p2407_p0 = scmp.ge.s32.totalorder %s2406_s4, %s4270_s11  ;;  %p2397_p1 = scmp.ge.s32.totalorder %s2398_s24, %s4270_s11 }
 0x276   : >> { %s4304_s4 = smov (%p2407_p0, %s2406_s4), 0  ;;  %2400 = sbr.rel (!%p2397_p1) target bundleno = 627 (0x273), region = 129 }
 0x277   : >> { %s2959_s12 = sshll.u32 %s4304_s4, 2  ;;  %s3549_s23 = smov %s4304_s4  }
 0x278   : >> { %s2411_s22 = scalar_lea.vmem %s2392_s17, %s2959_s12 [#allocation2]   ;;  %s2412_s21 = scalar_lea.vmem %s2394_s18, %s2959_s12  }
 0x27d PF: > { %p10_p2 = scmp.ge.s32.totalorder %s3592_s16, 18   ;;  %s4296_s12 = smov %s3518_s13 }
 0x27e   : > { %s4297_s13 = smov %s3600_s19  ;;  %s4298_s14 = smov %s3592_s16 }
 0x27f   :  { %12 = sbr.rel (!%p10_p2) target bundleno = 2 (0x2), region = 140 }

// kernel: simple_atari_net.5
= control target key start
LH: loop header
LB: loop body
LE: loop exit
PB: predicated region body
PF: predicated region fallthrough
CT: control target
= control target key end

     0   :  { %v4049_v0 = vmov 0   ;;  %vm3186_vm0 = vcmask 257024   ;;  %s5295_s1 = inlined_call_operand.vmem [shape: bf16[1024,32], index: 1, kind: input, shape index: {}]   ;;  %s5296_s0 = inlined_call_operand.vmem [shape: bf16[448,1024], index: 0, kind: input, shape index: {}]   ;;  %s5297_s2 = inlined_call_operand.vmem [shape: f32[1,32], index: 2, kind: input, shape index: {}]   ;;  %s5298_s3 = inlined_call_operand.vmem [shape: bf16[448,32], index: 3, kind: output, shape index: {}]  }
   0x1   :  { %1878 = vmatprep.subr.bf16.mxu1 %v4049_v0  ;;  %2392 = vmatprep.subr.bf16.mxu0 %v4049_v0  ;;  %v3985_v1 = vld [vmem:[%s5295_s1] sm:$0xff]   ;;  %v3987_v3 = vld [vmem:[%s5295_s1 + $0x8] sm:$0xff]   ;;  %v3989_v5 = vld [vmem:[%s5295_s1 + $0x10] sm:$0xff]  }
   0x2   :  { %v3986_v2 = vld [vmem:[%s5295_s1 + $0x100] sm:$0xff]   ;;  %1879 = vmatpush1.bf16.msra.mxu1 %v3985_v1  ;;  %v3988_v4 = vld [vmem:[%s5295_s1 + $0x108] sm:$0xff]   ;;  %v3990_v6 = vld [vmem:[%s5295_s1 + $0x110] sm:$0xff]  }
   0x3   :  { %2393 = vmatpush1.bf16.msra.mxu0 %v3986_v2  ;;  %1880 = vmatprep.subr.bf16.mxu1 %v4049_v0  ;;  %v3991_v7 = vld [vmem:[%s5295_s1 + $0x18] sm:$0xff]   ;;  %v3993_v9 = vld [vmem:[%s5295_s1 + $0x20] sm:$0xff]   ;;  %v3995_v11 = vld [vmem:[%s5295_s1 + $0x28] sm:$0xff]  }
   0x4   :  { %2394 = vmatprep.subr.bf16.mxu0 %v4049_v0  ;;  %v3992_v8 = vld [vmem:[%s5295_s1 + $0x118] sm:$0xff]   ;;  %v3994_v10 = vld [vmem:[%s5295_s1 + $0x120] sm:$0xff]   ;;  %v3996_v12 = vld [vmem:[%s5295_s1 + $0x128] sm:$0xff]  }
   0x5   :  { %v3997_v13 = vld [vmem:[%s5295_s1 + $0x30] sm:$0xff]   ;;  %v3999_v15 = vld [vmem:[%s5295_s1 + $0x38] sm:$0xff]   ;;  %v4001_v17 = vld [vmem:[%s5295_s1 + $0x40] sm:$0xff]  }
   0x6   :  { %1881 = vmatpush1.bf16.msra.mxu1 %v3987_v3  ;;  %v3998_v14 = vld [vmem:[%s5295_s1 + $0x130] sm:$0xff]   ;;  %v4000_v16 = vld [vmem:[%s5295_s1 + $0x138] sm:$0xff]   ;;  %v4002_v18 = vld [vmem:[%s5295_s1 + $0x140] sm:$0xff]  }
   0x7   :  { %2395 = vmatpush1.bf16.msra.mxu0 %v3988_v4  ;;  %1882 = vmatprep.subr.bf16.mxu1 %v4049_v0  ;;  %v4145_v19 = vld [vmem:[%s5296_s0] sm:$0xff]  ;;  %v4155_v21 = vld [vmem:[%s5296_s0 + $0x10] sm:$0xff]  ;;  %v4003_v24 = vld [vmem:[%s5295_s1 + $0x48] sm:$0xff]  }
   0x8   :  { %2396 = vmatprep.subr.bf16.mxu0 %v4049_v0  ;;  %v4150_v20 = vld [vmem:[%s5296_s0 + $0x20] sm:$0xff]  ;;  %v21_v23 = vld [vmem:[%s5296_s0 + $0x30] sm:$0xff]  ;;  %v4004_v26 = vld [vmem:[%s5295_s1 + $0x148] sm:$0xff]  }
   0x9   :  { %v3249_v22 = vcombine.high %v4145_v19, %v4150_v20  ;;  %v3253_v25 = vcombine.high %v4155_v21, %v21_v23  ;;  %v4005_v27 = vld [vmem:[%s5295_s1 + $0x50] sm:$0xff]   ;;  %v4007_v29 = vld [vmem:[%s5295_s1 + $0x58] sm:$0xff]   ;;  %v4009_v31 = vld [vmem:[%s5295_s1 + $0x60] sm:$0xff]   ;;  %v3248_v42 = vcombine.low %v4145_v19, %v4150_v20  ;;  %v3252_v44 = vcombine.low %v4155_v21, %v21_v23 }
   0xa   :  { %1883 = vmatpush1.bf16.msra.mxu1 %v3989_v5  ;;  %v4006_v28 = vld [vmem:[%s5295_s1 + $0x150] sm:$0xff]   ;;  %v4008_v30 = vld [vmem:[%s5295_s1 + $0x158] sm:$0xff]   ;;  %v4010_v32 = vld [vmem:[%s5295_s1 + $0x160] sm:$0xff]  }
   0xb   :  { %2397 = vmatpush1.bf16.msra.mxu0 %v3990_v6  ;;  %1884 = vmatprep.subr.bf16.mxu1 %v4049_v0  ;;  %v4011_v33 = vld [vmem:[%s5295_s1 + $0x68] sm:$0xff]   ;;  %v4013_v35 = vld [vmem:[%s5295_s1 + $0x70] sm:$0xff]   ;;  %v4015_v37 = vld [vmem:[%s5295_s1 + $0x78] sm:$0xff]  }
   0xc   :  { %2398 = vmatprep.subr.bf16.mxu0 %v4049_v0  ;;  %1910 = vmatprep.mubr.bf16.mxu1 %v3249_v22  ;;  %v4012_v34 = vld [vmem:[%s5295_s1 + $0x168] sm:$0xff]   ;;  %v4014_v36 = vld [vmem:[%s5295_s1 + $0x170] sm:$0xff]   ;;  %v4016_v38 = vld [vmem:[%s5295_s1 + $0x178] sm:$0xff]  }
   0xd   :  { %2424 = vmatprep.mubr.bf16.mxu0 %v3253_v25  ;;  %v23_v39 = vld [vmem:[%s5296_s0 + $0x40] sm:$0xff]  ;;  %v25_v41 = vld [vmem:[%s5296_s0 + $0x50] sm:$0xff]  ;;  %v4019_v50 = vld [vmem:[%s5295_s1 + $0x88] sm:$0xff]  }
   0xe   :  { %1885 = vmatpush1.bf16.msra.mxu1 %v3991_v7  ;;  %v27_v40 = vld [vmem:[%s5296_s0 + $0x60] sm:$0xff]  ;;  %v29_v43 = vld [vmem:[%s5296_s0 + $0x70] sm:$0xff]  ;;  %v4020_v53 = vld [vmem:[%s5295_s1 + $0x188] sm:$0xff]  }
   0xf   :  { %2399 = vmatpush1.bf16.msra.mxu0 %v3992_v8  ;;  %1886 = vmatprep.subr.bf16.mxu1 %v4049_v0  ;;  %v4017_v45 = vld [vmem:[%s5295_s1 + $0x80] sm:$0xff]   ;;  %v3257_v47 = vcombine.high %v23_v39, %v27_v40  ;;  %v3261_v48 = vcombine.high %v25_v41, %v29_v43  ;;  %v33_v52 = vld [vmem:[%s5296_s0 + $0x90] sm:$0xff]  ;;  %v3256_v55 = vcombine.low %v23_v39, %v27_v40  ;;  %v4023_v2 = vld [vmem:[%s5295_s1 + $0x98] sm:$0xff]  }
  0x10   :  { %2400 = vmatprep.subr.bf16.mxu0 %v4049_v0  ;;  %v4018_v46 = vld [vmem:[%s5295_s1 + $0x180] sm:$0xff]   ;;  %v37_v54 = vld [vmem:[%s5296_s0 + $0xb0] sm:$0xff]  ;;  %v3260_v56 = vcombine.low %v25_v41, %v29_v43  ;;  %v4024_v3 = vld [vmem:[%s5295_s1 + $0x198] sm:$0xff]  }
  0x11   :  { %v31_v49 = vld [vmem:[%s5296_s0 + $0x80] sm:$0xff]  ;;  %v3269_v58 = vcombine.high %v33_v52, %v37_v54  ;;  %v4021_v59 = vld [vmem:[%s5295_s1 + $0x90] sm:$0xff]   ;;  %v3268_v5 = vcombine.low %v33_v52, %v37_v54  ;;  %v4036_v39 = vld [vmem:[%s5295_s1 + $0x1c8] sm:$0xff]  }
  0x12   :  { %1887 = vmatpush1.bf16.msra.mxu1 %v3993_v9  ;;  %v35_v51 = vld [vmem:[%s5296_s0 + $0xa0] sm:$0xff]  ;;  %v4022_v60 = vld [vmem:[%s5295_s1 + $0x190] sm:$0xff]  }
  0x13   :  { %2401 = vmatpush1.bf16.msra.mxu0 %v3994_v10  ;;  %1888 = vmatprep.subr.bf16.mxu1 %v4049_v0  ;;  %v3265_v57 = vcombine.high %v31_v49, %v35_v51  ;;  %v39_v61 = vld [vmem:[%s5296_s0 + $0xc0] sm:$0xff]  ;;  %v41_v63 = vld [vmem:[%s5296_s0 + $0xd0] sm:$0xff]  ;;  %v3264_v4 = vcombine.low %v31_v49, %v35_v51  ;;  %v4040_v51 = vld [vmem:[%s5295_s1 + $0x1d8] sm:$0xff]  }
  0x14   :  { %2402 = vmatprep.subr.bf16.mxu0 %v4049_v0  ;;  %v43_v62 = vld [vmem:[%s5296_s0 + $0xe0] sm:$0xff]  ;;  %v45_v1 = vld [vmem:[%s5296_s0 + $0xf0] sm:$0xff] }
  0x15   :  { %v3273_v6 = vcombine.high %v39_v61, %v43_v62  ;;  %v4025_v7 = vld [vmem:[%s5295_s1 + $0xa0] sm:$0xff]   ;;  %v3277_v8 = vcombine.high %v41_v63, %v45_v1  ;;  %v4029_v20 = vld [vmem:[%s5295_s1 + $0xb0] sm:$0xff]  }
  0x16   :  { %1889 = vmatpush1.bf16.msra.mxu1 %v3995_v11  ;;  %v4026_v9 = vld [vmem:[%s5295_s1 + $0x1a0] sm:$0xff]   ;;  %v4030_v21 = vld [vmem:[%s5295_s1 + $0x1b0] sm:$0xff]  }
  0x17   :  { %2403 = vmatpush1.bf16.msra.mxu0 %v3996_v12  ;;  %1890 = vmatprep.subr.bf16.mxu1 %v4049_v0  ;;  %v47_v10 = vld [vmem:[%s5296_s0 + $0x100] sm:$0xff]  ;;  %v49_v12 = vld [vmem:[%s5296_s0 + $0x110] sm:$0xff] }
  0x18   :  { %2404 = vmatprep.subr.bf16.mxu0 %v4049_v0  ;;  %v51_v11 = vld [vmem:[%s5296_s0 + $0x120] sm:$0xff]  ;;  %v57_v25 = vld [vmem:[%s5296_s0 + $0x150] sm:$0xff] }
  0x19   :  { %v55_v22 = vld [vmem:[%s5296_s0 + $0x140] sm:$0xff]  ;;  %v73_v49 = vld [vmem:[%s5296_s0 + $0x1d0] sm:$0xff] }
  0x1a   :  { %1891 = vmatpush1.bf16.msra.mxu1 %v3997_v13  ;;  %v53_v13 = vld [vmem:[%s5296_s0 + $0x130] sm:$0xff]  ;;  %v59_v23 = vld [vmem:[%s5296_s0 + $0x160] sm:$0xff] }
  0x1b   :  { %2405 = vmatpush1.bf16.msra.mxu0 %v3998_v14  ;;  %1892 = vmatprep.subr.bf16.mxu1 %v4049_v0  ;;  %v4027_v14 = vld [vmem:[%s5295_s1 + $0xa8] sm:$0xff]   ;;  %v3285_v19 = vcombine.high %v49_v12, %v53_v13  ;;  %v3288_v40 = vcombine.low %v55_v22, %v59_v23 }
  0x1c   :  { %2406 = vmatprep.subr.bf16.mxu0 %v4049_v0 }
  0x1e   :  { %1893 = vmatpush1.bf16.msra.mxu1 %v3999_v15  ;;  %v4028_v15 = vld [vmem:[%s5295_s1 + $0x1a8] sm:$0xff]  }
  0x1f   :  { %2407 = vmatpush1.bf16.msra.mxu0 %v4000_v16  ;;  %1894 = vmatprep.subr.bf16.mxu1 %v4049_v0  ;;  %v3272_v16 = vcombine.low %v39_v61, %v43_v62  ;;  %v81_v61 = vld [vmem:[%s5296_s0 + $0x210] sm:$0xff] }
  0x20   :  { %2408 = vmatprep.subr.bf16.mxu0 %v4049_v0  ;;  %v85_v62 = vld [vmem:[%s5296_s0 + $0x230] sm:$0xff] }
  0x22   :  { %1895 = vmatpush1.bf16.msra.mxu1 %v4001_v17  ;;  %v3276_v17 = vcombine.low %v41_v63, %v45_v1 }
  0x23   :  { %2409 = vmatpush1.bf16.msra.mxu0 %v4002_v18  ;;  %1896 = vmatprep.subr.bf16.mxu1 %v4049_v0  ;;  %v3281_v18 = vcombine.high %v47_v10, %v51_v11 }
  0x24   :  { %2410 = vmatprep.subr.bf16.mxu0 %v4049_v0 }
  0x26   :  { %1897 = vmatpush1.bf16.msra.mxu1 %v4003_v24  ;;  %v4031_v24 = vld [vmem:[%s5295_s1 + $0xb8] sm:$0xff]  }
  0x27   :  { %2411 = vmatpush1.bf16.msra.mxu0 %v4004_v26  ;;  %1898 = vmatprep.subr.bf16.mxu1 %v4049_v0  ;;  %v61_v26 = vld [vmem:[%s5296_s0 + $0x170] sm:$0xff] }
  0x28   :  { %2412 = vmatprep.subr.bf16.mxu0 %v4049_v0  ;;  %v3292_v41 = vcombine.low %v57_v25, %v61_v26 }
  0x2a   :  { %1899 = vmatpush1.bf16.msra.mxu1 %v4005_v27  ;;  %v4032_v27 = vld [vmem:[%s5295_s1 + $0x1b8] sm:$0xff]  }
  0x2b   :  { %2413 = vmatpush1.bf16.msra.mxu0 %v4006_v28  ;;  %1900 = vmatprep.subr.bf16.mxu1 %v4049_v0  ;;  %v3280_v28 = vcombine.low %v47_v10, %v51_v11  ;;  %v3316_v10 = vcombine.low %v81_v61, %v85_v62 }
  0x2c   :  { %2414 = vmatprep.subr.bf16.mxu0 %v4049_v0 }
  0x2e   :  { %1901 = vmatpush1.bf16.msra.mxu1 %v4007_v29  ;;  %v3284_v29 = vcombine.low %v49_v12, %v53_v13  ;;  %v4045_v13 = vld [vmem:[%s5295_s1 + $0xf0] sm:$0xff]  }
  0x2f   :  { %2415 = vmatpush1.bf16.msra.mxu0 %v4008_v30  ;;  %1902 = vmatprep.subr.bf16.mxu1 %v4049_v0  ;;  %v3289_v30 = vcombine.high %v55_v22, %v59_v23  ;;  %v103_v23 = vld [vmem:[%s5296_s0 + $0x2c0] sm:$0xff] }
  0x30   :  { %2416 = vmatprep.subr.bf16.mxu0 %v4049_v0 }
  0x32   :  { %1903 = vmatpush1.bf16.msra.mxu1 %v4009_v31  ;;  %v3293_v31 = vcombine.high %v57_v25, %v61_v26  ;;  %v105_v25 = vld [vmem:[%s5296_s0 + $0x2d0] sm:$0xff] }
  0x33   :  { %2417 = vmatpush1.bf16.msra.mxu0 %v4010_v32  ;;  %1904 = vmatprep.subr.bf16.mxu1 %v4049_v0  ;;  %v4033_v32 = vld [vmem:[%s5295_s1 + $0xc0] sm:$0xff]  }
  0x34   :  { %2418 = vmatprep.subr.bf16.mxu0 %v4049_v0 }
  0x36   :  { %1905 = vmatpush1.bf16.msra.mxu1 %v4011_v33  ;;  %v4034_v33 = vld [vmem:[%s5295_s1 + $0x1c0] sm:$0xff]  }
  0x37   :  { %2419 = vmatpush1.bf16.msra.mxu0 %v4012_v34  ;;  %1906 = vmatprep.subr.bf16.mxu1 %v4049_v0  ;;  %v63_v34 = vld [vmem:[%s5296_s0 + $0x180] sm:$0xff] }
  0x38   :  { %2420 = vmatprep.subr.bf16.mxu0 %v4049_v0 }
  0x3a   :  { %1907 = vmatpush1.bf16.msra.mxu1 %v4013_v35  ;;  %v67_v35 = vld [vmem:[%s5296_s0 + $0x1a0] sm:$0xff] }
  0x3b   :  { %2421 = vmatpush1.bf16.msra.mxu0 %v4014_v36  ;;  %1908 = vmatprep.subr.bf16.mxu1 %v4049_v0  ;;  %v4035_v36 = vld [vmem:[%s5295_s1 + $0xc8] sm:$0xff]   ;;  %v3296_v52 = vcombine.low %v63_v34, %v67_v35 }
  0x3c   :  { %2422 = vmatprep.subr.bf16.mxu0 %v4049_v0 }
  0x3e   :  { %1909 = vmatpush1.bf16.msra.mxu1 %v4015_v37  ;;  %v65_v37 = vld [vmem:[%s5296_s0 + $0x190] sm:$0xff] }
  0x3f   :  { %2423 = vmatpush1.bf16.msra.mxu0 %v4016_v38  ;;  %2135 = vmatprep.subr.bf16.mxu1 %v4049_v0  ;;  %v69_v38 = vld [vmem:[%s5296_s0 + $0x1b0] sm:$0xff] }
  0x40   :  { %2649 = vmatprep.subr.bf16.mxu0 %v4049_v0  ;;  %v3301_v43 = vcombine.high %v65_v37, %v69_v38 }
  0x41   :  { %1911 = vmatmul.mubr.bf16.vlgmr.msra.gmra.mrb[0].mxu1 %v3248_v42  ;;  %v3297_v42 = vcombine.high %v63_v34, %v67_v35  ;;  %v113_v34 = vld [vmem:[%s5296_s0 + $0x310] sm:$0xff] }
  0x42   :  { %2425 = vmatmul.mubr.bf16.vlgmr.msra.gmra.mrb[0].mxu0 %v3252_v44  ;;  %2136 = vmatpush1.bf16.msra.mxu1 %v4017_v45  ;;  %v4037_v44 = vld [vmem:[%s5295_s1 + $0xd0] sm:$0xff]  }
  0x43   :  { %2650 = vmatpush1.bf16.msra.mxu0 %v4018_v46  ;;  %1918 = vmatprep.mubr.bf16.mxu1 %v3257_v47  ;;  %v4038_v45 = vld [vmem:[%s5295_s1 + $0x1d0] sm:$0xff]   ;;  %v71_v46 = vld [vmem:[%s5296_s0 + $0x1c0] sm:$0xff] }
  0x44   :  { %2432 = vmatprep.mubr.bf16.mxu0 %v3261_v48  ;;  %2137 = vmatprep.subr.bf16.mxu1 %v4049_v0  ;;  %v75_v47 = vld [vmem:[%s5296_s0 + $0x1e0] sm:$0xff]  ;;  %v4039_v48 = vld [vmem:[%s5295_s1 + $0xd8] sm:$0xff]   ;;  %v117_v35 = vld [vmem:[%s5296_s0 + $0x330] sm:$0xff] }
  0x45   :  { %2651 = vmatprep.subr.bf16.mxu0 %v4049_v0  ;;  %v3305_v54 = vcombine.high %v71_v46, %v75_v47  ;;  %v3304_v63 = vcombine.low %v71_v46, %v75_v47 }
  0x46   :  { %2138 = vmatpush1.bf16.msra.mxu1 %v4019_v50  ;;  %v77_v50 = vld [vmem:[%s5296_s0 + $0x1f0] sm:$0xff] }
  0x47   :  { %2652 = vmatpush1.bf16.msra.mxu0 %v4020_v53  ;;  %2139 = vmatprep.subr.bf16.mxu1 %v4049_v0  ;;  %v3300_v53 = vcombine.low %v65_v37, %v69_v38  ;;  %v3308_v1 = vcombine.low %v73_v49, %v77_v50 }
  0x48   :  { %2653 = vmatprep.subr.bf16.mxu0 %v4049_v0 }
  0x49   :  { %1919 = vmatmul.mubr.bf16.gmra.mrb[4].mxu1 %v3256_v55  ;;  %v3309_v55 = vcombine.high %v73_v49, %v77_v50  ;;  %v131_v49 = vld [vmem:[%s5296_s0 + $0x3a0] sm:$0xff]  ;;  %v129_v50 = vld [vmem:[%s5296_s0 + $0x390] sm:$0xff] }
  0x4a   :  { %2433 = vmatmul.mubr.bf16.gmra.mrb[4].mxu0 %v3260_v56  ;;  %1926 = vmatprep.mubr.bf16.mxu1 %v3265_v57  ;;  %v4041_v56 = vld [vmem:[%s5295_s1 + $0xe0] sm:$0xff]  }
  0x4b   :  { %2440 = vmatprep.mubr.bf16.mxu0 %v3269_v58  ;;  %2140 = vmatpush1.bf16.msra.mxu1 %v4021_v59  ;;  %v4042_v57 = vld [vmem:[%s5295_s1 + $0x1e0] sm:$0xff]  }
  0x4c   :  { %2654 = vmatpush1.bf16.msra.mxu0 %v4022_v60  ;;  %2141 = vmatprep.subr.bf16.mxu1 %v4049_v0  ;;  %v79_v58 = vld [vmem:[%s5296_s0 + $0x200] sm:$0xff]  ;;  %v4043_v60 = vld [vmem:[%s5295_s1 + $0xe8] sm:$0xff]  }
  0x4d   :  { %2655 = vmatprep.subr.bf16.mxu0 %v4049_v0  ;;  %v83_v59 = vld [vmem:[%s5296_s0 + $0x220] sm:$0xff] }
  0x4f   :  { %2142 = vmatpush1.bf16.msra.mxu1 %v4023_v2  ;;  %v3313_v2 = vcombine.high %v79_v58, %v83_v59 }
  0x50   :  { %2656 = vmatpush1.bf16.msra.mxu0 %v4024_v3  ;;  %2143 = vmatprep.subr.bf16.mxu1 %v4049_v0  ;;  %v3317_v3 = vcombine.high %v81_v61, %v85_v62 }
  0x51   :  { %1927 = vmatmul.mubr.bf16.gmra.mrb[8].mxu1 %v3264_v4  ;;  %2657 = vmatprep.subr.bf16.mxu0 %v4049_v0  ;;  %v4044_v4 = vld [vmem:[%s5295_s1 + $0x1e8] sm:$0xff]  }
  0x52   :  { %2441 = vmatmul.mubr.bf16.gmra.mrb[8].mxu0 %v3268_v5  ;;  %1934 = vmatprep.mubr.bf16.mxu1 %v3273_v6  ;;  %v87_v5 = vld [vmem:[%s5296_s0 + $0x240] sm:$0xff] }
  0x53   :  { %2448 = vmatprep.mubr.bf16.mxu0 %v3277_v8  ;;  %2144 = vmatpush1.bf16.msra.mxu1 %v4025_v7  ;;  %v91_v6 = vld [vmem:[%s5296_s0 + $0x260] sm:$0xff]  ;;  %v89_v7 = vld [vmem:[%s5296_s0 + $0x250] sm:$0xff] }
  0x54   :  { %2658 = vmatpush1.bf16.msra.mxu0 %v4026_v9  ;;  %2145 = vmatprep.subr.bf16.mxu1 %v4049_v0  ;;  %v93_v8 = vld [vmem:[%s5296_s0 + $0x270] sm:$0xff]  ;;  %v3312_v9 = vcombine.low %v79_v58, %v83_v59  ;;  %v3321_v11 = vcombine.high %v87_v5, %v91_v6 }
  0x55   :  { %2659 = vmatprep.subr.bf16.mxu0 %v4049_v0  ;;  %v3325_v12 = vcombine.high %v89_v7, %v93_v8  ;;  %v137_v58 = vld [vmem:[%s5296_s0 + $0x3d0] sm:$0xff] }
  0x56   :  { %v141_v59 = vld [vmem:[%s5296_s0 + $0x3f0] sm:$0xff] }
  0x57   :  { %2146 = vmatpush1.bf16.msra.mxu1 %v4027_v14  ;;  %v95_v14 = vld [vmem:[%s5296_s0 + $0x280] sm:$0xff] }
  0x58   :  { %2660 = vmatpush1.bf16.msra.mxu0 %v4028_v15  ;;  %2147 = vmatprep.subr.bf16.mxu1 %v4049_v0  ;;  %v99_v15 = vld [vmem:[%s5296_s0 + $0x2a0] sm:$0xff] }
  0x59   :  { %1935 = vmatmul.mubr.bf16.gmra.mrb[12].mxu1 %v3272_v16  ;;  %2661 = vmatprep.subr.bf16.mxu0 %v4049_v0  ;;  %v4046_v16 = vld [vmem:[%s5295_s1 + $0x1f0] sm:$0xff]   ;;  %v3328_v26 = vcombine.low %v95_v14, %v99_v15 }
  0x5a   :  { %2449 = vmatmul.mubr.bf16.gmra.mrb[12].mxu0 %v3276_v17  ;;  %1942 = vmatprep.mubr.bf16.mxu1 %v3281_v18  ;;  %v97_v17 = vld [vmem:[%s5296_s0 + $0x290] sm:$0xff] }
  0x5b   :  { %2456 = vmatprep.mubr.bf16.mxu0 %v3285_v19  ;;  %2148 = vmatpush1.bf16.msra.mxu1 %v4029_v20  ;;  %v101_v18 = vld [vmem:[%s5296_s0 + $0x2b0] sm:$0xff]  ;;  %v3320_v19 = vcombine.low %v87_v5, %v91_v6  ;;  %v3324_v20 = vcombine.low %v89_v7, %v93_v8  ;;  %v3372_v6 = vcombine.low %v137_v58, %v141_v59 }
  0x5c   :  { %2662 = vmatpush1.bf16.msra.mxu0 %v4030_v21  ;;  %2149 = vmatprep.subr.bf16.mxu1 %v4049_v0  ;;  %v3329_v21 = vcombine.high %v95_v14, %v99_v15  ;;  %v3333_v22 = vcombine.high %v97_v17, %v101_v18 }
  0x5d   :  { %2663 = vmatprep.subr.bf16.mxu0 %v4049_v0 }
  0x5f   :  { %2150 = vmatpush1.bf16.msra.mxu1 %v4031_v24  ;;  %v107_v24 = vld [vmem:[%s5296_s0 + $0x2e0] sm:$0xff] }
  0x60   :  { %2664 = vmatpush1.bf16.msra.mxu0 %v4032_v27  ;;  %2151 = vmatprep.subr.bf16.mxu1 %v4049_v0  ;;  %v3332_v27 = vcombine.low %v97_v17, %v101_v18  ;;  %v159_v17 = vld [vmem:[%s5296_s0 + $0x480] sm:$0xff] }
  0x61   :  { %1943 = vmatmul.mubr.bf16.gmra.mrb[16].mxu1 %v3280_v28  ;;  %2665 = vmatprep.subr.bf16.mxu0 %v4049_v0  ;;  %v3337_v28 = vcombine.high %v103_v23, %v107_v24  ;;  %v163_v18 = vld [vmem:[%s5296_s0 + $0x4a0] sm:$0xff] }
  0x62   :  { %2457 = vmatmul.mubr.bf16.gmra.mrb[16].mxu0 %v3284_v29  ;;  %1950 = vmatprep.mubr.bf16.mxu1 %v3289_v30  ;;  %v4047_v30 = vld [vmem:[%s5295_s1 + $0xf8] sm:$0xff]  }
  0x63   :  { %2464 = vmatprep.mubr.bf16.mxu0 %v3293_v31  ;;  %2152 = vmatpush1.bf16.msra.mxu1 %v4033_v32  ;;  %v4048_v31 = vld [vmem:[%s5295_s1 + $0x1f8] sm:$0xff]   ;;  %v111_v32 = vld [vmem:[%s5296_s0 + $0x300] sm:$0xff] }
  0x64   :  { %2666 = vmatpush1.bf16.msra.mxu0 %v4034_v33  ;;  %2153 = vmatprep.subr.bf16.mxu1 %v4049_v0  ;;  %v115_v33 = vld [vmem:[%s5296_s0 + $0x320] sm:$0xff] }
  0x65   :  { %2667 = vmatprep.subr.bf16.mxu0 %v4049_v0  ;;  %v3345_v38 = vcombine.high %v111_v32, %v115_v33 }
  0x67   :  { %2154 = vmatpush1.bf16.msra.mxu1 %v4035_v36  ;;  %v3336_v36 = vcombine.low %v103_v23, %v107_v24  ;;  %v3393_v23 = vcombine.high %v159_v17, %v163_v18 }
  0x68   :  { %2668 = vmatpush1.bf16.msra.mxu0 %v4036_v39  ;;  %2155 = vmatprep.subr.bf16.mxu1 %v4049_v0  ;;  %v3349_v39 = vcombine.high %v113_v34, %v117_v35 }
  0x69   :  { %1951 = vmatmul.mubr.bf16.gmra.mrb[20].mxu1 %v3288_v40  ;;  %2669 = vmatprep.subr.bf16.mxu0 %v4049_v0  ;;  %v119_v40 = vld [vmem:[%s5296_s0 + $0x340] sm:$0xff] }
  0x6a   :  { %2465 = vmatmul.mubr.bf16.gmra.mrb[20].mxu0 %v3292_v41  ;;  %1958 = vmatprep.mubr.bf16.mxu1 %v3297_v42  ;;  %v123_v41 = vld [vmem:[%s5296_s0 + $0x360] sm:$0xff]  ;;  %v121_v42 = vld [vmem:[%s5296_s0 + $0x350] sm:$0xff] }
  0x6b   :  { %2472 = vmatprep.mubr.bf16.mxu0 %v3301_v43  ;;  %2156 = vmatpush1.bf16.msra.mxu1 %v4037_v44  ;;  %v125_v43 = vld [vmem:[%s5296_s0 + $0x370] sm:$0xff]  ;;  %v3344_v44 = vcombine.low %v111_v32, %v115_v33  ;;  %v3353_v46 = vcombine.high %v119_v40, %v123_v41  ;;  %v175_v32 = vld [vmem:[%s5296_s0 + $0x500] sm:$0xff] }
  0x6c   :  { %2670 = vmatpush1.bf16.msra.mxu0 %v4038_v45  ;;  %2157 = vmatprep.subr.bf16.mxu1 %v4049_v0  ;;  %v3348_v45 = vcombine.low %v113_v34, %v117_v35  ;;  %v3357_v47 = vcombine.high %v121_v42, %v125_v43  ;;  %v179_v33 = vld [vmem:[%s5296_s0 + $0x520] sm:$0xff]  ;;  %v177_v34 = vld [vmem:[%s5296_s0 + $0x510] sm:$0xff] }
  0x6d   :  { %2671 = vmatprep.subr.bf16.mxu0 %v4049_v0  ;;  %v181_v35 = vld [vmem:[%s5296_s0 + $0x530] sm:$0xff] }
  0x6f   :  { %2158 = vmatpush1.bf16.msra.mxu1 %v4039_v48  ;;  %v127_v48 = vld [vmem:[%s5296_s0 + $0x380] sm:$0xff] }
  0x70   :  { %2672 = vmatpush1.bf16.msra.mxu0 %v4040_v51  ;;  %2159 = vmatprep.subr.bf16.mxu1 %v4049_v0  ;;  %v133_v51 = vld [vmem:[%s5296_s0 + $0x3b0] sm:$0xff] }
  0x71   :  { %1959 = vmatmul.mubr.bf16.gmra.mrb[24].mxu1 %v3296_v52  ;;  %2673 = vmatprep.subr.bf16.mxu0 %v4049_v0  ;;  %v3352_v52 = vcombine.low %v119_v40, %v123_v41  ;;  %v3364_v61 = vcombine.low %v129_v50, %v133_v51  ;;  %v183_v40 = vld [vmem:[%s5296_s0 + $0x540] sm:$0xff] }
  0x72   :  { %2473 = vmatmul.mubr.bf16.gmra.mrb[24].mxu0 %v3300_v53  ;;  %1966 = vmatprep.mubr.bf16.mxu1 %v3305_v54  ;;  %v3356_v53 = vcombine.low %v121_v42, %v125_v43  ;;  %v3361_v54 = vcombine.high %v127_v48, %v131_v49  ;;  %v187_v41 = vld [vmem:[%s5296_s0 + $0x560] sm:$0xff]  ;;  %v185_v42 = vld [vmem:[%s5296_s0 + $0x550] sm:$0xff] }
  0x73   :  { %2480 = vmatprep.mubr.bf16.mxu0 %v3309_v55  ;;  %2160 = vmatpush1.bf16.msra.mxu1 %v4041_v56  ;;  %v3365_v55 = vcombine.high %v129_v50, %v133_v51  ;;  %v135_v56 = vld [vmem:[%s5296_s0 + $0x3c0] sm:$0xff]  ;;  %v189_v43 = vld [vmem:[%s5296_s0 + $0x570] sm:$0xff] }
  0x74   :  { %2674 = vmatpush1.bf16.msra.mxu0 %v4042_v57  ;;  %2161 = vmatprep.subr.bf16.mxu1 %v4049_v0  ;;  %v139_v57 = vld [vmem:[%s5296_s0 + $0x3e0] sm:$0xff]  ;;  %v193_v50 = vld [vmem:[%s5296_s0 + $0x590] sm:$0xff] }
  0x75   :  { %2675 = vmatprep.subr.bf16.mxu0 %v4049_v0  ;;  %v3369_v62 = vcombine.high %v135_v56, %v139_v57  ;;  %v3368_v5 = vcombine.low %v135_v56, %v139_v57  ;;  %v197_v51 = vld [vmem:[%s5296_s0 + $0x5b0] sm:$0xff]  ;;  %v199_v56 = vld [vmem:[%s5296_s0 + $0x5c0] sm:$0xff] }
  0x76   :  { %v203_v57 = vld [vmem:[%s5296_s0 + $0x5e0] sm:$0xff] }
  0x77   :  { %2162 = vmatpush1.bf16.msra.mxu1 %v4043_v60  ;;  %v3360_v60 = vcombine.low %v127_v48, %v131_v49  ;;  %v191_v48 = vld [vmem:[%s5296_s0 + $0x580] sm:$0xff] }
  0x78   :  { %2163 = vmatprep.subr.bf16.mxu1 %v4049_v0  ;;  %2676 = vmatpush1.bf16.msra.mxu0 %v4044_v4  ;;  %v149_v4 = vld [vmem:[%s5296_s0 + $0x430] sm:$0xff]  ;;  %v195_v49 = vld [vmem:[%s5296_s0 + $0x5a0] sm:$0xff] }
  0x79   :  { %1967 = vmatmul.mubr.bf16.gmra.mrb[28].mxu1 %v3304_v63  ;;  %2677 = vmatprep.subr.bf16.mxu0 %v4049_v0  ;;  %v3373_v63 = vcombine.high %v137_v58, %v141_v59  ;;  %v201_v58 = vld [vmem:[%s5296_s0 + $0x5d0] sm:$0xff] }
  0x7a   :  { %2481 = vmatmul.mubr.bf16.gmra.mrb[28].mxu0 %v3308_v1  ;;  %1974 = vmatprep.mubr.bf16.mxu1 %v3313_v2  ;;  %v143_v1 = vld [vmem:[%s5296_s0 + $0x400] sm:$0xff]  ;;  %v205_v59 = vld [vmem:[%s5296_s0 + $0x5f0] sm:$0xff] }
  0x7b   :  { %2488 = vmatprep.mubr.bf16.mxu0 %v3317_v3  ;;  %2164 = vmatpush1.bf16.msra.mxu1 %v4045_v13  ;;  %v147_v2 = vld [vmem:[%s5296_s0 + $0x420] sm:$0xff]  ;;  %v145_v3 = vld [vmem:[%s5296_s0 + $0x410] sm:$0xff] }
  0x7c   :  { %2678 = vmatpush1.bf16.msra.mxu0 %v4046_v16  ;;  %2165 = vmatprep.subr.bf16.mxu1 %v4049_v0  ;;  %v3377_v7 = vcombine.high %v143_v1, %v147_v2  ;;  %v3381_v8 = vcombine.high %v145_v3, %v149_v4  ;;  %v3376_v13 = vcombine.low %v143_v1, %v147_v2  ;;  %v207_v1 = vld [vmem:[%s5296_s0 + $0x600] sm:$0xff] }
  0x7d   :  { %2679 = vmatprep.subr.bf16.mxu0 %v4049_v0  ;;  %v109_v0 = vld [vmem:[%s5296_s0 + $0x2f0] sm:$0xff]  ;;  %v3380_v14 = vcombine.low %v145_v3, %v149_v4  ;;  %v211_v2 = vld [vmem:[%s5296_s0 + $0x620] sm:$0xff] }
  0x7e   :  { %v3341_v29 = vcombine.high %v105_v25, %v109_v0  ;;  %v3340_v37 = vcombine.low %v105_v25, %v109_v0  ;;  %v167_v25 = vld [vmem:[%s5296_s0 + $0x4c0] sm:$0xff]  ;;  %v209_v3 = vld [vmem:[%s5296_s0 + $0x610] sm:$0xff] }
  0x7f   :  { %2166 = vmatpush1.bf16.msra.mxu1 %v4047_v30  ;;  %v171_v0 = vld [vmem:[%s5296_s0 + $0x4e0] sm:$0xff]  ;;  %v213_v4 = vld [vmem:[%s5296_s0 + $0x630] sm:$0xff] }
  0x80   :  { %2680 = vmatpush1.bf16.msra.mxu0 %v4048_v31  ;;  %v3401_v30 = vcombine.high %v167_v25, %v171_v0 }
  0x81   :  { %1975 = vmatmul.mubr.bf16.gmra.mrb[32].mxu1 %v3312_v9  ;;  %v151_v9 = vld [vmem:[%s5296_s0 + $0x440] sm:$0xff] }
  0x82   :  { %2489 = vmatmul.mubr.bf16.gmra.mrb[32].mxu0 %v3316_v10  ;;  %1982 = vmatprep.mubr.bf16.mxu1 %v3321_v11  ;;  %v155_v10 = vld [vmem:[%s5296_s0 + $0x460] sm:$0xff]  ;;  %v153_v11 = vld [vmem:[%s5296_s0 + $0x450] sm:$0xff] }
  0x83   :  { %2496 = vmatprep.mubr.bf16.mxu0 %v3325_v12  ;;  %v157_v12 = vld [vmem:[%s5296_s0 + $0x470] sm:$0xff]  ;;  %v3385_v15 = vcombine.high %v151_v9, %v155_v10 }
  0x84   :  { %v3389_v16 = vcombine.high %v153_v11, %v157_v12 }
  0x89   :  { %1983 = vmatmul.mubr.bf16.gmra.mrb[36].mxu1 %v3320_v19  ;;  %v161_v19 = vld [vmem:[%s5296_s0 + $0x490] sm:$0xff] }
  0x8a   :  { %2497 = vmatmul.mubr.bf16.gmra.mrb[36].mxu0 %v3324_v20  ;;  %1990 = vmatprep.mubr.bf16.mxu1 %v3329_v21  ;;  %v165_v20 = vld [vmem:[%s5296_s0 + $0x4b0] sm:$0xff]  ;;  %v3384_v21 = vcombine.low %v151_v9, %v155_v10  ;;  %v215_v9 = vld [vmem:[%s5296_s0 + $0x640] sm:$0xff] }
  0x8b   :  { %2504 = vmatprep.mubr.bf16.mxu0 %v3333_v22  ;;  %v3388_v22 = vcombine.low %v153_v11, %v157_v12  ;;  %v3397_v24 = vcombine.high %v161_v19, %v165_v20  ;;  %v219_v10 = vld [vmem:[%s5296_s0 + $0x660] sm:$0xff]  ;;  %v217_v11 = vld [vmem:[%s5296_s0 + $0x650] sm:$0xff] }
  0x8c   :  { %v221_v12 = vld [vmem:[%s5296_s0 + $0x670] sm:$0xff] }
  0x91   :  { %1991 = vmatmul.mubr.bf16.gmra.mrb[40].mxu1 %v3328_v26  ;;  %v169_v26 = vld [vmem:[%s5296_s0 + $0x4d0] sm:$0xff] }
  0x92   :  { %2505 = vmatmul.mubr.bf16.gmra.mrb[40].mxu0 %v3332_v27  ;;  %1998 = vmatprep.mubr.bf16.mxu1 %v3337_v28  ;;  %v173_v27 = vld [vmem:[%s5296_s0 + $0x4f0] sm:$0xff]  ;;  %v3392_v28 = vcombine.low %v159_v17, %v163_v18  ;;  %v223_v17 = vld [vmem:[%s5296_s0 + $0x680] sm:$0xff] }
  0x93   :  { %2512 = vmatprep.mubr.bf16.mxu0 %v3341_v29  ;;  %v3396_v29 = vcombine.low %v161_v19, %v165_v20  ;;  %v3405_v31 = vcombine.high %v169_v26, %v173_v27  ;;  %v227_v18 = vld [vmem:[%s5296_s0 + $0x6a0] sm:$0xff]  ;;  %v225_v19 = vld [vmem:[%s5296_s0 + $0x690] sm:$0xff] }
  0x94   :  { %v229_v20 = vld [vmem:[%s5296_s0 + $0x6b0] sm:$0xff] }
  0x99   :  { %1999 = vmatmul.mubr.bf16.gmra.mrb[44].mxu1 %v3336_v36  ;;  %v3400_v36 = vcombine.low %v167_v25, %v171_v0  ;;  %v231_v25 = vld [vmem:[%s5296_s0 + $0x6c0] sm:$0xff] }
  0x9a   :  { %2513 = vmatmul.mubr.bf16.gmra.mrb[44].mxu0 %v3340_v37  ;;  %2006 = vmatprep.mubr.bf16.mxu1 %v3345_v38  ;;  %v3404_v37 = vcombine.low %v169_v26, %v173_v27  ;;  %v3409_v38 = vcombine.high %v175_v32, %v179_v33  ;;  %v235_v0 = vld [vmem:[%s5296_s0 + $0x6e0] sm:$0xff]  ;;  %v233_v26 = vld [vmem:[%s5296_s0 + $0x6d0] sm:$0xff] }
  0x9b   :  { %2520 = vmatprep.mubr.bf16.mxu0 %v3349_v39  ;;  %v3413_v39 = vcombine.high %v177_v34, %v181_v35  ;;  %v237_v27 = vld [vmem:[%s5296_s0 + $0x6f0] sm:$0xff] }
  0xa1   :  { %2007 = vmatmul.mubr.bf16.gmra.mrb[48].mxu1 %v3344_v44  ;;  %v3408_v44 = vcombine.low %v175_v32, %v179_v33  ;;  %v16_v32 = vld [vmem:[%s5296_s0 + $0x8] sm:$0xff] }
  0xa2   :  { %2521 = vmatmul.mubr.bf16.gmra.mrb[48].mxu0 %v3348_v45  ;;  %2014 = vmatprep.mubr.bf16.mxu1 %v3353_v46  ;;  %v3412_v45 = vcombine.low %v177_v34, %v181_v35  ;;  %v3417_v46 = vcombine.high %v183_v40, %v187_v41  ;;  %v20_v33 = vld [vmem:[%s5296_s0 + $0x28] sm:$0xff]  ;;  %v18_v34 = vld [vmem:[%s5296_s0 + $0x18] sm:$0xff] }
  0xa3   :  { %2528 = vmatprep.mubr.bf16.mxu0 %v3357_v47  ;;  %v3421_v47 = vcombine.high %v185_v42, %v189_v43  ;;  %v22_v35 = vld [vmem:[%s5296_s0 + $0x38] sm:$0xff] }
  0xa9   :  { %2015 = vmatmul.mubr.bf16.gmra.mrb[52].mxu1 %v3352_v52  ;;  %v3416_v52 = vcombine.low %v183_v40, %v187_v41  ;;  %v24_v40 = vld [vmem:[%s5296_s0 + $0x48] sm:$0xff] }
  0xaa   :  { %2529 = vmatmul.mubr.bf16.gmra.mrb[52].mxu0 %v3356_v53  ;;  %2022 = vmatprep.mubr.bf16.mxu1 %v3361_v54  ;;  %v3420_v53 = vcombine.low %v185_v42, %v189_v43  ;;  %v3425_v54 = vcombine.high %v191_v48, %v195_v49  ;;  %v28_v41 = vld [vmem:[%s5296_s0 + $0x68] sm:$0xff]  ;;  %v26_v42 = vld [vmem:[%s5296_s0 + $0x58] sm:$0xff] }
  0xab   :  { %2536 = vmatprep.mubr.bf16.mxu0 %v3365_v55  ;;  %v3429_v55 = vcombine.high %v193_v50, %v197_v51  ;;  %v30_v43 = vld [vmem:[%s5296_s0 + $0x78] sm:$0xff] }
  0xb1   :  { %2023 = vmatmul.mubr.bf16.gmra.mrb[56].mxu1 %v3360_v60  ;;  %v3424_v60 = vcombine.low %v191_v48, %v195_v49  ;;  %v32_v48 = vld [vmem:[%s5296_s0 + $0x88] sm:$0xff] }
  0xb2   :  { %2537 = vmatmul.mubr.bf16.gmra.mrb[56].mxu0 %v3364_v61  ;;  %2030 = vmatprep.mubr.bf16.mxu1 %v3369_v62  ;;  %v3428_v61 = vcombine.low %v193_v50, %v197_v51  ;;  %v3433_v62 = vcombine.high %v199_v56, %v203_v57  ;;  %v36_v49 = vld [vmem:[%s5296_s0 + $0xa8] sm:$0xff]  ;;  %v34_v50 = vld [vmem:[%s5296_s0 + $0x98] sm:$0xff] }
  0xb3   :  { %2544 = vmatprep.mubr.bf16.mxu0 %v3373_v63  ;;  %v3437_v63 = vcombine.high %v201_v58, %v205_v59  ;;  %v38_v51 = vld [vmem:[%s5296_s0 + $0xb8] sm:$0xff] }
  0xb9   :  { %2031 = vmatmul.mubr.bf16.gmra.mrb[60].mxu1 %v3368_v5  ;;  %v3432_v5 = vcombine.low %v199_v56, %v203_v57  ;;  %v40_v56 = vld [vmem:[%s5296_s0 + $0xc8] sm:$0xff] }
  0xba   :  { %2545 = vmatmul.mubr.bf16.gmra.mrb[60].mxu0 %v3372_v6  ;;  %2038 = vmatprep.mubr.bf16.mxu1 %v3377_v7  ;;  %v3436_v6 = vcombine.low %v201_v58, %v205_v59  ;;  %v3441_v7 = vcombine.high %v207_v1, %v211_v2  ;;  %v44_v57 = vld [vmem:[%s5296_s0 + $0xe8] sm:$0xff]  ;;  %v42_v58 = vld [vmem:[%s5296_s0 + $0xd8] sm:$0xff] }
  0xbb   :  { %2552 = vmatprep.mubr.bf16.mxu0 %v3381_v8  ;;  %v3445_v8 = vcombine.high %v209_v3, %v213_v4  ;;  %v46_v59 = vld [vmem:[%s5296_s0 + $0xf8] sm:$0xff] }
  0xc1   :  { %2039 = vmatmul.mubr.bf16.gmra.mrb[64].mxu1 %v3376_v13  ;;  %v3440_v13 = vcombine.low %v207_v1, %v211_v2  ;;  %v48_v1 = vld [vmem:[%s5296_s0 + $0x108] sm:$0xff] }
  0xc2   :  { %2553 = vmatmul.mubr.bf16.gmra.mrb[64].mxu0 %v3380_v14  ;;  %2046 = vmatprep.mubr.bf16.mxu1 %v3385_v15  ;;  %v3444_v14 = vcombine.low %v209_v3, %v213_v4  ;;  %v3449_v15 = vcombine.high %v215_v9, %v219_v10  ;;  %v52_v2 = vld [vmem:[%s5296_s0 + $0x128] sm:$0xff]  ;;  %v50_v3 = vld [vmem:[%s5296_s0 + $0x118] sm:$0xff] }
  0xc3   :  { %2560 = vmatprep.mubr.bf16.mxu0 %v3389_v16  ;;  %v3453_v16 = vcombine.high %v217_v11, %v221_v12  ;;  %v54_v4 = vld [vmem:[%s5296_s0 + $0x138] sm:$0xff] }
  0xc9   :  { %2047 = vmatmul.mubr.bf16.gmra.mrb[68].mxu1 %v3384_v21  ;;  %v3448_v21 = vcombine.low %v215_v9, %v219_v10  ;;  %v56_v9 = vld [vmem:[%s5296_s0 + $0x148] sm:$0xff] }
  0xca   :  { %2561 = vmatmul.mubr.bf16.gmra.mrb[68].mxu0 %v3388_v22  ;;  %2054 = vmatprep.mubr.bf16.mxu1 %v3393_v23  ;;  %v3452_v22 = vcombine.low %v217_v11, %v221_v12  ;;  %v3457_v23 = vcombine.high %v223_v17, %v227_v18  ;;  %v60_v10 = vld [vmem:[%s5296_s0 + $0x168] sm:$0xff]  ;;  %v58_v11 = vld [vmem:[%s5296_s0 + $0x158] sm:$0xff] }
  0xcb   :  { %2568 = vmatprep.mubr.bf16.mxu0 %v3397_v24  ;;  %v3461_v24 = vcombine.high %v225_v19, %v229_v20  ;;  %v62_v12 = vld [vmem:[%s5296_s0 + $0x178] sm:$0xff] }
  0xd1   :  { %2055 = vmatmul.mubr.bf16.gmra.mrb[72].mxu1 %v3392_v28  ;;  %v3456_v28 = vcombine.low %v223_v17, %v227_v18  ;;  %v64_v17 = vld [vmem:[%s5296_s0 + $0x188] sm:$0xff] }
  0xd2   :  { %2569 = vmatmul.mubr.bf16.gmra.mrb[72].mxu0 %v3396_v29  ;;  %2062 = vmatprep.mubr.bf16.mxu1 %v3401_v30  ;;  %v3460_v29 = vcombine.low %v225_v19, %v229_v20  ;;  %v3465_v30 = vcombine.high %v231_v25, %v235_v0  ;;  %v68_v18 = vld [vmem:[%s5296_s0 + $0x1a8] sm:$0xff]  ;;  %v66_v19 = vld [vmem:[%s5296_s0 + $0x198] sm:$0xff] }
  0xd3   :  { %2576 = vmatprep.mubr.bf16.mxu0 %v3405_v31  ;;  %v3469_v31 = vcombine.high %v233_v26, %v237_v27  ;;  %v70_v20 = vld [vmem:[%s5296_s0 + $0x1b8] sm:$0xff] }
  0xd9   :  { %2063 = vmatmul.mubr.bf16.gmra.mrb[76].mxu1 %v3400_v36  ;;  %v3464_v36 = vcombine.low %v231_v25, %v235_v0  ;;  %v72_v25 = vld [vmem:[%s5296_s0 + $0x1c8] sm:$0xff] }
  0xda   :  { %2577 = vmatmul.mubr.bf16.gmra.mrb[76].mxu0 %v3404_v37  ;;  %2070 = vmatprep.mubr.bf16.mxu1 %v3409_v38  ;;  %v3468_v37 = vcombine.low %v233_v26, %v237_v27  ;;  %v3251_v38 = vcombine.high %v16_v32, %v20_v33  ;;  %v76_v0 = vld [vmem:[%s5296_s0 + $0x1e8] sm:$0xff]  ;;  %v74_v26 = vld [vmem:[%s5296_s0 + $0x1d8] sm:$0xff] }
  0xdb   :  { %2584 = vmatprep.mubr.bf16.mxu0 %v3413_v39  ;;  %v3255_v39 = vcombine.high %v18_v34, %v22_v35  ;;  %v78_v27 = vld [vmem:[%s5296_s0 + $0x1f8] sm:$0xff] }
  0xe1   :  { %2071 = vmatmul.mubr.bf16.gmra.mrb[80].mxu1 %v3408_v44  ;;  %v3250_v44 = vcombine.low %v16_v32, %v20_v33  ;;  %v80_v32 = vld [vmem:[%s5296_s0 + $0x208] sm:$0xff] }
  0xe2   :  { %2585 = vmatmul.mubr.bf16.gmra.mrb[80].mxu0 %v3412_v45  ;;  %2078 = vmatprep.mubr.bf16.mxu1 %v3417_v46  ;;  %v3254_v45 = vcombine.low %v18_v34, %v22_v35  ;;  %v3259_v46 = vcombine.high %v24_v40, %v28_v41  ;;  %v84_v33 = vld [vmem:[%s5296_s0 + $0x228] sm:$0xff]  ;;  %v82_v34 = vld [vmem:[%s5296_s0 + $0x218] sm:$0xff] }
  0xe3   :  { %2592 = vmatprep.mubr.bf16.mxu0 %v3421_v47  ;;  %v3263_v47 = vcombine.high %v26_v42, %v30_v43  ;;  %v86_v35 = vld [vmem:[%s5296_s0 + $0x238] sm:$0xff] }
  0xe9   :  { %2079 = vmatmul.mubr.bf16.gmra.mrb[84].mxu1 %v3416_v52  ;;  %v3258_v52 = vcombine.low %v24_v40, %v28_v41  ;;  %v88_v40 = vld [vmem:[%s5296_s0 + $0x248] sm:$0xff] }
  0xea   :  { %2593 = vmatmul.mubr.bf16.gmra.mrb[84].mxu0 %v3420_v53  ;;  %2086 = vmatprep.mubr.bf16.mxu1 %v3425_v54  ;;  %v3262_v53 = vcombine.low %v26_v42, %v30_v43  ;;  %v3267_v54 = vcombine.high %v32_v48, %v36_v49  ;;  %v92_v41 = vld [vmem:[%s5296_s0 + $0x268] sm:$0xff]  ;;  %v90_v42 = vld [vmem:[%s5296_s0 + $0x258] sm:$0xff] }
  0xeb   :  { %2600 = vmatprep.mubr.bf16.mxu0 %v3429_v55  ;;  %v3271_v55 = vcombine.high %v34_v50, %v38_v51  ;;  %v94_v43 = vld [vmem:[%s5296_s0 + $0x278] sm:$0xff] }
  0xf1   :  { %2087 = vmatmul.mubr.bf16.gmra.mrb[88].mxu1 %v3424_v60  ;;  %v3266_v60 = vcombine.low %v32_v48, %v36_v49  ;;  %v96_v48 = vld [vmem:[%s5296_s0 + $0x288] sm:$0xff] }
  0xf2   :  { %2601 = vmatmul.mubr.bf16.gmra.mrb[88].mxu0 %v3428_v61  ;;  %2094 = vmatprep.mubr.bf16.mxu1 %v3433_v62  ;;  %v3270_v61 = vcombine.low %v34_v50, %v38_v51  ;;  %v3275_v62 = vcombine.high %v40_v56, %v44_v57  ;;  %v100_v49 = vld [vmem:[%s5296_s0 + $0x2a8] sm:$0xff]  ;;  %v98_v50 = vld [vmem:[%s5296_s0 + $0x298] sm:$0xff] }
  0xf3   :  { %2608 = vmatprep.mubr.bf16.mxu0 %v3437_v63  ;;  %v3279_v63 = vcombine.high %v42_v58, %v46_v59  ;;  %v102_v51 = vld [vmem:[%s5296_s0 + $0x2b8] sm:$0xff] }
  0xf9   :  { %2095 = vmatmul.mubr.bf16.gmra.mrb[92].mxu1 %v3432_v5  ;;  %v3274_v5 = vcombine.low %v40_v56, %v44_v57  ;;  %v104_v56 = vld [vmem:[%s5296_s0 + $0x2c8] sm:$0xff] }
  0xfa   :  { %2609 = vmatmul.mubr.bf16.gmra.mrb[92].mxu0 %v3436_v6  ;;  %2102 = vmatprep.mubr.bf16.mxu1 %v3441_v7  ;;  %v3278_v6 = vcombine.low %v42_v58, %v46_v59  ;;  %v3283_v7 = vcombine.high %v48_v1, %v52_v2  ;;  %v108_v57 = vld [vmem:[%s5296_s0 + $0x2e8] sm:$0xff]  ;;  %v106_v58 = vld [vmem:[%s5296_s0 + $0x2d8] sm:$0xff] }
  0xfb   :  { %2616 = vmatprep.mubr.bf16.mxu0 %v3445_v8  ;;  %v3287_v8 = vcombine.high %v50_v3, %v54_v4  ;;  %v110_v59 = vld [vmem:[%s5296_s0 + $0x2f8] sm:$0xff] }
 0x101   :  { %2103 = vmatmul.mubr.bf16.gmra.mrb[96].mxu1 %v3440_v13  ;;  %v3282_v13 = vcombine.low %v48_v1, %v52_v2  ;;  %v112_v1 = vld [vmem:[%s5296_s0 + $0x308] sm:$0xff] }
 0x102   :  { %2617 = vmatmul.mubr.bf16.gmra.mrb[96].mxu0 %v3444_v14  ;;  %2110 = vmatprep.mubr.bf16.mxu1 %v3449_v15  ;;  %v3286_v14 = vcombine.low %v50_v3, %v54_v4  ;;  %v3291_v15 = vcombine.high %v56_v9, %v60_v10  ;;  %v116_v2 = vld [vmem:[%s5296_s0 + $0x328] sm:$0xff]  ;;  %v114_v3 = vld [vmem:[%s5296_s0 + $0x318] sm:$0xff] }
 0x103   :  { %2624 = vmatprep.mubr.bf16.mxu0 %v3453_v16  ;;  %v3295_v16 = vcombine.high %v58_v11, %v62_v12  ;;  %v118_v4 = vld [vmem:[%s5296_s0 + $0x338] sm:$0xff] }
 0x109   :  { %2111 = vmatmul.mubr.bf16.gmra.mrb[100].mxu1 %v3448_v21  ;;  %v3290_v21 = vcombine.low %v56_v9, %v60_v10  ;;  %v120_v9 = vld [vmem:[%s5296_s0 + $0x348] sm:$0xff] }
 0x10a   :  { %2625 = vmatmul.mubr.bf16.gmra.mrb[100].mxu0 %v3452_v22  ;;  %2118 = vmatprep.mubr.bf16.mxu1 %v3457_v23  ;;  %v3294_v22 = vcombine.low %v58_v11, %v62_v12  ;;  %v3299_v23 = vcombine.high %v64_v17, %v68_v18  ;;  %v124_v10 = vld [vmem:[%s5296_s0 + $0x368] sm:$0xff]  ;;  %v122_v11 = vld [vmem:[%s5296_s0 + $0x358] sm:$0xff] }
 0x10b   :  { %2632 = vmatprep.mubr.bf16.mxu0 %v3461_v24  ;;  %v3303_v24 = vcombine.high %v66_v19, %v70_v20  ;;  %v126_v12 = vld [vmem:[%s5296_s0 + $0x378] sm:$0xff] }
 0x111   :  { %2119 = vmatmul.mubr.bf16.gmra.mrb[104].mxu1 %v3456_v28  ;;  %v3298_v28 = vcombine.low %v64_v17, %v68_v18  ;;  %v128_v17 = vld [vmem:[%s5296_s0 + $0x388] sm:$0xff] }
 0x112   :  { %2633 = vmatmul.mubr.bf16.gmra.mrb[104].mxu0 %v3460_v29  ;;  %2126 = vmatprep.mubr.bf16.mxu1 %v3465_v30  ;;  %v3302_v29 = vcombine.low %v66_v19, %v70_v20  ;;  %v3307_v30 = vcombine.high %v72_v25, %v76_v0  ;;  %v132_v18 = vld [vmem:[%s5296_s0 + $0x3a8] sm:$0xff]  ;;  %v130_v19 = vld [vmem:[%s5296_s0 + $0x398] sm:$0xff] }
 0x113   :  { %2640 = vmatprep.mubr.bf16.mxu0 %v3469_v31  ;;  %v3311_v31 = vcombine.high %v74_v26, %v78_v27  ;;  %v134_v20 = vld [vmem:[%s5296_s0 + $0x3b8] sm:$0xff] }
 0x119   :  { %2127 = vmatmul.mubr.bf16.gmra.mrb[108].mxu1 %v3464_v36  ;;  %v3306_v36 = vcombine.low %v72_v25, %v76_v0  ;;  %v136_v25 = vld [vmem:[%s5296_s0 + $0x3c8] sm:$0xff] }
 0x11a   :  { %2641 = vmatmul.mubr.bf16.gmra.mrb[108].mxu0 %v3468_v37  ;;  %2167 = vmatprep.mubr.bf16.mxu1 %v3251_v38  ;;  %v3310_v37 = vcombine.low %v74_v26, %v78_v27  ;;  %v3315_v38 = vcombine.high %v80_v32, %v84_v33  ;;  %v140_v0 = vld [vmem:[%s5296_s0 + $0x3e8] sm:$0xff]  ;;  %v138_v26 = vld [vmem:[%s5296_s0 + $0x3d8] sm:$0xff] }
 0x11b   :  { %2681 = vmatprep.mubr.bf16.mxu0 %v3255_v39  ;;  %v3319_v39 = vcombine.high %v82_v34, %v86_v35  ;;  %v142_v27 = vld [vmem:[%s5296_s0 + $0x3f8] sm:$0xff] }
 0x121   :  { %2168 = vmatmul.mubr.bf16.vlgmr.msra.gmra.mrb[0].mxu1 %v3250_v44  ;;  %v3314_v44 = vcombine.low %v80_v32, %v84_v33  ;;  %v144_v32 = vld [vmem:[%s5296_s0 + $0x408] sm:$0xff] }
 0x122   :  { %2682 = vmatmul.mubr.bf16.vlgmr.msra.gmra.mrb[0].mxu0 %v3254_v45  ;;  %2175 = vmatprep.mubr.bf16.mxu1 %v3259_v46  ;;  %v3318_v45 = vcombine.low %v82_v34, %v86_v35  ;;  %v3323_v46 = vcombine.high %v88_v40, %v92_v41  ;;  %v148_v33 = vld [vmem:[%s5296_s0 + $0x428] sm:$0xff]  ;;  %v146_v34 = vld [vmem:[%s5296_s0 + $0x418] sm:$0xff] }
 0x123   :  { %2689 = vmatprep.mubr.bf16.mxu0 %v3263_v47  ;;  %v3327_v47 = vcombine.high %v90_v42, %v94_v43  ;;  %v150_v35 = vld [vmem:[%s5296_s0 + $0x438] sm:$0xff] }
 0x129   :  { %2176 = vmatmul.mubr.bf16.gmra.mrb[4].mxu1 %v3258_v52  ;;  %v3322_v52 = vcombine.low %v88_v40, %v92_v41  ;;  %v152_v40 = vld [vmem:[%s5296_s0 + $0x448] sm:$0xff] }
 0x12a   :  { %2690 = vmatmul.mubr.bf16.gmra.mrb[4].mxu0 %v3262_v53  ;;  %2183 = vmatprep.mubr.bf16.mxu1 %v3267_v54  ;;  %v3326_v53 = vcombine.low %v90_v42, %v94_v43  ;;  %v3331_v54 = vcombine.high %v96_v48, %v100_v49  ;;  %v156_v41 = vld [vmem:[%s5296_s0 + $0x468] sm:$0xff]  ;;  %v154_v42 = vld [vmem:[%s5296_s0 + $0x458] sm:$0xff] }
 0x12b   :  { %2697 = vmatprep.mubr.bf16.mxu0 %v3271_v55  ;;  %v3335_v55 = vcombine.high %v98_v50, %v102_v51  ;;  %v158_v43 = vld [vmem:[%s5296_s0 + $0x478] sm:$0xff] }
 0x131   :  { %2184 = vmatmul.mubr.bf16.gmra.mrb[8].mxu1 %v3266_v60  ;;  %v3330_v60 = vcombine.low %v96_v48, %v100_v49  ;;  %v160_v48 = vld [vmem:[%s5296_s0 + $0x488] sm:$0xff] }
 0x132   :  { %2698 = vmatmul.mubr.bf16.gmra.mrb[8].mxu0 %v3270_v61  ;;  %2191 = vmatprep.mubr.bf16.mxu1 %v3275_v62  ;;  %v3334_v61 = vcombine.low %v98_v50, %v102_v51  ;;  %v3339_v62 = vcombine.high %v104_v56, %v108_v57  ;;  %v164_v49 = vld [vmem:[%s5296_s0 + $0x4a8] sm:$0xff]  ;;  %v162_v50 = vld [vmem:[%s5296_s0 + $0x498] sm:$0xff] }
 0x133   :  { %2705 = vmatprep.mubr.bf16.mxu0 %v3279_v63  ;;  %v3343_v63 = vcombine.high %v106_v58, %v110_v59  ;;  %v166_v51 = vld [vmem:[%s5296_s0 + $0x4b8] sm:$0xff] }
 0x139   :  { %2192 = vmatmul.mubr.bf16.gmra.mrb[12].mxu1 %v3274_v5  ;;  %v3338_v5 = vcombine.low %v104_v56, %v108_v57  ;;  %v168_v56 = vld [vmem:[%s5296_s0 + $0x4c8] sm:$0xff] }
 0x13a   :  { %2706 = vmatmul.mubr.bf16.gmra.mrb[12].mxu0 %v3278_v6  ;;  %2199 = vmatprep.mubr.bf16.mxu1 %v3283_v7  ;;  %v3342_v6 = vcombine.low %v106_v58, %v110_v59  ;;  %v3347_v7 = vcombine.high %v112_v1, %v116_v2  ;;  %v172_v57 = vld [vmem:[%s5296_s0 + $0x4e8] sm:$0xff]  ;;  %v170_v58 = vld [vmem:[%s5296_s0 + $0x4d8] sm:$0xff] }
 0x13b   :  { %2713 = vmatprep.mubr.bf16.mxu0 %v3287_v8  ;;  %v3351_v8 = vcombine.high %v114_v3, %v118_v4  ;;  %v174_v59 = vld [vmem:[%s5296_s0 + $0x4f8] sm:$0xff] }
 0x141   :  { %2200 = vmatmul.mubr.bf16.gmra.mrb[16].mxu1 %v3282_v13  ;;  %v3346_v13 = vcombine.low %v112_v1, %v116_v2  ;;  %v176_v1 = vld [vmem:[%s5296_s0 + $0x508] sm:$0xff] }
 0x142   :  { %2714 = vmatmul.mubr.bf16.gmra.mrb[16].mxu0 %v3286_v14  ;;  %2207 = vmatprep.mubr.bf16.mxu1 %v3291_v15  ;;  %v3350_v14 = vcombine.low %v114_v3, %v118_v4  ;;  %v3355_v15 = vcombine.high %v120_v9, %v124_v10  ;;  %v180_v2 = vld [vmem:[%s5296_s0 + $0x528] sm:$0xff]  ;;  %v178_v3 = vld [vmem:[%s5296_s0 + $0x518] sm:$0xff] }
 0x143   :  { %2721 = vmatprep.mubr.bf16.mxu0 %v3295_v16  ;;  %v3359_v16 = vcombine.high %v122_v11, %v126_v12  ;;  %v182_v4 = vld [vmem:[%s5296_s0 + $0x538] sm:$0xff] }
 0x149   :  { %2208 = vmatmul.mubr.bf16.gmra.mrb[20].mxu1 %v3290_v21  ;;  %v3354_v21 = vcombine.low %v120_v9, %v124_v10  ;;  %v184_v9 = vld [vmem:[%s5296_s0 + $0x548] sm:$0xff] }
 0x14a   :  { %2722 = vmatmul.mubr.bf16.gmra.mrb[20].mxu0 %v3294_v22  ;;  %2215 = vmatprep.mubr.bf16.mxu1 %v3299_v23  ;;  %v3358_v22 = vcombine.low %v122_v11, %v126_v12  ;;  %v3363_v23 = vcombine.high %v128_v17, %v132_v18  ;;  %v188_v10 = vld [vmem:[%s5296_s0 + $0x568] sm:$0xff]  ;;  %v186_v11 = vld [vmem:[%s5296_s0 + $0x558] sm:$0xff] }
 0x14b   :  { %2729 = vmatprep.mubr.bf16.mxu0 %v3303_v24  ;;  %v3367_v24 = vcombine.high %v130_v19, %v134_v20  ;;  %v190_v12 = vld [vmem:[%s5296_s0 + $0x578] sm:$0xff] }
 0x151   :  { %2216 = vmatmul.mubr.bf16.gmra.mrb[24].mxu1 %v3298_v28  ;;  %v3362_v28 = vcombine.low %v128_v17, %v132_v18  ;;  %v192_v17 = vld [vmem:[%s5296_s0 + $0x588] sm:$0xff] }
 0x152   :  { %2730 = vmatmul.mubr.bf16.gmra.mrb[24].mxu0 %v3302_v29  ;;  %2223 = vmatprep.mubr.bf16.mxu1 %v3307_v30  ;;  %v3366_v29 = vcombine.low %v130_v19, %v134_v20  ;;  %v3371_v30 = vcombine.high %v136_v25, %v140_v0  ;;  %v196_v18 = vld [vmem:[%s5296_s0 + $0x5a8] sm:$0xff]  ;;  %v194_v19 = vld [vmem:[%s5296_s0 + $0x598] sm:$0xff] }
 0x153   :  { %2737 = vmatprep.mubr.bf16.mxu0 %v3311_v31  ;;  %v3375_v31 = vcombine.high %v138_v26, %v142_v27  ;;  %v198_v20 = vld [vmem:[%s5296_s0 + $0x5b8] sm:$0xff] }
 0x159   :  { %2224 = vmatmul.mubr.bf16.gmra.mrb[28].mxu1 %v3306_v36  ;;  %v3370_v36 = vcombine.low %v136_v25, %v140_v0  ;;  %v200_v25 = vld [vmem:[%s5296_s0 + $0x5c8] sm:$0xff] }
 0x15a   :  { %2738 = vmatmul.mubr.bf16.gmra.mrb[28].mxu0 %v3310_v37  ;;  %2231 = vmatprep.mubr.bf16.mxu1 %v3315_v38  ;;  %v3374_v37 = vcombine.low %v138_v26, %v142_v27  ;;  %v3379_v38 = vcombine.high %v144_v32, %v148_v33  ;;  %v204_v0 = vld [vmem:[%s5296_s0 + $0x5e8] sm:$0xff]  ;;  %v202_v26 = vld [vmem:[%s5296_s0 + $0x5d8] sm:$0xff] }
 0x15b   :  { %2745 = vmatprep.mubr.bf16.mxu0 %v3319_v39  ;;  %v3383_v39 = vcombine.high %v146_v34, %v150_v35  ;;  %v206_v27 = vld [vmem:[%s5296_s0 + $0x5f8] sm:$0xff] }
 0x161   :  { %2232 = vmatmul.mubr.bf16.gmra.mrb[32].mxu1 %v3314_v44  ;;  %v3378_v44 = vcombine.low %v144_v32, %v148_v33  ;;  %v208_v32 = vld [vmem:[%s5296_s0 + $0x608] sm:$0xff] }
 0x162   :  { %2746 = vmatmul.mubr.bf16.gmra.mrb[32].mxu0 %v3318_v45  ;;  %2239 = vmatprep.mubr.bf16.mxu1 %v3323_v46  ;;  %v3382_v45 = vcombine.low %v146_v34, %v150_v35  ;;  %v3387_v46 = vcombine.high %v152_v40, %v156_v41  ;;  %v212_v33 = vld [vmem:[%s5296_s0 + $0x628] sm:$0xff]  ;;  %v210_v34 = vld [vmem:[%s5296_s0 + $0x618] sm:$0xff] }
 0x163   :  { %2753 = vmatprep.mubr.bf16.mxu0 %v3327_v47  ;;  %v3391_v47 = vcombine.high %v154_v42, %v158_v43  ;;  %v214_v35 = vld [vmem:[%s5296_s0 + $0x638] sm:$0xff] }
 0x169   :  { %2240 = vmatmul.mubr.bf16.gmra.mrb[36].mxu1 %v3322_v52  ;;  %v3386_v52 = vcombine.low %v152_v40, %v156_v41  ;;  %v216_v40 = vld [vmem:[%s5296_s0 + $0x648] sm:$0xff] }
 0x16a   :  { %2754 = vmatmul.mubr.bf16.gmra.mrb[36].mxu0 %v3326_v53  ;;  %2247 = vmatprep.mubr.bf16.mxu1 %v3331_v54  ;;  %v3390_v53 = vcombine.low %v154_v42, %v158_v43  ;;  %v3395_v54 = vcombine.high %v160_v48, %v164_v49  ;;  %v220_v41 = vld [vmem:[%s5296_s0 + $0x668] sm:$0xff]  ;;  %v218_v42 = vld [vmem:[%s5296_s0 + $0x658] sm:$0xff] }
 0x16b   :  { %2761 = vmatprep.mubr.bf16.mxu0 %v3335_v55  ;;  %v3399_v55 = vcombine.high %v162_v50, %v166_v51  ;;  %v222_v43 = vld [vmem:[%s5296_s0 + $0x678] sm:$0xff] }
 0x171   :  { %2248 = vmatmul.mubr.bf16.gmra.mrb[40].mxu1 %v3330_v60  ;;  %v3394_v60 = vcombine.low %v160_v48, %v164_v49  ;;  %v224_v48 = vld [vmem:[%s5296_s0 + $0x688] sm:$0xff] }
 0x172   :  { %2762 = vmatmul.mubr.bf16.gmra.mrb[40].mxu0 %v3334_v61  ;;  %2255 = vmatprep.mubr.bf16.mxu1 %v3339_v62  ;;  %v3398_v61 = vcombine.low %v162_v50, %v166_v51  ;;  %v3403_v62 = vcombine.high %v168_v56, %v172_v57  ;;  %v228_v49 = vld [vmem:[%s5296_s0 + $0x6a8] sm:$0xff]  ;;  %v226_v50 = vld [vmem:[%s5296_s0 + $0x698] sm:$0xff] }
 0x173   :  { %2769 = vmatprep.mubr.bf16.mxu0 %v3343_v63  ;;  %v3407_v63 = vcombine.high %v170_v58, %v174_v59  ;;  %v230_v51 = vld [vmem:[%s5296_s0 + $0x6b8] sm:$0xff] }
 0x179   :  { %2256 = vmatmul.mubr.bf16.gmra.mrb[44].mxu1 %v3338_v5  ;;  %v3402_v5 = vcombine.low %v168_v56, %v172_v57  ;;  %v232_v56 = vld [vmem:[%s5296_s0 + $0x6c8] sm:$0xff] }
 0x17a   :  { %2770 = vmatmul.mubr.bf16.gmra.mrb[44].mxu0 %v3342_v6  ;;  %2263 = vmatprep.mubr.bf16.mxu1 %v3347_v7  ;;  %v3406_v6 = vcombine.low %v170_v58, %v174_v59  ;;  %v3411_v7 = vcombine.high %v176_v1, %v180_v2  ;;  %v236_v57 = vld [vmem:[%s5296_s0 + $0x6e8] sm:$0xff]  ;;  %v234_v58 = vld [vmem:[%s5296_s0 + $0x6d8] sm:$0xff] }
 0x17b   :  { %2777 = vmatprep.mubr.bf16.mxu0 %v3351_v8  ;;  %v3415_v8 = vcombine.high %v178_v3, %v182_v4  ;;  %v238_v59 = vld [vmem:[%s5296_s0 + $0x6f8] sm:$0xff] }
 0x181   :  { %2264 = vmatmul.mubr.bf16.gmra.mrb[48].mxu1 %v3346_v13  ;;  %v3410_v13 = vcombine.low %v176_v1, %v180_v2  ;;  %v5013_v1 = vld [vmem:[%s5297_s2] ss:$0 sm:$0xff] }
 0x182   :  { %2778 = vmatmul.mubr.bf16.gmra.mrb[48].mxu0 %v3350_v14  ;;  %2271 = vmatprep.mubr.bf16.mxu1 %v3355_v15  ;;  %v3414_v14 = vcombine.low %v178_v3, %v182_v4  ;;  %v3419_v15 = vcombine.high %v184_v9, %v188_v10 }
 0x183   :  { %2785 = vmatprep.mubr.bf16.mxu0 %v3359_v16  ;;  %v3423_v16 = vcombine.high %v186_v11, %v190_v12 }
 0x189   :  { %2272 = vmatmul.mubr.bf16.gmra.mrb[52].mxu1 %v3354_v21  ;;  %v3418_v21 = vcombine.low %v184_v9, %v188_v10  ;;  %v3470_v9 = vcombine.low %v234_v58, %v238_v59 }
 0x18a   :  { %2786 = vmatmul.mubr.bf16.gmra.mrb[52].mxu0 %v3358_v22  ;;  %2279 = vmatprep.mubr.bf16.mxu1 %v3363_v23  ;;  %v3422_v22 = vcombine.low %v186_v11, %v190_v12  ;;  %v3427_v23 = vcombine.high %v192_v17, %v196_v18 }
 0x18b   :  { %2793 = vmatprep.mubr.bf16.mxu0 %v3367_v24  ;;  %v3431_v24 = vcombine.high %v194_v19, %v198_v20 }
 0x191   :  { %2280 = vmatmul.mubr.bf16.gmra.mrb[56].mxu1 %v3362_v28  ;;  %v3426_v28 = vcombine.low %v192_v17, %v196_v18 }
 0x192   :  { %2794 = vmatmul.mubr.bf16.gmra.mrb[56].mxu0 %v3366_v29  ;;  %2287 = vmatprep.mubr.bf16.mxu1 %v3371_v30  ;;  %v3430_v29 = vcombine.low %v194_v19, %v198_v20  ;;  %v3435_v30 = vcombine.high %v200_v25, %v204_v0 }
 0x193   :  { %2801 = vmatprep.mubr.bf16.mxu0 %v3375_v31  ;;  %v3439_v31 = vcombine.high %v202_v26, %v206_v27 }
 0x199   :  { %2288 = vmatmul.mubr.bf16.gmra.mrb[60].mxu1 %v3370_v36  ;;  %v3434_v36 = vcombine.low %v200_v25, %v204_v0 }
 0x19a   :  { %2802 = vmatmul.mubr.bf16.gmra.mrb[60].mxu0 %v3374_v37  ;;  %2295 = vmatprep.mubr.bf16.mxu1 %v3379_v38  ;;  %v3438_v37 = vcombine.low %v202_v26, %v206_v27  ;;  %v3443_v38 = vcombine.high %v208_v32, %v212_v33 }
 0x19b   :  { %2809 = vmatprep.mubr.bf16.mxu0 %v3383_v39  ;;  %v3447_v39 = vcombine.high %v210_v34, %v214_v35 }
 0x1a1   :  { %2296 = vmatmul.mubr.bf16.gmra.mrb[64].mxu1 %v3378_v44  ;;  %v3442_v44 = vcombine.low %v208_v32, %v212_v33 }
 0x1a2   :  { %2810 = vmatmul.mubr.bf16.gmra.mrb[64].mxu0 %v3382_v45  ;;  %2303 = vmatprep.mubr.bf16.mxu1 %v3387_v46  ;;  %v3446_v45 = vcombine.low %v210_v34, %v214_v35  ;;  %v3451_v46 = vcombine.high %v216_v40, %v220_v41 }
 0x1a3   :  { %2817 = vmatprep.mubr.bf16.mxu0 %v3391_v47  ;;  %v3455_v47 = vcombine.high %v218_v42, %v222_v43 }
 0x1a9   :  { %2304 = vmatmul.mubr.bf16.gmra.mrb[68].mxu1 %v3386_v52  ;;  %v3450_v52 = vcombine.low %v216_v40, %v220_v41 }
 0x1aa   :  { %2818 = vmatmul.mubr.bf16.gmra.mrb[68].mxu0 %v3390_v53  ;;  %2311 = vmatprep.mubr.bf16.mxu1 %v3395_v54  ;;  %v3454_v53 = vcombine.low %v218_v42, %v222_v43  ;;  %v3459_v54 = vcombine.high %v224_v48, %v228_v49 }
 0x1ab   :  { %2825 = vmatprep.mubr.bf16.mxu0 %v3399_v55  ;;  %v3463_v55 = vcombine.high %v226_v50, %v230_v51 }
 0x1b1   :  { %2312 = vmatmul.mubr.bf16.gmra.mrb[72].mxu1 %v3394_v60  ;;  %v3458_v60 = vcombine.low %v224_v48, %v228_v49 }
 0x1b2   :  { %2826 = vmatmul.mubr.bf16.gmra.mrb[72].mxu0 %v3398_v61  ;;  %2319 = vmatprep.mubr.bf16.mxu1 %v3403_v62  ;;  %v3462_v61 = vcombine.low %v226_v50, %v230_v51  ;;  %v3467_v62 = vcombine.high %v232_v56, %v236_v57 }
 0x1b3   :  { %2833 = vmatprep.mubr.bf16.mxu0 %v3407_v63  ;;  %v3471_v63 = vcombine.high %v234_v58, %v238_v59 }
 0x1b9   :  { %2320 = vmatmul.mubr.bf16.gmra.mrb[76].mxu1 %v3402_v5 }
 0x1ba   :  { %2834 = vmatmul.mubr.bf16.gmra.mrb[76].mxu0 %v3406_v6  ;;  %2327 = vmatprep.mubr.bf16.mxu1 %v3411_v7  ;;  %v3466_v6 = vcombine.low %v232_v56, %v236_v57 }
 0x1bb   :  { %2841 = vmatprep.mubr.bf16.mxu0 %v3415_v8 }
 0x1c1   :  { %2328 = vmatmul.mubr.bf16.gmra.mrb[80].mxu1 %v3410_v13 }
 0x1c2   :  { %2842 = vmatmul.mubr.bf16.gmra.mrb[80].mxu0 %v3414_v14  ;;  %2335 = vmatprep.mubr.bf16.mxu1 %v3419_v15 }
 0x1c3   :  { %2849 = vmatprep.mubr.bf16.mxu0 %v3423_v16 }
 0x1c9   :  { %2336 = vmatmul.mubr.bf16.gmra.mrb[84].mxu1 %v3418_v21 }
 0x1ca   :  { %2850 = vmatmul.mubr.bf16.gmra.mrb[84].mxu0 %v3422_v22  ;;  %2343 = vmatprep.mubr.bf16.mxu1 %v3427_v23 }
 0x1cb   :  { %2857 = vmatprep.mubr.bf16.mxu0 %v3431_v24 }
 0x1d1   :  { %2344 = vmatmul.mubr.bf16.gmra.mrb[88].mxu1 %v3426_v28 }
 0x1d2   :  { %2858 = vmatmul.mubr.bf16.gmra.mrb[88].mxu0 %v3430_v29  ;;  %2351 = vmatprep.mubr.bf16.mxu1 %v3435_v30 }
 0x1d3   :  { %2865 = vmatprep.mubr.bf16.mxu0 %v3439_v31 }
 0x1d9   :  { %2352 = vmatmul.mubr.bf16.gmra.mrb[92].mxu1 %v3434_v36 }
 0x1da   :  { %2866 = vmatmul.mubr.bf16.gmra.mrb[92].mxu0 %v3438_v37  ;;  %2359 = vmatprep.mubr.bf16.mxu1 %v3443_v38 }
 0x1db   :  { %2873 = vmatprep.mubr.bf16.mxu0 %v3447_v39 }
 0x1e1   :  { %2360 = vmatmul.mubr.bf16.gmra.mrb[96].mxu1 %v3442_v44 }
 0x1e2   :  { %2874 = vmatmul.mubr.bf16.gmra.mrb[96].mxu0 %v3446_v45  ;;  %2367 = vmatprep.mubr.bf16.mxu1 %v3451_v46 }
 0x1e3   :  { %2881 = vmatprep.mubr.bf16.mxu0 %v3455_v47 }
 0x1e9   :  { %2368 = vmatmul.mubr.bf16.gmra.mrb[100].mxu1 %v3450_v52 }
 0x1ea   :  { %2882 = vmatmul.mubr.bf16.gmra.mrb[100].mxu0 %v3454_v53  ;;  %2375 = vmatprep.mubr.bf16.mxu1 %v3459_v54 }
 0x1eb   :  { %2889 = vmatprep.mubr.bf16.mxu0 %v3463_v55 }
 0x1f1   :  { %2376 = vmatmul.mubr.bf16.gmra.mrb[104].mxu1 %v3458_v60 }
 0x1f2   :  { %2890 = vmatmul.mubr.bf16.gmra.mrb[104].mxu0 %v3462_v61  ;;  %2383 = vmatprep.mubr.bf16.mxu1 %v3467_v62 }
 0x1f3   :  { %2897 = vmatprep.mubr.bf16.mxu0 %v3471_v63 }
 0x1f4   :  { %v2169_v2 = vpop.f32.mrb[0].mxu1 }
 0x1f5   :  { %v3648_v3 = vadd.f32 %v5013_v1, %v2169_v2  ;;  %v2683_v4 = vpop.f32.mrb[0].mxu0  ;;  %v2171_v5 = vpop.f32.mrb[1].mxu1 }
 0x1f6   :  { %v2685_v7 = vpop.f32.mrb[1].mxu0  ;;  %v2172_v8 = vpop.f32.mrb[2].mxu1 }
 0x1f7   :  { %v3649_v10 = vadd.f32 %v3648_v3, %v2683_v4  ;;  %v3650_v11 = vadd.f32 %v5013_v1, %v2172_v8  ;;  %v2686_v12 = vpop.f32.mrb[2].mxu0  ;;  %v2174_v13 = vpop.f32.mrb[3].mxu1 }
 0x1f8   :  { %v2688_v14 = vpop.f32.mrb[3].mxu0 }
 0x1f9   :  { %v2906_v15 = vmax.f32 %v3649_v10, 0.0  ;;  %v3651_v16 = vadd.f32 %v3650_v11, %v2686_v12  ;;  %2384 = vmatmul.mubr.bf16.gmra.mrb[108].mxu1 %v3466_v6 }
 0x1fa   :  { %2898 = vmatmul.mubr.bf16.gmra.mrb[108].mxu0 %v3470_v9 }
 0x1fb   :  { %v3592_v17 = vpack.c.bf16 %v2906_v15, %v2906_v15  ;;  %v2907_v18 = vmax.f32 %v3651_v16, 0.0 }
 0x1fc   :  { %v2177_v19 = vpop.f32.mrb[4].mxu1 }
 0x1fd   :  { %3187 = vst.msk [vmem:[%s5298_s3] sm:$0xf] %vm3186_vm0, %v3592_v17  ;;  %v3593_v20 = vpack.c.bf16 %v2907_v18, %v2907_v18  ;;  %v3652_v21 = vadd.f32 %v5013_v1, %v2177_v19  ;;  %v2691_v22 = vpop.f32.mrb[4].mxu0  ;;  %v2179_v23 = vpop.f32.mrb[5].mxu1 }
 0x1fe   :  { %v2693_v24 = vpop.f32.mrb[5].mxu0  ;;  %v2180_v25 = vpop.f32.mrb[6].mxu1 }
 0x1ff   :  { %3188 = vst.msk [vmem:[%s5298_s3 + $0x4] sm:$0xf] %vm3186_vm0, %v3593_v20  ;;  %v3653_v0 = vadd.f32 %v3652_v21, %v2691_v22  ;;  %v3654_v26 = vadd.f32 %v5013_v1, %v2180_v25  ;;  %v2694_v27 = vpop.f32.mrb[6].mxu0  ;;  %v2182_v28 = vpop.f32.mrb[7].mxu1 }
 0x200   :  { %v2696_v29 = vpop.f32.mrb[7].mxu0 }
 0x201   :  { %v2908_v30 = vmax.f32 %v3653_v0, 0.0  ;;  %v3655_v31 = vadd.f32 %v3654_v26, %v2694_v27 }
 0x203   :  { %v3594_v32 = vpack.c.bf16 %v2908_v30, %v2908_v30  ;;  %v2909_v33 = vmax.f32 %v3655_v31, 0.0 }
 0x204   :  { %v2185_v34 = vpop.f32.mrb[8].mxu1 }
 0x205   :  { %3189 = vst.msk [vmem:[%s5298_s3 + $0x8] sm:$0xf] %vm3186_vm0, %v3594_v32  ;;  %v3595_v35 = vpack.c.bf16 %v2909_v33, %v2909_v33  ;;  %v3656_v36 = vadd.f32 %v5013_v1, %v2185_v34  ;;  %v2699_v37 = vpop.f32.mrb[8].mxu0  ;;  %v2187_v38 = vpop.f32.mrb[9].mxu1 }
 0x206   :  { %v2701_v39 = vpop.f32.mrb[9].mxu0  ;;  %v2188_v40 = vpop.f32.mrb[10].mxu1 }
 0x207   :  { %3190 = vst.msk [vmem:[%s5298_s3 + $0xc] sm:$0xf] %vm3186_vm0, %v3595_v35  ;;  %v3657_v41 = vadd.f32 %v3656_v36, %v2699_v37  ;;  %v3658_v42 = vadd.f32 %v5013_v1, %v2188_v40  ;;  %v2702_v43 = vpop.f32.mrb[10].mxu0  ;;  %v2190_v44 = vpop.f32.mrb[11].mxu1 }
 0x208   :  { %v2704_v45 = vpop.f32.mrb[11].mxu0 }
 0x209   :  { %v2910_v46 = vmax.f32 %v3657_v41, 0.0  ;;  %v3659_v47 = vadd.f32 %v3658_v42, %v2702_v43 }
 0x20b   :  { %v3596_v48 = vpack.c.bf16 %v2910_v46, %v2910_v46  ;;  %v2911_v49 = vmax.f32 %v3659_v47, 0.0 }
 0x20c   :  { %v2193_v50 = vpop.f32.mrb[12].mxu1 }
 0x20d   :  { %3191 = vst.msk [vmem:[%s5298_s3 + $0x10] sm:$0xf] %vm3186_vm0, %v3596_v48  ;;  %v3597_v51 = vpack.c.bf16 %v2911_v49, %v2911_v49  ;;  %v3660_v52 = vadd.f32 %v5013_v1, %v2193_v50  ;;  %v2707_v53 = vpop.f32.mrb[12].mxu0  ;;  %v2195_v54 = vpop.f32.mrb[13].mxu1 }
 0x20e   :  { %v2709_v55 = vpop.f32.mrb[13].mxu0  ;;  %v2196_v56 = vpop.f32.mrb[14].mxu1 }
 0x20f   :  { %3192 = vst.msk [vmem:[%s5298_s3 + $0x14] sm:$0xf] %vm3186_vm0, %v3597_v51  ;;  %v3661_v57 = vadd.f32 %v3660_v52, %v2707_v53  ;;  %v3662_v58 = vadd.f32 %v5013_v1, %v2196_v56  ;;  %v2710_v59 = vpop.f32.mrb[14].mxu0  ;;  %v2198_v60 = vpop.f32.mrb[15].mxu1 }
 0x210   :  { %v2712_v61 = vpop.f32.mrb[15].mxu0 }
 0x211   :  { %v2912_v62 = vmax.f32 %v3661_v57, 0.0  ;;  %v3663_v63 = vadd.f32 %v3662_v58, %v2710_v59 }
 0x213   :  { %v3598_v2 = vpack.c.bf16 %v2912_v62, %v2912_v62  ;;  %v2913_v3 = vmax.f32 %v3663_v63, 0.0 }
 0x214   :  { %v2201_v4 = vpop.f32.mrb[16].mxu1 }
 0x215   :  { %3193 = vst.msk [vmem:[%s5298_s3 + $0x18] sm:$0xf] %vm3186_vm0, %v3598_v2  ;;  %v3599_v5 = vpack.c.bf16 %v2913_v3, %v2913_v3  ;;  %v3664_v6 = vadd.f32 %v5013_v1, %v2201_v4  ;;  %v2715_v7 = vpop.f32.mrb[16].mxu0  ;;  %v2203_v8 = vpop.f32.mrb[17].mxu1 }
 0x216   :  { %v2717_v9 = vpop.f32.mrb[17].mxu0  ;;  %v2204_v10 = vpop.f32.mrb[18].mxu1 }
 0x217   :  { %3194 = vst.msk [vmem:[%s5298_s3 + $0x1c] sm:$0xf] %vm3186_vm0, %v3599_v5  ;;  %v3665_v11 = vadd.f32 %v3664_v6, %v2715_v7  ;;  %v3666_v12 = vadd.f32 %v5013_v1, %v2204_v10  ;;  %v2718_v13 = vpop.f32.mrb[18].mxu0  ;;  %v2206_v14 = vpop.f32.mrb[19].mxu1 }
 0x218   :  { %v2720_v15 = vpop.f32.mrb[19].mxu0 }
 0x219   :  { %v2914_v16 = vmax.f32 %v3665_v11, 0.0  ;;  %v3667_v17 = vadd.f32 %v3666_v12, %v2718_v13 }
 0x21b   :  { %v3600_v18 = vpack.c.bf16 %v2914_v16, %v2914_v16  ;;  %v2915_v19 = vmax.f32 %v3667_v17, 0.0 }
 0x21c   :  { %v2209_v20 = vpop.f32.mrb[20].mxu1 }
 0x21d   :  { %3195 = vst.msk [vmem:[%s5298_s3 + $0x20] sm:$0xf] %vm3186_vm0, %v3600_v18  ;;  %v3601_v21 = vpack.c.bf16 %v2915_v19, %v2915_v19  ;;  %v3668_v22 = vadd.f32 %v5013_v1, %v2209_v20  ;;  %v2723_v23 = vpop.f32.mrb[20].mxu0  ;;  %v2211_v24 = vpop.f32.mrb[21].mxu1 }
 0x21e   :  { %v2725_v25 = vpop.f32.mrb[21].mxu0  ;;  %v2212_v0 = vpop.f32.mrb[22].mxu1 }
 0x21f   :  { %3196 = vst.msk [vmem:[%s5298_s3 + $0x24] sm:$0xf] %vm3186_vm0, %v3601_v21  ;;  %v3669_v26 = vadd.f32 %v3668_v22, %v2723_v23  ;;  %v3670_v27 = vadd.f32 %v5013_v1, %v2212_v0  ;;  %v2726_v28 = vpop.f32.mrb[22].mxu0  ;;  %v2214_v29 = vpop.f32.mrb[23].mxu1 }
 0x220   :  { %v2728_v30 = vpop.f32.mrb[23].mxu0 }
 0x221   :  { %v2916_v31 = vmax.f32 %v3669_v26, 0.0  ;;  %v3671_v32 = vadd.f32 %v3670_v27, %v2726_v28 }
 0x223   :  { %v3602_v33 = vpack.c.bf16 %v2916_v31, %v2916_v31  ;;  %v2917_v34 = vmax.f32 %v3671_v32, 0.0 }
 0x224   :  { %v2217_v35 = vpop.f32.mrb[24].mxu1 }
 0x225   :  { %3197 = vst.msk [vmem:[%s5298_s3 + $0x28] sm:$0xf] %vm3186_vm0, %v3602_v33  ;;  %v3603_v36 = vpack.c.bf16 %v2917_v34, %v2917_v34  ;;  %v3672_v37 = vadd.f32 %v5013_v1, %v2217_v35  ;;  %v2731_v38 = vpop.f32.mrb[24].mxu0  ;;  %v2219_v39 = vpop.f32.mrb[25].mxu1 }
 0x226   :  { %v2733_v40 = vpop.f32.mrb[25].mxu0  ;;  %v2220_v41 = vpop.f32.mrb[26].mxu1 }
 0x227   :  { %3198 = vst.msk [vmem:[%s5298_s3 + $0x2c] sm:$0xf] %vm3186_vm0, %v3603_v36  ;;  %v3673_v42 = vadd.f32 %v3672_v37, %v2731_v38  ;;  %v3674_v43 = vadd.f32 %v5013_v1, %v2220_v41  ;;  %v2734_v44 = vpop.f32.mrb[26].mxu0  ;;  %v2222_v45 = vpop.f32.mrb[27].mxu1 }
 0x228   :  { %v2736_v46 = vpop.f32.mrb[27].mxu0 }
 0x229   :  { %v2918_v47 = vmax.f32 %v3673_v42, 0.0  ;;  %v3675_v48 = vadd.f32 %v3674_v43, %v2734_v44 }
 0x22b   :  { %v3604_v49 = vpack.c.bf16 %v2918_v47, %v2918_v47  ;;  %v2919_v50 = vmax.f32 %v3675_v48, 0.0 }
 0x22c   :  { %v2225_v51 = vpop.f32.mrb[28].mxu1 }
 0x22d   :  { %3199 = vst.msk [vmem:[%s5298_s3 + $0x30] sm:$0xf] %vm3186_vm0, %v3604_v49  ;;  %v3605_v52 = vpack.c.bf16 %v2919_v50, %v2919_v50  ;;  %v3676_v53 = vadd.f32 %v5013_v1, %v2225_v51  ;;  %v2739_v54 = vpop.f32.mrb[28].mxu0  ;;  %v2227_v55 = vpop.f32.mrb[29].mxu1 }
 0x22e   :  { %v2741_v56 = vpop.f32.mrb[29].mxu0  ;;  %v2228_v57 = vpop.f32.mrb[30].mxu1 }
 0x22f   :  { %3200 = vst.msk [vmem:[%s5298_s3 + $0x34] sm:$0xf] %vm3186_vm0, %v3605_v52  ;;  %v3677_v58 = vadd.f32 %v3676_v53, %v2739_v54  ;;  %v3678_v59 = vadd.f32 %v5013_v1, %v2228_v57  ;;  %v2742_v60 = vpop.f32.mrb[30].mxu0  ;;  %v2230_v61 = vpop.f32.mrb[31].mxu1 }
 0x230   :  { %v2744_v62 = vpop.f32.mrb[31].mxu0 }
 0x231   :  { %v2920_v63 = vmax.f32 %v3677_v58, 0.0  ;;  %v3679_v2 = vadd.f32 %v3678_v59, %v2742_v60 }
 0x233   :  { %v3606_v3 = vpack.c.bf16 %v2920_v63, %v2920_v63  ;;  %v2921_v4 = vmax.f32 %v3679_v2, 0.0 }
 0x234   :  { %v2233_v5 = vpop.f32.mrb[32].mxu1 }
 0x235   :  { %3201 = vst.msk [vmem:[%s5298_s3 + $0x38] sm:$0xf] %vm3186_vm0, %v3606_v3  ;;  %v3607_v6 = vpack.c.bf16 %v2921_v4, %v2921_v4  ;;  %v3680_v7 = vadd.f32 %v5013_v1, %v2233_v5  ;;  %v2747_v8 = vpop.f32.mrb[32].mxu0  ;;  %v2235_v9 = vpop.f32.mrb[33].mxu1 }
 0x236   :  { %v2749_v10 = vpop.f32.mrb[33].mxu0  ;;  %v2236_v11 = vpop.f32.mrb[34].mxu1 }
 0x237   :  { %3202 = vst.msk [vmem:[%s5298_s3 + $0x3c] sm:$0xf] %vm3186_vm0, %v3607_v6  ;;  %v3681_v12 = vadd.f32 %v3680_v7, %v2747_v8  ;;  %v3682_v13 = vadd.f32 %v5013_v1, %v2236_v11  ;;  %v2750_v14 = vpop.f32.mrb[34].mxu0  ;;  %v2238_v15 = vpop.f32.mrb[35].mxu1 }
 0x238   :  { %v2752_v16 = vpop.f32.mrb[35].mxu0 }
 0x239   :  { %v2922_v17 = vmax.f32 %v3681_v12, 0.0  ;;  %v3683_v18 = vadd.f32 %v3682_v13, %v2750_v14 }
 0x23b   :  { %v3608_v19 = vpack.c.bf16 %v2922_v17, %v2922_v17  ;;  %v2923_v20 = vmax.f32 %v3683_v18, 0.0 }
 0x23c   :  { %v2241_v21 = vpop.f32.mrb[36].mxu1 }
 0x23d   :  { %3203 = vst.msk [vmem:[%s5298_s3 + $0x40] sm:$0xf] %vm3186_vm0, %v3608_v19  ;;  %v3609_v22 = vpack.c.bf16 %v2923_v20, %v2923_v20  ;;  %v3684_v23 = vadd.f32 %v5013_v1, %v2241_v21  ;;  %v2755_v24 = vpop.f32.mrb[36].mxu0  ;;  %v2243_v25 = vpop.f32.mrb[37].mxu1 }
 0x23e   :  { %v2757_v0 = vpop.f32.mrb[37].mxu0  ;;  %v2244_v26 = vpop.f32.mrb[38].mxu1 }
 0x23f   :  { %3204 = vst.msk [vmem:[%s5298_s3 + $0x44] sm:$0xf] %vm3186_vm0, %v3609_v22  ;;  %v3685_v27 = vadd.f32 %v3684_v23, %v2755_v24  ;;  %v3686_v28 = vadd.f32 %v5013_v1, %v2244_v26  ;;  %v2758_v29 = vpop.f32.mrb[38].mxu0  ;;  %v2246_v30 = vpop.f32.mrb[39].mxu1 }
 0x240   :  { %v2760_v31 = vpop.f32.mrb[39].mxu0 }
 0x241   :  { %v2924_v32 = vmax.f32 %v3685_v27, 0.0  ;;  %v3687_v33 = vadd.f32 %v3686_v28, %v2758_v29 }
 0x243   :  { %v3610_v34 = vpack.c.bf16 %v2924_v32, %v2924_v32  ;;  %v2925_v35 = vmax.f32 %v3687_v33, 0.0 }
 0x244   :  { %v2249_v36 = vpop.f32.mrb[40].mxu1 }
 0x245   :  { %3205 = vst.msk [vmem:[%s5298_s3 + $0x48] sm:$0xf] %vm3186_vm0, %v3610_v34  ;;  %v3611_v37 = vpack.c.bf16 %v2925_v35, %v2925_v35  ;;  %v3688_v38 = vadd.f32 %v5013_v1, %v2249_v36  ;;  %v2763_v39 = vpop.f32.mrb[40].mxu0  ;;  %v2251_v40 = vpop.f32.mrb[41].mxu1 }
 0x246   :  { %v2765_v41 = vpop.f32.mrb[41].mxu0  ;;  %v2252_v42 = vpop.f32.mrb[42].mxu1 }
 0x247   :  { %3206 = vst.msk [vmem:[%s5298_s3 + $0x4c] sm:$0xf] %vm3186_vm0, %v3611_v37  ;;  %v3689_v43 = vadd.f32 %v3688_v38, %v2763_v39  ;;  %v3690_v44 = vadd.f32 %v5013_v1, %v2252_v42  ;;  %v2766_v45 = vpop.f32.mrb[42].mxu0  ;;  %v2254_v46 = vpop.f32.mrb[43].mxu1 }
 0x248   :  { %v2768_v47 = vpop.f32.mrb[43].mxu0 }
 0x249   :  { %v2926_v48 = vmax.f32 %v3689_v43, 0.0  ;;  %v3691_v49 = vadd.f32 %v3690_v44, %v2766_v45 }
 0x24b   :  { %v3612_v50 = vpack.c.bf16 %v2926_v48, %v2926_v48  ;;  %v2927_v51 = vmax.f32 %v3691_v49, 0.0 }
 0x24c   :  { %v2257_v52 = vpop.f32.mrb[44].mxu1 }
 0x24d   :  { %3207 = vst.msk [vmem:[%s5298_s3 + $0x50] sm:$0xf] %vm3186_vm0, %v3612_v50  ;;  %v3613_v53 = vpack.c.bf16 %v2927_v51, %v2927_v51  ;;  %v3692_v54 = vadd.f32 %v5013_v1, %v2257_v52  ;;  %v2771_v55 = vpop.f32.mrb[44].mxu0  ;;  %v2259_v56 = vpop.f32.mrb[45].mxu1 }
 0x24e   :  { %v2773_v57 = vpop.f32.mrb[45].mxu0  ;;  %v2260_v58 = vpop.f32.mrb[46].mxu1 }
 0x24f   :  { %3208 = vst.msk [vmem:[%s5298_s3 + $0x54] sm:$0xf] %vm3186_vm0, %v3613_v53  ;;  %v3693_v59 = vadd.f32 %v3692_v54, %v2771_v55  ;;  %v3694_v60 = vadd.f32 %v5013_v1, %v2260_v58  ;;  %v2774_v61 = vpop.f32.mrb[46].mxu0  ;;  %v2262_v62 = vpop.f32.mrb[47].mxu1 }
 0x250   :  { %v2776_v63 = vpop.f32.mrb[47].mxu0 }
 0x251   :  { %v2928_v2 = vmax.f32 %v3693_v59, 0.0  ;;  %v3695_v3 = vadd.f32 %v3694_v60, %v2774_v61 }
 0x253   :  { %v3614_v4 = vpack.c.bf16 %v2928_v2, %v2928_v2  ;;  %v2929_v5 = vmax.f32 %v3695_v3, 0.0 }
 0x254   :  { %v2265_v6 = vpop.f32.mrb[48].mxu1 }
 0x255   :  { %3209 = vst.msk [vmem:[%s5298_s3 + $0x58] sm:$0xf] %vm3186_vm0, %v3614_v4  ;;  %v3615_v7 = vpack.c.bf16 %v2929_v5, %v2929_v5  ;;  %v3696_v8 = vadd.f32 %v5013_v1, %v2265_v6  ;;  %v2779_v9 = vpop.f32.mrb[48].mxu0  ;;  %v2267_v10 = vpop.f32.mrb[49].mxu1 }
 0x256   :  { %v2781_v11 = vpop.f32.mrb[49].mxu0  ;;  %v2268_v12 = vpop.f32.mrb[50].mxu1 }
 0x257   :  { %3210 = vst.msk [vmem:[%s5298_s3 + $0x5c] sm:$0xf] %vm3186_vm0, %v3615_v7  ;;  %v3697_v13 = vadd.f32 %v3696_v8, %v2779_v9  ;;  %v3698_v14 = vadd.f32 %v5013_v1, %v2268_v12  ;;  %v2782_v15 = vpop.f32.mrb[50].mxu0  ;;  %v2270_v16 = vpop.f32.mrb[51].mxu1 }
 0x258   :  { %v2784_v17 = vpop.f32.mrb[51].mxu0 }
 0x259   :  { %v2930_v18 = vmax.f32 %v3697_v13, 0.0  ;;  %v3699_v19 = vadd.f32 %v3698_v14, %v2782_v15 }
 0x25b   :  { %v3616_v20 = vpack.c.bf16 %v2930_v18, %v2930_v18  ;;  %v2931_v21 = vmax.f32 %v3699_v19, 0.0 }
 0x25c   :  { %v2273_v22 = vpop.f32.mrb[52].mxu1 }
 0x25d   :  { %3211 = vst.msk [vmem:[%s5298_s3 + $0x60] sm:$0xf] %vm3186_vm0, %v3616_v20  ;;  %v3617_v23 = vpack.c.bf16 %v2931_v21, %v2931_v21  ;;  %v3700_v24 = vadd.f32 %v5013_v1, %v2273_v22  ;;  %v2787_v25 = vpop.f32.mrb[52].mxu0  ;;  %v2275_v0 = vpop.f32.mrb[53].mxu1 }
 0x25e   :  { %v2789_v26 = vpop.f32.mrb[53].mxu0  ;;  %v2276_v27 = vpop.f32.mrb[54].mxu1 }
 0x25f   :  { %3212 = vst.msk [vmem:[%s5298_s3 + $0x64] sm:$0xf] %vm3186_vm0, %v3617_v23  ;;  %v3701_v28 = vadd.f32 %v3700_v24, %v2787_v25  ;;  %v3702_v29 = vadd.f32 %v5013_v1, %v2276_v27  ;;  %v2790_v30 = vpop.f32.mrb[54].mxu0  ;;  %v2278_v31 = vpop.f32.mrb[55].mxu1 }
 0x260   :  { %v2792_v32 = vpop.f32.mrb[55].mxu0 }
 0x261   :  { %v2932_v33 = vmax.f32 %v3701_v28, 0.0  ;;  %v3703_v34 = vadd.f32 %v3702_v29, %v2790_v30 }
 0x263   :  { %v3618_v35 = vpack.c.bf16 %v2932_v33, %v2932_v33  ;;  %v2933_v36 = vmax.f32 %v3703_v34, 0.0 }
 0x264   :  { %v2281_v37 = vpop.f32.mrb[56].mxu1 }
 0x265   :  { %3213 = vst.msk [vmem:[%s5298_s3 + $0x68] sm:$0xf] %vm3186_vm0, %v3618_v35  ;;  %v3619_v38 = vpack.c.bf16 %v2933_v36, %v2933_v36  ;;  %v3704_v39 = vadd.f32 %v5013_v1, %v2281_v37  ;;  %v2795_v40 = vpop.f32.mrb[56].mxu0  ;;  %v2283_v41 = vpop.f32.mrb[57].mxu1 }
 0x266   :  { %v2797_v42 = vpop.f32.mrb[57].mxu0  ;;  %v2284_v43 = vpop.f32.mrb[58].mxu1 }
 0x267   :  { %3214 = vst.msk [vmem:[%s5298_s3 + $0x6c] sm:$0xf] %vm3186_vm0, %v3619_v38  ;;  %v3705_v44 = vadd.f32 %v3704_v39, %v2795_v40  ;;  %v3706_v45 = vadd.f32 %v5013_v1, %v2284_v43  ;;  %v2798_v46 = vpop.f32.mrb[58].mxu0  ;;  %v2286_v47 = vpop.f32.mrb[59].mxu1 }
 0x268   :  { %v2800_v48 = vpop.f32.mrb[59].mxu0 }
 0x269   :  { %v2934_v49 = vmax.f32 %v3705_v44, 0.0  ;;  %v3707_v50 = vadd.f32 %v3706_v45, %v2798_v46 }
 0x26b   :  { %v3620_v51 = vpack.c.bf16 %v2934_v49, %v2934_v49  ;;  %v2935_v52 = vmax.f32 %v3707_v50, 0.0 }
 0x26c   :  { %v2289_v53 = vpop.f32.mrb[60].mxu1 }
 0x26d   :  { %3215 = vst.msk [vmem:[%s5298_s3 + $0x70] sm:$0xf] %vm3186_vm0, %v3620_v51  ;;  %v3621_v54 = vpack.c.bf16 %v2935_v52, %v2935_v52  ;;  %v3708_v55 = vadd.f32 %v5013_v1, %v2289_v53  ;;  %v2803_v56 = vpop.f32.mrb[60].mxu0  ;;  %v2291_v57 = vpop.f32.mrb[61].mxu1 }
 0x26e   :  { %v2805_v58 = vpop.f32.mrb[61].mxu0  ;;  %v2292_v59 = vpop.f32.mrb[62].mxu1 }
 0x26f   :  { %3216 = vst.msk [vmem:[%s5298_s3 + $0x74] sm:$0xf] %vm3186_vm0, %v3621_v54  ;;  %v3709_v60 = vadd.f32 %v3708_v55, %v2803_v56  ;;  %v3710_v61 = vadd.f32 %v5013_v1, %v2292_v59  ;;  %v2806_v62 = vpop.f32.mrb[62].mxu0  ;;  %v2294_v63 = vpop.f32.mrb[63].mxu1 }
 0x270   :  { %v2808_v2 = vpop.f32.mrb[63].mxu0 }
 0x271   :  { %v2936_v3 = vmax.f32 %v3709_v60, 0.0  ;;  %v3711_v4 = vadd.f32 %v3710_v61, %v2806_v62 }
 0x273   :  { %v3622_v5 = vpack.c.bf16 %v2936_v3, %v2936_v3  ;;  %v2937_v6 = vmax.f32 %v3711_v4, 0.0 }
 0x274   :  { %v2297_v7 = vpop.f32.mrb[64].mxu1 }
 0x275   :  { %3217 = vst.msk [vmem:[%s5298_s3 + $0x78] sm:$0xf] %vm3186_vm0, %v3622_v5  ;;  %v3623_v8 = vpack.c.bf16 %v2937_v6, %v2937_v6  ;;  %v3712_v9 = vadd.f32 %v5013_v1, %v2297_v7  ;;  %v2811_v10 = vpop.f32.mrb[64].mxu0  ;;  %v2299_v11 = vpop.f32.mrb[65].mxu1 }
 0x276   :  { %v2813_v12 = vpop.f32.mrb[65].mxu0  ;;  %v2300_v13 = vpop.f32.mrb[66].mxu1 }
 0x277   :  { %3218 = vst.msk [vmem:[%s5298_s3 + $0x7c] sm:$0xf] %vm3186_vm0, %v3623_v8  ;;  %v3713_v14 = vadd.f32 %v3712_v9, %v2811_v10  ;;  %v3714_v15 = vadd.f32 %v5013_v1, %v2300_v13  ;;  %v2814_v16 = vpop.f32.mrb[66].mxu0  ;;  %v2302_v17 = vpop.f32.mrb[67].mxu1 }
 0x278   :  { %v2816_v18 = vpop.f32.mrb[67].mxu0 }
 0x279   :  { %v2938_v19 = vmax.f32 %v3713_v14, 0.0  ;;  %v3715_v20 = vadd.f32 %v3714_v15, %v2814_v16 }
 0x27b   :  { %v3624_v21 = vpack.c.bf16 %v2938_v19, %v2938_v19  ;;  %v2939_v22 = vmax.f32 %v3715_v20, 0.0 }
 0x27c   :  { %v2305_v23 = vpop.f32.mrb[68].mxu1 }
 0x27d   :  { %3219 = vst.msk [vmem:[%s5298_s3 + $0x80] sm:$0xf] %vm3186_vm0, %v3624_v21  ;;  %v3625_v24 = vpack.c.bf16 %v2939_v22, %v2939_v22  ;;  %v3716_v25 = vadd.f32 %v5013_v1, %v2305_v23  ;;  %v2819_v0 = vpop.f32.mrb[68].mxu0  ;;  %v2307_v26 = vpop.f32.mrb[69].mxu1 }
 0x27e   :  { %v2821_v27 = vpop.f32.mrb[69].mxu0  ;;  %v2308_v28 = vpop.f32.mrb[70].mxu1 }
 0x27f   :  { %3220 = vst.msk [vmem:[%s5298_s3 + $0x84] sm:$0xf] %vm3186_vm0, %v3625_v24  ;;  %v3717_v29 = vadd.f32 %v3716_v25, %v2819_v0  ;;  %v3718_v30 = vadd.f32 %v5013_v1, %v2308_v28  ;;  %v2822_v31 = vpop.f32.mrb[70].mxu0  ;;  %v2310_v32 = vpop.f32.mrb[71].mxu1 }
 0x280   :  { %v2824_v33 = vpop.f32.mrb[71].mxu0 }
 0x281   :  { %v2940_v34 = vmax.f32 %v3717_v29, 0.0  ;;  %v3719_v35 = vadd.f32 %v3718_v30, %v2822_v31 }
 0x283   :  { %v3626_v36 = vpack.c.bf16 %v2940_v34, %v2940_v34  ;;  %v2941_v37 = vmax.f32 %v3719_v35, 0.0 }
 0x284   :  { %v2313_v38 = vpop.f32.mrb[72].mxu1 }
 0x285   :  { %3221 = vst.msk [vmem:[%s5298_s3 + $0x88] sm:$0xf] %vm3186_vm0, %v3626_v36  ;;  %v3627_v39 = vpack.c.bf16 %v2941_v37, %v2941_v37  ;;  %v3720_v40 = vadd.f32 %v5013_v1, %v2313_v38  ;;  %v2827_v41 = vpop.f32.mrb[72].mxu0  ;;  %v2315_v42 = vpop.f32.mrb[73].mxu1 }
 0x286   :  { %v2829_v43 = vpop.f32.mrb[73].mxu0  ;;  %v2316_v44 = vpop.f32.mrb[74].mxu1 }
 0x287   :  { %3222 = vst.msk [vmem:[%s5298_s3 + $0x8c] sm:$0xf] %vm3186_vm0, %v3627_v39  ;;  %v3721_v45 = vadd.f32 %v3720_v40, %v2827_v41  ;;  %v3722_v46 = vadd.f32 %v5013_v1, %v2316_v44  ;;  %v2830_v47 = vpop.f32.mrb[74].mxu0  ;;  %v2318_v48 = vpop.f32.mrb[75].mxu1 }
 0x288   :  { %v2832_v49 = vpop.f32.mrb[75].mxu0 }
 0x289   :  { %v2942_v50 = vmax.f32 %v3721_v45, 0.0  ;;  %v3723_v51 = vadd.f32 %v3722_v46, %v2830_v47 }
 0x28b   :  { %v3628_v52 = vpack.c.bf16 %v2942_v50, %v2942_v50  ;;  %v2943_v53 = vmax.f32 %v3723_v51, 0.0 }
 0x28c   :  { %v2321_v54 = vpop.f32.mrb[76].mxu1 }
 0x28d   :  { %3223 = vst.msk [vmem:[%s5298_s3 + $0x90] sm:$0xf] %vm3186_vm0, %v3628_v52  ;;  %v3629_v55 = vpack.c.bf16 %v2943_v53, %v2943_v53  ;;  %v3724_v56 = vadd.f32 %v5013_v1, %v2321_v54  ;;  %v2835_v57 = vpop.f32.mrb[76].mxu0  ;;  %v2323_v58 = vpop.f32.mrb[77].mxu1 }
 0x28e   :  { %v2837_v59 = vpop.f32.mrb[77].mxu0  ;;  %v2324_v60 = vpop.f32.mrb[78].mxu1 }
 0x28f   :  { %3224 = vst.msk [vmem:[%s5298_s3 + $0x94] sm:$0xf] %vm3186_vm0, %v3629_v55  ;;  %v3725_v61 = vadd.f32 %v3724_v56, %v2835_v57  ;;  %v3726_v62 = vadd.f32 %v5013_v1, %v2324_v60  ;;  %v2838_v63 = vpop.f32.mrb[78].mxu0  ;;  %v2326_v2 = vpop.f32.mrb[79].mxu1 }
 0x290   :  { %v2840_v3 = vpop.f32.mrb[79].mxu0 }
 0x291   :  { %v2944_v4 = vmax.f32 %v3725_v61, 0.0  ;;  %v3727_v5 = vadd.f32 %v3726_v62, %v2838_v63 }
 0x293   :  { %v3630_v6 = vpack.c.bf16 %v2944_v4, %v2944_v4  ;;  %v2945_v7 = vmax.f32 %v3727_v5, 0.0 }
 0x294   :  { %v2329_v8 = vpop.f32.mrb[80].mxu1 }
 0x295   :  { %3225 = vst.msk [vmem:[%s5298_s3 + $0x98] sm:$0xf] %vm3186_vm0, %v3630_v6  ;;  %v3631_v9 = vpack.c.bf16 %v2945_v7, %v2945_v7  ;;  %v3728_v10 = vadd.f32 %v5013_v1, %v2329_v8  ;;  %v2843_v11 = vpop.f32.mrb[80].mxu0  ;;  %v2331_v12 = vpop.f32.mrb[81].mxu1 }
 0x296   :  { %v2845_v13 = vpop.f32.mrb[81].mxu0  ;;  %v2332_v14 = vpop.f32.mrb[82].mxu1 }
 0x297   :  { %3226 = vst.msk [vmem:[%s5298_s3 + $0x9c] sm:$0xf] %vm3186_vm0, %v3631_v9  ;;  %v3729_v15 = vadd.f32 %v3728_v10, %v2843_v11  ;;  %v3730_v16 = vadd.f32 %v5013_v1, %v2332_v14  ;;  %v2846_v17 = vpop.f32.mrb[82].mxu0  ;;  %v2334_v18 = vpop.f32.mrb[83].mxu1 }
 0x298   :  { %v2848_v19 = vpop.f32.mrb[83].mxu0 }
 0x299   :  { %v2946_v20 = vmax.f32 %v3729_v15, 0.0  ;;  %v3731_v21 = vadd.f32 %v3730_v16, %v2846_v17 }
 0x29b   :  { %v3632_v22 = vpack.c.bf16 %v2946_v20, %v2946_v20  ;;  %v2947_v23 = vmax.f32 %v3731_v21, 0.0 }
 0x29c   :  { %v2337_v24 = vpop.f32.mrb[84].mxu1 }
 0x29d   :  { %3227 = vst.msk [vmem:[%s5298_s3 + $0xa0] sm:$0xf] %vm3186_vm0, %v3632_v22  ;;  %v3633_v25 = vpack.c.bf16 %v2947_v23, %v2947_v23  ;;  %v3732_v0 = vadd.f32 %v5013_v1, %v2337_v24  ;;  %v2851_v26 = vpop.f32.mrb[84].mxu0  ;;  %v2339_v27 = vpop.f32.mrb[85].mxu1 }
 0x29e   :  { %v2853_v28 = vpop.f32.mrb[85].mxu0  ;;  %v2340_v29 = vpop.f32.mrb[86].mxu1 }
 0x29f   :  { %3228 = vst.msk [vmem:[%s5298_s3 + $0xa4] sm:$0xf] %vm3186_vm0, %v3633_v25  ;;  %v3733_v30 = vadd.f32 %v3732_v0, %v2851_v26  ;;  %v3734_v31 = vadd.f32 %v5013_v1, %v2340_v29  ;;  %v2854_v32 = vpop.f32.mrb[86].mxu0  ;;  %v2342_v33 = vpop.f32.mrb[87].mxu1 }
 0x2a0   :  { %v2856_v34 = vpop.f32.mrb[87].mxu0 }
 0x2a1   :  { %v2948_v35 = vmax.f32 %v3733_v30, 0.0  ;;  %v3735_v36 = vadd.f32 %v3734_v31, %v2854_v32 }
 0x2a3   :  { %v3634_v37 = vpack.c.bf16 %v2948_v35, %v2948_v35  ;;  %v2949_v38 = vmax.f32 %v3735_v36, 0.0 }
 0x2a4   :  { %v2345_v39 = vpop.f32.mrb[88].mxu1 }
 0x2a5   :  { %3229 = vst.msk [vmem:[%s5298_s3 + $0xa8] sm:$0xf] %vm3186_vm0, %v3634_v37  ;;  %v3635_v40 = vpack.c.bf16 %v2949_v38, %v2949_v38  ;;  %v3736_v41 = vadd.f32 %v5013_v1, %v2345_v39  ;;  %v2859_v42 = vpop.f32.mrb[88].mxu0  ;;  %v2347_v43 = vpop.f32.mrb[89].mxu1 }
 0x2a6   :  { %v2861_v44 = vpop.f32.mrb[89].mxu0  ;;  %v2348_v45 = vpop.f32.mrb[90].mxu1 }
 0x2a7   :  { %3230 = vst.msk [vmem:[%s5298_s3 + $0xac] sm:$0xf] %vm3186_vm0, %v3635_v40  ;;  %v3737_v46 = vadd.f32 %v3736_v41, %v2859_v42  ;;  %v3738_v47 = vadd.f32 %v5013_v1, %v2348_v45  ;;  %v2862_v48 = vpop.f32.mrb[90].mxu0  ;;  %v2350_v49 = vpop.f32.mrb[91].mxu1 }
 0x2a8   :  { %v2864_v50 = vpop.f32.mrb[91].mxu0 }
 0x2a9   :  { %v2950_v51 = vmax.f32 %v3737_v46, 0.0  ;;  %v3739_v52 = vadd.f32 %v3738_v47, %v2862_v48 }
 0x2ab   :  { %v3636_v53 = vpack.c.bf16 %v2950_v51, %v2950_v51  ;;  %v2951_v54 = vmax.f32 %v3739_v52, 0.0 }
 0x2ac   :  { %v2353_v55 = vpop.f32.mrb[92].mxu1 }
 0x2ad   :  { %3231 = vst.msk [vmem:[%s5298_s3 + $0xb0] sm:$0xf] %vm3186_vm0, %v3636_v53  ;;  %v3637_v56 = vpack.c.bf16 %v2951_v54, %v2951_v54  ;;  %v3740_v57 = vadd.f32 %v5013_v1, %v2353_v55  ;;  %v2867_v58 = vpop.f32.mrb[92].mxu0  ;;  %v2355_v59 = vpop.f32.mrb[93].mxu1 }
 0x2ae   :  { %v2869_v60 = vpop.f32.mrb[93].mxu0  ;;  %v2356_v61 = vpop.f32.mrb[94].mxu1 }
 0x2af   :  { %3232 = vst.msk [vmem:[%s5298_s3 + $0xb4] sm:$0xf] %vm3186_vm0, %v3637_v56  ;;  %v3741_v62 = vadd.f32 %v3740_v57, %v2867_v58  ;;  %v3742_v63 = vadd.f32 %v5013_v1, %v2356_v61  ;;  %v2870_v2 = vpop.f32.mrb[94].mxu0  ;;  %v2358_v3 = vpop.f32.mrb[95].mxu1 }
 0x2b0   :  { %v2872_v4 = vpop.f32.mrb[95].mxu0 }
 0x2b1   :  { %v2952_v5 = vmax.f32 %v3741_v62, 0.0  ;;  %v3743_v6 = vadd.f32 %v3742_v63, %v2870_v2 }
 0x2b3   :  { %v3638_v7 = vpack.c.bf16 %v2952_v5, %v2952_v5  ;;  %v2953_v8 = vmax.f32 %v3743_v6, 0.0 }
 0x2b4   :  { %v2361_v9 = vpop.f32.mrb[96].mxu1 }
 0x2b5   :  { %3233 = vst.msk [vmem:[%s5298_s3 + $0xb8] sm:$0xf] %vm3186_vm0, %v3638_v7  ;;  %v3639_v10 = vpack.c.bf16 %v2953_v8, %v2953_v8  ;;  %v3744_v11 = vadd.f32 %v5013_v1, %v2361_v9  ;;  %v2875_v12 = vpop.f32.mrb[96].mxu0  ;;  %v2363_v13 = vpop.f32.mrb[97].mxu1 }
 0x2b6   :  { %v2877_v14 = vpop.f32.mrb[97].mxu0  ;;  %v2364_v15 = vpop.f32.mrb[98].mxu1 }
 0x2b7   :  { %3234 = vst.msk [vmem:[%s5298_s3 + $0xbc] sm:$0xf] %vm3186_vm0, %v3639_v10  ;;  %v3745_v16 = vadd.f32 %v3744_v11, %v2875_v12  ;;  %v3746_v17 = vadd.f32 %v5013_v1, %v2364_v15  ;;  %v2878_v18 = vpop.f32.mrb[98].mxu0  ;;  %v2366_v19 = vpop.f32.mrb[99].mxu1 }
 0x2b8   :  { %v2880_v20 = vpop.f32.mrb[99].mxu0 }
 0x2b9   :  { %v2954_v21 = vmax.f32 %v3745_v16, 0.0  ;;  %v3747_v22 = vadd.f32 %v3746_v17, %v2878_v18 }
 0x2bb   :  { %v3640_v23 = vpack.c.bf16 %v2954_v21, %v2954_v21  ;;  %v2955_v24 = vmax.f32 %v3747_v22, 0.0 }
 0x2bc   :  { %v2369_v25 = vpop.f32.mrb[100].mxu1 }
 0x2bd   :  { %3235 = vst.msk [vmem:[%s5298_s3 + $0xc0] sm:$0xf] %vm3186_vm0, %v3640_v23  ;;  %v3641_v0 = vpack.c.bf16 %v2955_v24, %v2955_v24  ;;  %v3748_v26 = vadd.f32 %v5013_v1, %v2369_v25  ;;  %v2883_v27 = vpop.f32.mrb[100].mxu0  ;;  %v2371_v28 = vpop.f32.mrb[101].mxu1 }
 0x2be   :  { %v2885_v29 = vpop.f32.mrb[101].mxu0  ;;  %v2372_v30 = vpop.f32.mrb[102].mxu1 }
 0x2bf   :  { %3236 = vst.msk [vmem:[%s5298_s3 + $0xc4] sm:$0xf] %vm3186_vm0, %v3641_v0  ;;  %v3749_v31 = vadd.f32 %v3748_v26, %v2883_v27  ;;  %v3750_v32 = vadd.f32 %v5013_v1, %v2372_v30  ;;  %v2886_v33 = vpop.f32.mrb[102].mxu0  ;;  %v2374_v34 = vpop.f32.mrb[103].mxu1 }
 0x2c0   :  { %v2888_v35 = vpop.f32.mrb[103].mxu0 }
 0x2c1   :  { %v2956_v36 = vmax.f32 %v3749_v31, 0.0  ;;  %v3751_v37 = vadd.f32 %v3750_v32, %v2886_v33 }
 0x2c3   :  { %v3642_v38 = vpack.c.bf16 %v2956_v36, %v2956_v36  ;;  %v2957_v39 = vmax.f32 %v3751_v37, 0.0 }
 0x2c4   :  { %v2377_v40 = vpop.f32.mrb[104].mxu1 }
 0x2c5   :  { %3237 = vst.msk [vmem:[%s5298_s3 + $0xc8] sm:$0xf] %vm3186_vm0, %v3642_v38  ;;  %v3643_v41 = vpack.c.bf16 %v2957_v39, %v2957_v39  ;;  %v3752_v42 = vadd.f32 %v5013_v1, %v2377_v40  ;;  %v2891_v43 = vpop.f32.mrb[104].mxu0  ;;  %v2379_v44 = vpop.f32.mrb[105].mxu1 }
 0x2c6   :  { %v2893_v45 = vpop.f32.mrb[105].mxu0  ;;  %v2380_v46 = vpop.f32.mrb[106].mxu1 }
 0x2c7   :  { %3238 = vst.msk [vmem:[%s5298_s3 + $0xcc] sm:$0xf] %vm3186_vm0, %v3643_v41  ;;  %v3753_v47 = vadd.f32 %v3752_v42, %v2891_v43  ;;  %v3754_v48 = vadd.f32 %v5013_v1, %v2380_v46  ;;  %v2894_v49 = vpop.f32.mrb[106].mxu0  ;;  %v2382_v50 = vpop.f32.mrb[107].mxu1 }
 0x2c8   :  { %v2896_v51 = vpop.f32.mrb[107].mxu0 }
 0x2c9   :  { %v2958_v52 = vmax.f32 %v3753_v47, 0.0  ;;  %v3755_v53 = vadd.f32 %v3754_v48, %v2894_v49 }
 0x2cb   :  { %v3644_v54 = vpack.c.bf16 %v2958_v52, %v2958_v52  ;;  %v2959_v55 = vmax.f32 %v3755_v53, 0.0 }
 0x2cc   :  { %v2385_v56 = vpop.f32.mrb[108].mxu1 }
 0x2cd   :  { %3239 = vst.msk [vmem:[%s5298_s3 + $0xd0] sm:$0xf] %vm3186_vm0, %v3644_v54  ;;  %v3645_v57 = vpack.c.bf16 %v2959_v55, %v2959_v55  ;;  %v3756_v58 = vadd.f32 %v5013_v1, %v2385_v56  ;;  %v2899_v59 = vpop.f32.mrb[108].mxu0  ;;  %v2387_v60 = vpop.f32.mrb[109].mxu1 }
 0x2ce   :  { %v2901_v61 = vpop.f32.mrb[109].mxu0  ;;  %v2388_v62 = vpop.f32.mrb[110].mxu1 }
 0x2cf   :  { %3240 = vst.msk [vmem:[%s5298_s3 + $0xd4] sm:$0xf] %vm3186_vm0, %v3645_v57  ;;  %v3757_v63 = vadd.f32 %v3756_v58, %v2899_v59  ;;  %v3758_v2 = vadd.f32 %v5013_v1, %v2388_v62  ;;  %v2902_v3 = vpop.f32.mrb[110].mxu0  ;;  %v2390_v4 = vpop.f32.mrb[111].mxu1 }
 0x2d0   :  { %v2904_v5 = vpop.f32.mrb[111].mxu0 }
 0x2d1   :  { %v2960_v6 = vmax.f32 %v3757_v63, 0.0  ;;  %v3759_v7 = vadd.f32 %v3758_v2, %v2902_v3 }
 0x2d3   :  { %v3646_v8 = vpack.c.bf16 %v2960_v6, %v2960_v6  ;;  %v2961_v9 = vmax.f32 %v3759_v7, 0.0 }
 0x2d5   :  { %3241 = vst.msk [vmem:[%s5298_s3 + $0xd8] sm:$0xf] %vm3186_vm0, %v3646_v8  ;;  %v3647_v10 = vpack.c.bf16 %v2961_v9, %v2961_v9 }
 0x2d7   :  { %3242 = vst.msk [vmem:[%s5298_s3 + $0xdc] sm:$0xf] %vm3186_vm0, %v3647_v10 }

// kernel: simple_atari_net.6
= control target key start
LH: loop header
LB: loop body
LE: loop exit
PB: predicated region body
PF: predicated region fallthrough
CT: control target
= control target key end

     0   :  { %vm630_vm0 = vcmask 519168   ;;  %vm641_vm1 = vcmask 517120   ;;  %s1137_s1 = inlined_call_operand.vmem [shape: bf16[512,64], index: 1, kind: input, shape index: {}]   ;;  %s1138_s0 = inlined_call_operand.vmem [shape: bf16[84,512], index: 0, kind: input, shape index: {}]   ;;  %s1139_s2 = inlined_call_operand.vmem [shape: f32[1,64], index: 2, kind: input, shape index: {}]   ;;  %s1140_s3 = inlined_call_operand.vmem [shape: bf16[84,64], index: 3, kind: output, shape index: {}]  }
   0x1   :  { %v830_v0 = vld [vmem:[%s1137_s1 + $0x40] sm:$0xff]   ;;  %v834_v4 = vld [vmem:[%s1137_s1 + $0x48] sm:$0xff]   ;;  %v838_v8 = vld [vmem:[%s1137_s1 + $0x50] sm:$0xff]  }
   0x2   :  { %v831_v1 = vld [vmem:[%s1137_s1 + $0xc0] sm:$0xff]   ;;  %726 = vmatprep.subr.bf16.mxu0 %v830_v0  ;;  %v835_v5 = vld [vmem:[%s1137_s1 + $0xc8] sm:$0xff]   ;;  %v839_v9 = vld [vmem:[%s1137_s1 + $0xd0] sm:$0xff]  }
   0x3   :  { %v832_v2 = vld [vmem:[%s1137_s1] sm:$0xff]   ;;  %778 = vmatprep.subr.bf16.mxu1 %v831_v1  ;;  %v836_v6 = vld [vmem:[%s1137_s1 + $0x8] sm:$0xff]   ;;  %v840_v10 = vld [vmem:[%s1137_s1 + $0x10] sm:$0xff]  }
   0x4   :  { %v833_v3 = vld [vmem:[%s1137_s1 + $0x80] sm:$0xff]   ;;  %727 = vmatpush3.bf16.msra.mxu0 %v832_v2  ;;  %v837_v7 = vld [vmem:[%s1137_s1 + $0x88] sm:$0xff]   ;;  %v841_v11 = vld [vmem:[%s1137_s1 + $0x90] sm:$0xff]  }
   0x5   :  { %779 = vmatpush3.bf16.msra.mxu1 %v833_v3  ;;  %728 = vmatprep.subr.bf16.mxu0 %v834_v4  ;;  %v842_v12 = vld [vmem:[%s1137_s1 + $0x58] sm:$0xff]   ;;  %v846_v16 = vld [vmem:[%s1137_s1 + $0x60] sm:$0xff]   ;;  %v850_v20 = vld [vmem:[%s1137_s1 + $0x68] sm:$0xff]  }
   0x6   :  { %780 = vmatprep.subr.bf16.mxu1 %v835_v5  ;;  %v843_v13 = vld [vmem:[%s1137_s1 + $0xd8] sm:$0xff]   ;;  %v847_v17 = vld [vmem:[%s1137_s1 + $0xe0] sm:$0xff]   ;;  %v851_v21 = vld [vmem:[%s1137_s1 + $0xe8] sm:$0xff]  }
   0x7   :  { %v844_v14 = vld [vmem:[%s1137_s1 + $0x18] sm:$0xff]   ;;  %v848_v18 = vld [vmem:[%s1137_s1 + $0x20] sm:$0xff]   ;;  %v852_v22 = vld [vmem:[%s1137_s1 + $0x28] sm:$0xff]  }
   0x8   :  { %729 = vmatpush3.bf16.msra.mxu0 %v836_v6  ;;  %v845_v15 = vld [vmem:[%s1137_s1 + $0x98] sm:$0xff]   ;;  %v849_v19 = vld [vmem:[%s1137_s1 + $0xa0] sm:$0xff]   ;;  %v853_v23 = vld [vmem:[%s1137_s1 + $0xa8] sm:$0xff]  }
   0x9   :  { %781 = vmatpush3.bf16.msra.mxu1 %v837_v7  ;;  %730 = vmatprep.subr.bf16.mxu0 %v838_v8  ;;  %v854_v24 = vld [vmem:[%s1137_s1 + $0x70] sm:$0xff]   ;;  %v858_v28 = vld [vmem:[%s1137_s1 + $0x78] sm:$0xff]   ;;  %v35_v50 = vld [vmem:[%s1138_s0 + $0xa0] sm:$0x33] }
   0xa   :  { %782 = vmatprep.subr.bf16.mxu1 %v839_v9  ;;  %v855_v25 = vld [vmem:[%s1137_s1 + $0xf0] sm:$0xff]   ;;  %v859_v29 = vld [vmem:[%s1137_s1 + $0xf8] sm:$0xff]   ;;  %v36_v51 = vld [vmem:[%s1138_s0 + $0xa8] sm:$0x33]  ;;  %v669_v54 = vcombine.high %v35_v50, %v35_v50  ;;  %v668_v56 = vcombine.low %v35_v50, %v35_v50 }
   0xb   :  { %v856_v26 = vld [vmem:[%s1137_s1 + $0x30] sm:$0xff]   ;;  %v860_v30 = vld [vmem:[%s1137_s1 + $0x38] sm:$0xff]   ;;  %v671_v55 = vcombine.high %v36_v51, %v36_v51  ;;  %v670_v57 = vcombine.low %v36_v51, %v36_v51  ;;  %v1081_v60 = vld [vmem:[%s1139_s2] ss:$0 sm:$0xff] }
   0xc   :  { %731 = vmatpush3.bf16.msra.mxu0 %v840_v10  ;;  %v857_v27 = vld [vmem:[%s1137_s1 + $0xb0] sm:$0xff]   ;;  %v861_v31 = vld [vmem:[%s1137_s1 + $0xb8] sm:$0xff]  }
   0xd   :  { %783 = vmatpush3.bf16.msra.mxu1 %v841_v11  ;;  %732 = vmatprep.subr.bf16.mxu0 %v842_v12  ;;  %v862_v32 = vld [vmem:[%s1138_s0] ss:$16 sps:$4 sm:$0xff]   ;;  %v864_v33 = vld [vmem:[%s1138_s0 + $0x4] ss:$16 sps:$4 sm:$0xff]   ;;  %v865_v34 = vld [vmem:[%s1138_s0 + $0x8] ss:$16 sps:$4 sm:$0xff]  }
   0xe   :  { %784 = vmatprep.subr.bf16.mxu1 %v843_v13  ;;  %v867_v35 = vld [vmem:[%s1138_s0 + $0xc] ss:$16 sps:$4 sm:$0xff]   ;;  %446 = vmatprep.mubr.bf16.mxu0 %v864_v33  ;;  %v868_v36 = vld [vmem:[%s1138_s0 + $0x24] ss:$16 sps:$4 sm:$0xff]   ;;  %v872_v38 = vld [vmem:[%s1138_s0 + $0x20] ss:$16 sps:$4 sm:$0xff]  }
   0xf   :  { %526 = vmatprep.mubr.bf16.mxu1 %v867_v35  ;;  %v870_v37 = vld [vmem:[%s1138_s0 + $0x2c] ss:$16 sps:$4 sm:$0xff]   ;;  %v873_v39 = vld [vmem:[%s1138_s0 + $0x28] ss:$16 sps:$4 sm:$0xff]   ;;  %v874_v40 = vld [vmem:[%s1138_s0 + $0x44] ss:$16 sps:$4 sm:$0xff]  }
  0x10   :  { %733 = vmatpush3.bf16.msra.mxu0 %v844_v14  ;;  %v876_v41 = vld [vmem:[%s1138_s0 + $0x4c] ss:$16 sps:$4 sm:$0xff]   ;;  %v878_v42 = vld [vmem:[%s1138_s0 + $0x40] ss:$16 sps:$4 sm:$0xff]   ;;  %v879_v43 = vld [vmem:[%s1138_s0 + $0x48] ss:$16 sps:$4 sm:$0xff]  }
  0x11   :  { %785 = vmatpush3.bf16.msra.mxu1 %v845_v15  ;;  %734 = vmatprep.subr.bf16.mxu0 %v846_v16  ;;  %v880_v44 = vld [vmem:[%s1138_s0 + $0x64] ss:$16 sps:$4 sm:$0xff]   ;;  %v882_v45 = vld [vmem:[%s1138_s0 + $0x6c] ss:$16 sps:$4 sm:$0xff]   ;;  %v884_v46 = vld [vmem:[%s1138_s0 + $0x60] ss:$16 sps:$4 sm:$0xff]  }
  0x12   :  { %786 = vmatprep.subr.bf16.mxu1 %v847_v17  ;;  %v885_v47 = vld [vmem:[%s1138_s0 + $0x68] ss:$16 sps:$4 sm:$0xff]   ;;  %v886_v48 = vld [vmem:[%s1138_s0 + $0x84] ss:$16 sps:$4 sm:$0xff]   ;;  %v888_v49 = vld [vmem:[%s1138_s0 + $0x8c] ss:$16 sps:$4 sm:$0xff]  }
  0x13   :  { %v890_v52 = vld [vmem:[%s1138_s0 + $0x80] ss:$16 sps:$4 sm:$0xff]   ;;  %v891_v53 = vld [vmem:[%s1138_s0 + $0x88] ss:$16 sps:$4 sm:$0xff]  }
  0x14   :  { %735 = vmatpush3.bf16.msra.mxu0 %v848_v18 }
  0x15   :  { %787 = vmatpush3.bf16.msra.mxu1 %v849_v19  ;;  %736 = vmatprep.subr.bf16.mxu0 %v850_v20 }
  0x16   :  { %788 = vmatprep.subr.bf16.mxu1 %v851_v21 }
  0x18   :  { %737 = vmatpush3.bf16.msra.mxu0 %v852_v22 }
  0x19   :  { %789 = vmatpush3.bf16.msra.mxu1 %v853_v23  ;;  %738 = vmatprep.subr.bf16.mxu0 %v854_v24 }
  0x1a   :  { %790 = vmatprep.subr.bf16.mxu1 %v855_v25 }
  0x1c   :  { %739 = vmatpush3.bf16.msra.mxu0 %v856_v26 }
  0x1d   :  { %791 = vmatpush3.bf16.msra.mxu1 %v857_v27  ;;  %740 = vmatprep.subr.bf16.mxu0 %v858_v28 }
  0x1e   :  { %792 = vmatprep.subr.bf16.mxu1 %v859_v29 }
  0x20   :  { %741 = vmatpush3.bf16.msra.mxu0 %v860_v30 }
  0x21   :  { %793 = vmatpush3.bf16.msra.mxu1 %v861_v31 }
  0x23   :  { %447 = vmatmul.mubr.bf16.vlgmr.msra.gmra.mrb[0].mxu0 %v862_v32 }
  0x24   :  { %527 = vmatmul.mubr.bf16.vlgmr.msra.gmra.mrb[0].mxu1 %v865_v34  ;;  %454 = vmatprep.mubr.bf16.mxu0 %v868_v36 }
  0x25   :  { %534 = vmatprep.mubr.bf16.mxu1 %v870_v37 }
  0x2b   :  { %455 = vmatmul.mubr.bf16.gmra.mrb[4].mxu0 %v872_v38 }
  0x2c   :  { %535 = vmatmul.mubr.bf16.gmra.mrb[4].mxu1 %v873_v39  ;;  %462 = vmatprep.mubr.bf16.mxu0 %v874_v40 }
  0x2d   :  { %542 = vmatprep.mubr.bf16.mxu1 %v876_v41 }
  0x33   :  { %463 = vmatmul.mubr.bf16.gmra.mrb[8].mxu0 %v878_v42 }
  0x34   :  { %543 = vmatmul.mubr.bf16.gmra.mrb[8].mxu1 %v879_v43  ;;  %470 = vmatprep.mubr.bf16.mxu0 %v880_v44 }
  0x35   :  { %550 = vmatprep.mubr.bf16.mxu1 %v882_v45 }
  0x3b   :  { %471 = vmatmul.mubr.bf16.gmra.mrb[12].mxu0 %v884_v46 }
  0x3c   :  { %551 = vmatmul.mubr.bf16.gmra.mrb[12].mxu1 %v885_v47  ;;  %478 = vmatprep.mubr.bf16.mxu0 %v886_v48 }
  0x3d   :  { %558 = vmatprep.mubr.bf16.mxu1 %v888_v49 }
  0x43   :  { %479 = vmatmul.mubr.bf16.gmra.mrb[16].mxu0 %v890_v52 }
  0x44   :  { %559 = vmatmul.mubr.bf16.gmra.mrb[16].mxu1 %v891_v53  ;;  %486 = vmatprep.mubr.bf16.mxu0 %v669_v54 }
  0x45   :  { %566 = vmatprep.mubr.bf16.mxu1 %v671_v55 }
  0x4b   :  { %487 = vmatmul.mubr.bf16.gmra.mrb[20].mxu0 %v668_v56 }
  0x4c   :  { %567 = vmatmul.mubr.bf16.gmra.mrb[20].mxu1 %v670_v57 }
  0xf6   :  { %v742_v58 = vpop.f32.mrb[0].mxu0 }
  0xf7   :  { %v794_v59 = vpop.f32.mrb[0].mxu1  ;;  %v743_v61 = vpop.f32.mrb[1].mxu0 }
  0xf8   :  { %v744_v62 = vadd.f32 %v743_v61, %v742_v58  ;;  %v795_v63 = vpop.f32.mrb[1].mxu1  ;;  %v745_v0 = vpop.f32.mrb[2].mxu0 }
  0xf9   :  { %v796_v1 = vadd.f32 %v795_v63, %v794_v59  ;;  %v797_v2 = vpop.f32.mrb[2].mxu1  ;;  %v746_v3 = vpop.f32.mrb[3].mxu0 }
  0xfa   :  { %v449_v4 = vadd.f32 %v744_v62, %v1081_v60  ;;  %v747_v5 = vadd.f32 %v746_v3, %v745_v0  ;;  %v798_v6 = vpop.f32.mrb[3].mxu1 }
  0xfb   :  { %v799_v7 = vadd.f32 %v798_v6, %v797_v2 }
  0xfc   :  { %v529_v8 = vadd.f32 %v796_v1, %v449_v4  ;;  %v452_v9 = vadd.f32 %v747_v5, %v1081_v60 }
  0xfe   :  { %v574_v10 = vmax.f32 %v529_v8, 0.0  ;;  %v532_v11 = vadd.f32 %v799_v7, %v452_v9  ;;  %v748_v12 = vpop.f32.mrb[4].mxu0 }
  0xff   :  { %v800_v13 = vpop.f32.mrb[4].mxu1  ;;  %v749_v14 = vpop.f32.mrb[5].mxu0 }
 0x100   :  { %v715_v15 = vpack.c.bf16 %v574_v10, %v574_v10  ;;  %v575_v16 = vmax.f32 %v532_v11, 0.0  ;;  %v750_v17 = vadd.f32 %v749_v14, %v748_v12  ;;  %v801_v18 = vpop.f32.mrb[5].mxu1  ;;  %v751_v19 = vpop.f32.mrb[6].mxu0 }
 0x101   :  { %v802_v20 = vadd.f32 %v801_v18, %v800_v13  ;;  %v803_v21 = vpop.f32.mrb[6].mxu1  ;;  %v752_v22 = vpop.f32.mrb[7].mxu0 }
 0x102   :  { %631 = vst.msk [vmem:[%s1140_s3] sm:$0xf] %vm630_vm0, %v715_v15  ;;  %v716_v23 = vpack.c.bf16 %v575_v16, %v575_v16  ;;  %v457_v24 = vadd.f32 %v750_v17, %v1081_v60  ;;  %v753_v25 = vadd.f32 %v752_v22, %v751_v19  ;;  %v804_v26 = vpop.f32.mrb[7].mxu1 }
 0x103   :  { %v805_v27 = vadd.f32 %v804_v26, %v803_v21 }
 0x104   :  { %632 = vst.msk [vmem:[%s1140_s3 + $0x4] sm:$0xf] %vm630_vm0, %v716_v23  ;;  %v537_v28 = vadd.f32 %v802_v20, %v457_v24  ;;  %v460_v29 = vadd.f32 %v753_v25, %v1081_v60 }
 0x106   :  { %v576_v30 = vmax.f32 %v537_v28, 0.0  ;;  %v540_v31 = vadd.f32 %v805_v27, %v460_v29  ;;  %v754_v32 = vpop.f32.mrb[8].mxu0 }
 0x107   :  { %v806_v33 = vpop.f32.mrb[8].mxu1  ;;  %v755_v34 = vpop.f32.mrb[9].mxu0 }
 0x108   :  { %v717_v35 = vpack.c.bf16 %v576_v30, %v576_v30  ;;  %v577_v36 = vmax.f32 %v540_v31, 0.0  ;;  %v756_v37 = vadd.f32 %v755_v34, %v754_v32  ;;  %v807_v38 = vpop.f32.mrb[9].mxu1  ;;  %v757_v39 = vpop.f32.mrb[10].mxu0 }
 0x109   :  { %v808_v40 = vadd.f32 %v807_v38, %v806_v33  ;;  %v809_v41 = vpop.f32.mrb[10].mxu1  ;;  %v758_v42 = vpop.f32.mrb[11].mxu0 }
 0x10a   :  { %633 = vst.msk [vmem:[%s1140_s3 + $0x8] sm:$0xf] %vm630_vm0, %v717_v35  ;;  %v718_v43 = vpack.c.bf16 %v577_v36, %v577_v36  ;;  %v465_v44 = vadd.f32 %v756_v37, %v1081_v60  ;;  %v759_v45 = vadd.f32 %v758_v42, %v757_v39  ;;  %v810_v46 = vpop.f32.mrb[11].mxu1 }
 0x10b   :  { %v811_v47 = vadd.f32 %v810_v46, %v809_v41 }
 0x10c   :  { %634 = vst.msk [vmem:[%s1140_s3 + $0xc] sm:$0xf] %vm630_vm0, %v718_v43  ;;  %v545_v48 = vadd.f32 %v808_v40, %v465_v44  ;;  %v468_v49 = vadd.f32 %v759_v45, %v1081_v60 }
 0x10e   :  { %v578_v50 = vmax.f32 %v545_v48, 0.0  ;;  %v548_v51 = vadd.f32 %v811_v47, %v468_v49  ;;  %v760_v52 = vpop.f32.mrb[12].mxu0 }
 0x10f   :  { %v812_v53 = vpop.f32.mrb[12].mxu1  ;;  %v761_v54 = vpop.f32.mrb[13].mxu0 }
 0x110   :  { %v719_v55 = vpack.c.bf16 %v578_v50, %v578_v50  ;;  %v579_v56 = vmax.f32 %v548_v51, 0.0  ;;  %v762_v57 = vadd.f32 %v761_v54, %v760_v52  ;;  %v813_v58 = vpop.f32.mrb[13].mxu1  ;;  %v763_v59 = vpop.f32.mrb[14].mxu0 }
 0x111   :  { %v814_v61 = vadd.f32 %v813_v58, %v812_v53  ;;  %v815_v62 = vpop.f32.mrb[14].mxu1  ;;  %v764_v63 = vpop.f32.mrb[15].mxu0 }
 0x112   :  { %635 = vst.msk [vmem:[%s1140_s3 + $0x10] sm:$0xf] %vm630_vm0, %v719_v55  ;;  %v720_v0 = vpack.c.bf16 %v579_v56, %v579_v56  ;;  %v473_v1 = vadd.f32 %v762_v57, %v1081_v60  ;;  %v765_v2 = vadd.f32 %v764_v63, %v763_v59  ;;  %v816_v3 = vpop.f32.mrb[15].mxu1 }
 0x113   :  { %v817_v4 = vadd.f32 %v816_v3, %v815_v62 }
 0x114   :  { %636 = vst.msk [vmem:[%s1140_s3 + $0x14] sm:$0xf] %vm630_vm0, %v720_v0  ;;  %v553_v5 = vadd.f32 %v814_v61, %v473_v1  ;;  %v476_v6 = vadd.f32 %v765_v2, %v1081_v60 }
 0x116   :  { %v580_v7 = vmax.f32 %v553_v5, 0.0  ;;  %v556_v8 = vadd.f32 %v817_v4, %v476_v6  ;;  %v766_v9 = vpop.f32.mrb[16].mxu0 }
 0x117   :  { %v818_v10 = vpop.f32.mrb[16].mxu1  ;;  %v767_v11 = vpop.f32.mrb[17].mxu0 }
 0x118   :  { %v721_v12 = vpack.c.bf16 %v580_v7, %v580_v7  ;;  %v581_v13 = vmax.f32 %v556_v8, 0.0  ;;  %v768_v14 = vadd.f32 %v767_v11, %v766_v9  ;;  %v819_v15 = vpop.f32.mrb[17].mxu1  ;;  %v769_v16 = vpop.f32.mrb[18].mxu0 }
 0x119   :  { %v820_v17 = vadd.f32 %v819_v15, %v818_v10  ;;  %v821_v18 = vpop.f32.mrb[18].mxu1  ;;  %v770_v19 = vpop.f32.mrb[19].mxu0 }
 0x11a   :  { %637 = vst.msk [vmem:[%s1140_s3 + $0x18] sm:$0xf] %vm630_vm0, %v721_v12  ;;  %v722_v20 = vpack.c.bf16 %v581_v13, %v581_v13  ;;  %v481_v21 = vadd.f32 %v768_v14, %v1081_v60  ;;  %v771_v22 = vadd.f32 %v770_v19, %v769_v16  ;;  %v822_v23 = vpop.f32.mrb[19].mxu1 }
 0x11b   :  { %v823_v24 = vadd.f32 %v822_v23, %v821_v18 }
 0x11c   :  { %638 = vst.msk [vmem:[%s1140_s3 + $0x1c] sm:$0xf] %vm630_vm0, %v722_v20  ;;  %v561_v25 = vadd.f32 %v820_v17, %v481_v21  ;;  %v484_v26 = vadd.f32 %v771_v22, %v1081_v60 }
 0x11e   :  { %v582_v27 = vmax.f32 %v561_v25, 0.0  ;;  %v564_v28 = vadd.f32 %v823_v24, %v484_v26  ;;  %v772_v29 = vpop.f32.mrb[20].mxu0 }
 0x11f   :  { %v824_v30 = vpop.f32.mrb[20].mxu1  ;;  %v773_v31 = vpop.f32.mrb[21].mxu0 }
 0x120   :  { %v723_v32 = vpack.c.bf16 %v582_v27, %v582_v27  ;;  %v583_v33 = vmax.f32 %v564_v28, 0.0  ;;  %v774_v34 = vadd.f32 %v773_v31, %v772_v29  ;;  %v825_v35 = vpop.f32.mrb[21].mxu1  ;;  %v775_v36 = vpop.f32.mrb[22].mxu0 }
 0x121   :  { %v826_v37 = vadd.f32 %v825_v35, %v824_v30  ;;  %v827_v38 = vpop.f32.mrb[22].mxu1  ;;  %v776_v39 = vpop.f32.mrb[23].mxu0 }
 0x122   :  { %639 = vst.msk [vmem:[%s1140_s3 + $0x20] sm:$0xf] %vm630_vm0, %v723_v32  ;;  %v724_v40 = vpack.c.bf16 %v583_v33, %v583_v33  ;;  %v489_v41 = vadd.f32 %v774_v34, %v1081_v60  ;;  %v828_v42 = vpop.f32.mrb[23].mxu1 }
 0x124   :  { %640 = vst.msk [vmem:[%s1140_s3 + $0x24] sm:$0xf] %vm630_vm0, %v724_v40  ;;  %v569_v43 = vadd.f32 %v826_v37, %v489_v41 }
 0x126   :  { %v584_v44 = vmax.f32 %v569_v43, 0.0 }
 0x128   :  { %v725_v45 = vpack.c.bf16 %v584_v44, %v584_v44 }
 0x12a   :  { %642 = vst.msk [vmem:[%s1140_s3 + $0x28] sm:$0x3] %vm641_vm1, %v725_v45 }

// kernel: simple_atari_net.7
= control target key start
LH: loop header
LB: loop body
LE: loop exit
PB: predicated region body
PF: predicated region fallthrough
CT: control target
= control target key end

     0   :  { %v113_v29 = vlaneseq  ;;  %v10628_v32 = vmov 1966171168   ;;  %v10629_v36 = vmov 0.0   ;;  %vm10630_vm0 = vmmov 0   ;;  %s14041_s0 = inlined_call_operand.vmem [shape: bf16[20,2,576], index: 0, kind: input, shape index: {}]   ;;  %s14042_s1 = inlined_call_operand.vmem [shape: bf16[576,64], index: 1, kind: input, shape index: {}]   ;;  %s14043_s2 = inlined_call_operand.vmem [shape: f32[1,64], index: 2, kind: input, shape index: {}]   ;;  %s14044_s3 = inlined_call_operand.vmem [shape: bf16[20,64,512], index: 3, kind: input, shape index: {}]   ;;  %s14045_s4 = inlined_call_operand.vmem [shape: f32[1,512], index: 4, kind: input, shape index: {}]   ;;  %s14046_s5 = inlined_call_operand.vmem [shape: bf16[512,2], index: 5, kind: input, shape index: {}]   ;;  %s14047_s6 = inlined_call_operand.vmem [shape: f32[1,2], index: 6, kind: input, shape index: {}]   ;;  %s14048_s7 = inlined_call_operand.hbm [shape: f32[2,2], index: 7, kind: output, shape index: {}]  }
   0x1   :  { %v10676_v0 = vld [vmem:[%s14042_s1 + $0x40] sm:$0xff]   ;;  %v10699_v4 = vld [vmem:[%s14042_s1 + $0x48] sm:$0xff]   ;;  %v10723_v8 = vld [vmem:[%s14042_s1 + $0x50] sm:$0xff]   ;;  %v111_v33 = vunpack.c.l.s4 %v10628_v32  ;;  %vm368_vm1 = vcmask 523264  }
   0x2   :  { %v10681_v1 = vld [vmem:[%s14042_s1] sm:$0xff]   ;;  %8620 = vmatprep.subr.bf16.mxu0 %v10676_v0  ;;  %v10705_v5 = vld [vmem:[%s14042_s1 + $0x8] sm:$0xff]   ;;  %v10729_v9 = vld [vmem:[%s14042_s1 + $0x10] sm:$0xff]   ;;  %v10859_v34 = vshrl.u32 %v113_v29, 7 }
   0x3   :  { %v10687_v2 = vld [vmem:[%s14042_s1 + $0xc0] sm:$0xff]   ;;  %8621 = vmatpush3.bf16.msra.mxu0 %v10681_v1  ;;  %v10711_v6 = vld [vmem:[%s14042_s1 + $0xc8] sm:$0xff]   ;;  %v10735_v10 = vld [vmem:[%s14042_s1 + $0xd0] sm:$0xff]   ;;  %v112_v37 = vunpack.c.0.s8 %v111_v33 }
   0x4   :  { %v10693_v3 = vld [vmem:[%s14042_s1 + $0x80] sm:$0xff]   ;;  %8642 = vmatprep.subr.bf16.mxu1 %v10687_v2  ;;  %8622 = vmatprep.subr.bf16.mxu0 %v10699_v4  ;;  %v10717_v7 = vld [vmem:[%s14042_s1 + $0x88] sm:$0xff]   ;;  %v10741_v11 = vld [vmem:[%s14042_s1 + $0x90] sm:$0xff]  }
   0x5   :  { %8643 = vmatpush3.bf16.msra.mxu1 %v10693_v3  ;;  %v10747_v12 = vld [vmem:[%s14042_s1 + $0x58] sm:$0xff]   ;;  %v10771_v16 = vld [vmem:[%s14042_s1 + $0x60] sm:$0xff]   ;;  %v10795_v20 = vld [vmem:[%s14042_s1 + $0x68] sm:$0xff]   ;;  %v10873_v39 = vsub.s32 %v112_v37, %v10859_v34 }
   0x6   :  { %8644 = vmatprep.subr.bf16.mxu1 %v10711_v6  ;;  %v10753_v13 = vld [vmem:[%s14042_s1 + $0x18] sm:$0xff]   ;;  %v10777_v17 = vld [vmem:[%s14042_s1 + $0x20] sm:$0xff]   ;;  %v10801_v21 = vld [vmem:[%s14042_s1 + $0x28] sm:$0xff]  }
   0x7   :  { %8623 = vmatpush3.bf16.msra.mxu0 %v10705_v5  ;;  %v10759_v14 = vld [vmem:[%s14042_s1 + $0xd8] sm:$0xff]   ;;  %v10783_v18 = vld [vmem:[%s14042_s1 + $0xe0] sm:$0xff]   ;;  %v10807_v22 = vld [vmem:[%s14042_s1 + $0xe8] sm:$0xff]  }
   0x8   :  { %8624 = vmatprep.subr.bf16.mxu0 %v10723_v8  ;;  %v10765_v15 = vld [vmem:[%s14042_s1 + $0x98] sm:$0xff]   ;;  %v10789_v19 = vld [vmem:[%s14042_s1 + $0xa0] sm:$0xff]   ;;  %v10813_v23 = vld [vmem:[%s14042_s1 + $0xa8] sm:$0xff]  }
   0x9   :  { %8645 = vmatpush3.bf16.msra.mxu1 %v10717_v7  ;;  %v10819_v24 = vld [vmem:[%s14042_s1 + $0x70] sm:$0xff]   ;;  %v10843_v28 = vld [vmem:[%s14042_s1 + $0x78] sm:$0xff]   ;;  %v28_v38 = vld [vmem:[%s14041_s0] sm:$0x1f] }
   0xa   :  { %8646 = vmatprep.subr.bf16.mxu1 %v10735_v10  ;;  %v10825_v25 = vld [vmem:[%s14042_s1 + $0x30] sm:$0xff]   ;;  %v10849_v30 = vld [vmem:[%s14042_s1 + $0x38] sm:$0xff]   ;;  %v10878_v40 = vld [vmem:[%s14041_s0 + $0x5] sm:$0x1f]  ;;  %v116_v41 = vrot.slane %v28_v38, %v10873_v39  ;;  %v109_v53 = vcombine.high %v28_v38, %v28_v38 }
   0xb   :  { %8625 = vmatpush3.bf16.msra.mxu0 %v10729_v9  ;;  %v10831_v26 = vld [vmem:[%s14042_s1 + $0xf0] sm:$0xff]   ;;  %v10855_v31 = vld [vmem:[%s14042_s1 + $0xf8] sm:$0xff]   ;;  %v520_v42 = vrot.slane %v10878_v40, %v10873_v39  ;;  %v9922_v45 = vld [vmem:[%s14042_s1 + $0x100] sm:$0xff]   ;;  %v513_v59 = vcombine.high %v10878_v40, %v10878_v40 }
   0xc   :  { %8626 = vmatprep.subr.bf16.mxu0 %v10747_v12  ;;  %v10837_v27 = vld [vmem:[%s14042_s1 + $0xb0] sm:$0xff]   ;;  %v10864_v35 = vld [vmem:[%s14042_s1 + $0xb8] sm:$0xff]   ;;  %v124_v43 = vcombine.high %v116_v41, %v116_v41  ;;  %v131_v44 = vrot.slane %v116_v41, %v10873_v39  ;;  %v9923_v50 = vld [vmem:[%s14042_s1 + $0x108] sm:$0xff]   ;;  %v123_v55 = vrot.slane %v109_v53, %v10873_v39 }
   0xd   :  { %8647 = vmatpush3.bf16.msra.mxu1 %v10741_v11  ;;  %v528_v46 = vcombine.high %v520_v42, %v520_v42  ;;  %v9924_v52 = vld [vmem:[%s14042_s1 + $0x110] sm:$0xff]   ;;  %v9925_v54 = vld [vmem:[%s14042_s1 + $0x118] sm:$0xff]   ;;  %v535_v58 = vrot.slane %v520_v42, %v10873_v39  ;;  %v527_v60 = vrot.slane %v513_v59, %v10873_v39 }
   0xe   :  { %8648 = vmatprep.subr.bf16.mxu1 %v10759_v14  ;;  %v145_v47 = vrot.slane %v124_v43, %v10873_v39  ;;  %v146_v48 = vcombine.high %v131_v44, %v131_v44  ;;  %v138_v56 = vrot.slane %v123_v55, %v10873_v39 }
   0xf   :  { %8627 = vmatpush3.bf16.msra.mxu0 %v10753_v13  ;;  %v549_v51 = vrot.slane %v528_v46, %v10873_v39  ;;  %v550_v61 = vcombine.high %v535_v58, %v535_v58  ;;  %v542_v62 = vrot.slane %v527_v60, %v10873_v39 }
  0x10   :  { %8628 = vmatprep.subr.bf16.mxu0 %v10771_v16  ;;  %404 = vmatprep.mubr.bf16.mxu0 %v145_v47  ;;  %v147_v49 = vcombine.high %v145_v47, %v145_v47 }
  0x11   :  { %8649 = vmatpush3.bf16.msra.mxu1 %v10765_v15  ;;  %v551_v57 = vcombine.high %v549_v51, %v549_v51 }
  0x12   :  { %8650 = vmatprep.subr.bf16.mxu1 %v10783_v18  ;;  %444 = vmatprep.mubr.bf16.mxu1 %v147_v49 }
  0x13   :  { %8629 = vmatpush3.bf16.msra.mxu0 %v10777_v17 }
  0x14   :  { %8630 = vmatprep.subr.bf16.mxu0 %v10795_v20 }
  0x15   :  { %8651 = vmatpush3.bf16.msra.mxu1 %v10789_v19 }
  0x16   :  { %8652 = vmatprep.subr.bf16.mxu1 %v10807_v22 }
  0x17   :  { %8631 = vmatpush3.bf16.msra.mxu0 %v10801_v21 }
  0x18   :  { %8632 = vmatprep.subr.bf16.mxu0 %v10819_v24 }
  0x19   :  { %8653 = vmatpush3.bf16.msra.mxu1 %v10813_v23 }
  0x1a   :  { %8654 = vmatprep.subr.bf16.mxu1 %v10831_v26 }
  0x1b   :  { %8633 = vmatpush3.bf16.msra.mxu0 %v10825_v25 }
  0x1c   :  { %8634 = vmatprep.subr.bf16.mxu0 %v10843_v28 }
  0x1d   :  { %8655 = vmatpush3.bf16.msra.mxu1 %v10837_v27 }
  0x1e   :  { %8656 = vmatprep.subr.bf16.mxu1 %v10855_v31 }
  0x1f   :  { %8635 = vmatpush3.bf16.msra.mxu0 %v10849_v30 }
  0x20   :  { %9644 = vmatprep.subr.bf16.mxu0 %v10629_v36 }
  0x21   :  { %8657 = vmatpush3.bf16.msra.mxu1 %v10864_v35 }
  0x22   :  { %8669 = vmatprep.subr.bf16.mxu1 %v10676_v0  ;;  %405 = vmatmul.mubr.bf16.vlgmr.msra.gmra.mrb[0].mxu0 %v131_v44 }
  0x23   :  { %9645 = vmatpush3.bf16.msra.mxu0 %v9922_v45  ;;  %9652 = vmatprep.mubr.msk.bf16.mxu0 %vm10630_vm0, %v10629_v36 }
  0x24   :  { %445 = vmatmul.mubr.bf16.vlgmr.msra.gmra.mrb[0].mxu1 %v146_v48  ;;  %9646 = vmatprep.subr.bf16.mxu0 %v10629_v36 }
  0x25   :  { %8670 = vmatpush3.bf16.msra.mxu1 %v10681_v1  ;;  %591 = vmatprep.mubr.bf16.mxu1 %v549_v51 }
  0x26   :  { %8671 = vmatprep.subr.bf16.mxu1 %v10699_v4 }
  0x27   :  { %9647 = vmatpush3.bf16.msra.mxu0 %v9923_v50 }
  0x28   :  { %9648 = vmatprep.subr.bf16.mxu0 %v10629_v36 }
  0x29   :  { %8672 = vmatpush3.bf16.msra.mxu1 %v10705_v5 }
  0x2a   :  { %8673 = vmatprep.subr.bf16.mxu1 %v10723_v8 }
  0x2b   :  { %9649 = vmatpush3.bf16.msra.mxu0 %v9924_v52 }
  0x2c   :  { %9650 = vmatprep.subr.bf16.mxu0 %v10629_v36 }
  0x2d   :  { %8674 = vmatpush3.bf16.msra.mxu1 %v10729_v9 }
  0x2e   :  { %8675 = vmatprep.subr.bf16.mxu1 %v10747_v12 }
  0x2f   :  { %9651 = vmatpush3.bf16.msra.mxu0 %v9925_v54 }
  0x30   :  { %8691 = vmatprep.subr.bf16.mxu0 %v10687_v2 }
  0x31   :  { %8676 = vmatpush3.bf16.msra.mxu1 %v10753_v13 }
  0x32   :  { %9653 = vmatmul.mubr.msk.bf16.vlgmr.msra.gmra.mrb[4].mxu0 %vm368_vm1, %v138_v56  ;;  %8677 = vmatprep.subr.bf16.mxu1 %v10771_v16 }
  0x33   :  { %8692 = vmatpush3.bf16.msra.mxu0 %v10693_v3  ;;  %631 = vmatprep.mubr.bf16.mxu0 %v551_v57 }
  0x34   :  { %8693 = vmatprep.subr.bf16.mxu0 %v10711_v6 }
  0x35   :  { %8678 = vmatpush3.bf16.msra.mxu1 %v10777_v17 }
  0x36   :  { %8679 = vmatprep.subr.bf16.mxu1 %v10795_v20 }
  0x37   :  { %8694 = vmatpush3.bf16.msra.mxu0 %v10717_v7 }
  0x38   :  { %8695 = vmatprep.subr.bf16.mxu0 %v10735_v10 }
  0x39   :  { %8680 = vmatpush3.bf16.msra.mxu1 %v10801_v21 }
  0x3a   :  { %8681 = vmatprep.subr.bf16.mxu1 %v10819_v24 }
  0x3b   :  { %8696 = vmatpush3.bf16.msra.mxu0 %v10741_v11 }
  0x3c   :  { %8697 = vmatprep.subr.bf16.mxu0 %v10759_v14 }
  0x3d   :  { %8682 = vmatpush3.bf16.msra.mxu1 %v10825_v25 }
  0x3e   :  { %8683 = vmatprep.subr.bf16.mxu1 %v10843_v28 }
  0x3f   :  { %8698 = vmatpush3.bf16.msra.mxu0 %v10765_v15 }
  0x40   :  { %8699 = vmatprep.subr.bf16.mxu0 %v10783_v18 }
  0x41   :  { %8684 = vmatpush3.bf16.msra.mxu1 %v10849_v30 }
  0x42   :  { %9656 = vmatprep.subr.bf16.mxu1 %v10629_v36 }
  0x43   :  { %8700 = vmatpush3.bf16.msra.mxu0 %v10789_v19 }
  0x44   :  { %592 = vmatmul.mubr.bf16.vlgmr.msra.gmra.mrb[4].mxu1 %v535_v58  ;;  %8701 = vmatprep.subr.bf16.mxu0 %v10807_v22 }
  0x45   :  { %9657 = vmatpush3.bf16.msra.mxu1 %v9922_v45  ;;  %9664 = vmatprep.mubr.msk.bf16.mxu1 %vm10630_vm0, %v10629_v36 }
  0x46   :  { %9658 = vmatprep.subr.bf16.mxu1 %v10629_v36 }
  0x47   :  { %8702 = vmatpush3.bf16.msra.mxu0 %v10813_v23 }
  0x48   :  { %8703 = vmatprep.subr.bf16.mxu0 %v10831_v26 }
  0x49   :  { %9659 = vmatpush3.bf16.msra.mxu1 %v9923_v50 }
  0x4a   :  { %9660 = vmatprep.subr.bf16.mxu1 %v10629_v36 }
  0x4b   :  { %8704 = vmatpush3.bf16.msra.mxu0 %v10837_v27 }
  0x4c   :  { %8705 = vmatprep.subr.bf16.mxu0 %v10855_v31 }
  0x4d   :  { %9661 = vmatpush3.bf16.msra.mxu1 %v9924_v52 }
  0x4e   :  { %9662 = vmatprep.subr.bf16.mxu1 %v10629_v36 }
  0x4f   :  { %8706 = vmatpush3.bf16.msra.mxu0 %v10864_v35 }
  0x51   :  { %9663 = vmatpush3.bf16.msra.mxu1 %v9925_v54 }
  0x52   :  { %632 = vmatmul.mubr.bf16.vlgmr.msra.gmra.mrb[8].mxu0 %v550_v61 }
  0x54   :  { %9665 = vmatmul.mubr.msk.bf16.vlgmr.msra.gmra.mrb[8].mxu1 %vm368_vm1, %v542_v62 }
  0x55   :  { %12 = vsyncpa [#allocation3], 0  ;;  %v9927_v63 = vld [vmem:[%s14044_s3 + $0x80] ss:$16 sps:$4 sm:$0xff]   ;;  %v9929_v0 = vld [vmem:[%s14044_s3 + $0x84] ss:$16 sps:$4 sm:$0xff]  }
  0x56   :  { %v9930_v1 = vld [vmem:[%s14044_s3 + $0x88] ss:$16 sps:$4 sm:$0xff]   ;;  %v9932_v2 = vld [vmem:[%s14044_s3 + $0x8c] ss:$16 sps:$4 sm:$0xff]   ;;  %v9935_v3 = vld [vmem:[%s14044_s3 + $0xa4] ss:$16 sps:$4 sm:$0xff]   ;;  %781 = vmatprep.subr.bf16.mxu0 %v9929_v0 }
  0x57   :  { %v9938_v4 = vld [vmem:[%s14044_s3 + $0xac] ss:$16 sps:$4 sm:$0xff]   ;;  %822 = vmatprep.subr.bf16.mxu1 %v9932_v2  ;;  %782 = vmatpush1.bf16.msra.mxu0 %v9927_v63  ;;  %v9933_v5 = vld [vmem:[%s14044_s3 + $0xa0] ss:$16 sps:$4 sm:$0xff]   ;;  %v9936_v6 = vld [vmem:[%s14044_s3 + $0xa8] ss:$16 sps:$4 sm:$0xff]  }
  0x58   :  { %823 = vmatpush1.bf16.msra.mxu1 %v9930_v1  ;;  %783 = vmatprep.subr.bf16.mxu0 %v9935_v3  ;;  %v9941_v7 = vld [vmem:[%s14044_s3 + $0xc4] ss:$16 sps:$4 sm:$0xff]   ;;  %v9944_v8 = vld [vmem:[%s14044_s3 + $0xcc] ss:$16 sps:$4 sm:$0xff]   ;;  %v9939_v9 = vld [vmem:[%s14044_s3 + $0xc0] ss:$16 sps:$4 sm:$0xff]  }
  0x59   :  { %824 = vmatprep.subr.bf16.mxu1 %v9938_v4  ;;  %v9942_v10 = vld [vmem:[%s14044_s3 + $0xc8] ss:$16 sps:$4 sm:$0xff]   ;;  %v9947_v11 = vld [vmem:[%s14044_s3 + $0xe4] ss:$16 sps:$4 sm:$0xff]   ;;  %v9950_v12 = vld [vmem:[%s14044_s3 + $0xec] ss:$16 sps:$4 sm:$0xff]  }
  0x5a   :  { %v9945_v13 = vld [vmem:[%s14044_s3 + $0xe0] ss:$16 sps:$4 sm:$0xff]   ;;  %v9948_v14 = vld [vmem:[%s14044_s3 + $0xe8] ss:$16 sps:$4 sm:$0xff]   ;;  %v9953_v15 = vld [vmem:[%s14044_s3 + $0x4] ss:$16 sps:$4 sm:$0xff]  }
  0x5b   :  { %784 = vmatpush1.bf16.msra.mxu0 %v9933_v5  ;;  %v9956_v16 = vld [vmem:[%s14044_s3 + $0xc] ss:$16 sps:$4 sm:$0xff]   ;;  %v10631_v17 = vmov 0   ;;  %v11008_v19 = vld [vmem:[%s14043_s2] ss:$0 sm:$0xff]  ;;  %s10632_s9 = smov [#allocation2]  }
  0x5c   :  { %825 = vmatpush1.bf16.msra.mxu1 %v9936_v6  ;;  %785 = vmatprep.subr.bf16.mxu0 %v9941_v7  ;;  %v9951_v57 = vld [vmem:[%s14044_s3] ss:$16 sps:$4 sm:$0xff]   ;;  %v9954_v58 = vld [vmem:[%s14044_s3 + $0x8] ss:$16 sps:$4 sm:$0xff]   ;;  %v9959_v60 = vld [vmem:[%s14044_s3 + $0x24] ss:$16 sps:$4 sm:$0xff]  }
  0x5d   :  { %826 = vmatprep.subr.bf16.mxu1 %v9944_v8  ;;  %813 = vmatprep.mubr.bf16.mxu0 %v10631_v17  ;;  %v9962_v61 = vld [vmem:[%s14044_s3 + $0x2c] ss:$16 sps:$4 sm:$0xff]   ;;  %v9957_v63 = vld [vmem:[%s14044_s3 + $0x20] ss:$16 sps:$4 sm:$0xff]   ;;  %v9960_v0 = vld [vmem:[%s14044_s3 + $0x28] ss:$16 sps:$4 sm:$0xff]  }
  0x5e   :  { %854 = vmatprep.mubr.bf16.mxu1 %v10631_v17  ;;  %v11029_v62 = vld [vmem:[%s14041_s0 + $0xa] sm:$0x1f]  ;;  %v9965_v1 = vld [vmem:[%s14044_s3 + $0x44] ss:$16 sps:$4 sm:$0xff]   ;;  %v9963_v4 = vld [vmem:[%s14044_s3 + $0x40] ss:$16 sps:$4 sm:$0xff]  }
  0x5f   :  { %786 = vmatpush1.bf16.msra.mxu0 %v9939_v9  ;;  %v9968_v2 = vld [vmem:[%s14044_s3 + $0x4c] ss:$16 sps:$4 sm:$0xff]   ;;  %v11047_v3 = vrot.slane %v11029_v62, %v10873_v39  ;;  %v9966_v5 = vld [vmem:[%s14044_s3 + $0x48] ss:$16 sps:$4 sm:$0xff]   ;;  %v9971_v6 = vld [vmem:[%s14044_s3 + $0x64] ss:$16 sps:$4 sm:$0xff]  }
  0x60   :  { %827 = vmatpush1.bf16.msra.mxu1 %v9942_v10  ;;  %787 = vmatprep.subr.bf16.mxu0 %v9947_v11  ;;  %v9974_v7 = vld [vmem:[%s14044_s3 + $0x6c] ss:$16 sps:$4 sm:$0xff]   ;;  %v9969_v9 = vld [vmem:[%s14044_s3 + $0x60] ss:$16 sps:$4 sm:$0xff]   ;;  %v9972_v10 = vld [vmem:[%s14044_s3 + $0x68] ss:$16 sps:$4 sm:$0xff]  }
  0x61   :  { %828 = vmatprep.subr.bf16.mxu1 %v9950_v12  ;;  %v1046_v8 = vcombine.high %v11047_v3, %v11047_v3  ;;  %s7839_s10 = sshll.u32 %s10632_s9, 4  ;;  %vm7831_vm2 = vcmask 9216   ;;  %s7840_s10 = int_to_ptr.vmem [resolvable:$true] %s7839_s10 }
  0x62   :  { %s10604_s11 = scalar_lea.vmem %s7840_s10, 32  ;;  %p10609_p1 = scmp.lt.s32.totalorder %s7840_s10, %s7840_s10 }
  0x63   :  { %788 = vmatpush1.bf16.msra.mxu0 %v9945_v13  ;;  %v1067_v12 = vrot.slane %v1046_v8, %v10873_v39  ;;  %v9991_v8 = vld [vmem:[%s14044_s3 + $0x148] ss:$16 sps:$4 sm:$0xff]   ;;  %p10605_p0 = scmp.ne.s32.totalorder %s7840_s10, %s10604_s11  ;;  %p10610_p2 = scmp.lt.s32.totalorder %s10604_s11, %s10604_s11 }
  0x64   :  { %829 = vmatpush1.bf16.msra.mxu1 %v9948_v14  ;;  %946 = vmatprep.subr.bf16.mxu0 %v9953_v15  ;;  %v11073_v14 = vld [vmem:[%s14042_s1 + $0x40] sm:$0xff]  }
  0x65   :  { %987 = vmatprep.subr.bf16.mxu1 %v9956_v16  ;;  %v11079_v15 = vld [vmem:[%s14042_s1 + $0xc0] sm:$0xff]   ;;  %v1069_v16 = vcombine.high %v1067_v12, %v1067_v12  ;;  %p10611_p3 = por %p10610_p2, %p10609_p1 }
  0x67   :  { %p10612_p4 = pnand %p10611_p3, %p10605_p0 }
  0xf5   :  { %v8636_v18 = vpop.f32.mrb[0].mxu0 }
  0xf6   :  { %v8637_v20 = vpop.f32.mrb[1].mxu0 }
  0xf7   :  { %v8638_v21 = vadd.f32 %v8637_v20, %v8636_v18  ;;  %v8639_v22 = vpop.f32.mrb[2].mxu0  ;;  %v8658_v23 = vpop.f32.mrb[0].mxu1  ;;  %v11087_v18 = vld [vmem:[%s14042_s1] sm:$0xff]  }
  0xf8   :  { %v8640_v24 = vpop.f32.mrb[3].mxu0  ;;  %v8659_v25 = vpop.f32.mrb[1].mxu1  ;;  %v11093_v20 = vld [vmem:[%s14042_s1 + $0x80] sm:$0xff]   ;;  %v11105_v22 = vld [vmem:[%s14042_s1 + $0xc8] sm:$0xff]  }
  0xf9   :  { %v407_v26 = vadd.f32 %v8638_v21, %v11008_v19  ;;  %v8660_v27 = vadd.f32 %v8659_v25, %v8658_v23  ;;  %v8661_v28 = vpop.f32.mrb[2].mxu1  ;;  %v11099_v21 = vld [vmem:[%s14042_s1 + $0x48] sm:$0xff]   ;;  %v11123_v25 = vld [vmem:[%s14042_s1 + $0x50] sm:$0xff]  }
  0xfa   :  { %v8662_v29 = vpop.f32.mrb[3].mxu1  ;;  %v11111_v23 = vld [vmem:[%s14042_s1 + $0x8] sm:$0xff]   ;;  %v11141_v28 = vld [vmem:[%s14042_s1 + $0x90] sm:$0xff]  }
  0xfb   :  { %v447_v30 = vadd.f32 %v8660_v27, %v407_v26  ;;  %v11117_v24 = vld [vmem:[%s14042_s1 + $0x88] sm:$0xff]   ;;  %v11129_v26 = vld [vmem:[%s14042_s1 + $0xd0] sm:$0xff]   ;;  %v11147_v29 = vld [vmem:[%s14042_s1 + $0x58] sm:$0xff]  }
  0xfc   :  { %v11135_v27 = vld [vmem:[%s14042_s1 + $0x10] sm:$0xff]  }
 0x105   :  { %v486_v31 = vpop.f32.mrb[4].mxu0 }
 0x106   :  { %v487_v32 = vadd.f32 %v486_v31, %v447_v30  ;;  %v9654_v33 = vpop.f32.mrb[5].mxu0  ;;  %v11153_v30 = vld [vmem:[%s14042_s1 + $0xd8] sm:$0xff]  }
 0x107   :  { %v489_v35 = vpop.f32.mrb[6].mxu0  ;;  %v11159_v31 = vld [vmem:[%s14042_s1 + $0x18] sm:$0xff]   ;;  %v11171_v33 = vld [vmem:[%s14042_s1 + $0x60] sm:$0xff]  }
 0x108   :  { %v9655_v37 = vpop.f32.mrb[7].mxu0  ;;  %v492_v11 = vmax.f32 %v487_v32, 0.0  ;;  %v11165_v32 = vld [vmem:[%s14042_s1 + $0x98] sm:$0xff]   ;;  %v11177_v35 = vld [vmem:[%s14042_s1 + $0xe0] sm:$0xff]  }
 0x109   :  { %v11183_v37 = vld [vmem:[%s14042_s1 + $0x20] sm:$0xff]  }
 0x10a   :  { %v493_v13 = vpack.c.bf16 %v492_v11, %v492_v11  ;;  %v9999_v11 = vld [vmem:[%s14044_s3 + $0x16c] ss:$16 sps:$4 sm:$0xff]  }
 0x117   :  { %v8685_v38 = vpop.f32.mrb[4].mxu1 }
 0x118   :  { %v8686_v40 = vpop.f32.mrb[5].mxu1 }
 0x119   :  { %v8687_v41 = vadd.f32 %v8686_v40, %v8685_v38  ;;  %v8688_v42 = vpop.f32.mrb[6].mxu1  ;;  %v11189_v38 = vld [vmem:[%s14042_s1 + $0xa0] sm:$0xff]   ;;  %v11195_v40 = vld [vmem:[%s14042_s1 + $0x68] sm:$0xff]  }
 0x11a   :  { %v8689_v43 = vpop.f32.mrb[7].mxu1  ;;  %v11207_v42 = vld [vmem:[%s14042_s1 + $0x28] sm:$0xff]  }
 0x11b   :  { %v594_v46 = vadd.f32 %v8687_v41, %v11008_v19  ;;  %v11201_v41 = vld [vmem:[%s14042_s1 + $0xe8] sm:$0xff]  }
 0x11c   :  { %v11213_v43 = vld [vmem:[%s14042_s1 + $0xa8] sm:$0xff]  }
 0x125   :  { %v8707_v44 = vpop.f32.mrb[8].mxu0 }
 0x126   :  { %v8708_v45 = vpop.f32.mrb[9].mxu0 }
 0x127   :  { %v8709_v47 = vadd.f32 %v8708_v45, %v8707_v44  ;;  %v8710_v48 = vpop.f32.mrb[10].mxu0  ;;  %v673_v49 = vpop.f32.mrb[8].mxu1  ;;  %v11219_v44 = vld [vmem:[%s14042_s1 + $0x70] sm:$0xff]  }
 0x128   :  { %v8711_v50 = vpop.f32.mrb[11].mxu0  ;;  %v9666_v51 = vpop.f32.mrb[9].mxu1  ;;  %v11225_v45 = vld [vmem:[%s14042_s1 + $0xf0] sm:$0xff]  }
 0x129   :  { %v634_v52 = vadd.f32 %v8709_v47, %v594_v46  ;;  %v676_v53 = vpop.f32.mrb[10].mxu1  ;;  %v1053_v46 = vrot.slane %v11047_v3, %v10873_v39  ;;  %v11233_v47 = vld [vmem:[%s14042_s1 + $0x30] sm:$0xff]   ;;  %v11251_v50 = vld [vmem:[%s14042_s1 + $0xf8] sm:$0xff]  }
 0x12a   :  { %v9667_v54 = vpop.f32.mrb[11].mxu1  ;;  %v11239_v48 = vld [vmem:[%s14042_s1 + $0xb0] sm:$0xff]   ;;  %v11263_v53 = vld [vmem:[%s14042_s1 + $0xb8] sm:$0xff]  }
 0x12b   :  { %v674_v55 = vadd.f32 %v673_v49, %v634_v52  ;;  %v11245_v49 = vld [vmem:[%s14042_s1 + $0x78] sm:$0xff]   ;;  %v1068_v51 = vcombine.high %v1053_v46, %v1053_v46  ;;  %v11270_v54 = vld [vmem:[%s14042_s1 + $0x100] sm:$0xff]  }
 0x12c   :  { %v11257_v52 = vld [vmem:[%s14042_s1 + $0x38] sm:$0xff]   ;;  %v9982_v3 = vld [vmem:[%s14044_s3 + $0x120] ss:$16 sps:$4 sm:$0xff]  }
 0x12d   :  { %v679_v56 = vmax.f32 %v674_v55, 0.0  ;;  %v1031_v55 = vcombine.high %v11029_v62, %v11029_v62  ;;  %v9978_v62 = vld [vmem:[%s14044_s3 + $0x104] ss:$16 sps:$4 sm:$0xff]  }
 0x12f   :  { %v680_v59 = vpack.c.bf16 %v679_v56, %v679_v56  ;;  %v11282_v56 = vld [vmem:[%s14042_s1 + $0x108] sm:$0xff]  }
 0x131   :  { %7919 = vmatmul.mubr.msk.bf16.vlgmr.msra.gmra.mrb[12].mxu0 %vm368_vm1, %v680_v59  ;;  %7920 = vmatmul.mubr.msk.bf16.vlgmr.msra.gmra.mrb[12].mxu1 %vm368_vm1, %v680_v59 }
 0x132   :  { %947 = vmatpush1.bf16.msra.mxu0 %v9951_v57  ;;  %988 = vmatpush1.bf16.msra.mxu1 %v9954_v58  ;;  %v1045_v57 = vrot.slane %v1031_v55, %v10873_v39  ;;  %v11290_v58 = vld [vmem:[%s14042_s1 + $0x110] sm:$0xff]  }
 0x133   :  { %948 = vmatprep.subr.bf16.mxu0 %v9959_v60  ;;  %989 = vmatprep.subr.bf16.mxu1 %v9962_v61  ;;  %v11298_v60 = vld [vmem:[%s14042_s1 + $0x118] sm:$0xff]   ;;  %v9976_v61 = vld [vmem:[%s14044_s3 + $0x100] ss:$16 sps:$4 sm:$0xff]  }
 0x134   :  { %978 = vmatprep.mubr.bf16.mxu0 %v10631_v17  ;;  %1019 = vmatprep.mubr.bf16.mxu1 %v10631_v17  ;;  %v1060_v59 = vrot.slane %v1045_v57, %v10873_v39 }
 0x136   :  { %949 = vmatpush1.bf16.msra.mxu0 %v9957_v63  ;;  %990 = vmatpush1.bf16.msra.mxu1 %v9960_v0  ;;  %v9979_v63 = vld [vmem:[%s14044_s3 + $0x108] ss:$16 sps:$4 sm:$0xff]   ;;  %v9981_v0 = vld [vmem:[%s14044_s3 + $0x10c] ss:$16 sps:$4 sm:$0xff]  }
 0x137   :  { %950 = vmatprep.subr.bf16.mxu0 %v9965_v1  ;;  %991 = vmatprep.subr.bf16.mxu1 %v9968_v2  ;;  %v9984_v1 = vld [vmem:[%s14044_s3 + $0x124] ss:$16 sps:$4 sm:$0xff]   ;;  %v9987_v2 = vld [vmem:[%s14044_s3 + $0x12c] ss:$16 sps:$4 sm:$0xff]  }
 0x13a   :  { %951 = vmatpush1.bf16.msra.mxu0 %v9963_v4  ;;  %992 = vmatpush1.bf16.msra.mxu1 %v9966_v5  ;;  %v9985_v4 = vld [vmem:[%s14044_s3 + $0x128] ss:$16 sps:$4 sm:$0xff]   ;;  %v9990_v5 = vld [vmem:[%s14044_s3 + $0x144] ss:$16 sps:$4 sm:$0xff]  }
 0x13b   :  { %952 = vmatprep.subr.bf16.mxu0 %v9971_v6  ;;  %993 = vmatprep.subr.bf16.mxu1 %v9974_v7  ;;  %v9993_v6 = vld [vmem:[%s14044_s3 + $0x14c] ss:$16 sps:$4 sm:$0xff]   ;;  %v9988_v7 = vld [vmem:[%s14044_s3 + $0x140] ss:$16 sps:$4 sm:$0xff]  }
 0x13e   :  { %953 = vmatpush1.bf16.msra.mxu0 %v9969_v9  ;;  %994 = vmatpush1.bf16.msra.mxu1 %v9972_v10  ;;  %v9996_v9 = vld [vmem:[%s14044_s3 + $0x164] ss:$16 sps:$4 sm:$0xff]   ;;  %v9994_v10 = vld [vmem:[%s14044_s3 + $0x160] ss:$16 sps:$4 sm:$0xff]  }
 0x13f   :  { %8718 = vmatprep.subr.bf16.mxu0 %v11073_v14  ;;  %8740 = vmatprep.subr.bf16.mxu1 %v11079_v15 }
 0x141   :  { %7937 = vmatmul.mubr.msk.bf16.vlgmr.msra.gmra.mrb[16].mxu0 %vm368_vm1, %v493_v13  ;;  %7938 = vmatmul.mubr.msk.bf16.vlgmr.msra.gmra.mrb[16].mxu1 %vm368_vm1, %v493_v13 }
 0x142   :  { %8719 = vmatpush3.bf16.msra.mxu0 %v11087_v18  ;;  %8741 = vmatpush3.bf16.msra.mxu1 %v11093_v20 }
 0x143   :  { %8720 = vmatprep.subr.bf16.mxu0 %v11099_v21  ;;  %8742 = vmatprep.subr.bf16.mxu1 %v11105_v22 }
 0x144   :  { %1109 = vmatprep.mubr.bf16.mxu0 %v1067_v12  ;;  %1149 = vmatprep.mubr.bf16.mxu1 %v1069_v16  ;;  %v9997_v12 = vld [vmem:[%s14044_s3 + $0x168] ss:$16 sps:$4 sm:$0xff]  }
 0x146   :  { %8721 = vmatpush3.bf16.msra.mxu0 %v11111_v23  ;;  %8743 = vmatpush3.bf16.msra.mxu1 %v11117_v24 }
 0x147   :  { %8722 = vmatprep.subr.bf16.mxu0 %v11123_v25  ;;  %8744 = vmatprep.subr.bf16.mxu1 %v11129_v26 }
 0x14a   :  { %8723 = vmatpush3.bf16.msra.mxu0 %v11135_v27  ;;  %8745 = vmatpush3.bf16.msra.mxu1 %v11141_v28 }
 0x14b   :  { %8724 = vmatprep.subr.bf16.mxu0 %v11147_v29  ;;  %8746 = vmatprep.subr.bf16.mxu1 %v11153_v30 }
 0x14e   :  { %8725 = vmatpush3.bf16.msra.mxu0 %v11159_v31  ;;  %8747 = vmatpush3.bf16.msra.mxu1 %v11165_v32 }
 0x14f   :  { %8726 = vmatprep.subr.bf16.mxu0 %v11171_v33  ;;  %8748 = vmatprep.subr.bf16.mxu1 %v11177_v35 }
 0x152   :  { %8727 = vmatpush3.bf16.msra.mxu0 %v11183_v37  ;;  %8749 = vmatpush3.bf16.msra.mxu1 %v11189_v38 }
 0x153   :  { %8728 = vmatprep.subr.bf16.mxu0 %v11195_v40  ;;  %8750 = vmatprep.subr.bf16.mxu1 %v11201_v41 }
 0x156   :  { %8729 = vmatpush3.bf16.msra.mxu0 %v11207_v42  ;;  %8751 = vmatpush3.bf16.msra.mxu1 %v11213_v43 }
 0x157   :  { %8730 = vmatprep.subr.bf16.mxu0 %v11219_v44  ;;  %8752 = vmatprep.subr.bf16.mxu1 %v11225_v45 }
 0x15a   :  { %8731 = vmatpush3.bf16.msra.mxu0 %v11233_v47  ;;  %8753 = vmatpush3.bf16.msra.mxu1 %v11239_v48 }
 0x15b   :  { %8732 = vmatprep.subr.bf16.mxu0 %v11245_v49  ;;  %8754 = vmatprep.subr.bf16.mxu1 %v11251_v50 }
 0x15e   :  { %8733 = vmatpush3.bf16.msra.mxu0 %v11257_v52  ;;  %8755 = vmatpush3.bf16.msra.mxu1 %v11263_v53 }
 0x15f   :  { %9668 = vmatprep.subr.bf16.mxu0 %v10629_v36  ;;  %1299 = vmatprep.subr.bf16.mxu1 %v9978_v62 }
 0x161   :  { %1110 = vmatmul.mubr.bf16.vlgmr.msra.gmra.mrb[20].mxu0 %v1053_v46  ;;  %1150 = vmatmul.mubr.bf16.vlgmr.msra.gmra.mrb[20].mxu1 %v1068_v51 }
 0x162   :  { %9669 = vmatpush3.bf16.msra.mxu0 %v11270_v54  ;;  %9676 = vmatprep.mubr.msk.bf16.mxu0 %vm10630_vm0, %v10629_v36 }
 0x163   :  { %9670 = vmatprep.subr.bf16.mxu0 %v10629_v36  ;;  %1331 = vmatprep.mubr.bf16.mxu1 %v10631_v17 }
 0x164   :  { %1300 = vmatpush1.bf16.msra.mxu1 %v9976_v61 }
 0x165   :  { %1301 = vmatprep.subr.bf16.mxu1 %v9984_v1 }
 0x166   :  { %9671 = vmatpush3.bf16.msra.mxu0 %v11282_v56 }
 0x167   :  { %9672 = vmatprep.subr.bf16.mxu0 %v10629_v36 }
 0x168   :  { %1302 = vmatpush1.bf16.msra.mxu1 %v9982_v3 }
 0x169   :  { %1303 = vmatprep.subr.bf16.mxu1 %v9990_v5 }
 0x16a   :  { %9673 = vmatpush3.bf16.msra.mxu0 %v11290_v58 }
 0x16b   :  { %9674 = vmatprep.subr.bf16.mxu0 %v10629_v36 }
 0x16c   :  { %1304 = vmatpush1.bf16.msra.mxu1 %v9988_v7 }
 0x16d   :  { %1305 = vmatprep.subr.bf16.mxu1 %v9996_v9 }
 0x16e   :  { %9675 = vmatpush3.bf16.msra.mxu0 %v11298_v60 }
 0x16f   :  { %1340 = vmatprep.subr.bf16.mxu0 %v9981_v0 }
 0x170   :  { %1306 = vmatpush1.bf16.msra.mxu1 %v9994_v10 }
 0x171   :  { %9677 = vmatmul.mubr.msk.bf16.vlgmr.msra.gmra.mrb[24].mxu0 %vm368_vm1, %v1060_v59  ;;  %8767 = vmatprep.subr.bf16.mxu1 %v11073_v14 }
 0x172   :  { %1372 = vmatprep.mubr.bf16.mxu0 %v10631_v17  ;;  %1341 = vmatpush1.bf16.msra.mxu0 %v9979_v63 }
 0x173   :  { %1342 = vmatprep.subr.bf16.mxu0 %v9987_v2 }
 0x176   :  { %1343 = vmatpush1.bf16.msra.mxu0 %v9985_v4 }
 0x177   :  { %1344 = vmatprep.subr.bf16.mxu0 %v9993_v6 }
 0x17a   :  { %1345 = vmatpush1.bf16.msra.mxu0 %v9991_v8 }
 0x17b   :  { %1346 = vmatprep.subr.bf16.mxu0 %v9999_v11 }
 0x17e   :  { %1347 = vmatpush1.bf16.msra.mxu0 %v9997_v12 }
 0x17f   :  { %8789 = vmatprep.subr.bf16.mxu0 %v11079_v15 }
 0x204   :  { %v815_v13 = vpop.f32.mrb[12].mxu0  ;;  %v856_v16 = vpop.f32.mrb[12].mxu1 }
 0x205   :  { %v817_v46 = vpop.f32.mrb[13].mxu0  ;;  %v858_v51 = vpop.f32.mrb[13].mxu1 }
 0x206   :  { %v819_v55 = vpop.f32.mrb[14].mxu0  ;;  %v860_v57 = vpop.f32.mrb[14].mxu1 }
 0x207   :  { %v820_v59 = vpop.f32.mrb[15].mxu0  ;;  %v861_v61 = vpop.f32.mrb[15].mxu1 }
 0x214   :  { %v980_v62 = vpop.f32.mrb[16].mxu0  ;;  %v1021_v63 = vpop.f32.mrb[16].mxu1 }
 0x215   :  { %v11353_v0 = vadd.f32 %v980_v62, %v815_v13  ;;  %v11355_v1 = vadd.f32 %v1021_v63, %v856_v16  ;;  %v982_v2 = vpop.f32.mrb[17].mxu0  ;;  %v1023_v3 = vpop.f32.mrb[17].mxu1 }
 0x216   :  { %v11357_v4 = vadd.f32 %v982_v2, %v817_v46  ;;  %v11359_v5 = vadd.f32 %v1023_v3, %v858_v51  ;;  %v984_v6 = vpop.f32.mrb[18].mxu0  ;;  %v1025_v7 = vpop.f32.mrb[18].mxu1  ;;  %v7975_v51 = vld [vmem:[%s14041_s0 + $0xf] sm:$0x1f] }
 0x217   :  { %v985_v8 = vpop.f32.mrb[19].mxu0  ;;  %v1026_v9 = vpop.f32.mrb[19].mxu1  ;;  %v1395_v2 = vrot.slane %v7975_v51, %v10873_v39 }
 0x219   :  { %v1403_v3 = vcombine.high %v1395_v2, %v1395_v2 }
 0x234   :  { %v8734_v10 = vpop.f32.mrb[20].mxu0  ;;  %v8756_v11 = vpop.f32.mrb[20].mxu1 }
 0x235   :  { %v8735_v12 = vpop.f32.mrb[21].mxu0  ;;  %v8757_v55 = vpop.f32.mrb[21].mxu1 }
 0x236   :  { %v8736_v57 = vadd.f32 %v8735_v12, %v8734_v10  ;;  %v8737_v59 = vpop.f32.mrb[22].mxu0  ;;  %v8758_v13 = vadd.f32 %v8757_v55, %v8756_v11  ;;  %v8759_v61 = vpop.f32.mrb[22].mxu1  ;;  %v1424_v10 = vrot.slane %v1403_v3, %v10873_v39  ;;  %v10009_v3 = vld [vmem:[%s14044_s3 + $0x1a4] ss:$16 sps:$4 sm:$0xff]  }
 0x237   :  { %v8738_v16 = vpop.f32.mrb[23].mxu0  ;;  %v8760_v62 = vpop.f32.mrb[23].mxu1  ;;  %v1388_v61 = vcombine.high %v7975_v51, %v7975_v51  ;;  %v10004_v51 = vld [vmem:[%s14044_s3 + $0x188] ss:$16 sps:$4 sm:$0xff]  }
 0x238   :  { %v1112_v63 = vadd.f32 %v8736_v57, %v11008_v19  ;;  %v1426_v59 = vcombine.high %v1424_v10, %v1424_v10  ;;  %v1410_v57 = vrot.slane %v1395_v2, %v10873_v39  ;;  %v10006_v2 = vld [vmem:[%s14044_s3 + $0x18c] ss:$16 sps:$4 sm:$0xff]  }
 0x239   :  { %v1402_v16 = vrot.slane %v1388_v61, %v10873_v39 }
 0x23a   :  { %v1152_v46 = vadd.f32 %v8758_v13, %v1112_v63  ;;  %v1425_v13 = vcombine.high %v1410_v57, %v1410_v57  ;;  %v10001_v63 = vld [vmem:[%s14044_s3 + $0x180] ss:$16 sps:$4 sm:$0xff]  }
 0x23b   :  { %v1417_v62 = vrot.slane %v1402_v16, %v10873_v39 }
 0x244   :  { %v1191_v6 = vpop.f32.mrb[24].mxu0 }
 0x245   :  { %v1192_v7 = vadd.f32 %v1191_v6, %v1152_v46  ;;  %v9678_v8 = vpop.f32.mrb[25].mxu0  ;;  %v10003_v46 = vld [vmem:[%s14044_s3 + $0x184] ss:$16 sps:$4 sm:$0xff]   ;;  %v10012_v6 = vld [vmem:[%s14044_s3 + $0x1ac] ss:$16 sps:$4 sm:$0xff]  }
 0x246   :  { %v1194_v9 = vpop.f32.mrb[26].mxu0  ;;  %v10010_v8 = vld [vmem:[%s14044_s3 + $0x1a8] ss:$16 sps:$4 sm:$0xff]  }
 0x247   :  { %v1197_v11 = vmax.f32 %v1192_v7, 0.0  ;;  %v9679_v12 = vpop.f32.mrb[27].mxu0  ;;  %v10007_v7 = vld [vmem:[%s14044_s3 + $0x1a0] ss:$16 sps:$4 sm:$0xff]   ;;  %v10015_v9 = vld [vmem:[%s14044_s3 + $0x1c4] ss:$16 sps:$4 sm:$0xff]  }
 0x248   :  { %v10016_v12 = vld [vmem:[%s14044_s3 + $0x1c8] ss:$16 sps:$4 sm:$0xff]  }
 0x249   :  { %v1198_v55 = vpack.c.bf16 %v1197_v11, %v1197_v11  ;;  %v10013_v11 = vld [vmem:[%s14044_s3 + $0x1c0] ss:$16 sps:$4 sm:$0xff]  }
 0x24b   :  { %7973 = vmatmul.mubr.msk.bf16.vlgmr.msra.gmra.mrb[24].mxu1 %vm368_vm1, %v1198_v55  ;;  %7974 = vmatmul.mubr.msk.bf16.vlgmr.msra.gmra.mrb[28].mxu0 %vm368_vm1, %v1198_v55  ;;  %v10021_v55 = vld [vmem:[%s14044_s3 + $0x1e4] ss:$16 sps:$4 sm:$0xff]  }
 0x24c   :  { %8768 = vmatpush3.bf16.msra.mxu1 %v11087_v18  ;;  %8790 = vmatpush3.bf16.msra.mxu0 %v11093_v20 }
 0x24d   :  { %8769 = vmatprep.subr.bf16.mxu1 %v11099_v21  ;;  %8791 = vmatprep.subr.bf16.mxu0 %v11105_v22 }
 0x24e   :  { %1466 = vmatprep.mubr.bf16.mxu1 %v1424_v10  ;;  %1506 = vmatprep.mubr.bf16.mxu0 %v1426_v59  ;;  %v10018_v10 = vld [vmem:[%s14044_s3 + $0x1cc] ss:$16 sps:$4 sm:$0xff]   ;;  %v10019_v59 = vld [vmem:[%s14044_s3 + $0x1e0] ss:$16 sps:$4 sm:$0xff]  }
 0x250   :  { %8770 = vmatpush3.bf16.msra.mxu1 %v11111_v23  ;;  %8792 = vmatpush3.bf16.msra.mxu0 %v11117_v24 }
 0x251   :  { %8771 = vmatprep.subr.bf16.mxu1 %v11123_v25  ;;  %8793 = vmatprep.subr.bf16.mxu0 %v11129_v26 }
 0x254   :  { %8772 = vmatpush3.bf16.msra.mxu1 %v11135_v27  ;;  %8794 = vmatpush3.bf16.msra.mxu0 %v11141_v28 }
 0x255   :  { %8773 = vmatprep.subr.bf16.mxu1 %v11147_v29  ;;  %8795 = vmatprep.subr.bf16.mxu0 %v11153_v30 }
 0x258   :  { %8774 = vmatpush3.bf16.msra.mxu1 %v11159_v31  ;;  %8796 = vmatpush3.bf16.msra.mxu0 %v11165_v32 }
 0x259   :  { %8775 = vmatprep.subr.bf16.mxu1 %v11171_v33  ;;  %8797 = vmatprep.subr.bf16.mxu0 %v11177_v35 }
 0x25c   :  { %8776 = vmatpush3.bf16.msra.mxu1 %v11183_v37  ;;  %8798 = vmatpush3.bf16.msra.mxu0 %v11189_v38 }
 0x25d   :  { %8777 = vmatprep.subr.bf16.mxu1 %v11195_v40  ;;  %8799 = vmatprep.subr.bf16.mxu0 %v11201_v41 }
 0x260   :  { %8778 = vmatpush3.bf16.msra.mxu1 %v11207_v42  ;;  %8800 = vmatpush3.bf16.msra.mxu0 %v11213_v43 }
 0x261   :  { %8779 = vmatprep.subr.bf16.mxu1 %v11219_v44  ;;  %8801 = vmatprep.subr.bf16.mxu0 %v11225_v45 }
 0x264   :  { %8780 = vmatpush3.bf16.msra.mxu1 %v11233_v47  ;;  %8802 = vmatpush3.bf16.msra.mxu0 %v11239_v48 }
 0x265   :  { %8781 = vmatprep.subr.bf16.mxu1 %v11245_v49  ;;  %8803 = vmatprep.subr.bf16.mxu0 %v11251_v50 }
 0x268   :  { %8782 = vmatpush3.bf16.msra.mxu1 %v11257_v52  ;;  %8804 = vmatpush3.bf16.msra.mxu0 %v11263_v53 }
 0x269   :  { %9680 = vmatprep.subr.bf16.mxu1 %v10629_v36  ;;  %1656 = vmatprep.subr.bf16.mxu0 %v10003_v46 }
 0x26b   :  { %1467 = vmatmul.mubr.bf16.vlgmr.msra.gmra.mrb[28].mxu1 %v1410_v57  ;;  %1507 = vmatmul.mubr.bf16.vlgmr.msra.gmra.mrb[32].mxu0 %v1425_v13  ;;  %v10024_v57 = vld [vmem:[%s14044_s3 + $0x1ec] ss:$16 sps:$4 sm:$0xff]   ;;  %v10022_v13 = vld [vmem:[%s14044_s3 + $0x1e8] ss:$16 sps:$4 sm:$0xff]  }
 0x26c   :  { %9681 = vmatpush3.bf16.msra.mxu1 %v11270_v54  ;;  %9688 = vmatprep.mubr.msk.bf16.mxu1 %vm10630_vm0, %v10629_v36 }
 0x26d   :  { %9682 = vmatprep.subr.bf16.mxu1 %v10629_v36  ;;  %1688 = vmatprep.mubr.bf16.mxu0 %v10631_v17 }
 0x26e   :  { %1657 = vmatpush1.bf16.msra.mxu0 %v10001_v63 }
 0x26f   :  { %1658 = vmatprep.subr.bf16.mxu0 %v10009_v3 }
 0x270   :  { %9683 = vmatpush3.bf16.msra.mxu1 %v11282_v56 }
 0x271   :  { %9684 = vmatprep.subr.bf16.mxu1 %v10629_v36 }
 0x272   :  { %1659 = vmatpush1.bf16.msra.mxu0 %v10007_v7 }
 0x273   :  { %1660 = vmatprep.subr.bf16.mxu0 %v10015_v9 }
 0x274   :  { %9685 = vmatpush3.bf16.msra.mxu1 %v11290_v58 }
 0x275   :  { %9686 = vmatprep.subr.bf16.mxu1 %v10629_v36 }
 0x276   :  { %1661 = vmatpush1.bf16.msra.mxu0 %v10013_v11 }
 0x277   :  { %1662 = vmatprep.subr.bf16.mxu0 %v10021_v55 }
 0x278   :  { %9687 = vmatpush3.bf16.msra.mxu1 %v11298_v60 }
 0x279   :  { %1697 = vmatprep.subr.bf16.mxu1 %v10006_v2 }
 0x27a   :  { %1663 = vmatpush1.bf16.msra.mxu0 %v10019_v59 }
 0x27b   :  { %9689 = vmatmul.mubr.msk.bf16.vlgmr.msra.gmra.mrb[32].mxu1 %vm368_vm1, %v1417_v62  ;;  %8816 = vmatprep.subr.bf16.mxu0 %v11073_v14 }
 0x27c   :  { %1729 = vmatprep.mubr.bf16.mxu1 %v10631_v17  ;;  %1698 = vmatpush1.bf16.msra.mxu1 %v10004_v51 }
 0x27d   :  { %1699 = vmatprep.subr.bf16.mxu1 %v10012_v6 }
 0x280   :  { %1700 = vmatpush1.bf16.msra.mxu1 %v10010_v8 }
 0x281   :  { %1701 = vmatprep.subr.bf16.mxu1 %v10018_v10 }
 0x284   :  { %1702 = vmatpush1.bf16.msra.mxu1 %v10016_v12 }
 0x285   :  { %1703 = vmatprep.subr.bf16.mxu1 %v10024_v57 }
 0x288   :  { %1704 = vmatpush1.bf16.msra.mxu1 %v10022_v13 }
 0x289   :  { %8838 = vmatprep.subr.bf16.mxu1 %v11079_v15 }
 0x31e   :  { %v1333_v61 = vpop.f32.mrb[24].mxu1  ;;  %v1374_v16 = vpop.f32.mrb[28].mxu0 }
 0x31f   :  { %v11466_v62 = vadd.f32 %v1333_v61, %v11353_v0  ;;  %v11469_v63 = vadd.f32 %v1374_v16, %v11355_v1  ;;  %v1335_v46 = vpop.f32.mrb[25].mxu1  ;;  %v1376_v51 = vpop.f32.mrb[29].mxu0 }
 0x320   :  { %v11472_v2 = vadd.f32 %v1335_v46, %v11357_v4  ;;  %v11475_v3 = vadd.f32 %v1376_v51, %v11359_v5  ;;  %v1337_v6 = vpop.f32.mrb[26].mxu1  ;;  %v1378_v7 = vpop.f32.mrb[30].mxu0  ;;  %v8011_v5 = vld [vmem:[%s14041_s0 + $0x14] sm:$0x1f] }
 0x321   :  { %v1338_v8 = vpop.f32.mrb[27].mxu1  ;;  %v1379_v9 = vpop.f32.mrb[31].mxu0  ;;  %v1752_v46 = vrot.slane %v8011_v5, %v10873_v39 }
 0x323   :  { %v1760_v51 = vcombine.high %v1752_v46, %v1752_v46 }
 0x33e   :  { %v8783_v10 = vpop.f32.mrb[28].mxu1  ;;  %v8805_v11 = vpop.f32.mrb[32].mxu0 }
 0x33f   :  { %v8784_v12 = vpop.f32.mrb[29].mxu1  ;;  %v8806_v0 = vpop.f32.mrb[33].mxu0 }
 0x340   :  { %v8785_v55 = vadd.f32 %v8784_v12, %v8783_v10  ;;  %v8786_v59 = vpop.f32.mrb[30].mxu1  ;;  %v8807_v1 = vadd.f32 %v8806_v0, %v8805_v11  ;;  %v8808_v57 = vpop.f32.mrb[34].mxu0  ;;  %v1781_v10 = vrot.slane %v1760_v51, %v10873_v39  ;;  %v10034_v51 = vld [vmem:[%s14044_s3 + $0x224] ss:$16 sps:$4 sm:$0xff]  }
 0x341   :  { %v8787_v13 = vpop.f32.mrb[31].mxu1  ;;  %v8809_v61 = vpop.f32.mrb[35].mxu0  ;;  %v1745_v57 = vcombine.high %v8011_v5, %v8011_v5  ;;  %v10029_v5 = vld [vmem:[%s14044_s3 + $0x208] ss:$16 sps:$4 sm:$0xff]  }
 0x342   :  { %v1469_v4 = vadd.f32 %v8785_v55, %v11008_v19  ;;  %v1783_v59 = vcombine.high %v1781_v10, %v1781_v10  ;;  %v1767_v55 = vrot.slane %v1752_v46, %v10873_v39  ;;  %v10031_v46 = vld [vmem:[%s14044_s3 + $0x20c] ss:$16 sps:$4 sm:$0xff]  }
 0x343   :  { %v1759_v13 = vrot.slane %v1745_v57, %v10873_v39 }
 0x344   :  { %v1509_v16 = vadd.f32 %v8807_v1, %v1469_v4  ;;  %v1782_v1 = vcombine.high %v1767_v55, %v1767_v55  ;;  %v10026_v4 = vld [vmem:[%s14044_s3 + $0x200] ss:$16 sps:$4 sm:$0xff]  }
 0x345   :  { %v1774_v61 = vrot.slane %v1759_v13, %v10873_v39 }
 0x34e   :  { %v1548_v6 = vpop.f32.mrb[32].mxu1 }
 0x34f   :  { %v1549_v7 = vadd.f32 %v1548_v6, %v1509_v16  ;;  %v9690_v8 = vpop.f32.mrb[33].mxu1  ;;  %v10028_v16 = vld [vmem:[%s14044_s3 + $0x204] ss:$16 sps:$4 sm:$0xff]   ;;  %v10037_v6 = vld [vmem:[%s14044_s3 + $0x22c] ss:$16 sps:$4 sm:$0xff]  }
 0x350   :  { %v1551_v9 = vpop.f32.mrb[34].mxu1  ;;  %v10035_v8 = vld [vmem:[%s14044_s3 + $0x228] ss:$16 sps:$4 sm:$0xff]  }
 0x351   :  { %v1554_v11 = vmax.f32 %v1549_v7, 0.0  ;;  %v9691_v12 = vpop.f32.mrb[35].mxu1  ;;  %v10032_v7 = vld [vmem:[%s14044_s3 + $0x220] ss:$16 sps:$4 sm:$0xff]   ;;  %v10040_v9 = vld [vmem:[%s14044_s3 + $0x244] ss:$16 sps:$4 sm:$0xff]  }
 0x352   :  { %v10041_v12 = vld [vmem:[%s14044_s3 + $0x248] ss:$16 sps:$4 sm:$0xff]  }
 0x353   :  { %v1555_v0 = vpack.c.bf16 %v1554_v11, %v1554_v11  ;;  %v10038_v11 = vld [vmem:[%s14044_s3 + $0x240] ss:$16 sps:$4 sm:$0xff]  }
 0x355   :  { %8009 = vmatmul.mubr.msk.bf16.vlgmr.msra.gmra.mrb[36].mxu0 %vm368_vm1, %v1555_v0  ;;  %8010 = vmatmul.mubr.msk.bf16.vlgmr.msra.gmra.mrb[36].mxu1 %vm368_vm1, %v1555_v0  ;;  %v10046_v0 = vld [vmem:[%s14044_s3 + $0x264] ss:$16 sps:$4 sm:$0xff]  }
 0x356   :  { %8817 = vmatpush3.bf16.msra.mxu0 %v11087_v18  ;;  %8839 = vmatpush3.bf16.msra.mxu1 %v11093_v20 }
 0x357   :  { %8818 = vmatprep.subr.bf16.mxu0 %v11099_v21  ;;  %8840 = vmatprep.subr.bf16.mxu1 %v11105_v22 }
 0x358   :  { %1823 = vmatprep.mubr.bf16.mxu0 %v1781_v10  ;;  %1863 = vmatprep.mubr.bf16.mxu1 %v1783_v59  ;;  %v10043_v10 = vld [vmem:[%s14044_s3 + $0x24c] ss:$16 sps:$4 sm:$0xff]   ;;  %v10044_v59 = vld [vmem:[%s14044_s3 + $0x260] ss:$16 sps:$4 sm:$0xff]  }
 0x35a   :  { %8819 = vmatpush3.bf16.msra.mxu0 %v11111_v23  ;;  %8841 = vmatpush3.bf16.msra.mxu1 %v11117_v24 }
 0x35b   :  { %8820 = vmatprep.subr.bf16.mxu0 %v11123_v25  ;;  %8842 = vmatprep.subr.bf16.mxu1 %v11129_v26 }
 0x35e   :  { %8821 = vmatpush3.bf16.msra.mxu0 %v11135_v27  ;;  %8843 = vmatpush3.bf16.msra.mxu1 %v11141_v28 }
 0x35f   :  { %8822 = vmatprep.subr.bf16.mxu0 %v11147_v29  ;;  %8844 = vmatprep.subr.bf16.mxu1 %v11153_v30 }
 0x362   :  { %8823 = vmatpush3.bf16.msra.mxu0 %v11159_v31  ;;  %8845 = vmatpush3.bf16.msra.mxu1 %v11165_v32 }
 0x363   :  { %8824 = vmatprep.subr.bf16.mxu0 %v11171_v33  ;;  %8846 = vmatprep.subr.bf16.mxu1 %v11177_v35 }
 0x366   :  { %8825 = vmatpush3.bf16.msra.mxu0 %v11183_v37  ;;  %8847 = vmatpush3.bf16.msra.mxu1 %v11189_v38 }
 0x367   :  { %8826 = vmatprep.subr.bf16.mxu0 %v11195_v40  ;;  %8848 = vmatprep.subr.bf16.mxu1 %v11201_v41 }
 0x36a   :  { %8827 = vmatpush3.bf16.msra.mxu0 %v11207_v42  ;;  %8849 = vmatpush3.bf16.msra.mxu1 %v11213_v43 }
 0x36b   :  { %8828 = vmatprep.subr.bf16.mxu0 %v11219_v44  ;;  %8850 = vmatprep.subr.bf16.mxu1 %v11225_v45 }
 0x36e   :  { %8829 = vmatpush3.bf16.msra.mxu0 %v11233_v47  ;;  %8851 = vmatpush3.bf16.msra.mxu1 %v11239_v48 }
 0x36f   :  { %8830 = vmatprep.subr.bf16.mxu0 %v11245_v49  ;;  %8852 = vmatprep.subr.bf16.mxu1 %v11251_v50 }
 0x372   :  { %8831 = vmatpush3.bf16.msra.mxu0 %v11257_v52  ;;  %8853 = vmatpush3.bf16.msra.mxu1 %v11263_v53 }
 0x373   :  { %9692 = vmatprep.subr.bf16.mxu0 %v10629_v36  ;;  %2013 = vmatprep.subr.bf16.mxu1 %v10028_v16 }
 0x375   :  { %1824 = vmatmul.mubr.bf16.vlgmr.msra.gmra.mrb[40].mxu0 %v1767_v55  ;;  %1864 = vmatmul.mubr.bf16.vlgmr.msra.gmra.mrb[40].mxu1 %v1782_v1  ;;  %v10049_v55 = vld [vmem:[%s14044_s3 + $0x26c] ss:$16 sps:$4 sm:$0xff]   ;;  %v10047_v1 = vld [vmem:[%s14044_s3 + $0x268] ss:$16 sps:$4 sm:$0xff]  }
 0x376   :  { %9693 = vmatpush3.bf16.msra.mxu0 %v11270_v54  ;;  %9700 = vmatprep.mubr.msk.bf16.mxu0 %vm10630_vm0, %v10629_v36 }
 0x377   :  { %9694 = vmatprep.subr.bf16.mxu0 %v10629_v36  ;;  %2045 = vmatprep.mubr.bf16.mxu1 %v10631_v17 }
 0x378   :  { %2014 = vmatpush1.bf16.msra.mxu1 %v10026_v4 }
 0x379   :  { %2015 = vmatprep.subr.bf16.mxu1 %v10034_v51 }
 0x37a   :  { %9695 = vmatpush3.bf16.msra.mxu0 %v11282_v56 }
 0x37b   :  { %9696 = vmatprep.subr.bf16.mxu0 %v10629_v36 }
 0x37c   :  { %2016 = vmatpush1.bf16.msra.mxu1 %v10032_v7 }
 0x37d   :  { %2017 = vmatprep.subr.bf16.mxu1 %v10040_v9 }
 0x37e   :  { %9697 = vmatpush3.bf16.msra.mxu0 %v11290_v58 }
 0x37f   :  { %9698 = vmatprep.subr.bf16.mxu0 %v10629_v36 }
 0x380   :  { %2018 = vmatpush1.bf16.msra.mxu1 %v10038_v11 }
 0x381   :  { %2019 = vmatprep.subr.bf16.mxu1 %v10046_v0 }
 0x382   :  { %9699 = vmatpush3.bf16.msra.mxu0 %v11298_v60 }
 0x383   :  { %2054 = vmatprep.subr.bf16.mxu0 %v10031_v46 }
 0x384   :  { %2020 = vmatpush1.bf16.msra.mxu1 %v10044_v59 }
 0x385   :  { %9701 = vmatmul.mubr.msk.bf16.vlgmr.msra.gmra.mrb[44].mxu0 %vm368_vm1, %v1774_v61  ;;  %8865 = vmatprep.subr.bf16.mxu1 %v11073_v14 }
 0x386   :  { %2086 = vmatprep.mubr.bf16.mxu0 %v10631_v17  ;;  %2055 = vmatpush1.bf16.msra.mxu0 %v10029_v5 }
 0x387   :  { %2056 = vmatprep.subr.bf16.mxu0 %v10037_v6 }
 0x38a   :  { %2057 = vmatpush1.bf16.msra.mxu0 %v10035_v8 }
 0x38b   :  { %2058 = vmatprep.subr.bf16.mxu0 %v10043_v10 }
 0x38e   :  { %2059 = vmatpush1.bf16.msra.mxu0 %v10041_v12 }
 0x38f   :  { %2060 = vmatprep.subr.bf16.mxu0 %v10049_v55 }
 0x392   :  { %2061 = vmatpush1.bf16.msra.mxu0 %v10047_v1 }
 0x393   :  { %8887 = vmatprep.subr.bf16.mxu0 %v11079_v15 }
 0x428   :  { %v1690_v57 = vpop.f32.mrb[36].mxu0  ;;  %v1731_v13 = vpop.f32.mrb[36].mxu1 }
 0x429   :  { %v11582_v61 = vadd.f32 %v1690_v57, %v11466_v62  ;;  %v11585_v4 = vadd.f32 %v1731_v13, %v11469_v63  ;;  %v1692_v16 = vpop.f32.mrb[37].mxu0  ;;  %v1733_v5 = vpop.f32.mrb[37].mxu1 }
 0x42a   :  { %v11588_v46 = vadd.f32 %v1692_v16, %v11472_v2  ;;  %v11591_v51 = vadd.f32 %v1733_v5, %v11475_v3  ;;  %v1694_v6 = vpop.f32.mrb[38].mxu0  ;;  %v1735_v7 = vpop.f32.mrb[38].mxu1  ;;  %v8047_v3 = vld [vmem:[%s14041_s0 + $0x19] sm:$0x1f] }
 0x42b   :  { %v1695_v8 = vpop.f32.mrb[39].mxu0  ;;  %v1736_v9 = vpop.f32.mrb[39].mxu1  ;;  %v2109_v16 = vrot.slane %v8047_v3, %v10873_v39 }
 0x42d   :  { %v2117_v5 = vcombine.high %v2109_v16, %v2109_v16 }
 0x448   :  { %v8832_v10 = vpop.f32.mrb[40].mxu0  ;;  %v8854_v11 = vpop.f32.mrb[40].mxu1 }
 0x449   :  { %v8833_v12 = vpop.f32.mrb[41].mxu0  ;;  %v8855_v62 = vpop.f32.mrb[41].mxu1 }
 0x44a   :  { %v8834_v0 = vadd.f32 %v8833_v12, %v8832_v10  ;;  %v8835_v59 = vpop.f32.mrb[42].mxu0  ;;  %v8856_v63 = vadd.f32 %v8855_v62, %v8854_v11  ;;  %v8857_v55 = vpop.f32.mrb[42].mxu1  ;;  %v2138_v10 = vrot.slane %v2117_v5, %v10873_v39  ;;  %v10062_v5 = vld [vmem:[%s14044_s3 + $0x2ac] ss:$16 sps:$4 sm:$0xff]  }
 0x44b   :  { %v8836_v1 = vpop.f32.mrb[43].mxu0  ;;  %v8858_v57 = vpop.f32.mrb[43].mxu1 }
 0x44c   :  { %v1826_v2 = vadd.f32 %v8834_v0, %v11008_v19  ;;  %v2140_v59 = vcombine.high %v2138_v10, %v2138_v10  ;;  %v2124_v19 = vrot.slane %v2109_v16, %v10873_v39  ;;  %v10051_v57 = vld [vmem:[%s14044_s3 + $0x280] ss:$16 sps:$4 sm:$0xff]   ;;  %v10059_v16 = vld [vmem:[%s14044_s3 + $0x2a4] ss:$16 sps:$4 sm:$0xff]  }
 0x44e   :  { %v1866_v13 = vadd.f32 %v8856_v63, %v1826_v2  ;;  %v2139_v0 = vcombine.high %v2124_v19, %v2124_v19  ;;  %v2102_v63 = vcombine.high %v8047_v3, %v8047_v3  ;;  %v10053_v2 = vld [vmem:[%s14044_s3 + $0x284] ss:$16 sps:$4 sm:$0xff]   ;;  %v10056_v3 = vld [vmem:[%s14044_s3 + $0x28c] ss:$16 sps:$4 sm:$0xff]  }
 0x450   :  { %v2116_v55 = vrot.slane %v2102_v63, %v10873_v39 }
 0x452   :  { %v2131_v1 = vrot.slane %v2116_v55, %v10873_v39 }
 0x458   :  { %v1905_v6 = vpop.f32.mrb[44].mxu0 }
 0x459   :  { %v1906_v7 = vadd.f32 %v1905_v6, %v1866_v13  ;;  %v9702_v8 = vpop.f32.mrb[45].mxu0  ;;  %v10054_v13 = vld [vmem:[%s14044_s3 + $0x288] ss:$16 sps:$4 sm:$0xff]   ;;  %v10057_v6 = vld [vmem:[%s14044_s3 + $0x2a0] ss:$16 sps:$4 sm:$0xff]  }
 0x45a   :  { %v1908_v9 = vpop.f32.mrb[46].mxu0  ;;  %v10065_v8 = vld [vmem:[%s14044_s3 + $0x2c4] ss:$16 sps:$4 sm:$0xff]  }
 0x45b   :  { %v1911_v11 = vmax.f32 %v1906_v7, 0.0  ;;  %v9703_v12 = vpop.f32.mrb[47].mxu0  ;;  %v10060_v7 = vld [vmem:[%s14044_s3 + $0x2a8] ss:$16 sps:$4 sm:$0xff]   ;;  %v10068_v9 = vld [vmem:[%s14044_s3 + $0x2cc] ss:$16 sps:$4 sm:$0xff]  }
 0x45c   :  { %v10071_v12 = vld [vmem:[%s14044_s3 + $0x2e4] ss:$16 sps:$4 sm:$0xff]  }
 0x45d   :  { %v1912_v62 = vpack.c.bf16 %v1911_v11, %v1911_v11  ;;  %v10066_v11 = vld [vmem:[%s14044_s3 + $0x2c8] ss:$16 sps:$4 sm:$0xff]  }
 0x45f   :  { %8045 = vmatmul.mubr.msk.bf16.vlgmr.msra.gmra.mrb[44].mxu1 %vm368_vm1, %v1912_v62  ;;  %8046 = vmatmul.mubr.msk.bf16.vlgmr.msra.gmra.mrb[48].mxu0 %vm368_vm1, %v1912_v62  ;;  %v10069_v62 = vld [vmem:[%s14044_s3 + $0x2e0] ss:$16 sps:$4 sm:$0xff]  }
 0x460   :  { %8866 = vmatpush3.bf16.msra.mxu1 %v11087_v18  ;;  %8888 = vmatpush3.bf16.msra.mxu0 %v11093_v20 }
 0x461   :  { %8867 = vmatprep.subr.bf16.mxu1 %v11099_v21  ;;  %8889 = vmatprep.subr.bf16.mxu0 %v11105_v22 }
 0x462   :  { %2180 = vmatprep.mubr.bf16.mxu1 %v2138_v10  ;;  %2220 = vmatprep.mubr.bf16.mxu0 %v2140_v59  ;;  %v10063_v10 = vld [vmem:[%s14044_s3 + $0x2c0] ss:$16 sps:$4 sm:$0xff]   ;;  %v10074_v59 = vld [vmem:[%s14044_s3 + $0x2ec] ss:$16 sps:$4 sm:$0xff]  }
 0x464   :  { %8868 = vmatpush3.bf16.msra.mxu1 %v11111_v23  ;;  %8890 = vmatpush3.bf16.msra.mxu0 %v11117_v24 }
 0x465   :  { %8869 = vmatprep.subr.bf16.mxu1 %v11123_v25  ;;  %8891 = vmatprep.subr.bf16.mxu0 %v11129_v26 }
 0x468   :  { %8870 = vmatpush3.bf16.msra.mxu1 %v11135_v27  ;;  %8892 = vmatpush3.bf16.msra.mxu0 %v11141_v28 }
 0x469   :  { %8871 = vmatprep.subr.bf16.mxu1 %v11147_v29  ;;  %8893 = vmatprep.subr.bf16.mxu0 %v11153_v30 }
 0x46c   :  { %8872 = vmatpush3.bf16.msra.mxu1 %v11159_v31  ;;  %8894 = vmatpush3.bf16.msra.mxu0 %v11165_v32 }
 0x46d   :  { %8873 = vmatprep.subr.bf16.mxu1 %v11171_v33  ;;  %8895 = vmatprep.subr.bf16.mxu0 %v11177_v35 }
 0x470   :  { %8874 = vmatpush3.bf16.msra.mxu1 %v11183_v37  ;;  %8896 = vmatpush3.bf16.msra.mxu0 %v11189_v38 }
 0x471   :  { %8875 = vmatprep.subr.bf16.mxu1 %v11195_v40  ;;  %8897 = vmatprep.subr.bf16.mxu0 %v11201_v41 }
 0x474   :  { %8876 = vmatpush3.bf16.msra.mxu1 %v11207_v42  ;;  %8898 = vmatpush3.bf16.msra.mxu0 %v11213_v43 }
 0x475   :  { %8877 = vmatprep.subr.bf16.mxu1 %v11219_v44  ;;  %8899 = vmatprep.subr.bf16.mxu0 %v11225_v45 }
 0x478   :  { %8878 = vmatpush3.bf16.msra.mxu1 %v11233_v47  ;;  %8900 = vmatpush3.bf16.msra.mxu0 %v11239_v48 }
 0x479   :  { %8879 = vmatprep.subr.bf16.mxu1 %v11245_v49  ;;  %8901 = vmatprep.subr.bf16.mxu0 %v11251_v50 }
 0x47c   :  { %8880 = vmatpush3.bf16.msra.mxu1 %v11257_v52  ;;  %8902 = vmatpush3.bf16.msra.mxu0 %v11263_v53 }
 0x47d   :  { %9704 = vmatprep.subr.bf16.mxu1 %v10629_v36  ;;  %2370 = vmatprep.subr.bf16.mxu0 %v10053_v2 }
 0x47f   :  { %2181 = vmatmul.mubr.bf16.vlgmr.msra.gmra.mrb[48].mxu1 %v2124_v19  ;;  %2221 = vmatmul.mubr.bf16.vlgmr.msra.gmra.mrb[52].mxu0 %v2139_v0  ;;  %v10072_v19 = vld [vmem:[%s14044_s3 + $0x2e8] ss:$16 sps:$4 sm:$0xff]  }
 0x480   :  { %9705 = vmatpush3.bf16.msra.mxu1 %v11270_v54  ;;  %9712 = vmatprep.mubr.msk.bf16.mxu1 %vm10630_vm0, %v10629_v36 }
 0x481   :  { %9706 = vmatprep.subr.bf16.mxu1 %v10629_v36  ;;  %2402 = vmatprep.mubr.bf16.mxu0 %v10631_v17 }
 0x482   :  { %2371 = vmatpush1.bf16.msra.mxu0 %v10051_v57 }
 0x483   :  { %2372 = vmatprep.subr.bf16.mxu0 %v10059_v16 }
 0x484   :  { %9707 = vmatpush3.bf16.msra.mxu1 %v11282_v56 }
 0x485   :  { %9708 = vmatprep.subr.bf16.mxu1 %v10629_v36 }
 0x486   :  { %2373 = vmatpush1.bf16.msra.mxu0 %v10057_v6 }
 0x487   :  { %2374 = vmatprep.subr.bf16.mxu0 %v10065_v8 }
 0x488   :  { %9709 = vmatpush3.bf16.msra.mxu1 %v11290_v58 }
 0x489   :  { %9710 = vmatprep.subr.bf16.mxu1 %v10629_v36 }
 0x48a   :  { %2375 = vmatpush1.bf16.msra.mxu0 %v10063_v10 }
 0x48b   :  { %2376 = vmatprep.subr.bf16.mxu0 %v10071_v12 }
 0x48c   :  { %9711 = vmatpush3.bf16.msra.mxu1 %v11298_v60 }
 0x48d   :  { %2411 = vmatprep.subr.bf16.mxu1 %v10056_v3 }
 0x48e   :  { %2377 = vmatpush1.bf16.msra.mxu0 %v10069_v62 }
 0x48f   :  { %9713 = vmatmul.mubr.msk.bf16.vlgmr.msra.gmra.mrb[52].mxu1 %vm368_vm1, %v2131_v1  ;;  %8914 = vmatprep.subr.bf16.mxu0 %v11073_v14 }
 0x490   :  { %2443 = vmatprep.mubr.bf16.mxu1 %v10631_v17  ;;  %2412 = vmatpush1.bf16.msra.mxu1 %v10054_v13 }
 0x491   :  { %2413 = vmatprep.subr.bf16.mxu1 %v10062_v5 }
 0x494   :  { %2414 = vmatpush1.bf16.msra.mxu1 %v10060_v7 }
 0x495   :  { %2415 = vmatprep.subr.bf16.mxu1 %v10068_v9 }
 0x498   :  { %2416 = vmatpush1.bf16.msra.mxu1 %v10066_v11 }
 0x499   :  { %2417 = vmatprep.subr.bf16.mxu1 %v10074_v59 }
 0x49c   :  { %2418 = vmatpush1.bf16.msra.mxu1 %v10072_v19  ;;  %v8083_v19 = vld [vmem:[%s14041_s0 + $0x1e] sm:$0x1f] }
 0x49d   :  { %8936 = vmatprep.subr.bf16.mxu1 %v11079_v15 }
 0x532   :  { %v2047_v0 = vpop.f32.mrb[44].mxu1  ;;  %v2088_v63 = vpop.f32.mrb[48].mxu0 }
 0x533   :  { %v11698_v55 = vadd.f32 %v2047_v0, %v11582_v61  ;;  %v11701_v1 = vadd.f32 %v2088_v63, %v11585_v4  ;;  %v2049_v57 = vpop.f32.mrb[45].mxu1  ;;  %v2090_v2 = vpop.f32.mrb[49].mxu0  ;;  %v2466_v0 = vrot.slane %v8083_v19, %v10873_v39 }
 0x534   :  { %v11704_v13 = vadd.f32 %v2049_v57, %v11588_v46  ;;  %v11707_v3 = vadd.f32 %v2090_v2, %v11591_v51  ;;  %v2051_v16 = vpop.f32.mrb[46].mxu1  ;;  %v2092_v14 = vpop.f32.mrb[50].mxu0  ;;  %v11712_v46 = vld [vmem:[%s14043_s2] ss:$0 sm:$0xff] }
 0x535   :  { %v2052_v5 = vpop.f32.mrb[47].mxu1  ;;  %v2093_v15 = vpop.f32.mrb[51].mxu0  ;;  %v2474_v63 = vcombine.high %v2466_v0, %v2466_v0 }
 0x537   :  { %v2495_v5 = vrot.slane %v2474_v63, %v10873_v39 }
 0x552   :  { %v8881_v6 = vpop.f32.mrb[48].mxu1  ;;  %v8903_v7 = vpop.f32.mrb[52].mxu0 }
 0x553   :  { %v8882_v8 = vpop.f32.mrb[49].mxu1  ;;  %v8904_v61 = vpop.f32.mrb[53].mxu0 }
 0x554   :  { %v8883_v9 = vadd.f32 %v8882_v8, %v8881_v6  ;;  %v8884_v10 = vpop.f32.mrb[50].mxu1  ;;  %v8905_v4 = vadd.f32 %v8904_v61, %v8903_v7  ;;  %v8906_v11 = vpop.f32.mrb[54].mxu0  ;;  %v2497_v8 = vcombine.high %v2495_v5, %v2495_v5 }
 0x555   :  { %v8885_v12 = vpop.f32.mrb[51].mxu1  ;;  %v8907_v62 = vpop.f32.mrb[55].mxu0 }
 0x556   :  { %v2183_v51 = vadd.f32 %v11712_v46, %v8883_v9 }
 0x558   :  { %v2223_v59 = vadd.f32 %v8905_v4, %v2183_v51 }
 0x562   :  { %v2262_v57 = vpop.f32.mrb[52].mxu1 }
 0x563   :  { %v2263_v2 = vadd.f32 %v2262_v57, %v2223_v59  ;;  %v9714_v16 = vpop.f32.mrb[53].mxu1 }
 0x564   :  { %v2265_v14 = vpop.f32.mrb[54].mxu1 }
 0x565   :  { %v2268_v15 = vmax.f32 %v2263_v2, 0.0  ;;  %v9715_v6 = vpop.f32.mrb[55].mxu1 }
 0x567   :  { %v2269_v7 = vpack.c.bf16 %v2268_v15, %v2268_v15 }
 0x569   :  { %8081 = vmatmul.mubr.msk.bf16.vlgmr.msra.gmra.mrb[56].mxu0 %vm368_vm1, %v2269_v7  ;;  %8082 = vmatmul.mubr.msk.bf16.vlgmr.msra.gmra.mrb[56].mxu1 %vm368_vm1, %v2269_v7 }
 0x56a   :  { %8915 = vmatpush3.bf16.msra.mxu0 %v11087_v18  ;;  %8937 = vmatpush3.bf16.msra.mxu1 %v11093_v20  ;;  %v2481_v18 = vrot.slane %v2466_v0, %v10873_v39 }
 0x56b   :  { %8916 = vmatprep.subr.bf16.mxu0 %v11099_v21  ;;  %8938 = vmatprep.subr.bf16.mxu1 %v11105_v22  ;;  %v2459_v21 = vcombine.high %v8083_v19, %v8083_v19 }
 0x56c   :  { %2537 = vmatprep.mubr.bf16.mxu0 %v2495_v5  ;;  %2577 = vmatprep.mubr.bf16.mxu1 %v2497_v8  ;;  %v2496_v20 = vcombine.high %v2481_v18, %v2481_v18 }
 0x56d   :  { %v2473_v22 = vrot.slane %v2459_v21, %v10873_v39  ;;  %v11870_v21 = vld [vmem:[%s14042_s1 + $0x48] sm:$0xff]  }
 0x56e   :  { %8917 = vmatpush3.bf16.msra.mxu0 %v11111_v23  ;;  %8939 = vmatpush3.bf16.msra.mxu1 %v11117_v24  ;;  %v10076_v24 = vld [vmem:[%s14044_s3 + $0x300] ss:$16 sps:$4 sm:$0xff]  }
 0x56f   :  { %8918 = vmatprep.subr.bf16.mxu0 %v11123_v25  ;;  %8940 = vmatprep.subr.bf16.mxu1 %v11129_v26  ;;  %v2488_v23 = vrot.slane %v2473_v22, %v10873_v39  ;;  %v10078_v25 = vld [vmem:[%s14044_s3 + $0x304] ss:$16 sps:$4 sm:$0xff]   ;;  %v10079_v26 = vld [vmem:[%s14044_s3 + $0x308] ss:$16 sps:$4 sm:$0xff]  }
 0x570   :  { %v11876_v22 = vld [vmem:[%s14042_s1 + $0xc8] sm:$0xff]  }
 0x572   :  { %8919 = vmatpush3.bf16.msra.mxu0 %v11135_v27  ;;  %8941 = vmatpush3.bf16.msra.mxu1 %v11141_v28  ;;  %v10081_v27 = vld [vmem:[%s14044_s3 + $0x30c] ss:$16 sps:$4 sm:$0xff]   ;;  %v10084_v28 = vld [vmem:[%s14044_s3 + $0x324] ss:$16 sps:$4 sm:$0xff]  }
 0x573   :  { %8920 = vmatprep.subr.bf16.mxu0 %v11147_v29  ;;  %8942 = vmatprep.subr.bf16.mxu1 %v11153_v30  ;;  %v10087_v29 = vld [vmem:[%s14044_s3 + $0x32c] ss:$16 sps:$4 sm:$0xff]   ;;  %v10082_v30 = vld [vmem:[%s14044_s3 + $0x320] ss:$16 sps:$4 sm:$0xff]  }
 0x576   :  { %8921 = vmatpush3.bf16.msra.mxu0 %v11159_v31  ;;  %8943 = vmatpush3.bf16.msra.mxu1 %v11165_v32  ;;  %v10085_v31 = vld [vmem:[%s14044_s3 + $0x328] ss:$16 sps:$4 sm:$0xff]   ;;  %v10090_v32 = vld [vmem:[%s14044_s3 + $0x344] ss:$16 sps:$4 sm:$0xff]  }
 0x577   :  { %8922 = vmatprep.subr.bf16.mxu0 %v11171_v33  ;;  %8944 = vmatprep.subr.bf16.mxu1 %v11177_v35  ;;  %v10093_v33 = vld [vmem:[%s14044_s3 + $0x34c] ss:$16 sps:$4 sm:$0xff]   ;;  %v10088_v35 = vld [vmem:[%s14044_s3 + $0x340] ss:$16 sps:$4 sm:$0xff]  }
 0x57a   :  { %8923 = vmatpush3.bf16.msra.mxu0 %v11183_v37  ;;  %8945 = vmatpush3.bf16.msra.mxu1 %v11189_v38  ;;  %v10091_v37 = vld [vmem:[%s14044_s3 + $0x348] ss:$16 sps:$4 sm:$0xff]   ;;  %v10096_v38 = vld [vmem:[%s14044_s3 + $0x364] ss:$16 sps:$4 sm:$0xff]  }
 0x57b   :  { %8924 = vmatprep.subr.bf16.mxu0 %v11195_v40  ;;  %8946 = vmatprep.subr.bf16.mxu1 %v11201_v41  ;;  %v10094_v40 = vld [vmem:[%s14044_s3 + $0x360] ss:$16 sps:$4 sm:$0xff]   ;;  %v10099_v41 = vld [vmem:[%s14044_s3 + $0x36c] ss:$16 sps:$4 sm:$0xff]  }
 0x57e   :  { %8925 = vmatpush3.bf16.msra.mxu0 %v11207_v42  ;;  %8947 = vmatpush3.bf16.msra.mxu1 %v11213_v43  ;;  %v10097_v42 = vld [vmem:[%s14044_s3 + $0x368] ss:$16 sps:$4 sm:$0xff]   ;;  %v11819_v43 = vld [vmem:[%s14042_s1 + $0x40] sm:$0xff]  }
 0x57f   :  { %8926 = vmatprep.subr.bf16.mxu0 %v11219_v44  ;;  %8948 = vmatprep.subr.bf16.mxu1 %v11225_v45  ;;  %v11825_v44 = vld [vmem:[%s14042_s1 + $0xc0] sm:$0xff]  }
 0x582   :  { %8927 = vmatpush3.bf16.msra.mxu0 %v11233_v47  ;;  %8949 = vmatpush3.bf16.msra.mxu1 %v11239_v48 }
 0x583   :  { %8928 = vmatprep.subr.bf16.mxu0 %v11245_v49  ;;  %8950 = vmatprep.subr.bf16.mxu1 %v11251_v50 }
 0x586   :  { %8929 = vmatpush3.bf16.msra.mxu0 %v11257_v52  ;;  %8951 = vmatpush3.bf16.msra.mxu1 %v11263_v53 }
 0x587   :  { %9716 = vmatprep.subr.bf16.mxu0 %v10629_v36  ;;  %2727 = vmatprep.subr.bf16.mxu1 %v10078_v25  ;;  %v11894_v25 = vld [vmem:[%s14042_s1 + $0x50] sm:$0xff]  }
 0x589   :  { %2538 = vmatmul.mubr.bf16.vlgmr.msra.gmra.mrb[60].mxu0 %v2481_v18  ;;  %2578 = vmatmul.mubr.bf16.vlgmr.msra.gmra.mrb[60].mxu1 %v2496_v20  ;;  %v11858_v18 = vld [vmem:[%s14042_s1] sm:$0xff]  }
 0x58a   :  { %9717 = vmatpush3.bf16.msra.mxu0 %v11270_v54  ;;  %9724 = vmatprep.mubr.msk.bf16.mxu0 %vm10630_vm0, %v10629_v36  ;;  %v11864_v20 = vld [vmem:[%s14042_s1 + $0x80] sm:$0xff]  }
 0x58b   :  { %9718 = vmatprep.subr.bf16.mxu0 %v10629_v36  ;;  %2759 = vmatprep.mubr.bf16.mxu1 %v10631_v17 }
 0x58c   :  { %2728 = vmatpush1.bf16.msra.mxu1 %v10076_v24  ;;  %v11888_v24 = vld [vmem:[%s14042_s1 + $0x88] sm:$0xff]  }
 0x58d   :  { %2729 = vmatprep.subr.bf16.mxu1 %v10084_v28  ;;  %v11912_v28 = vld [vmem:[%s14042_s1 + $0x90] sm:$0xff]  }
 0x58e   :  { %9719 = vmatpush3.bf16.msra.mxu0 %v11282_v56 }
 0x58f   :  { %9720 = vmatprep.subr.bf16.mxu0 %v10629_v36 }
 0x590   :  { %2730 = vmatpush1.bf16.msra.mxu1 %v10082_v30  ;;  %v11924_v30 = vld [vmem:[%s14042_s1 + $0xd8] sm:$0xff]  }
 0x591   :  { %2731 = vmatprep.subr.bf16.mxu1 %v10090_v32  ;;  %v11936_v32 = vld [vmem:[%s14042_s1 + $0x98] sm:$0xff]  }
 0x592   :  { %9721 = vmatpush3.bf16.msra.mxu0 %v11290_v58 }
 0x593   :  { %9722 = vmatprep.subr.bf16.mxu0 %v10629_v36 }
 0x594   :  { %2732 = vmatpush1.bf16.msra.mxu1 %v10088_v35  ;;  %v11948_v35 = vld [vmem:[%s14042_s1 + $0xe0] sm:$0xff]  }
 0x595   :  { %2733 = vmatprep.subr.bf16.mxu1 %v10096_v38  ;;  %v11960_v38 = vld [vmem:[%s14042_s1 + $0xa0] sm:$0xff]  }
 0x596   :  { %9723 = vmatpush3.bf16.msra.mxu0 %v11298_v60 }
 0x597   :  { %2768 = vmatprep.subr.bf16.mxu0 %v10081_v27  ;;  %v11906_v27 = vld [vmem:[%s14042_s1 + $0x10] sm:$0xff]  }
 0x598   :  { %2734 = vmatpush1.bf16.msra.mxu1 %v10094_v40  ;;  %v11966_v40 = vld [vmem:[%s14042_s1 + $0x68] sm:$0xff]  }
 0x599   :  { %9725 = vmatmul.mubr.msk.bf16.vlgmr.msra.gmra.mrb[64].mxu0 %vm368_vm1, %v2488_v23  ;;  %8963 = vmatprep.subr.bf16.mxu1 %v11819_v43  ;;  %v11882_v23 = vld [vmem:[%s14042_s1 + $0x8] sm:$0xff]  }
 0x59a   :  { %2800 = vmatprep.mubr.bf16.mxu0 %v10631_v17  ;;  %2769 = vmatpush1.bf16.msra.mxu0 %v10079_v26  ;;  %v11900_v26 = vld [vmem:[%s14042_s1 + $0xd0] sm:$0xff]  }
 0x59b   :  { %2770 = vmatprep.subr.bf16.mxu0 %v10087_v29  ;;  %v11918_v29 = vld [vmem:[%s14042_s1 + $0x58] sm:$0xff]  }
 0x59e   :  { %2771 = vmatpush1.bf16.msra.mxu0 %v10085_v31  ;;  %v11930_v31 = vld [vmem:[%s14042_s1 + $0x18] sm:$0xff]  }
 0x59f   :  { %2772 = vmatprep.subr.bf16.mxu0 %v10093_v33  ;;  %v11942_v33 = vld [vmem:[%s14042_s1 + $0x60] sm:$0xff]  }
 0x5a2   :  { %2773 = vmatpush1.bf16.msra.mxu0 %v10091_v37  ;;  %v11954_v37 = vld [vmem:[%s14042_s1 + $0x20] sm:$0xff]  }
 0x5a3   :  { %2774 = vmatprep.subr.bf16.mxu0 %v10099_v41  ;;  %v11972_v41 = vld [vmem:[%s14042_s1 + $0xe8] sm:$0xff]  }
 0x5a6   :  { %2775 = vmatpush1.bf16.msra.mxu0 %v10097_v42  ;;  %v11978_v42 = vld [vmem:[%s14042_s1 + $0x28] sm:$0xff]  }
 0x5a7   :  { %8985 = vmatprep.subr.bf16.mxu0 %v11825_v44 }
 0x63c   :  { %v2404_v45 = vpop.f32.mrb[56].mxu0  ;;  %v2445_v47 = vpop.f32.mrb[56].mxu1 }
 0x63d   :  { %v11829_v48 = vadd.f32 %v2404_v45, %v11698_v55  ;;  %v11832_v49 = vadd.f32 %v2445_v47, %v11701_v1  ;;  %v2406_v50 = vpop.f32.mrb[57].mxu0  ;;  %v2447_v52 = vpop.f32.mrb[57].mxu1  ;;  %v11984_v45 = vld [vmem:[%s14042_s1 + $0xa8] sm:$0xff]   ;;  %v11990_v47 = vld [vmem:[%s14042_s1 + $0x70] sm:$0xff]  }
 0x63e   :  { %v11835_v53 = vadd.f32 %v2406_v50, %v11704_v13  ;;  %v11838_v54 = vadd.f32 %v2447_v52, %v11707_v3  ;;  %v2408_v56 = vpop.f32.mrb[58].mxu0  ;;  %v2449_v58 = vpop.f32.mrb[58].mxu1  ;;  %v11844_v3 = vld [vmem:[%s14041_s0 + $0x23] sm:$0x1f]  ;;  %v11996_v50 = vld [vmem:[%s14042_s1 + $0xf0] sm:$0xff]  }
 0x63f   :  { %v2409_v60 = vpop.f32.mrb[59].mxu0  ;;  %v2450_v61 = vpop.f32.mrb[59].mxu1  ;;  %v11848_v0 = vrot.slane %v11844_v3, %v10873_v39  ;;  %v12004_v56 = vld [vmem:[%s14042_s1 + $0x30] sm:$0xff]  }
 0x640   :  { %v12010_v58 = vld [vmem:[%s14042_s1 + $0xb0] sm:$0xff]   ;;  %v12016_v60 = vld [vmem:[%s14042_s1 + $0x78] sm:$0xff]  }
 0x641   :  { %v2831_v63 = vcombine.high %v11848_v0, %v11848_v0  ;;  %v2838_v52 = vrot.slane %v11848_v0, %v10873_v39  ;;  %v12022_v61 = vld [vmem:[%s14042_s1 + $0xf8] sm:$0xff]  }
 0x642   :  { %v10106_v0 = vld [vmem:[%s14044_s3 + $0x38c] ss:$16 sps:$4 sm:$0xff]  }
 0x643   :  { %v2852_v5 = vrot.slane %v2831_v63, %v10873_v39  ;;  %v10109_v63 = vld [vmem:[%s14044_s3 + $0x3a4] ss:$16 sps:$4 sm:$0xff]  }
 0x645   :  { %v2854_v8 = vcombine.high %v2852_v5, %v2852_v5 }
 0x65c   :  { %v8930_v9 = vpop.f32.mrb[60].mxu0  ;;  %v8952_v10 = vpop.f32.mrb[60].mxu1 }
 0x65d   :  { %v8931_v4 = vpop.f32.mrb[61].mxu0  ;;  %v8953_v55 = vpop.f32.mrb[61].mxu1 }
 0x65e   :  { %v8932_v11 = vadd.f32 %v8931_v4, %v8930_v9  ;;  %v8933_v12 = vpop.f32.mrb[62].mxu0  ;;  %v8954_v1 = vadd.f32 %v8953_v55, %v8952_v10  ;;  %v8955_v62 = vpop.f32.mrb[62].mxu1  ;;  %v2853_v9 = vcombine.high %v2838_v52, %v2838_v52  ;;  %v12028_v10 = vld [vmem:[%s14042_s1 + $0x38] sm:$0xff]   ;;  %v12041_v55 = vld [vmem:[%s14042_s1 + $0x100] sm:$0xff]  }
 0x65f   :  { %v8934_v51 = vpop.f32.mrb[63].mxu0  ;;  %v8956_v59 = vpop.f32.mrb[63].mxu1  ;;  %v12034_v4 = vld [vmem:[%s14042_s1 + $0xb8] sm:$0xff]   ;;  %v12053_v12 = vld [vmem:[%s14042_s1 + $0x108] sm:$0xff]   ;;  %v12061_v62 = vld [vmem:[%s14042_s1 + $0x110] sm:$0xff]  }
 0x660   :  { %v2540_v13 = vadd.f32 %v11712_v46, %v8932_v11  ;;  %v2816_v11 = vcombine.high %v11844_v3, %v11844_v3  ;;  %v12069_v59 = vld [vmem:[%s14042_s1 + $0x118] sm:$0xff]  }
 0x661   :  { %v10104_v3 = vld [vmem:[%s14044_s3 + $0x388] ss:$16 sps:$4 sm:$0xff]  }
 0x662   :  { %v2580_v19 = vadd.f32 %v8954_v1, %v2540_v13  ;;  %v2830_v1 = vrot.slane %v2816_v11, %v10873_v39  ;;  %v10101_v13 = vld [vmem:[%s14044_s3 + $0x380] ss:$16 sps:$4 sm:$0xff]  }
 0x664   :  { %v2845_v51 = vrot.slane %v2830_v1, %v10873_v39 }
 0x66c   :  { %v2619_v57 = vpop.f32.mrb[64].mxu0 }
 0x66d   :  { %v2620_v2 = vadd.f32 %v2619_v57, %v2580_v19  ;;  %v9726_v16 = vpop.f32.mrb[65].mxu0  ;;  %v10103_v19 = vld [vmem:[%s14044_s3 + $0x384] ss:$16 sps:$4 sm:$0xff]   ;;  %v10112_v57 = vld [vmem:[%s14044_s3 + $0x3ac] ss:$16 sps:$4 sm:$0xff]  }
 0x66e   :  { %v2622_v14 = vpop.f32.mrb[66].mxu0  ;;  %v10110_v16 = vld [vmem:[%s14044_s3 + $0x3a8] ss:$16 sps:$4 sm:$0xff]  }
 0x66f   :  { %v2625_v15 = vmax.f32 %v2620_v2, 0.0  ;;  %v9727_v6 = vpop.f32.mrb[67].mxu0  ;;  %v10107_v2 = vld [vmem:[%s14044_s3 + $0x3a0] ss:$16 sps:$4 sm:$0xff]   ;;  %v10115_v14 = vld [vmem:[%s14044_s3 + $0x3c4] ss:$16 sps:$4 sm:$0xff]  }
 0x670   :  { %v10116_v6 = vld [vmem:[%s14044_s3 + $0x3c8] ss:$16 sps:$4 sm:$0xff]  }
 0x671   :  { %v2626_v7 = vpack.c.bf16 %v2625_v15, %v2625_v15  ;;  %v10113_v15 = vld [vmem:[%s14044_s3 + $0x3c0] ss:$16 sps:$4 sm:$0xff]  }
 0x673   :  { %8117 = vmatmul.mubr.msk.bf16.vlgmr.msra.gmra.mrb[64].mxu1 %vm368_vm1, %v2626_v7  ;;  %8118 = vmatmul.mubr.msk.bf16.vlgmr.msra.gmra.mrb[68].mxu0 %vm368_vm1, %v2626_v7  ;;  %v10121_v7 = vld [vmem:[%s14044_s3 + $0x3e4] ss:$16 sps:$4 sm:$0xff]  }
 0x674   :  { %8964 = vmatpush3.bf16.msra.mxu1 %v11858_v18  ;;  %8986 = vmatpush3.bf16.msra.mxu0 %v11864_v20 }
 0x675   :  { %8965 = vmatprep.subr.bf16.mxu1 %v11870_v21  ;;  %8987 = vmatprep.subr.bf16.mxu0 %v11876_v22 }
 0x676   :  { %2894 = vmatprep.mubr.bf16.mxu1 %v2852_v5  ;;  %2934 = vmatprep.mubr.bf16.mxu0 %v2854_v8  ;;  %v10118_v5 = vld [vmem:[%s14044_s3 + $0x3cc] ss:$16 sps:$4 sm:$0xff]   ;;  %v10119_v8 = vld [vmem:[%s14044_s3 + $0x3e0] ss:$16 sps:$4 sm:$0xff]  }
 0x678   :  { %8966 = vmatpush3.bf16.msra.mxu1 %v11882_v23  ;;  %8988 = vmatpush3.bf16.msra.mxu0 %v11888_v24 }
 0x679   :  { %8967 = vmatprep.subr.bf16.mxu1 %v11894_v25  ;;  %8989 = vmatprep.subr.bf16.mxu0 %v11900_v26 }
 0x67c   :  { %8968 = vmatpush3.bf16.msra.mxu1 %v11906_v27  ;;  %8990 = vmatpush3.bf16.msra.mxu0 %v11912_v28 }
 0x67d   :  { %8969 = vmatprep.subr.bf16.mxu1 %v11918_v29  ;;  %8991 = vmatprep.subr.bf16.mxu0 %v11924_v30 }
 0x680   :  { %8970 = vmatpush3.bf16.msra.mxu1 %v11930_v31  ;;  %8992 = vmatpush3.bf16.msra.mxu0 %v11936_v32 }
 0x681   :  { %8971 = vmatprep.subr.bf16.mxu1 %v11942_v33  ;;  %8993 = vmatprep.subr.bf16.mxu0 %v11948_v35 }
 0x684   :  { %8972 = vmatpush3.bf16.msra.mxu1 %v11954_v37  ;;  %8994 = vmatpush3.bf16.msra.mxu0 %v11960_v38 }
 0x685   :  { %8973 = vmatprep.subr.bf16.mxu1 %v11966_v40  ;;  %8995 = vmatprep.subr.bf16.mxu0 %v11972_v41 }
 0x688   :  { %8974 = vmatpush3.bf16.msra.mxu1 %v11978_v42  ;;  %8996 = vmatpush3.bf16.msra.mxu0 %v11984_v45 }
 0x689   :  { %8975 = vmatprep.subr.bf16.mxu1 %v11990_v47  ;;  %8997 = vmatprep.subr.bf16.mxu0 %v11996_v50 }
 0x68c   :  { %8976 = vmatpush3.bf16.msra.mxu1 %v12004_v56  ;;  %8998 = vmatpush3.bf16.msra.mxu0 %v12010_v58 }
 0x68d   :  { %8977 = vmatprep.subr.bf16.mxu1 %v12016_v60  ;;  %8999 = vmatprep.subr.bf16.mxu0 %v12022_v61 }
 0x690   :  { %8978 = vmatpush3.bf16.msra.mxu1 %v12028_v10  ;;  %9000 = vmatpush3.bf16.msra.mxu0 %v12034_v4 }
 0x691   :  { %9728 = vmatprep.subr.bf16.mxu1 %v10629_v36  ;;  %3084 = vmatprep.subr.bf16.mxu0 %v10103_v19 }
 0x693   :  { %2895 = vmatmul.mubr.bf16.vlgmr.msra.gmra.mrb[68].mxu1 %v2838_v52  ;;  %2935 = vmatmul.mubr.bf16.vlgmr.msra.gmra.mrb[72].mxu0 %v2853_v9  ;;  %v10124_v52 = vld [vmem:[%s14044_s3 + $0x3ec] ss:$16 sps:$4 sm:$0xff]   ;;  %v10122_v9 = vld [vmem:[%s14044_s3 + $0x3e8] ss:$16 sps:$4 sm:$0xff]  }
 0x694   :  { %9729 = vmatpush3.bf16.msra.mxu1 %v12041_v55  ;;  %9736 = vmatprep.mubr.msk.bf16.mxu1 %vm10630_vm0, %v10629_v36 }
 0x695   :  { %9730 = vmatprep.subr.bf16.mxu1 %v10629_v36  ;;  %3116 = vmatprep.mubr.bf16.mxu0 %v10631_v17 }
 0x696   :  { %3085 = vmatpush1.bf16.msra.mxu0 %v10101_v13 }
 0x697   :  { %3086 = vmatprep.subr.bf16.mxu0 %v10109_v63 }
 0x698   :  { %9731 = vmatpush3.bf16.msra.mxu1 %v12053_v12 }
 0x699   :  { %9732 = vmatprep.subr.bf16.mxu1 %v10629_v36 }
 0x69a   :  { %3087 = vmatpush1.bf16.msra.mxu0 %v10107_v2 }
 0x69b   :  { %3088 = vmatprep.subr.bf16.mxu0 %v10115_v14 }
 0x69c   :  { %9733 = vmatpush3.bf16.msra.mxu1 %v12061_v62 }
 0x69d   :  { %9734 = vmatprep.subr.bf16.mxu1 %v10629_v36 }
 0x69e   :  { %3089 = vmatpush1.bf16.msra.mxu0 %v10113_v15 }
 0x69f   :  { %3090 = vmatprep.subr.bf16.mxu0 %v10121_v7 }
 0x6a0   :  { %9735 = vmatpush3.bf16.msra.mxu1 %v12069_v59 }
 0x6a1   :  { %3125 = vmatprep.subr.bf16.mxu1 %v10106_v0 }
 0x6a2   :  { %3091 = vmatpush1.bf16.msra.mxu0 %v10119_v8 }
 0x6a3   :  { %9737 = vmatmul.mubr.msk.bf16.vlgmr.msra.gmra.mrb[72].mxu1 %vm368_vm1, %v2845_v51  ;;  %9012 = vmatprep.subr.bf16.mxu0 %v11819_v43 }
 0x6a4   :  { %3157 = vmatprep.mubr.bf16.mxu1 %v10631_v17  ;;  %3126 = vmatpush1.bf16.msra.mxu1 %v10104_v3 }
 0x6a5   :  { %3127 = vmatprep.subr.bf16.mxu1 %v10112_v57 }
 0x6a8   :  { %3128 = vmatpush1.bf16.msra.mxu1 %v10110_v16 }
 0x6a9   :  { %3129 = vmatprep.subr.bf16.mxu1 %v10118_v5 }
 0x6ac   :  { %3130 = vmatpush1.bf16.msra.mxu1 %v10116_v6 }
 0x6ad   :  { %3131 = vmatprep.subr.bf16.mxu1 %v10124_v52 }
 0x6b0   :  { %3132 = vmatpush1.bf16.msra.mxu1 %v10122_v9 }
 0x6b1   :  { %9034 = vmatprep.subr.bf16.mxu1 %v11825_v44 }
 0x746   :  { %v2761_v11 = vpop.f32.mrb[64].mxu1  ;;  %v2802_v1 = vpop.f32.mrb[68].mxu0 }
 0x747   :  { %v12125_v51 = vadd.f32 %v2761_v11, %v11829_v48  ;;  %v12128_v13 = vadd.f32 %v2802_v1, %v11832_v49  ;;  %v2763_v19 = vpop.f32.mrb[65].mxu1  ;;  %v2804_v3 = vpop.f32.mrb[69].mxu0 }
 0x748   :  { %v12131_v0 = vadd.f32 %v2763_v19, %v11835_v53  ;;  %v12134_v63 = vadd.f32 %v2804_v3, %v11838_v54  ;;  %v2765_v57 = vpop.f32.mrb[66].mxu1  ;;  %v2806_v2 = vpop.f32.mrb[70].mxu0  ;;  %v8155_v54 = vld [vmem:[%s14041_s0 + $0x28] sm:$0x1f] }
 0x749   :  { %v2766_v16 = vpop.f32.mrb[67].mxu1  ;;  %v2807_v14 = vpop.f32.mrb[71].mxu0  ;;  %v3180_v19 = vrot.slane %v8155_v54, %v10873_v39 }
 0x74b   :  { %v3188_v3 = vcombine.high %v3180_v19, %v3180_v19 }
 0x766   :  { %v8979_v5 = vpop.f32.mrb[68].mxu1  ;;  %v9001_v15 = vpop.f32.mrb[72].mxu0 }
 0x767   :  { %v8980_v6 = vpop.f32.mrb[69].mxu1  ;;  %v9002_v48 = vpop.f32.mrb[73].mxu0 }
 0x768   :  { %v8981_v7 = vadd.f32 %v8980_v6, %v8979_v5  ;;  %v8982_v8 = vpop.f32.mrb[70].mxu1  ;;  %v9003_v49 = vadd.f32 %v9002_v48, %v9001_v15  ;;  %v9004_v52 = vpop.f32.mrb[74].mxu0  ;;  %v3209_v5 = vrot.slane %v3188_v3, %v10873_v39  ;;  %v10134_v3 = vld [vmem:[%s14044_s3 + $0x424] ss:$16 sps:$4 sm:$0xff]  }
 0x769   :  { %v8983_v9 = vpop.f32.mrb[71].mxu1  ;;  %v9005_v11 = vpop.f32.mrb[75].mxu0  ;;  %v3173_v52 = vcombine.high %v8155_v54, %v8155_v54  ;;  %v10129_v54 = vld [vmem:[%s14044_s3 + $0x408] ss:$16 sps:$4 sm:$0xff]  }
 0x76a   :  { %v2897_v53 = vadd.f32 %v11712_v46, %v8981_v7  ;;  %v3211_v8 = vcombine.high %v3209_v5, %v3209_v5  ;;  %v3195_v7 = vrot.slane %v3180_v19, %v10873_v39  ;;  %v10131_v19 = vld [vmem:[%s14044_s3 + $0x40c] ss:$16 sps:$4 sm:$0xff]  }
 0x76b   :  { %v3187_v9 = vrot.slane %v3173_v52, %v10873_v39 }
 0x76c   :  { %v2937_v1 = vadd.f32 %v9003_v49, %v2897_v53  ;;  %v3210_v49 = vcombine.high %v3195_v7, %v3195_v7  ;;  %v10126_v53 = vld [vmem:[%s14044_s3 + $0x400] ss:$16 sps:$4 sm:$0xff]  }
 0x76d   :  { %v3202_v11 = vrot.slane %v3187_v9, %v10873_v39 }
 0x776   :  { %v2976_v57 = vpop.f32.mrb[72].mxu1 }
 0x777   :  { %v2977_v2 = vadd.f32 %v2976_v57, %v2937_v1  ;;  %v9738_v16 = vpop.f32.mrb[73].mxu1  ;;  %v10128_v1 = vld [vmem:[%s14044_s3 + $0x404] ss:$16 sps:$4 sm:$0xff]   ;;  %v10137_v57 = vld [vmem:[%s14044_s3 + $0x42c] ss:$16 sps:$4 sm:$0xff]  }
 0x778   :  { %v2979_v14 = vpop.f32.mrb[74].mxu1  ;;  %v10135_v16 = vld [vmem:[%s14044_s3 + $0x428] ss:$16 sps:$4 sm:$0xff]  }
 0x779   :  { %v2982_v15 = vmax.f32 %v2977_v2, 0.0  ;;  %v9739_v6 = vpop.f32.mrb[75].mxu1  ;;  %v10132_v2 = vld [vmem:[%s14044_s3 + $0x420] ss:$16 sps:$4 sm:$0xff]   ;;  %v10140_v14 = vld [vmem:[%s14044_s3 + $0x444] ss:$16 sps:$4 sm:$0xff]  }
 0x77a   :  { %v10141_v6 = vld [vmem:[%s14044_s3 + $0x448] ss:$16 sps:$4 sm:$0xff]  }
 0x77b   :  { %v2983_v48 = vpack.c.bf16 %v2982_v15, %v2982_v15  ;;  %v10138_v15 = vld [vmem:[%s14044_s3 + $0x440] ss:$16 sps:$4 sm:$0xff]  }
 0x77d   :  { %8153 = vmatmul.mubr.msk.bf16.vlgmr.msra.gmra.mrb[76].mxu0 %vm368_vm1, %v2983_v48  ;;  %8154 = vmatmul.mubr.msk.bf16.vlgmr.msra.gmra.mrb[76].mxu1 %vm368_vm1, %v2983_v48  ;;  %v10146_v48 = vld [vmem:[%s14044_s3 + $0x464] ss:$16 sps:$4 sm:$0xff]  }
 0x77e   :  { %9013 = vmatpush3.bf16.msra.mxu0 %v11858_v18  ;;  %9035 = vmatpush3.bf16.msra.mxu1 %v11864_v20 }
 0x77f   :  { %9014 = vmatprep.subr.bf16.mxu0 %v11870_v21  ;;  %9036 = vmatprep.subr.bf16.mxu1 %v11876_v22 }
 0x780   :  { %3251 = vmatprep.mubr.bf16.mxu0 %v3209_v5  ;;  %3291 = vmatprep.mubr.bf16.mxu1 %v3211_v8  ;;  %v10143_v5 = vld [vmem:[%s14044_s3 + $0x44c] ss:$16 sps:$4 sm:$0xff]   ;;  %v10144_v8 = vld [vmem:[%s14044_s3 + $0x460] ss:$16 sps:$4 sm:$0xff]  }
 0x782   :  { %9015 = vmatpush3.bf16.msra.mxu0 %v11882_v23  ;;  %9037 = vmatpush3.bf16.msra.mxu1 %v11888_v24 }
 0x783   :  { %9016 = vmatprep.subr.bf16.mxu0 %v11894_v25  ;;  %9038 = vmatprep.subr.bf16.mxu1 %v11900_v26 }
 0x786   :  { %9017 = vmatpush3.bf16.msra.mxu0 %v11906_v27  ;;  %9039 = vmatpush3.bf16.msra.mxu1 %v11912_v28 }
 0x787   :  { %9018 = vmatprep.subr.bf16.mxu0 %v11918_v29  ;;  %9040 = vmatprep.subr.bf16.mxu1 %v11924_v30 }
 0x78a   :  { %9019 = vmatpush3.bf16.msra.mxu0 %v11930_v31  ;;  %9041 = vmatpush3.bf16.msra.mxu1 %v11936_v32 }
 0x78b   :  { %9020 = vmatprep.subr.bf16.mxu0 %v11942_v33  ;;  %9042 = vmatprep.subr.bf16.mxu1 %v11948_v35 }
 0x78e   :  { %9021 = vmatpush3.bf16.msra.mxu0 %v11954_v37  ;;  %9043 = vmatpush3.bf16.msra.mxu1 %v11960_v38 }
 0x78f   :  { %9022 = vmatprep.subr.bf16.mxu0 %v11966_v40  ;;  %9044 = vmatprep.subr.bf16.mxu1 %v11972_v41 }
 0x792   :  { %9023 = vmatpush3.bf16.msra.mxu0 %v11978_v42  ;;  %9045 = vmatpush3.bf16.msra.mxu1 %v11984_v45 }
 0x793   :  { %9024 = vmatprep.subr.bf16.mxu0 %v11990_v47  ;;  %9046 = vmatprep.subr.bf16.mxu1 %v11996_v50 }
 0x796   :  { %9025 = vmatpush3.bf16.msra.mxu0 %v12004_v56  ;;  %9047 = vmatpush3.bf16.msra.mxu1 %v12010_v58 }
 0x797   :  { %9026 = vmatprep.subr.bf16.mxu0 %v12016_v60  ;;  %9048 = vmatprep.subr.bf16.mxu1 %v12022_v61 }
 0x79a   :  { %9027 = vmatpush3.bf16.msra.mxu0 %v12028_v10  ;;  %9049 = vmatpush3.bf16.msra.mxu1 %v12034_v4 }
 0x79b   :  { %9740 = vmatprep.subr.bf16.mxu0 %v10629_v36  ;;  %3441 = vmatprep.subr.bf16.mxu1 %v10128_v1 }
 0x79d   :  { %3252 = vmatmul.mubr.bf16.vlgmr.msra.gmra.mrb[80].mxu0 %v3195_v7  ;;  %3292 = vmatmul.mubr.bf16.vlgmr.msra.gmra.mrb[80].mxu1 %v3210_v49  ;;  %v10149_v7 = vld [vmem:[%s14044_s3 + $0x46c] ss:$16 sps:$4 sm:$0xff]   ;;  %v10147_v49 = vld [vmem:[%s14044_s3 + $0x468] ss:$16 sps:$4 sm:$0xff]  }
 0x79e   :  { %9741 = vmatpush3.bf16.msra.mxu0 %v12041_v55  ;;  %9748 = vmatprep.mubr.msk.bf16.mxu0 %vm10630_vm0, %v10629_v36 }
 0x79f   :  { %9742 = vmatprep.subr.bf16.mxu0 %v10629_v36  ;;  %3473 = vmatprep.mubr.bf16.mxu1 %v10631_v17 }
 0x7a0   :  { %3442 = vmatpush1.bf16.msra.mxu1 %v10126_v53 }
 0x7a1   :  { %3443 = vmatprep.subr.bf16.mxu1 %v10134_v3 }
 0x7a2   :  { %9743 = vmatpush3.bf16.msra.mxu0 %v12053_v12 }
 0x7a3   :  { %9744 = vmatprep.subr.bf16.mxu0 %v10629_v36 }
 0x7a4   :  { %3444 = vmatpush1.bf16.msra.mxu1 %v10132_v2 }
 0x7a5   :  { %3445 = vmatprep.subr.bf16.mxu1 %v10140_v14 }
 0x7a6   :  { %9745 = vmatpush3.bf16.msra.mxu0 %v12061_v62 }
 0x7a7   :  { %9746 = vmatprep.subr.bf16.mxu0 %v10629_v36 }
 0x7a8   :  { %3446 = vmatpush1.bf16.msra.mxu1 %v10138_v15 }
 0x7a9   :  { %3447 = vmatprep.subr.bf16.mxu1 %v10146_v48 }
 0x7aa   :  { %9747 = vmatpush3.bf16.msra.mxu0 %v12069_v59 }
 0x7ab   :  { %3482 = vmatprep.subr.bf16.mxu0 %v10131_v19 }
 0x7ac   :  { %3448 = vmatpush1.bf16.msra.mxu1 %v10144_v8 }
 0x7ad   :  { %9749 = vmatmul.mubr.msk.bf16.vlgmr.msra.gmra.mrb[84].mxu0 %vm368_vm1, %v3202_v11  ;;  %9061 = vmatprep.subr.bf16.mxu1 %v11819_v43 }
 0x7ae   :  { %3514 = vmatprep.mubr.bf16.mxu0 %v10631_v17  ;;  %3483 = vmatpush1.bf16.msra.mxu0 %v10129_v54 }
 0x7af   :  { %3484 = vmatprep.subr.bf16.mxu0 %v10137_v57 }
 0x7b2   :  { %3485 = vmatpush1.bf16.msra.mxu0 %v10135_v16 }
 0x7b3   :  { %3486 = vmatprep.subr.bf16.mxu0 %v10143_v5 }
 0x7b6   :  { %3487 = vmatpush1.bf16.msra.mxu0 %v10141_v6 }
 0x7b7   :  { %3488 = vmatprep.subr.bf16.mxu0 %v10149_v7 }
 0x7ba   :  { %3489 = vmatpush1.bf16.msra.mxu0 %v10147_v49 }
 0x7bb   :  { %9083 = vmatprep.subr.bf16.mxu0 %v11825_v44 }
 0x850   :  { %v3118_v52 = vpop.f32.mrb[76].mxu0  ;;  %v3159_v9 = vpop.f32.mrb[76].mxu1 }
 0x851   :  { %v12241_v11 = vadd.f32 %v3118_v52, %v12125_v51  ;;  %v12244_v53 = vadd.f32 %v3159_v9, %v12128_v13  ;;  %v3120_v1 = vpop.f32.mrb[77].mxu0  ;;  %v3161_v54 = vpop.f32.mrb[77].mxu1 }
 0x852   :  { %v12247_v19 = vadd.f32 %v3120_v1, %v12131_v0  ;;  %v12250_v3 = vadd.f32 %v3161_v54, %v12134_v63  ;;  %v3122_v57 = vpop.f32.mrb[78].mxu0  ;;  %v3163_v2 = vpop.f32.mrb[78].mxu1  ;;  %v8191_v63 = vld [vmem:[%s14041_s0 + $0x2d] sm:$0x1f] }
 0x853   :  { %v3123_v16 = vpop.f32.mrb[79].mxu0  ;;  %v3164_v14 = vpop.f32.mrb[79].mxu1  ;;  %v3537_v1 = vrot.slane %v8191_v63, %v10873_v39 }
 0x855   :  { %v3545_v54 = vcombine.high %v3537_v1, %v3537_v1 }
 0x870   :  { %v9028_v5 = vpop.f32.mrb[80].mxu0  ;;  %v9050_v15 = vpop.f32.mrb[80].mxu1 }
 0x871   :  { %v9029_v6 = vpop.f32.mrb[81].mxu0  ;;  %v9051_v51 = vpop.f32.mrb[81].mxu1 }
 0x872   :  { %v9030_v48 = vadd.f32 %v9029_v6, %v9028_v5  ;;  %v9031_v8 = vpop.f32.mrb[82].mxu0  ;;  %v9052_v13 = vadd.f32 %v9051_v51, %v9050_v15  ;;  %v9053_v7 = vpop.f32.mrb[82].mxu1  ;;  %v3566_v5 = vrot.slane %v3545_v54, %v10873_v39  ;;  %v10159_v54 = vld [vmem:[%s14044_s3 + $0x4a4] ss:$16 sps:$4 sm:$0xff]  }
 0x873   :  { %v9032_v49 = vpop.f32.mrb[83].mxu0  ;;  %v9054_v52 = vpop.f32.mrb[83].mxu1  ;;  %v3530_v7 = vcombine.high %v8191_v63, %v8191_v63  ;;  %v10154_v63 = vld [vmem:[%s14044_s3 + $0x488] ss:$16 sps:$4 sm:$0xff]  }
 0x874   :  { %v3254_v0 = vadd.f32 %v11712_v46, %v9030_v48  ;;  %v3568_v8 = vcombine.high %v3566_v5, %v3566_v5  ;;  %v3552_v48 = vrot.slane %v3537_v1, %v10873_v39  ;;  %v10156_v1 = vld [vmem:[%s14044_s3 + $0x48c] ss:$16 sps:$4 sm:$0xff]  }
 0x875   :  { %v3544_v49 = vrot.slane %v3530_v7, %v10873_v39 }
 0x876   :  { %v3294_v9 = vadd.f32 %v9052_v13, %v3254_v0  ;;  %v3567_v13 = vcombine.high %v3552_v48, %v3552_v48  ;;  %v10151_v0 = vld [vmem:[%s14044_s3 + $0x480] ss:$16 sps:$4 sm:$0xff]  }
 0x877   :  { %v3559_v52 = vrot.slane %v3544_v49, %v10873_v39 }
 0x880   :  { %v3333_v57 = vpop.f32.mrb[84].mxu0 }
 0x881   :  { %v3334_v2 = vadd.f32 %v3333_v57, %v3294_v9  ;;  %v9750_v16 = vpop.f32.mrb[85].mxu0  ;;  %v10153_v9 = vld [vmem:[%s14044_s3 + $0x484] ss:$16 sps:$4 sm:$0xff]   ;;  %v10162_v57 = vld [vmem:[%s14044_s3 + $0x4ac] ss:$16 sps:$4 sm:$0xff]  }
 0x882   :  { %v3336_v14 = vpop.f32.mrb[86].mxu0  ;;  %v10160_v16 = vld [vmem:[%s14044_s3 + $0x4a8] ss:$16 sps:$4 sm:$0xff]  }
 0x883   :  { %v3339_v15 = vmax.f32 %v3334_v2, 0.0  ;;  %v9751_v6 = vpop.f32.mrb[87].mxu0  ;;  %v10157_v2 = vld [vmem:[%s14044_s3 + $0x4a0] ss:$16 sps:$4 sm:$0xff]   ;;  %v10165_v14 = vld [vmem:[%s14044_s3 + $0x4c4] ss:$16 sps:$4 sm:$0xff]  }
 0x884   :  { %v10166_v6 = vld [vmem:[%s14044_s3 + $0x4c8] ss:$16 sps:$4 sm:$0xff]  }
 0x885   :  { %v3340_v51 = vpack.c.bf16 %v3339_v15, %v3339_v15  ;;  %v10163_v15 = vld [vmem:[%s14044_s3 + $0x4c0] ss:$16 sps:$4 sm:$0xff]  }
 0x887   :  { %8189 = vmatmul.mubr.msk.bf16.vlgmr.msra.gmra.mrb[84].mxu1 %vm368_vm1, %v3340_v51  ;;  %8190 = vmatmul.mubr.msk.bf16.vlgmr.msra.gmra.mrb[88].mxu0 %vm368_vm1, %v3340_v51  ;;  %v10171_v51 = vld [vmem:[%s14044_s3 + $0x4e4] ss:$16 sps:$4 sm:$0xff]  }
 0x888   :  { %9062 = vmatpush3.bf16.msra.mxu1 %v11858_v18  ;;  %9084 = vmatpush3.bf16.msra.mxu0 %v11864_v20 }
 0x889   :  { %9063 = vmatprep.subr.bf16.mxu1 %v11870_v21  ;;  %9085 = vmatprep.subr.bf16.mxu0 %v11876_v22 }
 0x88a   :  { %3608 = vmatprep.mubr.bf16.mxu1 %v3566_v5  ;;  %3648 = vmatprep.mubr.bf16.mxu0 %v3568_v8  ;;  %v10168_v5 = vld [vmem:[%s14044_s3 + $0x4cc] ss:$16 sps:$4 sm:$0xff]   ;;  %v10169_v8 = vld [vmem:[%s14044_s3 + $0x4e0] ss:$16 sps:$4 sm:$0xff]  }
 0x88c   :  { %9064 = vmatpush3.bf16.msra.mxu1 %v11882_v23  ;;  %9086 = vmatpush3.bf16.msra.mxu0 %v11888_v24 }
 0x88d   :  { %9065 = vmatprep.subr.bf16.mxu1 %v11894_v25  ;;  %9087 = vmatprep.subr.bf16.mxu0 %v11900_v26 }
 0x890   :  { %9066 = vmatpush3.bf16.msra.mxu1 %v11906_v27  ;;  %9088 = vmatpush3.bf16.msra.mxu0 %v11912_v28 }
 0x891   :  { %9067 = vmatprep.subr.bf16.mxu1 %v11918_v29  ;;  %9089 = vmatprep.subr.bf16.mxu0 %v11924_v30 }
 0x894   :  { %9068 = vmatpush3.bf16.msra.mxu1 %v11930_v31  ;;  %9090 = vmatpush3.bf16.msra.mxu0 %v11936_v32 }
 0x895   :  { %9069 = vmatprep.subr.bf16.mxu1 %v11942_v33  ;;  %9091 = vmatprep.subr.bf16.mxu0 %v11948_v35 }
 0x898   :  { %9070 = vmatpush3.bf16.msra.mxu1 %v11954_v37  ;;  %9092 = vmatpush3.bf16.msra.mxu0 %v11960_v38 }
 0x899   :  { %9071 = vmatprep.subr.bf16.mxu1 %v11966_v40  ;;  %9093 = vmatprep.subr.bf16.mxu0 %v11972_v41 }
 0x89c   :  { %9072 = vmatpush3.bf16.msra.mxu1 %v11978_v42  ;;  %9094 = vmatpush3.bf16.msra.mxu0 %v11984_v45 }
 0x89d   :  { %9073 = vmatprep.subr.bf16.mxu1 %v11990_v47  ;;  %9095 = vmatprep.subr.bf16.mxu0 %v11996_v50 }
 0x8a0   :  { %9074 = vmatpush3.bf16.msra.mxu1 %v12004_v56  ;;  %9096 = vmatpush3.bf16.msra.mxu0 %v12010_v58 }
 0x8a1   :  { %9075 = vmatprep.subr.bf16.mxu1 %v12016_v60  ;;  %9097 = vmatprep.subr.bf16.mxu0 %v12022_v61 }
 0x8a4   :  { %9076 = vmatpush3.bf16.msra.mxu1 %v12028_v10  ;;  %9098 = vmatpush3.bf16.msra.mxu0 %v12034_v4 }
 0x8a5   :  { %9752 = vmatprep.subr.bf16.mxu1 %v10629_v36  ;;  %3798 = vmatprep.subr.bf16.mxu0 %v10153_v9 }
 0x8a7   :  { %3609 = vmatmul.mubr.bf16.vlgmr.msra.gmra.mrb[88].mxu1 %v3552_v48  ;;  %3649 = vmatmul.mubr.bf16.vlgmr.msra.gmra.mrb[92].mxu0 %v3567_v13  ;;  %v10174_v48 = vld [vmem:[%s14044_s3 + $0x4ec] ss:$16 sps:$4 sm:$0xff]   ;;  %v10172_v13 = vld [vmem:[%s14044_s3 + $0x4e8] ss:$16 sps:$4 sm:$0xff]  }
 0x8a8   :  { %9753 = vmatpush3.bf16.msra.mxu1 %v12041_v55  ;;  %9760 = vmatprep.mubr.msk.bf16.mxu1 %vm10630_vm0, %v10629_v36 }
 0x8a9   :  { %9754 = vmatprep.subr.bf16.mxu1 %v10629_v36  ;;  %3830 = vmatprep.mubr.bf16.mxu0 %v10631_v17 }
 0x8aa   :  { %3799 = vmatpush1.bf16.msra.mxu0 %v10151_v0 }
 0x8ab   :  { %3800 = vmatprep.subr.bf16.mxu0 %v10159_v54 }
 0x8ac   :  { %9755 = vmatpush3.bf16.msra.mxu1 %v12053_v12 }
 0x8ad   :  { %9756 = vmatprep.subr.bf16.mxu1 %v10629_v36 }
 0x8ae   :  { %3801 = vmatpush1.bf16.msra.mxu0 %v10157_v2 }
 0x8af   :  { %3802 = vmatprep.subr.bf16.mxu0 %v10165_v14 }
 0x8b0   :  { %9757 = vmatpush3.bf16.msra.mxu1 %v12061_v62 }
 0x8b1   :  { %9758 = vmatprep.subr.bf16.mxu1 %v10629_v36 }
 0x8b2   :  { %3803 = vmatpush1.bf16.msra.mxu0 %v10163_v15 }
 0x8b3   :  { %3804 = vmatprep.subr.bf16.mxu0 %v10171_v51 }
 0x8b4   :  { %9759 = vmatpush3.bf16.msra.mxu1 %v12069_v59 }
 0x8b5   :  { %3839 = vmatprep.subr.bf16.mxu1 %v10156_v1 }
 0x8b6   :  { %3805 = vmatpush1.bf16.msra.mxu0 %v10169_v8 }
 0x8b7   :  { %9761 = vmatmul.mubr.msk.bf16.vlgmr.msra.gmra.mrb[92].mxu1 %vm368_vm1, %v3559_v52  ;;  %9110 = vmatprep.subr.bf16.mxu0 %v11819_v43 }
 0x8b8   :  { %3871 = vmatprep.mubr.bf16.mxu1 %v10631_v17  ;;  %3840 = vmatpush1.bf16.msra.mxu1 %v10154_v63 }
 0x8b9   :  { %3841 = vmatprep.subr.bf16.mxu1 %v10162_v57 }
 0x8bc   :  { %3842 = vmatpush1.bf16.msra.mxu1 %v10160_v16 }
 0x8bd   :  { %3843 = vmatprep.subr.bf16.mxu1 %v10168_v5 }
 0x8c0   :  { %3844 = vmatpush1.bf16.msra.mxu1 %v10166_v6 }
 0x8c1   :  { %3845 = vmatprep.subr.bf16.mxu1 %v10174_v48 }
 0x8c4   :  { %3846 = vmatpush1.bf16.msra.mxu1 %v10172_v13 }
 0x8c5   :  { %9132 = vmatprep.subr.bf16.mxu1 %v11825_v44 }
 0x95a   :  { %v3475_v7 = vpop.f32.mrb[84].mxu1  ;;  %v3516_v49 = vpop.f32.mrb[88].mxu0 }
 0x95b   :  { %v12357_v52 = vadd.f32 %v3475_v7, %v12241_v11  ;;  %v12360_v0 = vadd.f32 %v3516_v49, %v12244_v53  ;;  %v3477_v9 = vpop.f32.mrb[85].mxu1  ;;  %v3518_v63 = vpop.f32.mrb[89].mxu0 }
 0x95c   :  { %v12363_v1 = vadd.f32 %v3477_v9, %v12247_v19  ;;  %v12366_v54 = vadd.f32 %v3518_v63, %v12250_v3  ;;  %v3479_v57 = vpop.f32.mrb[86].mxu1  ;;  %v3520_v2 = vpop.f32.mrb[90].mxu0  ;;  %v8227_v3 = vld [vmem:[%s14041_s0 + $0x32] sm:$0x1f] }
 0x95d   :  { %v3480_v16 = vpop.f32.mrb[87].mxu1  ;;  %v3521_v14 = vpop.f32.mrb[91].mxu0  ;;  %v3894_v9 = vrot.slane %v8227_v3, %v10873_v39 }
 0x95f   :  { %v3902_v63 = vcombine.high %v3894_v9, %v3894_v9 }
 0x97a   :  { %v9077_v5 = vpop.f32.mrb[88].mxu1  ;;  %v9099_v15 = vpop.f32.mrb[92].mxu0 }
 0x97b   :  { %v9078_v6 = vpop.f32.mrb[89].mxu1  ;;  %v9100_v11 = vpop.f32.mrb[93].mxu0 }
 0x97c   :  { %v9079_v51 = vadd.f32 %v9078_v6, %v9077_v5  ;;  %v9080_v8 = vpop.f32.mrb[90].mxu1  ;;  %v9101_v53 = vadd.f32 %v9100_v11, %v9099_v15  ;;  %v9102_v48 = vpop.f32.mrb[94].mxu0  ;;  %v3923_v5 = vrot.slane %v3902_v63, %v10873_v39  ;;  %v10187_v63 = vld [vmem:[%s14044_s3 + $0x52c] ss:$16 sps:$4 sm:$0xff]  }
 0x97d   :  { %v9081_v13 = vpop.f32.mrb[91].mxu1  ;;  %v9103_v7 = vpop.f32.mrb[95].mxu0 }
 0x97e   :  { %v3611_v19 = vadd.f32 %v11712_v46, %v9079_v51  ;;  %v3925_v8 = vcombine.high %v3923_v5, %v3923_v5  ;;  %v3909_v46 = vrot.slane %v3894_v9, %v10873_v39  ;;  %v10176_v7 = vld [vmem:[%s14044_s3 + $0x500] ss:$16 sps:$4 sm:$0xff]   ;;  %v10184_v9 = vld [vmem:[%s14044_s3 + $0x524] ss:$16 sps:$4 sm:$0xff]  }
 0x980   :  { %v3651_v49 = vadd.f32 %v9101_v53, %v3611_v19  ;;  %v3924_v51 = vcombine.high %v3909_v46, %v3909_v46  ;;  %v3887_v53 = vcombine.high %v8227_v3, %v8227_v3  ;;  %v10178_v19 = vld [vmem:[%s14044_s3 + $0x504] ss:$16 sps:$4 sm:$0xff]   ;;  %v10181_v3 = vld [vmem:[%s14044_s3 + $0x50c] ss:$16 sps:$4 sm:$0xff]  }
 0x982   :  { %v3901_v48 = vrot.slane %v3887_v53, %v10873_v39 }
 0x984   :  { %v3916_v13 = vrot.slane %v3901_v48, %v10873_v39 }
 0x98a   :  { %v3690_v57 = vpop.f32.mrb[92].mxu1 }
 0x98b   :  { %v3691_v2 = vadd.f32 %v3690_v57, %v3651_v49  ;;  %v9762_v16 = vpop.f32.mrb[93].mxu1  ;;  %v10179_v49 = vld [vmem:[%s14044_s3 + $0x508] ss:$16 sps:$4 sm:$0xff]   ;;  %v10182_v57 = vld [vmem:[%s14044_s3 + $0x520] ss:$16 sps:$4 sm:$0xff]  }
 0x98c   :  { %v3693_v14 = vpop.f32.mrb[94].mxu1  ;;  %v10190_v16 = vld [vmem:[%s14044_s3 + $0x544] ss:$16 sps:$4 sm:$0xff]  }
 0x98d   :  { %v3696_v15 = vmax.f32 %v3691_v2, 0.0  ;;  %v9763_v6 = vpop.f32.mrb[95].mxu1  ;;  %v10185_v2 = vld [vmem:[%s14044_s3 + $0x528] ss:$16 sps:$4 sm:$0xff]   ;;  %v10193_v14 = vld [vmem:[%s14044_s3 + $0x54c] ss:$16 sps:$4 sm:$0xff]  }
 0x98e   :  { %v10196_v6 = vld [vmem:[%s14044_s3 + $0x564] ss:$16 sps:$4 sm:$0xff]  }
 0x98f   :  { %v3697_v11 = vpack.c.bf16 %v3696_v15, %v3696_v15  ;;  %v10191_v15 = vld [vmem:[%s14044_s3 + $0x548] ss:$16 sps:$4 sm:$0xff]  }
 0x991   :  { %8225 = vmatmul.mubr.msk.bf16.vlgmr.msra.gmra.mrb[96].mxu0 %vm368_vm1, %v3697_v11  ;;  %8226 = vmatmul.mubr.msk.bf16.vlgmr.msra.gmra.mrb[96].mxu1 %vm368_vm1, %v3697_v11  ;;  %v10194_v11 = vld [vmem:[%s14044_s3 + $0x560] ss:$16 sps:$4 sm:$0xff]  }
 0x992   :  { %9111 = vmatpush3.bf16.msra.mxu0 %v11858_v18  ;;  %9133 = vmatpush3.bf16.msra.mxu1 %v11864_v20 }
 0x993   :  { %9112 = vmatprep.subr.bf16.mxu0 %v11870_v21  ;;  %9134 = vmatprep.subr.bf16.mxu1 %v11876_v22 }
 0x994   :  { %3965 = vmatprep.mubr.bf16.mxu0 %v3923_v5  ;;  %4005 = vmatprep.mubr.bf16.mxu1 %v3925_v8  ;;  %v10188_v5 = vld [vmem:[%s14044_s3 + $0x540] ss:$16 sps:$4 sm:$0xff]   ;;  %v10199_v8 = vld [vmem:[%s14044_s3 + $0x56c] ss:$16 sps:$4 sm:$0xff]  }
 0x996   :  { %9113 = vmatpush3.bf16.msra.mxu0 %v11882_v23  ;;  %9135 = vmatpush3.bf16.msra.mxu1 %v11888_v24 }
 0x997   :  { %9114 = vmatprep.subr.bf16.mxu0 %v11894_v25  ;;  %9136 = vmatprep.subr.bf16.mxu1 %v11900_v26 }
 0x99a   :  { %9115 = vmatpush3.bf16.msra.mxu0 %v11906_v27  ;;  %9137 = vmatpush3.bf16.msra.mxu1 %v11912_v28 }
 0x99b   :  { %9116 = vmatprep.subr.bf16.mxu0 %v11918_v29  ;;  %9138 = vmatprep.subr.bf16.mxu1 %v11924_v30 }
 0x99e   :  { %9117 = vmatpush3.bf16.msra.mxu0 %v11930_v31  ;;  %9139 = vmatpush3.bf16.msra.mxu1 %v11936_v32 }
 0x99f   :  { %9118 = vmatprep.subr.bf16.mxu0 %v11942_v33  ;;  %9140 = vmatprep.subr.bf16.mxu1 %v11948_v35 }
 0x9a2   :  { %9119 = vmatpush3.bf16.msra.mxu0 %v11954_v37  ;;  %9141 = vmatpush3.bf16.msra.mxu1 %v11960_v38 }
 0x9a3   :  { %9120 = vmatprep.subr.bf16.mxu0 %v11966_v40  ;;  %9142 = vmatprep.subr.bf16.mxu1 %v11972_v41 }
 0x9a6   :  { %9121 = vmatpush3.bf16.msra.mxu0 %v11978_v42  ;;  %9143 = vmatpush3.bf16.msra.mxu1 %v11984_v45 }
 0x9a7   :  { %9122 = vmatprep.subr.bf16.mxu0 %v11990_v47  ;;  %9144 = vmatprep.subr.bf16.mxu1 %v11996_v50 }
 0x9aa   :  { %9123 = vmatpush3.bf16.msra.mxu0 %v12004_v56  ;;  %9145 = vmatpush3.bf16.msra.mxu1 %v12010_v58 }
 0x9ab   :  { %9124 = vmatprep.subr.bf16.mxu0 %v12016_v60  ;;  %9146 = vmatprep.subr.bf16.mxu1 %v12022_v61 }
 0x9ae   :  { %9125 = vmatpush3.bf16.msra.mxu0 %v12028_v10  ;;  %9147 = vmatpush3.bf16.msra.mxu1 %v12034_v4 }
 0x9af   :  { %9764 = vmatprep.subr.bf16.mxu0 %v10629_v36  ;;  %4155 = vmatprep.subr.bf16.mxu1 %v10178_v19 }
 0x9b1   :  { %3966 = vmatmul.mubr.bf16.vlgmr.msra.gmra.mrb[100].mxu0 %v3909_v46  ;;  %4006 = vmatmul.mubr.bf16.vlgmr.msra.gmra.mrb[100].mxu1 %v3924_v51  ;;  %v10197_v46 = vld [vmem:[%s14044_s3 + $0x568] ss:$16 sps:$4 sm:$0xff]  }
 0x9b2   :  { %9765 = vmatpush3.bf16.msra.mxu0 %v12041_v55  ;;  %9772 = vmatprep.mubr.msk.bf16.mxu0 %vm10630_vm0, %v10629_v36 }
 0x9b3   :  { %9766 = vmatprep.subr.bf16.mxu0 %v10629_v36  ;;  %4187 = vmatprep.mubr.bf16.mxu1 %v10631_v17 }
 0x9b4   :  { %4156 = vmatpush1.bf16.msra.mxu1 %v10176_v7 }
 0x9b5   :  { %4157 = vmatprep.subr.bf16.mxu1 %v10184_v9 }
 0x9b6   :  { %9767 = vmatpush3.bf16.msra.mxu0 %v12053_v12 }
 0x9b7   :  { %9768 = vmatprep.subr.bf16.mxu0 %v10629_v36 }
 0x9b8   :  { %4158 = vmatpush1.bf16.msra.mxu1 %v10182_v57 }
 0x9b9   :  { %4159 = vmatprep.subr.bf16.mxu1 %v10190_v16 }
 0x9ba   :  { %9769 = vmatpush3.bf16.msra.mxu0 %v12061_v62 }
 0x9bb   :  { %9770 = vmatprep.subr.bf16.mxu0 %v10629_v36 }
 0x9bc   :  { %4160 = vmatpush1.bf16.msra.mxu1 %v10188_v5 }
 0x9bd   :  { %4161 = vmatprep.subr.bf16.mxu1 %v10196_v6 }
 0x9be   :  { %9771 = vmatpush3.bf16.msra.mxu0 %v12069_v59 }
 0x9bf   :  { %4196 = vmatprep.subr.bf16.mxu0 %v10181_v3 }
 0x9c0   :  { %4162 = vmatpush1.bf16.msra.mxu1 %v10194_v11 }
 0x9c1   :  { %9773 = vmatmul.mubr.msk.bf16.vlgmr.msra.gmra.mrb[104].mxu0 %vm368_vm1, %v3916_v13  ;;  %9159 = vmatprep.subr.bf16.mxu1 %v11819_v43 }
 0x9c2   :  { %4228 = vmatprep.mubr.bf16.mxu0 %v10631_v17  ;;  %4197 = vmatpush1.bf16.msra.mxu0 %v10179_v49 }
 0x9c3   :  { %4198 = vmatprep.subr.bf16.mxu0 %v10187_v63 }
 0x9c6   :  { %4199 = vmatpush1.bf16.msra.mxu0 %v10185_v2 }
 0x9c7   :  { %4200 = vmatprep.subr.bf16.mxu0 %v10193_v14 }
 0x9ca   :  { %4201 = vmatpush1.bf16.msra.mxu0 %v10191_v15 }
 0x9cb   :  { %4202 = vmatprep.subr.bf16.mxu0 %v10199_v8 }
 0x9ce   :  { %4203 = vmatpush1.bf16.msra.mxu0 %v10197_v46  ;;  %v8263_v46 = vld [vmem:[%s14041_s0 + $0x37] sm:$0x1f] }
 0x9cf   :  { %9181 = vmatprep.subr.bf16.mxu0 %v11825_v44 }
 0xa64   :  { %v3832_v51 = vpop.f32.mrb[96].mxu0  ;;  %v3873_v53 = vpop.f32.mrb[96].mxu1 }
 0xa65   :  { %v12473_v48 = vadd.f32 %v3832_v51, %v12357_v52  ;;  %v12476_v13 = vadd.f32 %v3873_v53, %v12360_v0  ;;  %v3834_v7 = vpop.f32.mrb[97].mxu0  ;;  %v3875_v19 = vpop.f32.mrb[97].mxu1  ;;  %v4251_v51 = vrot.slane %v8263_v46, %v10873_v39 }
 0xa66   :  { %v12479_v49 = vadd.f32 %v3834_v7, %v12363_v1  ;;  %v12482_v3 = vadd.f32 %v3875_v19, %v12366_v54  ;;  %v3836_v9 = vpop.f32.mrb[98].mxu0  ;;  %v3877_v43 = vpop.f32.mrb[98].mxu1  ;;  %v12487_v1 = vld [vmem:[%s14043_s2] ss:$0 sm:$0xff] }
 0xa67   :  { %v3837_v63 = vpop.f32.mrb[99].mxu0  ;;  %v3878_v44 = vpop.f32.mrb[99].mxu1  ;;  %v4259_v53 = vcombine.high %v4251_v51, %v4251_v51 }
 0xa69   :  { %v4280_v63 = vrot.slane %v4259_v53, %v10873_v39 }
 0xa84   :  { %v9126_v57 = vpop.f32.mrb[100].mxu0  ;;  %v9148_v2 = vpop.f32.mrb[100].mxu1 }
 0xa85   :  { %v9127_v16 = vpop.f32.mrb[101].mxu0  ;;  %v9149_v52 = vpop.f32.mrb[101].mxu1 }
 0xa86   :  { %v9128_v14 = vadd.f32 %v9127_v16, %v9126_v57  ;;  %v9129_v5 = vpop.f32.mrb[102].mxu0  ;;  %v9150_v0 = vadd.f32 %v9149_v52, %v9148_v2  ;;  %v9151_v15 = vpop.f32.mrb[102].mxu1  ;;  %v4282_v16 = vcombine.high %v4280_v63, %v4280_v63 }
 0xa87   :  { %v9130_v6 = vpop.f32.mrb[103].mxu0  ;;  %v9152_v11 = vpop.f32.mrb[103].mxu1 }
 0xa88   :  { %v3968_v54 = vadd.f32 %v12487_v1, %v9128_v14 }
 0xa8a   :  { %v4008_v8 = vadd.f32 %v9150_v0, %v3968_v54 }
 0xa94   :  { %v4047_v7 = vpop.f32.mrb[104].mxu0 }
 0xa95   :  { %v4048_v19 = vadd.f32 %v4047_v7, %v4008_v8  ;;  %v9774_v9 = vpop.f32.mrb[105].mxu0 }
 0xa96   :  { %v4050_v43 = vpop.f32.mrb[106].mxu0 }
 0xa97   :  { %v4053_v44 = vmax.f32 %v4048_v19, 0.0  ;;  %v9775_v57 = vpop.f32.mrb[107].mxu0 }
 0xa99   :  { %v4054_v2 = vpack.c.bf16 %v4053_v44, %v4053_v44 }
 0xa9b   :  { %8261 = vmatmul.mubr.msk.bf16.vlgmr.msra.gmra.mrb[104].mxu1 %vm368_vm1, %v4054_v2  ;;  %8262 = vmatmul.mubr.msk.bf16.vlgmr.msra.gmra.mrb[108].mxu0 %vm368_vm1, %v4054_v2 }
 0xa9c   :  { %9160 = vmatpush3.bf16.msra.mxu1 %v11858_v18  ;;  %9182 = vmatpush3.bf16.msra.mxu0 %v11864_v20  ;;  %v4266_v18 = vrot.slane %v4251_v51, %v10873_v39 }
 0xa9d   :  { %9161 = vmatprep.subr.bf16.mxu1 %v11870_v21  ;;  %9183 = vmatprep.subr.bf16.mxu0 %v11876_v22  ;;  %v4244_v21 = vcombine.high %v8263_v46, %v8263_v46 }
 0xa9e   :  { %4322 = vmatprep.mubr.bf16.mxu1 %v4280_v63  ;;  %4362 = vmatprep.mubr.bf16.mxu0 %v4282_v16  ;;  %v4281_v20 = vcombine.high %v4266_v18, %v4266_v18 }
 0xa9f   :  { %v4258_v22 = vrot.slane %v4244_v21, %v10873_v39  ;;  %v12645_v21 = vld [vmem:[%s14042_s1 + $0x48] sm:$0xff]  }
 0xaa0   :  { %9162 = vmatpush3.bf16.msra.mxu1 %v11882_v23  ;;  %9184 = vmatpush3.bf16.msra.mxu0 %v11888_v24  ;;  %v10201_v24 = vld [vmem:[%s14044_s3 + $0x580] ss:$16 sps:$4 sm:$0xff]  }
 0xaa1   :  { %9163 = vmatprep.subr.bf16.mxu1 %v11894_v25  ;;  %9185 = vmatprep.subr.bf16.mxu0 %v11900_v26  ;;  %v4273_v23 = vrot.slane %v4258_v22, %v10873_v39  ;;  %v10203_v25 = vld [vmem:[%s14044_s3 + $0x584] ss:$16 sps:$4 sm:$0xff]   ;;  %v10204_v26 = vld [vmem:[%s14044_s3 + $0x588] ss:$16 sps:$4 sm:$0xff]  }
 0xaa2   :  { %v12651_v22 = vld [vmem:[%s14042_s1 + $0xc8] sm:$0xff]  }
 0xaa4   :  { %9164 = vmatpush3.bf16.msra.mxu1 %v11906_v27  ;;  %9186 = vmatpush3.bf16.msra.mxu0 %v11912_v28  ;;  %v10206_v27 = vld [vmem:[%s14044_s3 + $0x58c] ss:$16 sps:$4 sm:$0xff]   ;;  %v10209_v28 = vld [vmem:[%s14044_s3 + $0x5a4] ss:$16 sps:$4 sm:$0xff]  }
 0xaa5   :  { %9165 = vmatprep.subr.bf16.mxu1 %v11918_v29  ;;  %9187 = vmatprep.subr.bf16.mxu0 %v11924_v30  ;;  %v10212_v29 = vld [vmem:[%s14044_s3 + $0x5ac] ss:$16 sps:$4 sm:$0xff]   ;;  %v10207_v30 = vld [vmem:[%s14044_s3 + $0x5a0] ss:$16 sps:$4 sm:$0xff]  }
 0xaa8   :  { %9166 = vmatpush3.bf16.msra.mxu1 %v11930_v31  ;;  %9188 = vmatpush3.bf16.msra.mxu0 %v11936_v32  ;;  %v10210_v31 = vld [vmem:[%s14044_s3 + $0x5a8] ss:$16 sps:$4 sm:$0xff]   ;;  %v10215_v32 = vld [vmem:[%s14044_s3 + $0x5c4] ss:$16 sps:$4 sm:$0xff]  }
 0xaa9   :  { %9167 = vmatprep.subr.bf16.mxu1 %v11942_v33  ;;  %9189 = vmatprep.subr.bf16.mxu0 %v11948_v35  ;;  %v10218_v33 = vld [vmem:[%s14044_s3 + $0x5cc] ss:$16 sps:$4 sm:$0xff]   ;;  %v10213_v35 = vld [vmem:[%s14044_s3 + $0x5c0] ss:$16 sps:$4 sm:$0xff]  }
 0xaac   :  { %9168 = vmatpush3.bf16.msra.mxu1 %v11954_v37  ;;  %9190 = vmatpush3.bf16.msra.mxu0 %v11960_v38  ;;  %v10216_v37 = vld [vmem:[%s14044_s3 + $0x5c8] ss:$16 sps:$4 sm:$0xff]   ;;  %v10221_v38 = vld [vmem:[%s14044_s3 + $0x5e4] ss:$16 sps:$4 sm:$0xff]  }
 0xaad   :  { %9169 = vmatprep.subr.bf16.mxu1 %v11966_v40  ;;  %9191 = vmatprep.subr.bf16.mxu0 %v11972_v41  ;;  %v10219_v40 = vld [vmem:[%s14044_s3 + $0x5e0] ss:$16 sps:$4 sm:$0xff]   ;;  %v10224_v41 = vld [vmem:[%s14044_s3 + $0x5ec] ss:$16 sps:$4 sm:$0xff]  }
 0xab0   :  { %9170 = vmatpush3.bf16.msra.mxu1 %v11978_v42  ;;  %9192 = vmatpush3.bf16.msra.mxu0 %v11984_v45  ;;  %v10222_v42 = vld [vmem:[%s14044_s3 + $0x5e8] ss:$16 sps:$4 sm:$0xff]   ;;  %v12594_v45 = vld [vmem:[%s14042_s1 + $0x40] sm:$0xff]  }
 0xab1   :  { %9171 = vmatprep.subr.bf16.mxu1 %v11990_v47  ;;  %9193 = vmatprep.subr.bf16.mxu0 %v11996_v50  ;;  %v12600_v47 = vld [vmem:[%s14042_s1 + $0xc0] sm:$0xff]  }
 0xab4   :  { %9172 = vmatpush3.bf16.msra.mxu1 %v12004_v56  ;;  %9194 = vmatpush3.bf16.msra.mxu0 %v12010_v58 }
 0xab5   :  { %9173 = vmatprep.subr.bf16.mxu1 %v12016_v60  ;;  %9195 = vmatprep.subr.bf16.mxu0 %v12022_v61 }
 0xab8   :  { %9174 = vmatpush3.bf16.msra.mxu1 %v12028_v10  ;;  %9196 = vmatpush3.bf16.msra.mxu0 %v12034_v4 }
 0xab9   :  { %9776 = vmatprep.subr.bf16.mxu1 %v10629_v36  ;;  %4512 = vmatprep.subr.bf16.mxu0 %v10203_v25  ;;  %v12669_v25 = vld [vmem:[%s14042_s1 + $0x50] sm:$0xff]  }
 0xabb   :  { %4323 = vmatmul.mubr.bf16.vlgmr.msra.gmra.mrb[108].mxu1 %v4266_v18  ;;  %4363 = vmatmul.mubr.bf16.vlgmr.msra.gmra.mrb[112].mxu0 %v4281_v20  ;;  %v12633_v18 = vld [vmem:[%s14042_s1] sm:$0xff]  }
 0xabc   :  { %9777 = vmatpush3.bf16.msra.mxu1 %v12041_v55  ;;  %9784 = vmatprep.mubr.msk.bf16.mxu1 %vm10630_vm0, %v10629_v36  ;;  %v12639_v20 = vld [vmem:[%s14042_s1 + $0x80] sm:$0xff]  }
 0xabd   :  { %9778 = vmatprep.subr.bf16.mxu1 %v10629_v36  ;;  %4544 = vmatprep.mubr.bf16.mxu0 %v10631_v17 }
 0xabe   :  { %4513 = vmatpush1.bf16.msra.mxu0 %v10201_v24  ;;  %v12663_v24 = vld [vmem:[%s14042_s1 + $0x88] sm:$0xff]  }
 0xabf   :  { %4514 = vmatprep.subr.bf16.mxu0 %v10209_v28  ;;  %v12687_v28 = vld [vmem:[%s14042_s1 + $0x90] sm:$0xff]  }
 0xac0   :  { %9779 = vmatpush3.bf16.msra.mxu1 %v12053_v12 }
 0xac1   :  { %9780 = vmatprep.subr.bf16.mxu1 %v10629_v36 }
 0xac2   :  { %4515 = vmatpush1.bf16.msra.mxu0 %v10207_v30  ;;  %v12699_v30 = vld [vmem:[%s14042_s1 + $0xd8] sm:$0xff]  }
 0xac3   :  { %4516 = vmatprep.subr.bf16.mxu0 %v10215_v32  ;;  %v12711_v32 = vld [vmem:[%s14042_s1 + $0x98] sm:$0xff]  }
 0xac4   :  { %9781 = vmatpush3.bf16.msra.mxu1 %v12061_v62 }
 0xac5   :  { %9782 = vmatprep.subr.bf16.mxu1 %v10629_v36 }
 0xac6   :  { %4517 = vmatpush1.bf16.msra.mxu0 %v10213_v35  ;;  %v12723_v35 = vld [vmem:[%s14042_s1 + $0xe0] sm:$0xff]  }
 0xac7   :  { %4518 = vmatprep.subr.bf16.mxu0 %v10221_v38  ;;  %v12735_v38 = vld [vmem:[%s14042_s1 + $0xa0] sm:$0xff]  }
 0xac8   :  { %9783 = vmatpush3.bf16.msra.mxu1 %v12069_v59 }
 0xac9   :  { %4553 = vmatprep.subr.bf16.mxu1 %v10206_v27  ;;  %v12681_v27 = vld [vmem:[%s14042_s1 + $0x10] sm:$0xff]  }
 0xaca   :  { %4519 = vmatpush1.bf16.msra.mxu0 %v10219_v40  ;;  %v12741_v40 = vld [vmem:[%s14042_s1 + $0x68] sm:$0xff]  }
 0xacb   :  { %9785 = vmatmul.mubr.msk.bf16.vlgmr.msra.gmra.mrb[112].mxu1 %vm368_vm1, %v4273_v23  ;;  %9208 = vmatprep.subr.bf16.mxu0 %v12594_v45  ;;  %v12657_v23 = vld [vmem:[%s14042_s1 + $0x8] sm:$0xff]  }
 0xacc   :  { %4585 = vmatprep.mubr.bf16.mxu1 %v10631_v17  ;;  %4554 = vmatpush1.bf16.msra.mxu1 %v10204_v26  ;;  %v12675_v26 = vld [vmem:[%s14042_s1 + $0xd0] sm:$0xff]  }
 0xacd   :  { %4555 = vmatprep.subr.bf16.mxu1 %v10212_v29  ;;  %v12693_v29 = vld [vmem:[%s14042_s1 + $0x58] sm:$0xff]  }
 0xad0   :  { %4556 = vmatpush1.bf16.msra.mxu1 %v10210_v31  ;;  %v12705_v31 = vld [vmem:[%s14042_s1 + $0x18] sm:$0xff]  }
 0xad1   :  { %4557 = vmatprep.subr.bf16.mxu1 %v10218_v33  ;;  %v12717_v33 = vld [vmem:[%s14042_s1 + $0x60] sm:$0xff]  }
 0xad4   :  { %4558 = vmatpush1.bf16.msra.mxu1 %v10216_v37  ;;  %v12729_v37 = vld [vmem:[%s14042_s1 + $0x20] sm:$0xff]  }
 0xad5   :  { %4559 = vmatprep.subr.bf16.mxu1 %v10224_v41  ;;  %v12747_v41 = vld [vmem:[%s14042_s1 + $0xe8] sm:$0xff]  }
 0xad8   :  { %4560 = vmatpush1.bf16.msra.mxu1 %v10222_v42  ;;  %v12753_v42 = vld [vmem:[%s14042_s1 + $0x28] sm:$0xff]  }
 0xad9   :  { %9230 = vmatprep.subr.bf16.mxu1 %v12600_v47 }
 0xb6e   :  { %v4189_v50 = vpop.f32.mrb[104].mxu1  ;;  %v4230_v56 = vpop.f32.mrb[108].mxu0 }
 0xb6f   :  { %v12604_v58 = vadd.f32 %v4189_v50, %v12473_v48  ;;  %v12607_v60 = vadd.f32 %v4230_v56, %v12476_v13  ;;  %v4191_v61 = vpop.f32.mrb[105].mxu1  ;;  %v4232_v10 = vpop.f32.mrb[109].mxu0  ;;  %v12759_v50 = vld [vmem:[%s14042_s1 + $0xa8] sm:$0xff]   ;;  %v12765_v56 = vld [vmem:[%s14042_s1 + $0x70] sm:$0xff]  }
 0xb70   :  { %v12610_v4 = vadd.f32 %v4191_v61, %v12479_v49  ;;  %v12613_v55 = vadd.f32 %v4232_v10, %v12482_v3  ;;  %v4193_v12 = vpop.f32.mrb[106].mxu1  ;;  %v4234_v62 = vpop.f32.mrb[110].mxu0  ;;  %v12619_v3 = vld [vmem:[%s14041_s0 + $0x3c] sm:$0x1f]  ;;  %v12771_v61 = vld [vmem:[%s14042_s1 + $0xf0] sm:$0xff]  }
 0xb71   :  { %v4194_v59 = vpop.f32.mrb[107].mxu1  ;;  %v4235_v52 = vpop.f32.mrb[111].mxu0  ;;  %v12623_v51 = vrot.slane %v12619_v3, %v10873_v39  ;;  %v12779_v12 = vld [vmem:[%s14042_s1 + $0x30] sm:$0xff]  }
 0xb72   :  { %v12785_v62 = vld [vmem:[%s14042_s1 + $0xb0] sm:$0xff]   ;;  %v12791_v59 = vld [vmem:[%s14042_s1 + $0x78] sm:$0xff]  }
 0xb73   :  { %v4616_v53 = vcombine.high %v12623_v51, %v12623_v51  ;;  %v4623_v10 = vrot.slane %v12623_v51, %v10873_v39  ;;  %v12797_v52 = vld [vmem:[%s14042_s1 + $0xf8] sm:$0xff]  }
 0xb74   :  { %v10231_v51 = vld [vmem:[%s14044_s3 + $0x60c] ss:$16 sps:$4 sm:$0xff]  }
 0xb75   :  { %v4637_v63 = vrot.slane %v4616_v53, %v10873_v39  ;;  %v10234_v53 = vld [vmem:[%s14044_s3 + $0x624] ss:$16 sps:$4 sm:$0xff]  }
 0xb77   :  { %v4639_v16 = vcombine.high %v4637_v63, %v4637_v63 }
 0xb8e   :  { %v9175_v14 = vpop.f32.mrb[108].mxu1  ;;  %v9197_v5 = vpop.f32.mrb[112].mxu0 }
 0xb8f   :  { %v9176_v0 = vpop.f32.mrb[109].mxu1  ;;  %v9198_v48 = vpop.f32.mrb[113].mxu0 }
 0xb90   :  { %v9177_v15 = vadd.f32 %v9176_v0, %v9175_v14  ;;  %v9178_v6 = vpop.f32.mrb[110].mxu1  ;;  %v9199_v13 = vadd.f32 %v9198_v48, %v9197_v5  ;;  %v9200_v11 = vpop.f32.mrb[114].mxu0  ;;  %v4638_v14 = vcombine.high %v4623_v10, %v4623_v10  ;;  %v12803_v5 = vld [vmem:[%s14042_s1 + $0x38] sm:$0xff]   ;;  %v12816_v48 = vld [vmem:[%s14042_s1 + $0x100] sm:$0xff]  }
 0xb91   :  { %v9179_v54 = vpop.f32.mrb[111].mxu1  ;;  %v9201_v8 = vpop.f32.mrb[115].mxu0  ;;  %v12809_v0 = vld [vmem:[%s14042_s1 + $0xb8] sm:$0xff]   ;;  %v12828_v6 = vld [vmem:[%s14042_s1 + $0x108] sm:$0xff]   ;;  %v12836_v11 = vld [vmem:[%s14042_s1 + $0x110] sm:$0xff]  }
 0xb92   :  { %v4325_v49 = vadd.f32 %v12487_v1, %v9177_v15  ;;  %v4601_v15 = vcombine.high %v12619_v3, %v12619_v3  ;;  %v12844_v8 = vld [vmem:[%s14042_s1 + $0x118] sm:$0xff]  }
 0xb93   :  { %v10229_v3 = vld [vmem:[%s14044_s3 + $0x608] ss:$16 sps:$4 sm:$0xff]  }
 0xb94   :  { %v4365_v46 = vadd.f32 %v9199_v13, %v4325_v49  ;;  %v4615_v13 = vrot.slane %v4601_v15, %v10873_v39  ;;  %v10226_v49 = vld [vmem:[%s14044_s3 + $0x600] ss:$16 sps:$4 sm:$0xff]  }
 0xb96   :  { %v4630_v54 = vrot.slane %v4615_v13, %v10873_v39 }
 0xb9e   :  { %v4404_v7 = vpop.f32.mrb[112].mxu1 }
 0xb9f   :  { %v4405_v19 = vadd.f32 %v4404_v7, %v4365_v46  ;;  %v9786_v9 = vpop.f32.mrb[113].mxu1  ;;  %v10228_v46 = vld [vmem:[%s14044_s3 + $0x604] ss:$16 sps:$4 sm:$0xff]   ;;  %v10237_v7 = vld [vmem:[%s14044_s3 + $0x62c] ss:$16 sps:$4 sm:$0xff]  }
 0xba0   :  { %v4407_v43 = vpop.f32.mrb[114].mxu1  ;;  %v10235_v9 = vld [vmem:[%s14044_s3 + $0x628] ss:$16 sps:$4 sm:$0xff]  }
 0xba1   :  { %v4410_v44 = vmax.f32 %v4405_v19, 0.0  ;;  %v9787_v57 = vpop.f32.mrb[115].mxu1  ;;  %v10232_v19 = vld [vmem:[%s14044_s3 + $0x620] ss:$16 sps:$4 sm:$0xff]   ;;  %v10240_v43 = vld [vmem:[%s14044_s3 + $0x644] ss:$16 sps:$4 sm:$0xff]  }
 0xba2   :  { %v10241_v57 = vld [vmem:[%s14044_s3 + $0x648] ss:$16 sps:$4 sm:$0xff]  }
 0xba3   :  { %v4411_v2 = vpack.c.bf16 %v4410_v44, %v4410_v44  ;;  %v10238_v44 = vld [vmem:[%s14044_s3 + $0x640] ss:$16 sps:$4 sm:$0xff]  }
 0xba5   :  { %8297 = vmatmul.mubr.msk.bf16.vlgmr.msra.gmra.mrb[116].mxu0 %vm368_vm1, %v4411_v2  ;;  %8298 = vmatmul.mubr.msk.bf16.vlgmr.msra.gmra.mrb[116].mxu1 %vm368_vm1, %v4411_v2  ;;  %v10246_v2 = vld [vmem:[%s14044_s3 + $0x664] ss:$16 sps:$4 sm:$0xff]  }
 0xba6   :  { %9209 = vmatpush3.bf16.msra.mxu0 %v12633_v18  ;;  %9231 = vmatpush3.bf16.msra.mxu1 %v12639_v20 }
 0xba7   :  { %9210 = vmatprep.subr.bf16.mxu0 %v12645_v21  ;;  %9232 = vmatprep.subr.bf16.mxu1 %v12651_v22 }
 0xba8   :  { %4679 = vmatprep.mubr.bf16.mxu0 %v4637_v63  ;;  %4719 = vmatprep.mubr.bf16.mxu1 %v4639_v16  ;;  %v10243_v63 = vld [vmem:[%s14044_s3 + $0x64c] ss:$16 sps:$4 sm:$0xff]   ;;  %v10244_v16 = vld [vmem:[%s14044_s3 + $0x660] ss:$16 sps:$4 sm:$0xff]  }
 0xbaa   :  { %9211 = vmatpush3.bf16.msra.mxu0 %v12657_v23  ;;  %9233 = vmatpush3.bf16.msra.mxu1 %v12663_v24 }
 0xbab   :  { %9212 = vmatprep.subr.bf16.mxu0 %v12669_v25  ;;  %9234 = vmatprep.subr.bf16.mxu1 %v12675_v26 }
 0xbae   :  { %9213 = vmatpush3.bf16.msra.mxu0 %v12681_v27  ;;  %9235 = vmatpush3.bf16.msra.mxu1 %v12687_v28 }
 0xbaf   :  { %9214 = vmatprep.subr.bf16.mxu0 %v12693_v29  ;;  %9236 = vmatprep.subr.bf16.mxu1 %v12699_v30 }
 0xbb2   :  { %9215 = vmatpush3.bf16.msra.mxu0 %v12705_v31  ;;  %9237 = vmatpush3.bf16.msra.mxu1 %v12711_v32 }
 0xbb3   :  { %9216 = vmatprep.subr.bf16.mxu0 %v12717_v33  ;;  %9238 = vmatprep.subr.bf16.mxu1 %v12723_v35 }
 0xbb6   :  { %9217 = vmatpush3.bf16.msra.mxu0 %v12729_v37  ;;  %9239 = vmatpush3.bf16.msra.mxu1 %v12735_v38 }
 0xbb7   :  { %9218 = vmatprep.subr.bf16.mxu0 %v12741_v40  ;;  %9240 = vmatprep.subr.bf16.mxu1 %v12747_v41 }
 0xbba   :  { %9219 = vmatpush3.bf16.msra.mxu0 %v12753_v42  ;;  %9241 = vmatpush3.bf16.msra.mxu1 %v12759_v50 }
 0xbbb   :  { %9220 = vmatprep.subr.bf16.mxu0 %v12765_v56  ;;  %9242 = vmatprep.subr.bf16.mxu1 %v12771_v61 }
 0xbbe   :  { %9221 = vmatpush3.bf16.msra.mxu0 %v12779_v12  ;;  %9243 = vmatpush3.bf16.msra.mxu1 %v12785_v62 }
 0xbbf   :  { %9222 = vmatprep.subr.bf16.mxu0 %v12791_v59  ;;  %9244 = vmatprep.subr.bf16.mxu1 %v12797_v52 }
 0xbc2   :  { %9223 = vmatpush3.bf16.msra.mxu0 %v12803_v5  ;;  %9245 = vmatpush3.bf16.msra.mxu1 %v12809_v0 }
 0xbc3   :  { %9788 = vmatprep.subr.bf16.mxu0 %v10629_v36  ;;  %4869 = vmatprep.subr.bf16.mxu1 %v10228_v46 }
 0xbc5   :  { %4680 = vmatmul.mubr.bf16.vlgmr.msra.gmra.mrb[120].mxu0 %v4623_v10  ;;  %4720 = vmatmul.mubr.bf16.vlgmr.msra.gmra.mrb[120].mxu1 %v4638_v14  ;;  %v10249_v10 = vld [vmem:[%s14044_s3 + $0x66c] ss:$16 sps:$4 sm:$0xff]   ;;  %v10247_v14 = vld [vmem:[%s14044_s3 + $0x668] ss:$16 sps:$4 sm:$0xff]  }
 0xbc6   :  { %9789 = vmatpush3.bf16.msra.mxu0 %v12816_v48  ;;  %9796 = vmatprep.mubr.msk.bf16.mxu0 %vm10630_vm0, %v10629_v36 }
 0xbc7   :  { %9790 = vmatprep.subr.bf16.mxu0 %v10629_v36  ;;  %4901 = vmatprep.mubr.bf16.mxu1 %v10631_v17 }
 0xbc8   :  { %4870 = vmatpush1.bf16.msra.mxu1 %v10226_v49 }
 0xbc9   :  { %4871 = vmatprep.subr.bf16.mxu1 %v10234_v53 }
 0xbca   :  { %9791 = vmatpush3.bf16.msra.mxu0 %v12828_v6 }
 0xbcb   :  { %9792 = vmatprep.subr.bf16.mxu0 %v10629_v36 }
 0xbcc   :  { %4872 = vmatpush1.bf16.msra.mxu1 %v10232_v19 }
 0xbcd   :  { %4873 = vmatprep.subr.bf16.mxu1 %v10240_v43 }
 0xbce   :  { %9793 = vmatpush3.bf16.msra.mxu0 %v12836_v11 }
 0xbcf   :  { %9794 = vmatprep.subr.bf16.mxu0 %v10629_v36 }
 0xbd0   :  { %4874 = vmatpush1.bf16.msra.mxu1 %v10238_v44 }
 0xbd1   :  { %4875 = vmatprep.subr.bf16.mxu1 %v10246_v2 }
 0xbd2   :  { %9795 = vmatpush3.bf16.msra.mxu0 %v12844_v8 }
 0xbd3   :  { %4910 = vmatprep.subr.bf16.mxu0 %v10231_v51 }
 0xbd4   :  { %4876 = vmatpush1.bf16.msra.mxu1 %v10244_v16 }
 0xbd5   :  { %9797 = vmatmul.mubr.msk.bf16.vlgmr.msra.gmra.mrb[124].mxu0 %vm368_vm1, %v4630_v54  ;;  %9257 = vmatprep.subr.bf16.mxu1 %v12594_v45 }
 0xbd6   :  { %4942 = vmatprep.mubr.bf16.mxu0 %v10631_v17  ;;  %4911 = vmatpush1.bf16.msra.mxu0 %v10229_v3 }
 0xbd7   :  { %4912 = vmatprep.subr.bf16.mxu0 %v10237_v7 }
 0xbda   :  { %4913 = vmatpush1.bf16.msra.mxu0 %v10235_v9 }
 0xbdb   :  { %4914 = vmatprep.subr.bf16.mxu0 %v10243_v63 }
 0xbde   :  { %4915 = vmatpush1.bf16.msra.mxu0 %v10241_v57 }
 0xbdf   :  { %4916 = vmatprep.subr.bf16.mxu0 %v10249_v10 }
 0xbe2   :  { %4917 = vmatpush1.bf16.msra.mxu0 %v10247_v14 }
 0xbe3   :  { %9279 = vmatprep.subr.bf16.mxu0 %v12600_v47 }
 0xc78   :  { %v4546_v15 = vpop.f32.mrb[116].mxu0  ;;  %v4587_v13 = vpop.f32.mrb[116].mxu1 }
 0xc79   :  { %v12900_v54 = vadd.f32 %v4546_v15, %v12604_v58  ;;  %v12903_v49 = vadd.f32 %v4587_v13, %v12607_v60  ;;  %v4548_v46 = vpop.f32.mrb[117].mxu0  ;;  %v4589_v3 = vpop.f32.mrb[117].mxu1 }
 0xc7a   :  { %v12906_v51 = vadd.f32 %v4548_v46, %v12610_v4  ;;  %v12909_v53 = vadd.f32 %v4589_v3, %v12613_v55  ;;  %v4550_v7 = vpop.f32.mrb[118].mxu0  ;;  %v4591_v19 = vpop.f32.mrb[118].mxu1  ;;  %v8335_v55 = vld [vmem:[%s14041_s0 + $0x41] sm:$0x1f] }
 0xc7b   :  { %v4551_v9 = vpop.f32.mrb[119].mxu0  ;;  %v4592_v43 = vpop.f32.mrb[119].mxu1  ;;  %v4965_v46 = vrot.slane %v8335_v55, %v10873_v39 }
 0xc7d   :  { %v4973_v3 = vcombine.high %v4965_v46, %v4965_v46 }
 0xc98   :  { %v9224_v63 = vpop.f32.mrb[120].mxu0  ;;  %v9246_v44 = vpop.f32.mrb[120].mxu1 }
 0xc99   :  { %v9225_v57 = vpop.f32.mrb[121].mxu0  ;;  %v9247_v58 = vpop.f32.mrb[121].mxu1 }
 0xc9a   :  { %v9226_v2 = vadd.f32 %v9225_v57, %v9224_v63  ;;  %v9227_v16 = vpop.f32.mrb[122].mxu0  ;;  %v9248_v60 = vadd.f32 %v9247_v58, %v9246_v44  ;;  %v9249_v10 = vpop.f32.mrb[122].mxu1  ;;  %v4994_v63 = vrot.slane %v4973_v3, %v10873_v39  ;;  %v10259_v3 = vld [vmem:[%s14044_s3 + $0x6a4] ss:$16 sps:$4 sm:$0xff]  }
 0xc9b   :  { %v9228_v14 = vpop.f32.mrb[123].mxu0  ;;  %v9250_v15 = vpop.f32.mrb[123].mxu1  ;;  %v4958_v10 = vcombine.high %v8335_v55, %v8335_v55  ;;  %v10254_v55 = vld [vmem:[%s14044_s3 + $0x688] ss:$16 sps:$4 sm:$0xff]  }
 0xc9c   :  { %v4682_v4 = vadd.f32 %v12487_v1, %v9226_v2  ;;  %v4996_v16 = vcombine.high %v4994_v63, %v4994_v63  ;;  %v4980_v2 = vrot.slane %v4965_v46, %v10873_v39  ;;  %v10256_v46 = vld [vmem:[%s14044_s3 + $0x68c] ss:$16 sps:$4 sm:$0xff]  }
 0xc9d   :  { %v4972_v14 = vrot.slane %v4958_v10, %v10873_v39 }
 0xc9e   :  { %v4722_v13 = vadd.f32 %v9248_v60, %v4682_v4  ;;  %v4995_v60 = vcombine.high %v4980_v2, %v4980_v2  ;;  %v10251_v4 = vld [vmem:[%s14044_s3 + $0x680] ss:$16 sps:$4 sm:$0xff]  }
 0xc9f   :  { %v4987_v15 = vrot.slane %v4972_v14, %v10873_v39 }
 0xca8   :  { %v4761_v7 = vpop.f32.mrb[124].mxu0 }
 0xca9   :  { %v4762_v19 = vadd.f32 %v4761_v7, %v4722_v13  ;;  %v9798_v9 = vpop.f32.mrb[125].mxu0  ;;  %v10253_v13 = vld [vmem:[%s14044_s3 + $0x684] ss:$16 sps:$4 sm:$0xff]   ;;  %v10262_v7 = vld [vmem:[%s14044_s3 + $0x6ac] ss:$16 sps:$4 sm:$0xff]  }
 0xcaa   :  { %v4764_v43 = vpop.f32.mrb[126].mxu0  ;;  %v10260_v9 = vld [vmem:[%s14044_s3 + $0x6a8] ss:$16 sps:$4 sm:$0xff]  }
 0xcab   :  { %v4767_v44 = vmax.f32 %v4762_v19, 0.0  ;;  %v9799_v57 = vpop.f32.mrb[127].mxu0  ;;  %v10257_v19 = vld [vmem:[%s14044_s3 + $0x6a0] ss:$16 sps:$4 sm:$0xff]   ;;  %v10265_v43 = vld [vmem:[%s14044_s3 + $0x6c4] ss:$16 sps:$4 sm:$0xff]  }
 0xcac   :  { %v10266_v57 = vld [vmem:[%s14044_s3 + $0x6c8] ss:$16 sps:$4 sm:$0xff]  }
 0xcad   :  { %v4768_v58 = vpack.c.bf16 %v4767_v44, %v4767_v44  ;;  %v10263_v44 = vld [vmem:[%s14044_s3 + $0x6c0] ss:$16 sps:$4 sm:$0xff]  }
 0xcaf   :  { %8333 = vmatmul.mubr.msk.bf16.vlgmr.msra.gmra.mrb[124].mxu1 %vm368_vm1, %v4768_v58  ;;  %8334 = vmatmul.mubr.msk.bf16.vlgmr.msra.gmra.mrb[128].mxu0 %vm368_vm1, %v4768_v58  ;;  %v10271_v58 = vld [vmem:[%s14044_s3 + $0x6e4] ss:$16 sps:$4 sm:$0xff]  }
 0xcb0   :  { %9258 = vmatpush3.bf16.msra.mxu1 %v12633_v18  ;;  %9280 = vmatpush3.bf16.msra.mxu0 %v12639_v20 }
 0xcb1   :  { %9259 = vmatprep.subr.bf16.mxu1 %v12645_v21  ;;  %9281 = vmatprep.subr.bf16.mxu0 %v12651_v22 }
 0xcb2   :  { %5036 = vmatprep.mubr.bf16.mxu1 %v4994_v63  ;;  %5076 = vmatprep.mubr.bf16.mxu0 %v4996_v16  ;;  %v10268_v63 = vld [vmem:[%s14044_s3 + $0x6cc] ss:$16 sps:$4 sm:$0xff]   ;;  %v10269_v16 = vld [vmem:[%s14044_s3 + $0x6e0] ss:$16 sps:$4 sm:$0xff]  }
 0xcb4   :  { %9260 = vmatpush3.bf16.msra.mxu1 %v12657_v23  ;;  %9282 = vmatpush3.bf16.msra.mxu0 %v12663_v24 }
 0xcb5   :  { %9261 = vmatprep.subr.bf16.mxu1 %v12669_v25  ;;  %9283 = vmatprep.subr.bf16.mxu0 %v12675_v26 }
 0xcb8   :  { %9262 = vmatpush3.bf16.msra.mxu1 %v12681_v27  ;;  %9284 = vmatpush3.bf16.msra.mxu0 %v12687_v28 }
 0xcb9   :  { %9263 = vmatprep.subr.bf16.mxu1 %v12693_v29  ;;  %9285 = vmatprep.subr.bf16.mxu0 %v12699_v30 }
 0xcbc   :  { %9264 = vmatpush3.bf16.msra.mxu1 %v12705_v31  ;;  %9286 = vmatpush3.bf16.msra.mxu0 %v12711_v32 }
 0xcbd   :  { %9265 = vmatprep.subr.bf16.mxu1 %v12717_v33  ;;  %9287 = vmatprep.subr.bf16.mxu0 %v12723_v35 }
 0xcc0   :  { %9266 = vmatpush3.bf16.msra.mxu1 %v12729_v37  ;;  %9288 = vmatpush3.bf16.msra.mxu0 %v12735_v38 }
 0xcc1   :  { %9267 = vmatprep.subr.bf16.mxu1 %v12741_v40  ;;  %9289 = vmatprep.subr.bf16.mxu0 %v12747_v41 }
 0xcc4   :  { %9268 = vmatpush3.bf16.msra.mxu1 %v12753_v42  ;;  %9290 = vmatpush3.bf16.msra.mxu0 %v12759_v50 }
 0xcc5   :  { %9269 = vmatprep.subr.bf16.mxu1 %v12765_v56  ;;  %9291 = vmatprep.subr.bf16.mxu0 %v12771_v61 }
 0xcc8   :  { %9270 = vmatpush3.bf16.msra.mxu1 %v12779_v12  ;;  %9292 = vmatpush3.bf16.msra.mxu0 %v12785_v62 }
 0xcc9   :  { %9271 = vmatprep.subr.bf16.mxu1 %v12791_v59  ;;  %9293 = vmatprep.subr.bf16.mxu0 %v12797_v52 }
 0xccc   :  { %9272 = vmatpush3.bf16.msra.mxu1 %v12803_v5  ;;  %9294 = vmatpush3.bf16.msra.mxu0 %v12809_v0 }
 0xccd   :  { %9800 = vmatprep.subr.bf16.mxu1 %v10629_v36  ;;  %5226 = vmatprep.subr.bf16.mxu0 %v10253_v13 }
 0xccf   :  { %5037 = vmatmul.mubr.bf16.vlgmr.msra.gmra.mrb[128].mxu1 %v4980_v2  ;;  %5077 = vmatmul.mubr.bf16.vlgmr.msra.gmra.mrb[132].mxu0 %v4995_v60  ;;  %v10274_v2 = vld [vmem:[%s14044_s3 + $0x6ec] ss:$16 sps:$4 sm:$0xff]   ;;  %v10272_v60 = vld [vmem:[%s14044_s3 + $0x6e8] ss:$16 sps:$4 sm:$0xff]  }
 0xcd0   :  { %9801 = vmatpush3.bf16.msra.mxu1 %v12816_v48  ;;  %9808 = vmatprep.mubr.msk.bf16.mxu1 %vm10630_vm0, %v10629_v36 }
 0xcd1   :  { %9802 = vmatprep.subr.bf16.mxu1 %v10629_v36  ;;  %5258 = vmatprep.mubr.bf16.mxu0 %v10631_v17 }
 0xcd2   :  { %5227 = vmatpush1.bf16.msra.mxu0 %v10251_v4 }
 0xcd3   :  { %5228 = vmatprep.subr.bf16.mxu0 %v10259_v3 }
 0xcd4   :  { %9803 = vmatpush3.bf16.msra.mxu1 %v12828_v6 }
 0xcd5   :  { %9804 = vmatprep.subr.bf16.mxu1 %v10629_v36 }
 0xcd6   :  { %5229 = vmatpush1.bf16.msra.mxu0 %v10257_v19 }
 0xcd7   :  { %5230 = vmatprep.subr.bf16.mxu0 %v10265_v43 }
 0xcd8   :  { %9805 = vmatpush3.bf16.msra.mxu1 %v12836_v11 }
 0xcd9   :  { %9806 = vmatprep.subr.bf16.mxu1 %v10629_v36 }
 0xcda   :  { %5231 = vmatpush1.bf16.msra.mxu0 %v10263_v44 }
 0xcdb   :  { %5232 = vmatprep.subr.bf16.mxu0 %v10271_v58 }
 0xcdc   :  { %9807 = vmatpush3.bf16.msra.mxu1 %v12844_v8 }
 0xcdd   :  { %5267 = vmatprep.subr.bf16.mxu1 %v10256_v46 }
 0xcde   :  { %5233 = vmatpush1.bf16.msra.mxu0 %v10269_v16 }
 0xcdf   :  { %9809 = vmatmul.mubr.msk.bf16.vlgmr.msra.gmra.mrb[132].mxu1 %vm368_vm1, %v4987_v15  ;;  %9306 = vmatprep.subr.bf16.mxu0 %v12594_v45 }
 0xce0   :  { %5299 = vmatprep.mubr.bf16.mxu1 %v10631_v17  ;;  %5268 = vmatpush1.bf16.msra.mxu1 %v10254_v55 }
 0xce1   :  { %5269 = vmatprep.subr.bf16.mxu1 %v10262_v7 }
 0xce4   :  { %5270 = vmatpush1.bf16.msra.mxu1 %v10260_v9 }
 0xce5   :  { %5271 = vmatprep.subr.bf16.mxu1 %v10268_v63 }
 0xce8   :  { %5272 = vmatpush1.bf16.msra.mxu1 %v10266_v57 }
 0xce9   :  { %5273 = vmatprep.subr.bf16.mxu1 %v10274_v2 }
 0xcec   :  { %5274 = vmatpush1.bf16.msra.mxu1 %v10272_v60 }
 0xced   :  { %9328 = vmatprep.subr.bf16.mxu1 %v12600_v47 }
 0xd82   :  { %v4903_v10 = vpop.f32.mrb[124].mxu1  ;;  %v4944_v14 = vpop.f32.mrb[128].mxu0 }
 0xd83   :  { %v13016_v15 = vadd.f32 %v4903_v10, %v12900_v54  ;;  %v13019_v4 = vadd.f32 %v4944_v14, %v12903_v49  ;;  %v4905_v13 = vpop.f32.mrb[125].mxu1  ;;  %v4946_v55 = vpop.f32.mrb[129].mxu0 }
 0xd84   :  { %v13022_v46 = vadd.f32 %v4905_v13, %v12906_v51  ;;  %v13025_v3 = vadd.f32 %v4946_v55, %v12909_v53  ;;  %v4907_v7 = vpop.f32.mrb[126].mxu1  ;;  %v4948_v19 = vpop.f32.mrb[130].mxu0  ;;  %v8371_v53 = vld [vmem:[%s14041_s0 + $0x46] sm:$0x1f] }
 0xd85   :  { %v4908_v9 = vpop.f32.mrb[127].mxu1  ;;  %v4949_v43 = vpop.f32.mrb[131].mxu0  ;;  %v5322_v13 = vrot.slane %v8371_v53, %v10873_v39 }
 0xd87   :  { %v5330_v55 = vcombine.high %v5322_v13, %v5322_v13 }
 0xda2   :  { %v9273_v63 = vpop.f32.mrb[128].mxu1  ;;  %v9295_v44 = vpop.f32.mrb[132].mxu0 }
 0xda3   :  { %v9274_v57 = vpop.f32.mrb[129].mxu1  ;;  %v9296_v54 = vpop.f32.mrb[133].mxu0 }
 0xda4   :  { %v9275_v58 = vadd.f32 %v9274_v57, %v9273_v63  ;;  %v9276_v16 = vpop.f32.mrb[130].mxu1  ;;  %v9297_v49 = vadd.f32 %v9296_v54, %v9295_v44  ;;  %v9298_v2 = vpop.f32.mrb[134].mxu0  ;;  %v5351_v63 = vrot.slane %v5330_v55, %v10873_v39  ;;  %v10284_v55 = vld [vmem:[%s14044_s3 + $0x724] ss:$16 sps:$4 sm:$0xff]  }
 0xda5   :  { %v9277_v60 = vpop.f32.mrb[131].mxu1  ;;  %v9299_v10 = vpop.f32.mrb[135].mxu0  ;;  %v5315_v2 = vcombine.high %v8371_v53, %v8371_v53  ;;  %v10279_v53 = vld [vmem:[%s14044_s3 + $0x708] ss:$16 sps:$4 sm:$0xff]  }
 0xda6   :  { %v5039_v51 = vadd.f32 %v12487_v1, %v9275_v58  ;;  %v5353_v16 = vcombine.high %v5351_v63, %v5351_v63  ;;  %v5337_v58 = vrot.slane %v5322_v13, %v10873_v39  ;;  %v10281_v13 = vld [vmem:[%s14044_s3 + $0x70c] ss:$16 sps:$4 sm:$0xff]  }
 0xda7   :  { %v5329_v60 = vrot.slane %v5315_v2, %v10873_v39 }
 0xda8   :  { %v5079_v14 = vadd.f32 %v9297_v49, %v5039_v51  ;;  %v5352_v49 = vcombine.high %v5337_v58, %v5337_v58  ;;  %v10276_v51 = vld [vmem:[%s14044_s3 + $0x700] ss:$16 sps:$4 sm:$0xff]  }
 0xda9   :  { %v5344_v10 = vrot.slane %v5329_v60, %v10873_v39 }
 0xdb2   :  { %v5118_v7 = vpop.f32.mrb[132].mxu1 }
 0xdb3   :  { %v5119_v19 = vadd.f32 %v5118_v7, %v5079_v14  ;;  %v9810_v9 = vpop.f32.mrb[133].mxu1  ;;  %v10278_v14 = vld [vmem:[%s14044_s3 + $0x704] ss:$16 sps:$4 sm:$0xff]   ;;  %v10287_v7 = vld [vmem:[%s14044_s3 + $0x72c] ss:$16 sps:$4 sm:$0xff]  }
 0xdb4   :  { %v5121_v43 = vpop.f32.mrb[134].mxu1  ;;  %v10285_v9 = vld [vmem:[%s14044_s3 + $0x728] ss:$16 sps:$4 sm:$0xff]  }
 0xdb5   :  { %v5124_v44 = vmax.f32 %v5119_v19, 0.0  ;;  %v9811_v57 = vpop.f32.mrb[135].mxu1  ;;  %v10282_v19 = vld [vmem:[%s14044_s3 + $0x720] ss:$16 sps:$4 sm:$0xff]   ;;  %v10290_v43 = vld [vmem:[%s14044_s3 + $0x744] ss:$16 sps:$4 sm:$0xff]  }
 0xdb6   :  { %v10291_v57 = vld [vmem:[%s14044_s3 + $0x748] ss:$16 sps:$4 sm:$0xff]  }
 0xdb7   :  { %v5125_v54 = vpack.c.bf16 %v5124_v44, %v5124_v44  ;;  %v10288_v44 = vld [vmem:[%s14044_s3 + $0x740] ss:$16 sps:$4 sm:$0xff]  }
 0xdb9   :  { %8369 = vmatmul.mubr.msk.bf16.vlgmr.msra.gmra.mrb[136].mxu0 %vm368_vm1, %v5125_v54  ;;  %8370 = vmatmul.mubr.msk.bf16.vlgmr.msra.gmra.mrb[136].mxu1 %vm368_vm1, %v5125_v54  ;;  %v10296_v54 = vld [vmem:[%s14044_s3 + $0x764] ss:$16 sps:$4 sm:$0xff]  }
 0xdba   :  { %9307 = vmatpush3.bf16.msra.mxu0 %v12633_v18  ;;  %9329 = vmatpush3.bf16.msra.mxu1 %v12639_v20 }
 0xdbb   :  { %9308 = vmatprep.subr.bf16.mxu0 %v12645_v21  ;;  %9330 = vmatprep.subr.bf16.mxu1 %v12651_v22 }
 0xdbc   :  { %5393 = vmatprep.mubr.bf16.mxu0 %v5351_v63  ;;  %5433 = vmatprep.mubr.bf16.mxu1 %v5353_v16  ;;  %v10293_v63 = vld [vmem:[%s14044_s3 + $0x74c] ss:$16 sps:$4 sm:$0xff]   ;;  %v10294_v16 = vld [vmem:[%s14044_s3 + $0x760] ss:$16 sps:$4 sm:$0xff]  }
 0xdbe   :  { %9309 = vmatpush3.bf16.msra.mxu0 %v12657_v23  ;;  %9331 = vmatpush3.bf16.msra.mxu1 %v12663_v24 }
 0xdbf   :  { %9310 = vmatprep.subr.bf16.mxu0 %v12669_v25  ;;  %9332 = vmatprep.subr.bf16.mxu1 %v12675_v26 }
 0xdc2   :  { %9311 = vmatpush3.bf16.msra.mxu0 %v12681_v27  ;;  %9333 = vmatpush3.bf16.msra.mxu1 %v12687_v28 }
 0xdc3   :  { %9312 = vmatprep.subr.bf16.mxu0 %v12693_v29  ;;  %9334 = vmatprep.subr.bf16.mxu1 %v12699_v30 }
 0xdc6   :  { %9313 = vmatpush3.bf16.msra.mxu0 %v12705_v31  ;;  %9335 = vmatpush3.bf16.msra.mxu1 %v12711_v32 }
 0xdc7   :  { %9314 = vmatprep.subr.bf16.mxu0 %v12717_v33  ;;  %9336 = vmatprep.subr.bf16.mxu1 %v12723_v35 }
 0xdca   :  { %9315 = vmatpush3.bf16.msra.mxu0 %v12729_v37  ;;  %9337 = vmatpush3.bf16.msra.mxu1 %v12735_v38 }
 0xdcb   :  { %9316 = vmatprep.subr.bf16.mxu0 %v12741_v40  ;;  %9338 = vmatprep.subr.bf16.mxu1 %v12747_v41 }
 0xdce   :  { %9317 = vmatpush3.bf16.msra.mxu0 %v12753_v42  ;;  %9339 = vmatpush3.bf16.msra.mxu1 %v12759_v50 }
 0xdcf   :  { %9318 = vmatprep.subr.bf16.mxu0 %v12765_v56  ;;  %9340 = vmatprep.subr.bf16.mxu1 %v12771_v61 }
 0xdd2   :  { %9319 = vmatpush3.bf16.msra.mxu0 %v12779_v12  ;;  %9341 = vmatpush3.bf16.msra.mxu1 %v12785_v62 }
 0xdd3   :  { %9320 = vmatprep.subr.bf16.mxu0 %v12791_v59  ;;  %9342 = vmatprep.subr.bf16.mxu1 %v12797_v52 }
 0xdd6   :  { %9321 = vmatpush3.bf16.msra.mxu0 %v12803_v5  ;;  %9343 = vmatpush3.bf16.msra.mxu1 %v12809_v0 }
 0xdd7   :  { %9812 = vmatprep.subr.bf16.mxu0 %v10629_v36  ;;  %5583 = vmatprep.subr.bf16.mxu1 %v10278_v14 }
 0xdd9   :  { %5394 = vmatmul.mubr.bf16.vlgmr.msra.gmra.mrb[140].mxu0 %v5337_v58  ;;  %5434 = vmatmul.mubr.bf16.vlgmr.msra.gmra.mrb[140].mxu1 %v5352_v49  ;;  %v10299_v58 = vld [vmem:[%s14044_s3 + $0x76c] ss:$16 sps:$4 sm:$0xff]   ;;  %v10297_v49 = vld [vmem:[%s14044_s3 + $0x768] ss:$16 sps:$4 sm:$0xff]  }
 0xdda   :  { %9813 = vmatpush3.bf16.msra.mxu0 %v12816_v48  ;;  %9820 = vmatprep.mubr.msk.bf16.mxu0 %vm10630_vm0, %v10629_v36 }
 0xddb   :  { %9814 = vmatprep.subr.bf16.mxu0 %v10629_v36  ;;  %5615 = vmatprep.mubr.bf16.mxu1 %v10631_v17 }
 0xddc   :  { %5584 = vmatpush1.bf16.msra.mxu1 %v10276_v51 }
 0xddd   :  { %5585 = vmatprep.subr.bf16.mxu1 %v10284_v55 }
 0xdde   :  { %9815 = vmatpush3.bf16.msra.mxu0 %v12828_v6 }
 0xddf   :  { %9816 = vmatprep.subr.bf16.mxu0 %v10629_v36 }
 0xde0   :  { %5586 = vmatpush1.bf16.msra.mxu1 %v10282_v19 }
 0xde1   :  { %5587 = vmatprep.subr.bf16.mxu1 %v10290_v43 }
 0xde2   :  { %9817 = vmatpush3.bf16.msra.mxu0 %v12836_v11 }
 0xde3   :  { %9818 = vmatprep.subr.bf16.mxu0 %v10629_v36 }
 0xde4   :  { %5588 = vmatpush1.bf16.msra.mxu1 %v10288_v44 }
 0xde5   :  { %5589 = vmatprep.subr.bf16.mxu1 %v10296_v54 }
 0xde6   :  { %9819 = vmatpush3.bf16.msra.mxu0 %v12844_v8 }
 0xde7   :  { %5624 = vmatprep.subr.bf16.mxu0 %v10281_v13 }
 0xde8   :  { %5590 = vmatpush1.bf16.msra.mxu1 %v10294_v16 }
 0xde9   :  { %9821 = vmatmul.mubr.msk.bf16.vlgmr.msra.gmra.mrb[144].mxu0 %vm368_vm1, %v5344_v10  ;;  %9355 = vmatprep.subr.bf16.mxu1 %v12594_v45 }
 0xdea   :  { %5656 = vmatprep.mubr.bf16.mxu0 %v10631_v17  ;;  %5625 = vmatpush1.bf16.msra.mxu0 %v10279_v53 }
 0xdeb   :  { %5626 = vmatprep.subr.bf16.mxu0 %v10287_v7 }
 0xdee   :  { %5627 = vmatpush1.bf16.msra.mxu0 %v10285_v9 }
 0xdef   :  { %5628 = vmatprep.subr.bf16.mxu0 %v10293_v63 }
 0xdf2   :  { %5629 = vmatpush1.bf16.msra.mxu0 %v10291_v57 }
 0xdf3   :  { %5630 = vmatprep.subr.bf16.mxu0 %v10299_v58 }
 0xdf6   :  { %5631 = vmatpush1.bf16.msra.mxu0 %v10297_v49 }
 0xdf7   :  { %9377 = vmatprep.subr.bf16.mxu0 %v12600_v47 }
 0xe8c   :  { %v5260_v2 = vpop.f32.mrb[136].mxu0  ;;  %v5301_v60 = vpop.f32.mrb[136].mxu1 }
 0xe8d   :  { %v13132_v10 = vadd.f32 %v5260_v2, %v13016_v15  ;;  %v13135_v51 = vadd.f32 %v5301_v60, %v13019_v4  ;;  %v5262_v14 = vpop.f32.mrb[137].mxu0  ;;  %v5303_v53 = vpop.f32.mrb[137].mxu1 }
 0xe8e   :  { %v13138_v13 = vadd.f32 %v5262_v14, %v13022_v46  ;;  %v13141_v55 = vadd.f32 %v5303_v53, %v13025_v3  ;;  %v5264_v7 = vpop.f32.mrb[138].mxu0  ;;  %v5305_v19 = vpop.f32.mrb[138].mxu1  ;;  %v8407_v3 = vld [vmem:[%s14041_s0 + $0x4b] sm:$0x1f] }
 0xe8f   :  { %v5265_v9 = vpop.f32.mrb[139].mxu0  ;;  %v5306_v43 = vpop.f32.mrb[139].mxu1  ;;  %v5679_v14 = vrot.slane %v8407_v3, %v10873_v39 }
 0xe91   :  { %v5687_v53 = vcombine.high %v5679_v14, %v5679_v14 }
 0xeac   :  { %v9322_v63 = vpop.f32.mrb[140].mxu0  ;;  %v9344_v44 = vpop.f32.mrb[140].mxu1 }
 0xead   :  { %v9323_v57 = vpop.f32.mrb[141].mxu0  ;;  %v9345_v15 = vpop.f32.mrb[141].mxu1 }
 0xeae   :  { %v9324_v54 = vadd.f32 %v9323_v57, %v9322_v63  ;;  %v9325_v16 = vpop.f32.mrb[142].mxu0  ;;  %v9346_v4 = vadd.f32 %v9345_v15, %v9344_v44  ;;  %v9347_v58 = vpop.f32.mrb[142].mxu1  ;;  %v5708_v63 = vrot.slane %v5687_v53, %v10873_v39  ;;  %v10312_v53 = vld [vmem:[%s14044_s3 + $0x7ac] ss:$16 sps:$4 sm:$0xff]  }
 0xeaf   :  { %v9326_v49 = vpop.f32.mrb[143].mxu0  ;;  %v9348_v2 = vpop.f32.mrb[143].mxu1 }
 0xeb0   :  { %v5396_v46 = vadd.f32 %v12487_v1, %v9324_v54  ;;  %v5710_v16 = vcombine.high %v5708_v63, %v5708_v63  ;;  %v5694_v1 = vrot.slane %v5679_v14, %v10873_v39  ;;  %v10301_v2 = vld [vmem:[%s14044_s3 + $0x780] ss:$16 sps:$4 sm:$0xff]   ;;  %v10309_v14 = vld [vmem:[%s14044_s3 + $0x7a4] ss:$16 sps:$4 sm:$0xff]  }
 0xeb2   :  { %v5436_v60 = vadd.f32 %v9346_v4, %v5396_v46  ;;  %v5709_v54 = vcombine.high %v5694_v1, %v5694_v1  ;;  %v5672_v4 = vcombine.high %v8407_v3, %v8407_v3  ;;  %v10303_v46 = vld [vmem:[%s14044_s3 + $0x784] ss:$16 sps:$4 sm:$0xff]   ;;  %v10306_v3 = vld [vmem:[%s14044_s3 + $0x78c] ss:$16 sps:$4 sm:$0xff]  }
 0xeb4   :  { %v5686_v58 = vrot.slane %v5672_v4, %v10873_v39 }
 0xeb6   :  { %v5701_v49 = vrot.slane %v5686_v58, %v10873_v39 }
 0xebc   :  { %v5475_v7 = vpop.f32.mrb[144].mxu0 }
 0xebd   :  { %v5476_v19 = vadd.f32 %v5475_v7, %v5436_v60  ;;  %v9822_v9 = vpop.f32.mrb[145].mxu0  ;;  %v10304_v60 = vld [vmem:[%s14044_s3 + $0x788] ss:$16 sps:$4 sm:$0xff]   ;;  %v10307_v7 = vld [vmem:[%s14044_s3 + $0x7a0] ss:$16 sps:$4 sm:$0xff]  }
 0xebe   :  { %v5478_v43 = vpop.f32.mrb[146].mxu0  ;;  %v10315_v9 = vld [vmem:[%s14044_s3 + $0x7c4] ss:$16 sps:$4 sm:$0xff]  }
 0xebf   :  { %v5481_v44 = vmax.f32 %v5476_v19, 0.0  ;;  %v9823_v57 = vpop.f32.mrb[147].mxu0  ;;  %v10310_v19 = vld [vmem:[%s14044_s3 + $0x7a8] ss:$16 sps:$4 sm:$0xff]   ;;  %v10318_v43 = vld [vmem:[%s14044_s3 + $0x7cc] ss:$16 sps:$4 sm:$0xff]  }
 0xec0   :  { %v10321_v57 = vld [vmem:[%s14044_s3 + $0x7e4] ss:$16 sps:$4 sm:$0xff]  }
 0xec1   :  { %v5482_v15 = vpack.c.bf16 %v5481_v44, %v5481_v44  ;;  %v10316_v44 = vld [vmem:[%s14044_s3 + $0x7c8] ss:$16 sps:$4 sm:$0xff]  }
 0xec3   :  { %8405 = vmatmul.mubr.msk.bf16.vlgmr.msra.gmra.mrb[144].mxu1 %vm368_vm1, %v5482_v15  ;;  %8406 = vmatmul.mubr.msk.bf16.vlgmr.msra.gmra.mrb[148].mxu0 %vm368_vm1, %v5482_v15  ;;  %v10319_v15 = vld [vmem:[%s14044_s3 + $0x7e0] ss:$16 sps:$4 sm:$0xff]  }
 0xec4   :  { %9356 = vmatpush3.bf16.msra.mxu1 %v12633_v18  ;;  %9378 = vmatpush3.bf16.msra.mxu0 %v12639_v20 }
 0xec5   :  { %9357 = vmatprep.subr.bf16.mxu1 %v12645_v21  ;;  %9379 = vmatprep.subr.bf16.mxu0 %v12651_v22 }
 0xec6   :  { %5750 = vmatprep.mubr.bf16.mxu1 %v5708_v63  ;;  %5790 = vmatprep.mubr.bf16.mxu0 %v5710_v16  ;;  %v10313_v63 = vld [vmem:[%s14044_s3 + $0x7c0] ss:$16 sps:$4 sm:$0xff]   ;;  %v10324_v16 = vld [vmem:[%s14044_s3 + $0x7ec] ss:$16 sps:$4 sm:$0xff]  }
 0xec8   :  { %9358 = vmatpush3.bf16.msra.mxu1 %v12657_v23  ;;  %9380 = vmatpush3.bf16.msra.mxu0 %v12663_v24 }
 0xec9   :  { %9359 = vmatprep.subr.bf16.mxu1 %v12669_v25  ;;  %9381 = vmatprep.subr.bf16.mxu0 %v12675_v26 }
 0xecc   :  { %9360 = vmatpush3.bf16.msra.mxu1 %v12681_v27  ;;  %9382 = vmatpush3.bf16.msra.mxu0 %v12687_v28 }
 0xecd   :  { %9361 = vmatprep.subr.bf16.mxu1 %v12693_v29  ;;  %9383 = vmatprep.subr.bf16.mxu0 %v12699_v30 }
 0xed0   :  { %9362 = vmatpush3.bf16.msra.mxu1 %v12705_v31  ;;  %9384 = vmatpush3.bf16.msra.mxu0 %v12711_v32 }
 0xed1   :  { %9363 = vmatprep.subr.bf16.mxu1 %v12717_v33  ;;  %9385 = vmatprep.subr.bf16.mxu0 %v12723_v35 }
 0xed4   :  { %9364 = vmatpush3.bf16.msra.mxu1 %v12729_v37  ;;  %9386 = vmatpush3.bf16.msra.mxu0 %v12735_v38 }
 0xed5   :  { %9365 = vmatprep.subr.bf16.mxu1 %v12741_v40  ;;  %9387 = vmatprep.subr.bf16.mxu0 %v12747_v41 }
 0xed8   :  { %9366 = vmatpush3.bf16.msra.mxu1 %v12753_v42  ;;  %9388 = vmatpush3.bf16.msra.mxu0 %v12759_v50 }
 0xed9   :  { %9367 = vmatprep.subr.bf16.mxu1 %v12765_v56  ;;  %9389 = vmatprep.subr.bf16.mxu0 %v12771_v61 }
 0xedc   :  { %9368 = vmatpush3.bf16.msra.mxu1 %v12779_v12  ;;  %9390 = vmatpush3.bf16.msra.mxu0 %v12785_v62 }
 0xedd   :  { %9369 = vmatprep.subr.bf16.mxu1 %v12791_v59  ;;  %9391 = vmatprep.subr.bf16.mxu0 %v12797_v52 }
 0xee0   :  { %9370 = vmatpush3.bf16.msra.mxu1 %v12803_v5  ;;  %9392 = vmatpush3.bf16.msra.mxu0 %v12809_v0 }
 0xee1   :  { %9824 = vmatprep.subr.bf16.mxu1 %v10629_v36  ;;  %5940 = vmatprep.subr.bf16.mxu0 %v10303_v46 }
 0xee3   :  { %5751 = vmatmul.mubr.bf16.vlgmr.msra.gmra.mrb[148].mxu1 %v5694_v1  ;;  %5791 = vmatmul.mubr.bf16.vlgmr.msra.gmra.mrb[152].mxu0 %v5709_v54  ;;  %v10322_v1 = vld [vmem:[%s14044_s3 + $0x7e8] ss:$16 sps:$4 sm:$0xff]  }
 0xee4   :  { %9825 = vmatpush3.bf16.msra.mxu1 %v12816_v48  ;;  %9832 = vmatprep.mubr.msk.bf16.mxu1 %vm10630_vm0, %v10629_v36 }
 0xee5   :  { %9826 = vmatprep.subr.bf16.mxu1 %v10629_v36  ;;  %5972 = vmatprep.mubr.bf16.mxu0 %v10631_v17 }
 0xee6   :  { %5941 = vmatpush1.bf16.msra.mxu0 %v10301_v2 }
 0xee7   :  { %5942 = vmatprep.subr.bf16.mxu0 %v10309_v14 }
 0xee8   :  { %9827 = vmatpush3.bf16.msra.mxu1 %v12828_v6 }
 0xee9   :  { %9828 = vmatprep.subr.bf16.mxu1 %v10629_v36 }
 0xeea   :  { %5943 = vmatpush1.bf16.msra.mxu0 %v10307_v7 }
 0xeeb   :  { %5944 = vmatprep.subr.bf16.mxu0 %v10315_v9 }
 0xeec   :  { %9829 = vmatpush3.bf16.msra.mxu1 %v12836_v11 }
 0xeed   :  { %9830 = vmatprep.subr.bf16.mxu1 %v10629_v36 }
 0xeee   :  { %5945 = vmatpush1.bf16.msra.mxu0 %v10313_v63 }
 0xeef   :  { %5946 = vmatprep.subr.bf16.mxu0 %v10321_v57 }
 0xef0   :  { %9831 = vmatpush3.bf16.msra.mxu1 %v12844_v8 }
 0xef1   :  { %5981 = vmatprep.subr.bf16.mxu1 %v10306_v3 }
 0xef2   :  { %5947 = vmatpush1.bf16.msra.mxu0 %v10319_v15 }
 0xef3   :  { %9833 = vmatmul.mubr.msk.bf16.vlgmr.msra.gmra.mrb[152].mxu1 %vm368_vm1, %v5701_v49  ;;  %9404 = vmatprep.subr.bf16.mxu0 %v12594_v45 }
 0xef4   :  { %6013 = vmatprep.mubr.bf16.mxu1 %v10631_v17  ;;  %5982 = vmatpush1.bf16.msra.mxu1 %v10304_v60 }
 0xef5   :  { %5983 = vmatprep.subr.bf16.mxu1 %v10312_v53 }
 0xef8   :  { %5984 = vmatpush1.bf16.msra.mxu1 %v10310_v19 }
 0xef9   :  { %5985 = vmatprep.subr.bf16.mxu1 %v10318_v43 }
 0xefc   :  { %5986 = vmatpush1.bf16.msra.mxu1 %v10316_v44 }
 0xefd   :  { %5987 = vmatprep.subr.bf16.mxu1 %v10324_v16 }
 0xf00   :  { %5988 = vmatpush1.bf16.msra.mxu1 %v10322_v1  ;;  %v8443_v1 = vld [vmem:[%s14041_s0 + $0x50] sm:$0x1f] }
 0xf01   :  { %9426 = vmatprep.subr.bf16.mxu1 %v12600_v47 }
 0xf96   :  { %v5617_v54 = vpop.f32.mrb[144].mxu1  ;;  %v5658_v4 = vpop.f32.mrb[148].mxu0 }
 0xf97   :  { %v13248_v58 = vadd.f32 %v5617_v54, %v13132_v10  ;;  %v13251_v49 = vadd.f32 %v5658_v4, %v13135_v51  ;;  %v5619_v2 = vpop.f32.mrb[145].mxu1  ;;  %v5660_v46 = vpop.f32.mrb[149].mxu0  ;;  %v6036_v54 = vrot.slane %v8443_v1, %v10873_v39 }
 0xf98   :  { %v13254_v60 = vadd.f32 %v5619_v2, %v13138_v13  ;;  %v13257_v3 = vadd.f32 %v5660_v46, %v13141_v55  ;;  %v5621_v14 = vpop.f32.mrb[146].mxu1  ;;  %v5662_v45 = vpop.f32.mrb[150].mxu0  ;;  %v13262_v13 = vld [vmem:[%s14043_s2] ss:$0 sm:$0xff] }
 0xf99   :  { %v5622_v53 = vpop.f32.mrb[147].mxu1  ;;  %v5663_v47 = vpop.f32.mrb[151].mxu0  ;;  %v6044_v4 = vcombine.high %v6036_v54, %v6036_v54 }
 0xf9b   :  { %v6065_v53 = vrot.slane %v6044_v4, %v10873_v39 }
 0xfb6   :  { %v9371_v7 = vpop.f32.mrb[148].mxu1  ;;  %v9393_v19 = vpop.f32.mrb[152].mxu0 }
 0xfb7   :  { %v9372_v9 = vpop.f32.mrb[149].mxu1  ;;  %v9394_v10 = vpop.f32.mrb[153].mxu0 }
 0xfb8   :  { %v9373_v43 = vadd.f32 %v9372_v9, %v9371_v7  ;;  %v9374_v63 = vpop.f32.mrb[150].mxu1  ;;  %v9395_v51 = vadd.f32 %v9394_v10, %v9393_v19  ;;  %v9396_v44 = vpop.f32.mrb[154].mxu0  ;;  %v6067_v9 = vcombine.high %v6065_v53, %v6065_v53 }
 0xfb9   :  { %v9375_v57 = vpop.f32.mrb[151].mxu1  ;;  %v9397_v15 = vpop.f32.mrb[155].mxu0 }
 0xfba   :  { %v5753_v55 = vadd.f32 %v13262_v13, %v9373_v43 }
 0xfbc   :  { %v5793_v16 = vadd.f32 %v9395_v51, %v5753_v55 }
 0xfc6   :  { %v5832_v2 = vpop.f32.mrb[152].mxu1 }
 0xfc7   :  { %v5833_v46 = vadd.f32 %v5832_v2, %v5793_v16  ;;  %v9834_v14 = vpop.f32.mrb[153].mxu1 }
 0xfc8   :  { %v5835_v45 = vpop.f32.mrb[154].mxu1 }
 0xfc9   :  { %v5838_v47 = vmax.f32 %v5833_v46, 0.0  ;;  %v9835_v7 = vpop.f32.mrb[155].mxu1 }
 0xfcb   :  { %v5839_v19 = vpack.c.bf16 %v5838_v47, %v5838_v47 }
 0xfcd   :  { %8441 = vmatmul.mubr.msk.bf16.vlgmr.msra.gmra.mrb[156].mxu0 %vm368_vm1, %v5839_v19  ;;  %8442 = vmatmul.mubr.msk.bf16.vlgmr.msra.gmra.mrb[156].mxu1 %vm368_vm1, %v5839_v19 }
 0xfce   :  { %9405 = vmatpush3.bf16.msra.mxu0 %v12633_v18  ;;  %9427 = vmatpush3.bf16.msra.mxu1 %v12639_v20  ;;  %v6051_v18 = vrot.slane %v6036_v54, %v10873_v39 }
 0xfcf   :  { %9406 = vmatprep.subr.bf16.mxu0 %v12645_v21  ;;  %9428 = vmatprep.subr.bf16.mxu1 %v12651_v22  ;;  %v6029_v21 = vcombine.high %v8443_v1, %v8443_v1 }
 0xfd0   :  { %6107 = vmatprep.mubr.bf16.mxu0 %v6065_v53  ;;  %6147 = vmatprep.mubr.bf16.mxu1 %v6067_v9  ;;  %v6066_v20 = vcombine.high %v6051_v18, %v6051_v18 }
 0xfd1   :  { %v6043_v22 = vrot.slane %v6029_v21, %v10873_v39  ;;  %v13420_v21 = vld [vmem:[%s14042_s1 + $0x48] sm:$0xff]  }
 0xfd2   :  { %9407 = vmatpush3.bf16.msra.mxu0 %v12657_v23  ;;  %9429 = vmatpush3.bf16.msra.mxu1 %v12663_v24  ;;  %v10326_v24 = vld [vmem:[%s14044_s3 + $0x800] ss:$16 sps:$4 sm:$0xff]  }
 0xfd3   :  { %9408 = vmatprep.subr.bf16.mxu0 %v12669_v25  ;;  %9430 = vmatprep.subr.bf16.mxu1 %v12675_v26  ;;  %v6058_v23 = vrot.slane %v6043_v22, %v10873_v39  ;;  %v10328_v25 = vld [vmem:[%s14044_s3 + $0x804] ss:$16 sps:$4 sm:$0xff]   ;;  %v10329_v26 = vld [vmem:[%s14044_s3 + $0x808] ss:$16 sps:$4 sm:$0xff]  }
 0xfd4   :  { %v13426_v22 = vld [vmem:[%s14042_s1 + $0xc8] sm:$0xff]  }
 0xfd6   :  { %9409 = vmatpush3.bf16.msra.mxu0 %v12681_v27  ;;  %9431 = vmatpush3.bf16.msra.mxu1 %v12687_v28  ;;  %v10331_v27 = vld [vmem:[%s14044_s3 + $0x80c] ss:$16 sps:$4 sm:$0xff]   ;;  %v10334_v28 = vld [vmem:[%s14044_s3 + $0x824] ss:$16 sps:$4 sm:$0xff]  }
 0xfd7   :  { %9410 = vmatprep.subr.bf16.mxu0 %v12693_v29  ;;  %9432 = vmatprep.subr.bf16.mxu1 %v12699_v30  ;;  %v10337_v29 = vld [vmem:[%s14044_s3 + $0x82c] ss:$16 sps:$4 sm:$0xff]   ;;  %v10332_v30 = vld [vmem:[%s14044_s3 + $0x820] ss:$16 sps:$4 sm:$0xff]  }
 0xfda   :  { %9411 = vmatpush3.bf16.msra.mxu0 %v12705_v31  ;;  %9433 = vmatpush3.bf16.msra.mxu1 %v12711_v32  ;;  %v10335_v31 = vld [vmem:[%s14044_s3 + $0x828] ss:$16 sps:$4 sm:$0xff]   ;;  %v10340_v32 = vld [vmem:[%s14044_s3 + $0x844] ss:$16 sps:$4 sm:$0xff]  }
 0xfdb   :  { %9412 = vmatprep.subr.bf16.mxu0 %v12717_v33  ;;  %9434 = vmatprep.subr.bf16.mxu1 %v12723_v35  ;;  %v10343_v33 = vld [vmem:[%s14044_s3 + $0x84c] ss:$16 sps:$4 sm:$0xff]   ;;  %v10338_v35 = vld [vmem:[%s14044_s3 + $0x840] ss:$16 sps:$4 sm:$0xff]  }
 0xfde   :  { %9413 = vmatpush3.bf16.msra.mxu0 %v12729_v37  ;;  %9435 = vmatpush3.bf16.msra.mxu1 %v12735_v38  ;;  %v10341_v37 = vld [vmem:[%s14044_s3 + $0x848] ss:$16 sps:$4 sm:$0xff]   ;;  %v10346_v38 = vld [vmem:[%s14044_s3 + $0x864] ss:$16 sps:$4 sm:$0xff]  }
 0xfdf   :  { %9414 = vmatprep.subr.bf16.mxu0 %v12741_v40  ;;  %9436 = vmatprep.subr.bf16.mxu1 %v12747_v41  ;;  %v10344_v40 = vld [vmem:[%s14044_s3 + $0x860] ss:$16 sps:$4 sm:$0xff]   ;;  %v10349_v41 = vld [vmem:[%s14044_s3 + $0x86c] ss:$16 sps:$4 sm:$0xff]  }
 0xfe2   :  { %9415 = vmatpush3.bf16.msra.mxu0 %v12753_v42  ;;  %9437 = vmatpush3.bf16.msra.mxu1 %v12759_v50  ;;  %v10347_v42 = vld [vmem:[%s14044_s3 + $0x868] ss:$16 sps:$4 sm:$0xff]   ;;  %v13369_v50 = vld [vmem:[%s14042_s1 + $0x40] sm:$0xff]  }
 0xfe3   :  { %9416 = vmatprep.subr.bf16.mxu0 %v12765_v56  ;;  %9438 = vmatprep.subr.bf16.mxu1 %v12771_v61  ;;  %v13375_v56 = vld [vmem:[%s14042_s1 + $0xc0] sm:$0xff]  }
 0xfe6   :  { %9417 = vmatpush3.bf16.msra.mxu0 %v12779_v12  ;;  %9439 = vmatpush3.bf16.msra.mxu1 %v12785_v62 }
 0xfe7   :  { %9418 = vmatprep.subr.bf16.mxu0 %v12791_v59  ;;  %9440 = vmatprep.subr.bf16.mxu1 %v12797_v52 }
 0xfea   :  { %9419 = vmatpush3.bf16.msra.mxu0 %v12803_v5  ;;  %9441 = vmatpush3.bf16.msra.mxu1 %v12809_v0 }
 0xfeb   :  { %9836 = vmatprep.subr.bf16.mxu0 %v10629_v36  ;;  %6297 = vmatprep.subr.bf16.mxu1 %v10328_v25  ;;  %v13444_v25 = vld [vmem:[%s14042_s1 + $0x50] sm:$0xff]  }
 0xfed   :  { %6108 = vmatmul.mubr.bf16.vlgmr.msra.gmra.mrb[160].mxu0 %v6051_v18  ;;  %6148 = vmatmul.mubr.bf16.vlgmr.msra.gmra.mrb[160].mxu1 %v6066_v20  ;;  %v13408_v18 = vld [vmem:[%s14042_s1] sm:$0xff]  }
 0xfee   :  { %9837 = vmatpush3.bf16.msra.mxu0 %v12816_v48  ;;  %9844 = vmatprep.mubr.msk.bf16.mxu0 %vm10630_vm0, %v10629_v36  ;;  %v13414_v20 = vld [vmem:[%s14042_s1 + $0x80] sm:$0xff]  }
 0xfef   :  { %9838 = vmatprep.subr.bf16.mxu0 %v10629_v36  ;;  %6329 = vmatprep.mubr.bf16.mxu1 %v10631_v17 }
 0xff0   :  { %6298 = vmatpush1.bf16.msra.mxu1 %v10326_v24  ;;  %v13438_v24 = vld [vmem:[%s14042_s1 + $0x88] sm:$0xff]  }
 0xff1   :  { %6299 = vmatprep.subr.bf16.mxu1 %v10334_v28  ;;  %v13462_v28 = vld [vmem:[%s14042_s1 + $0x90] sm:$0xff]  }
 0xff2   :  { %9839 = vmatpush3.bf16.msra.mxu0 %v12828_v6 }
 0xff3   :  { %9840 = vmatprep.subr.bf16.mxu0 %v10629_v36 }
 0xff4   :  { %6300 = vmatpush1.bf16.msra.mxu1 %v10332_v30  ;;  %v13474_v30 = vld [vmem:[%s14042_s1 + $0xd8] sm:$0xff]  }
 0xff5   :  { %6301 = vmatprep.subr.bf16.mxu1 %v10340_v32  ;;  %v13486_v32 = vld [vmem:[%s14042_s1 + $0x98] sm:$0xff]  }
 0xff6   :  { %9841 = vmatpush3.bf16.msra.mxu0 %v12836_v11 }
 0xff7   :  { %9842 = vmatprep.subr.bf16.mxu0 %v10629_v36 }
 0xff8   :  { %6302 = vmatpush1.bf16.msra.mxu1 %v10338_v35  ;;  %v13498_v35 = vld [vmem:[%s14042_s1 + $0xe0] sm:$0xff]  }
 0xff9   :  { %6303 = vmatprep.subr.bf16.mxu1 %v10346_v38  ;;  %v13510_v38 = vld [vmem:[%s14042_s1 + $0xa0] sm:$0xff]  }
 0xffa   :  { %9843 = vmatpush3.bf16.msra.mxu0 %v12844_v8 }
 0xffb   :  { %6338 = vmatprep.subr.bf16.mxu0 %v10331_v27  ;;  %v13456_v27 = vld [vmem:[%s14042_s1 + $0x10] sm:$0xff]  }
 0xffc   :  { %6304 = vmatpush1.bf16.msra.mxu1 %v10344_v40  ;;  %v13516_v40 = vld [vmem:[%s14042_s1 + $0x68] sm:$0xff]  }
 0xffd   :  { %9845 = vmatmul.mubr.msk.bf16.vlgmr.msra.gmra.mrb[164].mxu0 %vm368_vm1, %v6058_v23  ;;  %9453 = vmatprep.subr.bf16.mxu1 %v13369_v50  ;;  %v13432_v23 = vld [vmem:[%s14042_s1 + $0x8] sm:$0xff]  }
 0xffe   :  { %6370 = vmatprep.mubr.bf16.mxu0 %v10631_v17  ;;  %6339 = vmatpush1.bf16.msra.mxu0 %v10329_v26  ;;  %v13450_v26 = vld [vmem:[%s14042_s1 + $0xd0] sm:$0xff]  }
 0xfff   :  { %6340 = vmatprep.subr.bf16.mxu0 %v10337_v29  ;;  %v13468_v29 = vld [vmem:[%s14042_s1 + $0x58] sm:$0xff]  }
0x1002   :  { %6341 = vmatpush1.bf16.msra.mxu0 %v10335_v31  ;;  %v13480_v31 = vld [vmem:[%s14042_s1 + $0x18] sm:$0xff]  }
0x1003   :  { %6342 = vmatprep.subr.bf16.mxu0 %v10343_v33  ;;  %v13492_v33 = vld [vmem:[%s14042_s1 + $0x60] sm:$0xff]  }
0x1006   :  { %6343 = vmatpush1.bf16.msra.mxu0 %v10341_v37  ;;  %v13504_v37 = vld [vmem:[%s14042_s1 + $0x20] sm:$0xff]  }
0x1007   :  { %6344 = vmatprep.subr.bf16.mxu0 %v10349_v41  ;;  %v13522_v41 = vld [vmem:[%s14042_s1 + $0xe8] sm:$0xff]  }
0x100a   :  { %6345 = vmatpush1.bf16.msra.mxu0 %v10347_v42  ;;  %v13528_v42 = vld [vmem:[%s14042_s1 + $0x28] sm:$0xff]  }
0x100b   :  { %9475 = vmatprep.subr.bf16.mxu0 %v13375_v56 }
0x10a0   :  { %v5974_v61 = vpop.f32.mrb[156].mxu0  ;;  %v6015_v12 = vpop.f32.mrb[156].mxu1 }
0x10a1   :  { %v13379_v62 = vadd.f32 %v5974_v61, %v13248_v58  ;;  %v13382_v59 = vadd.f32 %v6015_v12, %v13251_v49  ;;  %v5976_v52 = vpop.f32.mrb[157].mxu0  ;;  %v6017_v5 = vpop.f32.mrb[157].mxu1  ;;  %v13534_v61 = vld [vmem:[%s14042_s1 + $0xa8] sm:$0xff]   ;;  %v13540_v12 = vld [vmem:[%s14042_s1 + $0x70] sm:$0xff]  }
0x10a2   :  { %v13385_v0 = vadd.f32 %v5976_v52, %v13254_v60  ;;  %v13388_v48 = vadd.f32 %v6017_v5, %v13257_v3  ;;  %v5978_v6 = vpop.f32.mrb[158].mxu0  ;;  %v6019_v11 = vpop.f32.mrb[158].mxu1  ;;  %v13394_v3 = vld [vmem:[%s14041_s0 + $0x55] sm:$0x1f] }
0x10a3   :  { %v5979_v8 = vpop.f32.mrb[159].mxu0  ;;  %v6020_v10 = vpop.f32.mrb[159].mxu1  ;;  %v13398_v54 = vrot.slane %v13394_v3, %v10873_v39  ;;  %v13546_v52 = vld [vmem:[%s14042_s1 + $0xf0] sm:$0xff]  }
0x10a4   :  { %v13554_v6 = vld [vmem:[%s14042_s1 + $0x30] sm:$0xff]   ;;  %v13566_v8 = vld [vmem:[%s14042_s1 + $0x78] sm:$0xff]  }
0x10a5   :  { %v6401_v4 = vcombine.high %v13398_v54, %v13398_v54  ;;  %v6408_v5 = vrot.slane %v13398_v54, %v10873_v39  ;;  %v13560_v11 = vld [vmem:[%s14042_s1 + $0xb0] sm:$0xff]   ;;  %v13572_v10 = vld [vmem:[%s14042_s1 + $0xf8] sm:$0xff]  }
0x10a6   :  { %v10356_v54 = vld [vmem:[%s14044_s3 + $0x88c] ss:$16 sps:$4 sm:$0xff]  }
0x10a7   :  { %v6422_v53 = vrot.slane %v6401_v4, %v10873_v39  ;;  %v10359_v4 = vld [vmem:[%s14044_s3 + $0x8a4] ss:$16 sps:$4 sm:$0xff]  }
0x10a9   :  { %v6424_v9 = vcombine.high %v6422_v53, %v6422_v53 }
0x10c0   :  { %v9420_v43 = vpop.f32.mrb[160].mxu0  ;;  %v9442_v63 = vpop.f32.mrb[160].mxu1 }
0x10c1   :  { %v9421_v51 = vpop.f32.mrb[161].mxu0  ;;  %v9443_v58 = vpop.f32.mrb[161].mxu1 }
0x10c2   :  { %v9422_v44 = vadd.f32 %v9421_v51, %v9420_v43  ;;  %v9423_v57 = vpop.f32.mrb[162].mxu0  ;;  %v9444_v49 = vadd.f32 %v9443_v58, %v9442_v63  ;;  %v9445_v15 = vpop.f32.mrb[162].mxu1  ;;  %v6423_v43 = vcombine.high %v6408_v5, %v6408_v5  ;;  %v13578_v63 = vld [vmem:[%s14042_s1 + $0x38] sm:$0xff]   ;;  %v13591_v58 = vld [vmem:[%s14042_s1 + $0x100] sm:$0xff]  }
0x10c3   :  { %v9424_v55 = vpop.f32.mrb[163].mxu0  ;;  %v9446_v16 = vpop.f32.mrb[163].mxu1  ;;  %v13584_v51 = vld [vmem:[%s14042_s1 + $0xb8] sm:$0xff]   ;;  %v13603_v57 = vld [vmem:[%s14042_s1 + $0x108] sm:$0xff]   ;;  %v13611_v15 = vld [vmem:[%s14042_s1 + $0x110] sm:$0xff]  }
0x10c4   :  { %v6110_v60 = vadd.f32 %v13262_v13, %v9422_v44  ;;  %v6386_v44 = vcombine.high %v13394_v3, %v13394_v3  ;;  %v13619_v16 = vld [vmem:[%s14042_s1 + $0x118] sm:$0xff]  }
0x10c5   :  { %v10354_v3 = vld [vmem:[%s14044_s3 + $0x888] ss:$16 sps:$4 sm:$0xff]  }
0x10c6   :  { %v6150_v1 = vadd.f32 %v9444_v49, %v6110_v60  ;;  %v6400_v49 = vrot.slane %v6386_v44, %v10873_v39  ;;  %v10351_v60 = vld [vmem:[%s14044_s3 + $0x880] ss:$16 sps:$4 sm:$0xff]  }
0x10c8   :  { %v6415_v55 = vrot.slane %v6400_v49, %v10873_v39 }
0x10d0   :  { %v6189_v2 = vpop.f32.mrb[164].mxu0 }
0x10d1   :  { %v6190_v46 = vadd.f32 %v6189_v2, %v6150_v1  ;;  %v9846_v14 = vpop.f32.mrb[165].mxu0  ;;  %v10353_v1 = vld [vmem:[%s14044_s3 + $0x884] ss:$16 sps:$4 sm:$0xff]   ;;  %v10362_v2 = vld [vmem:[%s14044_s3 + $0x8ac] ss:$16 sps:$4 sm:$0xff]  }
0x10d2   :  { %v6192_v45 = vpop.f32.mrb[166].mxu0  ;;  %v10360_v14 = vld [vmem:[%s14044_s3 + $0x8a8] ss:$16 sps:$4 sm:$0xff]  }
0x10d3   :  { %v6195_v47 = vmax.f32 %v6190_v46, 0.0  ;;  %v9847_v7 = vpop.f32.mrb[167].mxu0  ;;  %v10357_v46 = vld [vmem:[%s14044_s3 + $0x8a0] ss:$16 sps:$4 sm:$0xff]   ;;  %v10365_v45 = vld [vmem:[%s14044_s3 + $0x8c4] ss:$16 sps:$4 sm:$0xff]  }
0x10d4   :  { %v10366_v7 = vld [vmem:[%s14044_s3 + $0x8c8] ss:$16 sps:$4 sm:$0xff]  }
0x10d5   :  { %v6196_v19 = vpack.c.bf16 %v6195_v47, %v6195_v47  ;;  %v10363_v47 = vld [vmem:[%s14044_s3 + $0x8c0] ss:$16 sps:$4 sm:$0xff]  }
0x10d7   :  { %8477 = vmatmul.mubr.msk.bf16.vlgmr.msra.gmra.mrb[164].mxu1 %vm368_vm1, %v6196_v19  ;;  %8478 = vmatmul.mubr.msk.bf16.vlgmr.msra.gmra.mrb[168].mxu0 %vm368_vm1, %v6196_v19  ;;  %v10371_v19 = vld [vmem:[%s14044_s3 + $0x8e4] ss:$16 sps:$4 sm:$0xff]  }
0x10d8   :  { %9454 = vmatpush3.bf16.msra.mxu1 %v13408_v18  ;;  %9476 = vmatpush3.bf16.msra.mxu0 %v13414_v20 }
0x10d9   :  { %9455 = vmatprep.subr.bf16.mxu1 %v13420_v21  ;;  %9477 = vmatprep.subr.bf16.mxu0 %v13426_v22 }
0x10da   :  { %6464 = vmatprep.mubr.bf16.mxu1 %v6422_v53  ;;  %6504 = vmatprep.mubr.bf16.mxu0 %v6424_v9  ;;  %v10368_v53 = vld [vmem:[%s14044_s3 + $0x8cc] ss:$16 sps:$4 sm:$0xff]   ;;  %v10369_v9 = vld [vmem:[%s14044_s3 + $0x8e0] ss:$16 sps:$4 sm:$0xff]  }
0x10dc   :  { %9456 = vmatpush3.bf16.msra.mxu1 %v13432_v23  ;;  %9478 = vmatpush3.bf16.msra.mxu0 %v13438_v24 }
0x10dd   :  { %9457 = vmatprep.subr.bf16.mxu1 %v13444_v25  ;;  %9479 = vmatprep.subr.bf16.mxu0 %v13450_v26 }
0x10e0   :  { %9458 = vmatpush3.bf16.msra.mxu1 %v13456_v27  ;;  %9480 = vmatpush3.bf16.msra.mxu0 %v13462_v28 }
0x10e1   :  { %9459 = vmatprep.subr.bf16.mxu1 %v13468_v29  ;;  %9481 = vmatprep.subr.bf16.mxu0 %v13474_v30 }
0x10e4   :  { %9460 = vmatpush3.bf16.msra.mxu1 %v13480_v31  ;;  %9482 = vmatpush3.bf16.msra.mxu0 %v13486_v32 }
0x10e5   :  { %9461 = vmatprep.subr.bf16.mxu1 %v13492_v33  ;;  %9483 = vmatprep.subr.bf16.mxu0 %v13498_v35 }
0x10e8   :  { %9462 = vmatpush3.bf16.msra.mxu1 %v13504_v37  ;;  %9484 = vmatpush3.bf16.msra.mxu0 %v13510_v38 }
0x10e9   :  { %9463 = vmatprep.subr.bf16.mxu1 %v13516_v40  ;;  %9485 = vmatprep.subr.bf16.mxu0 %v13522_v41 }
0x10ec   :  { %9464 = vmatpush3.bf16.msra.mxu1 %v13528_v42  ;;  %9486 = vmatpush3.bf16.msra.mxu0 %v13534_v61 }
0x10ed   :  { %9465 = vmatprep.subr.bf16.mxu1 %v13540_v12  ;;  %9487 = vmatprep.subr.bf16.mxu0 %v13546_v52 }
0x10f0   :  { %9466 = vmatpush3.bf16.msra.mxu1 %v13554_v6  ;;  %9488 = vmatpush3.bf16.msra.mxu0 %v13560_v11 }
0x10f1   :  { %9467 = vmatprep.subr.bf16.mxu1 %v13566_v8  ;;  %9489 = vmatprep.subr.bf16.mxu0 %v13572_v10 }
0x10f4   :  { %9468 = vmatpush3.bf16.msra.mxu1 %v13578_v63  ;;  %9490 = vmatpush3.bf16.msra.mxu0 %v13584_v51 }
0x10f5   :  { %9848 = vmatprep.subr.bf16.mxu1 %v10629_v36  ;;  %6654 = vmatprep.subr.bf16.mxu0 %v10353_v1 }
0x10f7   :  { %6465 = vmatmul.mubr.bf16.vlgmr.msra.gmra.mrb[168].mxu1 %v6408_v5  ;;  %6505 = vmatmul.mubr.bf16.vlgmr.msra.gmra.mrb[172].mxu0 %v6423_v43  ;;  %v10374_v5 = vld [vmem:[%s14044_s3 + $0x8ec] ss:$16 sps:$4 sm:$0xff]   ;;  %v10372_v43 = vld [vmem:[%s14044_s3 + $0x8e8] ss:$16 sps:$4 sm:$0xff]  }
0x10f8   :  { %9849 = vmatpush3.bf16.msra.mxu1 %v13591_v58  ;;  %9856 = vmatprep.mubr.msk.bf16.mxu1 %vm10630_vm0, %v10629_v36 }
0x10f9   :  { %9850 = vmatprep.subr.bf16.mxu1 %v10629_v36  ;;  %6686 = vmatprep.mubr.bf16.mxu0 %v10631_v17 }
0x10fa   :  { %6655 = vmatpush1.bf16.msra.mxu0 %v10351_v60 }
0x10fb   :  { %6656 = vmatprep.subr.bf16.mxu0 %v10359_v4 }
0x10fc   :  { %9851 = vmatpush3.bf16.msra.mxu1 %v13603_v57 }
0x10fd   :  { %9852 = vmatprep.subr.bf16.mxu1 %v10629_v36 }
0x10fe   :  { %6657 = vmatpush1.bf16.msra.mxu0 %v10357_v46 }
0x10ff   :  { %6658 = vmatprep.subr.bf16.mxu0 %v10365_v45 }
0x1100   :  { %9853 = vmatpush3.bf16.msra.mxu1 %v13611_v15 }
0x1101   :  { %9854 = vmatprep.subr.bf16.mxu1 %v10629_v36 }
0x1102   :  { %6659 = vmatpush1.bf16.msra.mxu0 %v10363_v47 }
0x1103   :  { %6660 = vmatprep.subr.bf16.mxu0 %v10371_v19 }
0x1104   :  { %9855 = vmatpush3.bf16.msra.mxu1 %v13619_v16 }
0x1105   :  { %6695 = vmatprep.subr.bf16.mxu1 %v10356_v54 }
0x1106   :  { %6661 = vmatpush1.bf16.msra.mxu0 %v10369_v9 }
0x1107   :  { %9857 = vmatmul.mubr.msk.bf16.vlgmr.msra.gmra.mrb[172].mxu1 %vm368_vm1, %v6415_v55  ;;  %9502 = vmatprep.subr.bf16.mxu0 %v13369_v50 }
0x1108   :  { %6727 = vmatprep.mubr.bf16.mxu1 %v10631_v17  ;;  %6696 = vmatpush1.bf16.msra.mxu1 %v10354_v3 }
0x1109   :  { %6697 = vmatprep.subr.bf16.mxu1 %v10362_v2 }
0x110c   :  { %6698 = vmatpush1.bf16.msra.mxu1 %v10360_v14 }
0x110d   :  { %6699 = vmatprep.subr.bf16.mxu1 %v10368_v53 }
0x1110   :  { %6700 = vmatpush1.bf16.msra.mxu1 %v10366_v7 }
0x1111   :  { %6701 = vmatprep.subr.bf16.mxu1 %v10374_v5 }
0x1114   :  { %6702 = vmatpush1.bf16.msra.mxu1 %v10372_v43 }
0x1115   :  { %9524 = vmatprep.subr.bf16.mxu1 %v13375_v56 }
0x11aa   :  { %v6331_v44 = vpop.f32.mrb[164].mxu1  ;;  %v6372_v49 = vpop.f32.mrb[168].mxu0 }
0x11ab   :  { %v13675_v55 = vadd.f32 %v6331_v44, %v13379_v62  ;;  %v13678_v60 = vadd.f32 %v6372_v49, %v13382_v59  ;;  %v6333_v1 = vpop.f32.mrb[165].mxu1  ;;  %v6374_v3 = vpop.f32.mrb[169].mxu0 }
0x11ac   :  { %v13681_v54 = vadd.f32 %v6333_v1, %v13385_v0  ;;  %v13684_v4 = vadd.f32 %v6374_v3, %v13388_v48  ;;  %v6335_v2 = vpop.f32.mrb[166].mxu1  ;;  %v6376_v46 = vpop.f32.mrb[170].mxu0  ;;  %v8515_v48 = vld [vmem:[%s14041_s0 + $0x5a] sm:$0x1f] }
0x11ad   :  { %v6336_v14 = vpop.f32.mrb[167].mxu1  ;;  %v6377_v45 = vpop.f32.mrb[171].mxu0  ;;  %v6750_v1 = vrot.slane %v8515_v48, %v10873_v39 }
0x11af   :  { %v6758_v3 = vcombine.high %v6750_v1, %v6750_v1 }
0x11ca   :  { %v9469_v53 = vpop.f32.mrb[168].mxu1  ;;  %v9491_v47 = vpop.f32.mrb[172].mxu0 }
0x11cb   :  { %v9470_v7 = vpop.f32.mrb[169].mxu1  ;;  %v9492_v62 = vpop.f32.mrb[173].mxu0 }
0x11cc   :  { %v9471_v19 = vadd.f32 %v9470_v7, %v9469_v53  ;;  %v9472_v9 = vpop.f32.mrb[170].mxu1  ;;  %v9493_v59 = vadd.f32 %v9492_v62, %v9491_v47  ;;  %v9494_v5 = vpop.f32.mrb[174].mxu0  ;;  %v6779_v53 = vrot.slane %v6758_v3, %v10873_v39  ;;  %v10384_v3 = vld [vmem:[%s14044_s3 + $0x924] ss:$16 sps:$4 sm:$0xff]  }
0x11cd   :  { %v9473_v43 = vpop.f32.mrb[171].mxu1  ;;  %v9495_v44 = vpop.f32.mrb[175].mxu0  ;;  %v6743_v5 = vcombine.high %v8515_v48, %v8515_v48  ;;  %v10379_v48 = vld [vmem:[%s14044_s3 + $0x908] ss:$16 sps:$4 sm:$0xff]  }
0x11ce   :  { %v6467_v0 = vadd.f32 %v13262_v13, %v9471_v19  ;;  %v6781_v9 = vcombine.high %v6779_v53, %v6779_v53  ;;  %v6765_v19 = vrot.slane %v6750_v1, %v10873_v39  ;;  %v10381_v1 = vld [vmem:[%s14044_s3 + $0x90c] ss:$16 sps:$4 sm:$0xff]  }
0x11cf   :  { %v6757_v43 = vrot.slane %v6743_v5, %v10873_v39 }
0x11d0   :  { %v6507_v49 = vadd.f32 %v9493_v59, %v6467_v0  ;;  %v6780_v59 = vcombine.high %v6765_v19, %v6765_v19  ;;  %v10376_v0 = vld [vmem:[%s14044_s3 + $0x900] ss:$16 sps:$4 sm:$0xff]  }
0x11d1   :  { %v6772_v44 = vrot.slane %v6757_v43, %v10873_v39 }
0x11da   :  { %v6546_v2 = vpop.f32.mrb[172].mxu1 }
0x11db   :  { %v6547_v46 = vadd.f32 %v6546_v2, %v6507_v49  ;;  %v9858_v14 = vpop.f32.mrb[173].mxu1  ;;  %v10378_v49 = vld [vmem:[%s14044_s3 + $0x904] ss:$16 sps:$4 sm:$0xff]   ;;  %v10387_v2 = vld [vmem:[%s14044_s3 + $0x92c] ss:$16 sps:$4 sm:$0xff]  }
0x11dc   :  { %v6549_v45 = vpop.f32.mrb[174].mxu1  ;;  %v10385_v14 = vld [vmem:[%s14044_s3 + $0x928] ss:$16 sps:$4 sm:$0xff]  }
0x11dd   :  { %v6552_v47 = vmax.f32 %v6547_v46, 0.0  ;;  %v9859_v7 = vpop.f32.mrb[175].mxu1  ;;  %v10382_v46 = vld [vmem:[%s14044_s3 + $0x920] ss:$16 sps:$4 sm:$0xff]   ;;  %v10390_v45 = vld [vmem:[%s14044_s3 + $0x944] ss:$16 sps:$4 sm:$0xff]  }
0x11de   :  { %v10391_v7 = vld [vmem:[%s14044_s3 + $0x948] ss:$16 sps:$4 sm:$0xff]  }
0x11df   :  { %v6553_v62 = vpack.c.bf16 %v6552_v47, %v6552_v47  ;;  %v10388_v47 = vld [vmem:[%s14044_s3 + $0x940] ss:$16 sps:$4 sm:$0xff]  }
0x11e1   :  { %8513 = vmatmul.mubr.msk.bf16.vlgmr.msra.gmra.mrb[176].mxu0 %vm368_vm1, %v6553_v62  ;;  %8514 = vmatmul.mubr.msk.bf16.vlgmr.msra.gmra.mrb[176].mxu1 %vm368_vm1, %v6553_v62  ;;  %v10396_v62 = vld [vmem:[%s14044_s3 + $0x964] ss:$16 sps:$4 sm:$0xff]  }
0x11e2   :  { %9503 = vmatpush3.bf16.msra.mxu0 %v13408_v18  ;;  %9525 = vmatpush3.bf16.msra.mxu1 %v13414_v20 }
0x11e3   :  { %9504 = vmatprep.subr.bf16.mxu0 %v13420_v21  ;;  %9526 = vmatprep.subr.bf16.mxu1 %v13426_v22 }
0x11e4   :  { %6821 = vmatprep.mubr.bf16.mxu0 %v6779_v53  ;;  %6861 = vmatprep.mubr.bf16.mxu1 %v6781_v9  ;;  %v10393_v53 = vld [vmem:[%s14044_s3 + $0x94c] ss:$16 sps:$4 sm:$0xff]   ;;  %v10394_v9 = vld [vmem:[%s14044_s3 + $0x960] ss:$16 sps:$4 sm:$0xff]  }
0x11e6   :  { %9505 = vmatpush3.bf16.msra.mxu0 %v13432_v23  ;;  %9527 = vmatpush3.bf16.msra.mxu1 %v13438_v24 }
0x11e7   :  { %9506 = vmatprep.subr.bf16.mxu0 %v13444_v25  ;;  %9528 = vmatprep.subr.bf16.mxu1 %v13450_v26 }
0x11ea   :  { %9507 = vmatpush3.bf16.msra.mxu0 %v13456_v27  ;;  %9529 = vmatpush3.bf16.msra.mxu1 %v13462_v28 }
0x11eb   :  { %9508 = vmatprep.subr.bf16.mxu0 %v13468_v29  ;;  %9530 = vmatprep.subr.bf16.mxu1 %v13474_v30 }
0x11ee   :  { %9509 = vmatpush3.bf16.msra.mxu0 %v13480_v31  ;;  %9531 = vmatpush3.bf16.msra.mxu1 %v13486_v32 }
0x11ef   :  { %9510 = vmatprep.subr.bf16.mxu0 %v13492_v33  ;;  %9532 = vmatprep.subr.bf16.mxu1 %v13498_v35 }
0x11f2   :  { %9511 = vmatpush3.bf16.msra.mxu0 %v13504_v37  ;;  %9533 = vmatpush3.bf16.msra.mxu1 %v13510_v38 }
0x11f3   :  { %9512 = vmatprep.subr.bf16.mxu0 %v13516_v40  ;;  %9534 = vmatprep.subr.bf16.mxu1 %v13522_v41 }
0x11f6   :  { %9513 = vmatpush3.bf16.msra.mxu0 %v13528_v42  ;;  %9535 = vmatpush3.bf16.msra.mxu1 %v13534_v61 }
0x11f7   :  { %9514 = vmatprep.subr.bf16.mxu0 %v13540_v12  ;;  %9536 = vmatprep.subr.bf16.mxu1 %v13546_v52 }
0x11fa   :  { %9515 = vmatpush3.bf16.msra.mxu0 %v13554_v6  ;;  %9537 = vmatpush3.bf16.msra.mxu1 %v13560_v11 }
0x11fb   :  { %9516 = vmatprep.subr.bf16.mxu0 %v13566_v8  ;;  %9538 = vmatprep.subr.bf16.mxu1 %v13572_v10 }
0x11fe   :  { %9517 = vmatpush3.bf16.msra.mxu0 %v13578_v63  ;;  %9539 = vmatpush3.bf16.msra.mxu1 %v13584_v51 }
0x11ff   :  { %9860 = vmatprep.subr.bf16.mxu0 %v10629_v36  ;;  %7011 = vmatprep.subr.bf16.mxu1 %v10378_v49 }
0x1201   :  { %6822 = vmatmul.mubr.bf16.vlgmr.msra.gmra.mrb[180].mxu0 %v6765_v19  ;;  %6862 = vmatmul.mubr.bf16.vlgmr.msra.gmra.mrb[180].mxu1 %v6780_v59  ;;  %v10399_v19 = vld [vmem:[%s14044_s3 + $0x96c] ss:$16 sps:$4 sm:$0xff]   ;;  %v10397_v59 = vld [vmem:[%s14044_s3 + $0x968] ss:$16 sps:$4 sm:$0xff]  }
0x1202   :  { %9861 = vmatpush3.bf16.msra.mxu0 %v13591_v58  ;;  %9868 = vmatprep.mubr.msk.bf16.mxu0 %vm10630_vm0, %v10629_v36 }
0x1203   :  { %9862 = vmatprep.subr.bf16.mxu0 %v10629_v36  ;;  %7043 = vmatprep.mubr.bf16.mxu1 %v10631_v17 }
0x1204   :  { %7012 = vmatpush1.bf16.msra.mxu1 %v10376_v0 }
0x1205   :  { %7013 = vmatprep.subr.bf16.mxu1 %v10384_v3 }
0x1206   :  { %9863 = vmatpush3.bf16.msra.mxu0 %v13603_v57 }
0x1207   :  { %9864 = vmatprep.subr.bf16.mxu0 %v10629_v36 }
0x1208   :  { %7014 = vmatpush1.bf16.msra.mxu1 %v10382_v46 }
0x1209   :  { %7015 = vmatprep.subr.bf16.mxu1 %v10390_v45 }
0x120a   :  { %9865 = vmatpush3.bf16.msra.mxu0 %v13611_v15 }
0x120b   :  { %9866 = vmatprep.subr.bf16.mxu0 %v10629_v36 }
0x120c   :  { %7016 = vmatpush1.bf16.msra.mxu1 %v10388_v47 }
0x120d   :  { %7017 = vmatprep.subr.bf16.mxu1 %v10396_v62 }
0x120e   :  { %9867 = vmatpush3.bf16.msra.mxu0 %v13619_v16 }
0x120f   :  { %7052 = vmatprep.subr.bf16.mxu0 %v10381_v1 }
0x1210   :  { %7018 = vmatpush1.bf16.msra.mxu1 %v10394_v9 }
0x1211   :  { %9869 = vmatmul.mubr.msk.bf16.vlgmr.msra.gmra.mrb[184].mxu0 %vm368_vm1, %v6772_v44  ;;  %9551 = vmatprep.subr.bf16.mxu1 %v13369_v50 }
0x1212   :  { %7084 = vmatprep.mubr.bf16.mxu0 %v10631_v17  ;;  %7053 = vmatpush1.bf16.msra.mxu0 %v10379_v48 }
0x1213   :  { %7054 = vmatprep.subr.bf16.mxu0 %v10387_v2 }
0x1216   :  { %7055 = vmatpush1.bf16.msra.mxu0 %v10385_v14 }
0x1217   :  { %7056 = vmatprep.subr.bf16.mxu0 %v10393_v53 }
0x121a   :  { %7057 = vmatpush1.bf16.msra.mxu0 %v10391_v7 }
0x121b   :  { %7058 = vmatprep.subr.bf16.mxu0 %v10399_v19 }
0x121e   :  { %7059 = vmatpush1.bf16.msra.mxu0 %v10397_v59 }
0x121f   :  { %9573 = vmatprep.subr.bf16.mxu0 %v13375_v56 }
0x12b4   :  { %v6688_v5 = vpop.f32.mrb[176].mxu0  ;;  %v6729_v43 = vpop.f32.mrb[176].mxu1 }
0x12b5   :  { %v13791_v44 = vadd.f32 %v6688_v5, %v13675_v55  ;;  %v13794_v0 = vadd.f32 %v6729_v43, %v13678_v60  ;;  %v6690_v49 = vpop.f32.mrb[177].mxu0  ;;  %v6731_v48 = vpop.f32.mrb[177].mxu1 }
0x12b6   :  { %v13797_v1 = vadd.f32 %v6690_v49, %v13681_v54  ;;  %v13800_v3 = vadd.f32 %v6731_v48, %v13684_v4  ;;  %v6692_v2 = vpop.f32.mrb[178].mxu0  ;;  %v6733_v50 = vpop.f32.mrb[178].mxu1  ;;  %v8551_v4 = vld [vmem:[%s14041_s0 + $0x5f] sm:$0x1f] }
0x12b7   :  { %v6693_v46 = vpop.f32.mrb[179].mxu0  ;;  %v6734_v56 = vpop.f32.mrb[179].mxu1  ;;  %v7107_v5 = vrot.slane %v8551_v4, %v10873_v39 }
0x12b9   :  { %v7115_v43 = vcombine.high %v7107_v5, %v7107_v5 }
0x12bb   :  { %v7136_v46 = vrot.slane %v7115_v43, %v10873_v39 }
0x12d4   :  { %v9518_v14 = vpop.f32.mrb[180].mxu0  ;;  %v9540_v45 = vpop.f32.mrb[180].mxu1 }
0x12d5   :  { %v9519_v53 = vpop.f32.mrb[181].mxu0  ;;  %v9541_v55 = vpop.f32.mrb[181].mxu1 }
0x12d6   :  { %v9520_v47 = vadd.f32 %v9519_v53, %v9518_v14  ;;  %v9521_v7 = vpop.f32.mrb[182].mxu0  ;;  %v9542_v60 = vadd.f32 %v9541_v55, %v9540_v45  ;;  %v9543_v62 = vpop.f32.mrb[182].mxu1  ;;  %v7138_v53 = vcombine.high %v7136_v46, %v7136_v46 }
0x12d7   :  { %v9522_v9 = vpop.f32.mrb[183].mxu0  ;;  %v9544_v19 = vpop.f32.mrb[183].mxu1 }
0x12d8   :  { %v6824_v54 = vadd.f32 %v13262_v13, %v9520_v47 }
0x12da   :  { %v6864_v59 = vadd.f32 %v9542_v60, %v6824_v54 }
0x12e4   :  { %v6903_v49 = vpop.f32.mrb[184].mxu0 }
0x12e5   :  { %v6904_v48 = vadd.f32 %v6903_v49, %v6864_v59  ;;  %v9870_v2 = vpop.f32.mrb[185].mxu0  ;;  %v10427_v49 = vld [vmem:[%s14046_s5] sm:$0xff]  }
0x12e6   :  { %v6906_v50 = vpop.f32.mrb[186].mxu0 }
0x12e7   :  { %v6909_v56 = vmax.f32 %v6904_v48, 0.0  ;;  %v9871_v14 = vpop.f32.mrb[187].mxu0  ;;  %v10428_v48 = vld [vmem:[%s14046_s5 + $0x80] sm:$0xff]   ;;  %v10430_v50 = vld [vmem:[%s14046_s5 + $0xc8] sm:$0xff]  }
0x12e8   :  { %v10433_v14 = vld [vmem:[%s14046_s5 + $0x50] sm:$0xff]  }
0x12e9   :  { %v6910_v45 = vpack.c.bf16 %v6909_v56, %v6909_v56  ;;  %v10432_v56 = vld [vmem:[%s14046_s5 + $0x88] sm:$0xff]  }
0x12eb   :  { %8549 = vmatmul.mubr.msk.bf16.vlgmr.msra.gmra.mrb[184].mxu1 %vm368_vm1, %v6910_v45  ;;  %8550 = vmatmul.mubr.msk.bf16.vlgmr.msra.gmra.mrb[188].mxu0 %vm368_vm1, %v6910_v45  ;;  %v10434_v45 = vld [vmem:[%s14046_s5 + $0xd0] sm:$0xff]  }
0x12ec   :  { %9552 = vmatpush3.bf16.msra.mxu1 %v13408_v18  ;;  %9574 = vmatpush3.bf16.msra.mxu0 %v13414_v20  ;;  %v7122_v18 = vrot.slane %v7107_v5, %v10873_v39 }
0x12ed   :  { %9553 = vmatprep.subr.bf16.mxu1 %v13420_v21  ;;  %9575 = vmatprep.subr.bf16.mxu0 %v13426_v22  ;;  %v7100_v21 = vcombine.high %v8551_v4, %v8551_v4 }
0x12ee   :  { %7178 = vmatprep.mubr.bf16.mxu1 %v7136_v46  ;;  %7218 = vmatprep.mubr.bf16.mxu0 %v7138_v53  ;;  %v7137_v20 = vcombine.high %v7122_v18, %v7122_v18  ;;  %v10431_v46 = vld [vmem:[%s14046_s5 + $0x8] sm:$0xff]   ;;  %v10435_v53 = vld [vmem:[%s14046_s5 + $0x10] sm:$0xff]  }
0x12ef   :  { %v7114_v22 = vrot.slane %v7100_v21, %v10873_v39  ;;  %v10438_v21 = vld [vmem:[%s14046_s5 + $0xd8] sm:$0xff]  }
0x12f0   :  { %9554 = vmatpush3.bf16.msra.mxu1 %v13432_v23  ;;  %9576 = vmatpush3.bf16.msra.mxu0 %v13438_v24  ;;  %v10401_v24 = vld [vmem:[%s14044_s3 + $0x980] ss:$16 sps:$4 sm:$0xff]  }
0x12f1   :  { %9555 = vmatprep.subr.bf16.mxu1 %v13444_v25  ;;  %9577 = vmatprep.subr.bf16.mxu0 %v13450_v26  ;;  %v7129_v23 = vrot.slane %v7114_v22, %v10873_v39  ;;  %v10403_v25 = vld [vmem:[%s14044_s3 + $0x984] ss:$16 sps:$4 sm:$0xff]   ;;  %v10406_v39 = vld [vmem:[%s14044_s3 + $0x98c] ss:$16 sps:$4 sm:$0xff]  }
0x12f2   :  { %v10412_v26 = vld [vmem:[%s14044_s3 + $0x9ac] ss:$16 sps:$4 sm:$0xff]  }
0x12f3   :  { %v10439_v22 = vld [vmem:[%s14046_s5 + $0x18] sm:$0xff]  }
0x12f4   :  { %9556 = vmatpush3.bf16.msra.mxu1 %v13456_v27  ;;  %9578 = vmatpush3.bf16.msra.mxu0 %v13462_v28  ;;  %v10407_v27 = vld [vmem:[%s14044_s3 + $0x9a0] ss:$16 sps:$4 sm:$0xff]   ;;  %v10410_v28 = vld [vmem:[%s14044_s3 + $0x9a8] ss:$16 sps:$4 sm:$0xff]  }
0x12f5   :  { %9557 = vmatprep.subr.bf16.mxu1 %v13468_v29  ;;  %9579 = vmatprep.subr.bf16.mxu0 %v13474_v30  ;;  %v10415_v29 = vld [vmem:[%s14044_s3 + $0x9c4] ss:$16 sps:$4 sm:$0xff]   ;;  %v10418_v30 = vld [vmem:[%s14044_s3 + $0x9cc] ss:$16 sps:$4 sm:$0xff]  }
0x12f8   :  { %9558 = vmatpush3.bf16.msra.mxu1 %v13480_v31  ;;  %9580 = vmatpush3.bf16.msra.mxu0 %v13486_v32  ;;  %v10413_v31 = vld [vmem:[%s14044_s3 + $0x9c0] ss:$16 sps:$4 sm:$0xff]   ;;  %v10416_v32 = vld [vmem:[%s14044_s3 + $0x9c8] ss:$16 sps:$4 sm:$0xff]  }
0x12f9   :  { %9559 = vmatprep.subr.bf16.mxu1 %v13492_v33  ;;  %9581 = vmatprep.subr.bf16.mxu0 %v13498_v35  ;;  %v10421_v33 = vld [vmem:[%s14044_s3 + $0x9e4] ss:$16 sps:$4 sm:$0xff]   ;;  %v10424_v35 = vld [vmem:[%s14044_s3 + $0x9ec] ss:$16 sps:$4 sm:$0xff]  }
0x12fc   :  { %9560 = vmatpush3.bf16.msra.mxu1 %v13504_v37  ;;  %9582 = vmatpush3.bf16.msra.mxu0 %v13510_v38  ;;  %v10419_v37 = vld [vmem:[%s14044_s3 + $0x9e0] ss:$16 sps:$4 sm:$0xff]   ;;  %v10422_v38 = vld [vmem:[%s14044_s3 + $0x9e8] ss:$16 sps:$4 sm:$0xff]  }
0x12fd   :  { %9561 = vmatprep.subr.bf16.mxu1 %v13516_v40  ;;  %9583 = vmatprep.subr.bf16.mxu0 %v13522_v41  ;;  %v10425_v40 = vld [vmem:[%s14046_s5 + $0x40] sm:$0xff]  }
0x12fe   :  { %v10426_v41 = vld [vmem:[%s14046_s5 + $0xc0] sm:$0xff]  }
0x1300   :  { %9562 = vmatpush3.bf16.msra.mxu1 %v13528_v42  ;;  %9584 = vmatpush3.bf16.msra.mxu0 %v13534_v61 }
0x1301   :  { %9563 = vmatprep.subr.bf16.mxu1 %v13540_v12  ;;  %9585 = vmatprep.subr.bf16.mxu0 %v13546_v52 }
0x1304   :  { %9564 = vmatpush3.bf16.msra.mxu1 %v13554_v6  ;;  %9586 = vmatpush3.bf16.msra.mxu0 %v13560_v11 }
0x1305   :  { %9565 = vmatprep.subr.bf16.mxu1 %v13566_v8  ;;  %9587 = vmatprep.subr.bf16.mxu0 %v13572_v10 }
0x1308   :  { %9566 = vmatpush3.bf16.msra.mxu1 %v13578_v63  ;;  %9588 = vmatpush3.bf16.msra.mxu0 %v13584_v51 }
0x1309   :  { %9872 = vmatprep.subr.bf16.mxu1 %v10629_v36  ;;  %7368 = vmatprep.subr.bf16.mxu0 %v10403_v25  ;;  %v10442_v25 = vld [vmem:[%s14046_s5 + $0xe0] sm:$0xff]  }
0x130b   :  { %7179 = vmatmul.mubr.bf16.vlgmr.msra.gmra.mrb[188].mxu1 %v7122_v18  ;;  %7219 = vmatmul.mubr.bf16.vlgmr.msra.gmra.mrb[192].mxu0 %v7137_v20  ;;  %v10436_v18 = vld [vmem:[%s14046_s5 + $0x90] sm:$0xff]   ;;  %v10437_v20 = vld [vmem:[%s14046_s5 + $0x58] sm:$0xff]  }
0x130c   :  { %9873 = vmatpush3.bf16.msra.mxu1 %v13591_v58  ;;  %9880 = vmatprep.mubr.msk.bf16.mxu1 %vm10630_vm0, %v10629_v36 }
0x130d   :  { %9874 = vmatprep.subr.bf16.mxu1 %v10629_v36  ;;  %7400 = vmatprep.mubr.bf16.mxu0 %v10631_v17 }
0x130e   :  { %7369 = vmatpush1.bf16.msra.mxu0 %v10401_v24  ;;  %v10441_v24 = vld [vmem:[%s14046_s5 + $0x60] sm:$0xff]  }
0x1310   :  { %9875 = vmatpush3.bf16.msra.mxu1 %v13603_v57 }
0x1311   :  { %9876 = vmatprep.subr.bf16.mxu1 %v10629_v36 }
0x1314   :  { %9877 = vmatpush3.bf16.msra.mxu1 %v13611_v15 }
0x1315   :  { %9878 = vmatprep.subr.bf16.mxu1 %v10629_v36  ;;  %v10404_v36 = vld [vmem:[%s14044_s3 + $0x988] ss:$16 sps:$4 sm:$0xff]  }
0x1318   :  { %9879 = vmatpush3.bf16.msra.mxu1 %v13619_v16 }
0x1319   :  { %7409 = vmatprep.subr.bf16.mxu1 %v10406_v39  ;;  %v10444_v39 = vld [vmem:[%s14046_s5 + $0xa0] sm:$0xff]  }
0x131b   :  { %9881 = vmatmul.mubr.msk.bf16.vlgmr.msra.gmra.mrb[192].mxu1 %vm368_vm1, %v7129_v23  ;;  %v10440_v23 = vld [vmem:[%s14046_s5 + $0x98] sm:$0xff]  }
0x131c   :  { %7441 = vmatprep.mubr.bf16.mxu1 %v10631_v17  ;;  %v10409_v17 = vld [vmem:[%s14044_s3 + $0x9a4] ss:$16 sps:$4 sm:$0xff]   ;;  %7410 = vmatpush1.bf16.msra.mxu1 %v10404_v36 }
0x131d   :  { %7370 = vmatprep.subr.bf16.mxu0 %v10409_v17  ;;  %7411 = vmatprep.subr.bf16.mxu1 %v10412_v26  ;;  %v10443_v36 = vld [vmem:[%s14046_s5 + $0x20] sm:$0xff]   ;;  %v10445_v17 = vld [vmem:[%s14046_s5 + $0x68] sm:$0xff]  }
0x131e   :  { %7371 = vmatpush1.bf16.msra.mxu0 %v10407_v27  ;;  %v10446_v26 = vld [vmem:[%s14046_s5 + $0xe8] sm:$0xff]  }
0x131f   :  { %7372 = vmatprep.subr.bf16.mxu0 %v10415_v29  ;;  %v10447_v27 = vld [vmem:[%s14046_s5 + $0x28] sm:$0xff]   ;;  %v10449_v29 = vld [vmem:[%s14046_s5 + $0x70] sm:$0xff]  }
0x1320   :  { %7412 = vmatpush1.bf16.msra.mxu1 %v10410_v28  ;;  %v10448_v28 = vld [vmem:[%s14046_s5 + $0xa8] sm:$0xff]  }
0x1321   :  { %7413 = vmatprep.subr.bf16.mxu1 %v10418_v30  ;;  %v10450_v30 = vld [vmem:[%s14046_s5 + $0xf0] sm:$0xff]  }
0x1322   :  { %7373 = vmatpush1.bf16.msra.mxu0 %v10413_v31  ;;  %v10451_v31 = vld [vmem:[%s14046_s5 + $0x30] sm:$0xff]  }
0x1323   :  { %7374 = vmatprep.subr.bf16.mxu0 %v10421_v33  ;;  %v10453_v33 = vld [vmem:[%s14046_s5 + $0x78] sm:$0xff]  }
0x1324   :  { %7414 = vmatpush1.bf16.msra.mxu1 %v10416_v32  ;;  %v10452_v32 = vld [vmem:[%s14046_s5 + $0xb0] sm:$0xff]  }
0x1325   :  { %7415 = vmatprep.subr.bf16.mxu1 %v10424_v35  ;;  %v10454_v35 = vld [vmem:[%s14046_s5 + $0xf8] sm:$0xff]  }
0x1326   :  { %7375 = vmatpush1.bf16.msra.mxu0 %v10419_v37  ;;  %v10455_v37 = vld [vmem:[%s14046_s5 + $0x38] sm:$0xff]  }
0x1327   :  { %9600 = vmatprep.subr.bf16.mxu0 %v10425_v40  ;;  %v7458_v40 = vsub.s32 0, %v10859_v34 }
0x1328   :  { %7416 = vmatpush1.bf16.msra.mxu1 %v10422_v38  ;;  %v10456_v38 = vld [vmem:[%s14046_s5 + $0xb8] sm:$0xff]  }
0x1329   :  { %9622 = vmatprep.subr.bf16.mxu1 %v10426_v41  ;;  %v7466_v41 = vsub.s32 2, %v10859_v34 }
0x13be   :  { %v7045_v42 = vpop.f32.mrb[184].mxu1  ;;  %v7086_v61 = vpop.f32.mrb[188].mxu0 }
0x13bf   :  { %v13911_v12 = vadd.f32 %v7045_v42, %v13791_v44  ;;  %v13914_v52 = vadd.f32 %v7086_v61, %v13794_v0  ;;  %v7047_v6 = vpop.f32.mrb[185].mxu1  ;;  %v7088_v11 = vpop.f32.mrb[189].mxu0  ;;  %v7454_v42 = vld [vmem:[%s14045_s4] sm:$0xf]  ;;  %v7462_v61 = vsub.s32 1, %v10859_v34 }
0x13c0   :  { %v13917_v8 = vadd.f32 %v7047_v6, %v13797_v1  ;;  %v13920_v10 = vadd.f32 %v7088_v11, %v13800_v3  ;;  %v7049_v63 = vpop.f32.mrb[186].mxu1  ;;  %v7090_v51 = vpop.f32.mrb[190].mxu0  ;;  %v7470_v6 = vsub.s32 3, %v10859_v34  ;;  %v7459_v11 = vrot.slane %v7454_v42, %v7458_v40 }
0x13c1   :  { %v7050_v58 = vpop.f32.mrb[187].mxu1  ;;  %v7091_v57 = vpop.f32.mrb[191].mxu0  ;;  %v7467_v63 = vrot.slane %v7454_v42, %v7466_v41 }
0x13c2   :  { %v7463_v57 = vrot.slane %v7454_v42, %v7462_v61 }
0x13de   :  { %v9567_v15 = vpop.f32.mrb[188].mxu1  ;;  %v9589_v16 = vpop.f32.mrb[192].mxu0 }
0x13df   :  { %v9568_v55 = vpop.f32.mrb[189].mxu1  ;;  %v9590_v44 = vpop.f32.mrb[193].mxu0 }
0x13e0   :  { %v9569_v47 = vadd.f32 %v9568_v55, %v9567_v15  ;;  %v9570_v7 = vpop.f32.mrb[190].mxu1  ;;  %v9591_v0 = vadd.f32 %v9590_v44, %v9589_v16  ;;  %v9592_v60 = vpop.f32.mrb[194].mxu0  ;;  %v7471_v15 = vrot.slane %v7454_v42, %v7470_v6 }
0x13e1   :  { %v9571_v62 = vpop.f32.mrb[191].mxu1  ;;  %v9593_v9 = vpop.f32.mrb[195].mxu0 }
0x13e2   :  { %v7181_v1 = vadd.f32 %v13262_v13, %v9569_v47  ;;  %v10429_v13 = vld [vmem:[%s14046_s5 + $0x48] sm:$0xff]  }
0x13e4   :  { %v7221_v19 = vadd.f32 %v9591_v0, %v7181_v1 }
0x13ee   :  { %v7260_v54 = vpop.f32.mrb[192].mxu1 }
0x13ef   :  { %v7261_v3 = vadd.f32 %v7260_v54, %v7221_v19  ;;  %v9882_v59 = vpop.f32.mrb[193].mxu1 }
0x13f0   :  { %v7263_v4 = vpop.f32.mrb[194].mxu1 }
0x13f1   :  { %v7266_v5 = vmax.f32 %v7261_v3, 0.0  ;;  %v9883_v43 = vpop.f32.mrb[195].mxu1 }
0x13f3   :  { %v7267_v2 = vpack.c.bf16 %v7266_v5, %v7266_v5 }
0x13f5   :  { %8585 = vmatmul.mubr.msk.bf16.vlgmr.msra.gmra.mrb[196].mxu0 %vm368_vm1, %v7267_v2  ;;  %8586 = vmatmul.mubr.msk.bf16.vlgmr.msra.gmra.mrb[196].mxu1 %vm368_vm1, %v7267_v2  ;;  %v8587_v2 = vld [vmem:[%s14047_s6] ss:$0 sm:$0xff] }
0x13f6   :  { %9601 = vmatpush3.bf16.msra.mxu0 %v10427_v49  ;;  %9623 = vmatpush3.bf16.msra.mxu1 %v10428_v48 }
0x13f7   :  { %9602 = vmatprep.subr.bf16.mxu0 %v10429_v13  ;;  %9624 = vmatprep.subr.bf16.mxu1 %v10430_v50 }
0x13fa   :  { %9603 = vmatpush3.bf16.msra.mxu0 %v10431_v46  ;;  %9625 = vmatpush3.bf16.msra.mxu1 %v10432_v56 }
0x13fb   :  { %9604 = vmatprep.subr.bf16.mxu0 %v10433_v14  ;;  %9626 = vmatprep.subr.bf16.mxu1 %v10434_v45 }
0x13fe   :  { %9605 = vmatpush3.bf16.msra.mxu0 %v10435_v53  ;;  %9627 = vmatpush3.bf16.msra.mxu1 %v10436_v18 }
0x13ff   :  { %9606 = vmatprep.subr.bf16.mxu0 %v10437_v20  ;;  %9628 = vmatprep.subr.bf16.mxu1 %v10438_v21 }
0x1402   :  { %9607 = vmatpush3.bf16.msra.mxu0 %v10439_v22  ;;  %9629 = vmatpush3.bf16.msra.mxu1 %v10440_v23 }
0x1403   :  { %9608 = vmatprep.subr.bf16.mxu0 %v10441_v24  ;;  %9630 = vmatprep.subr.bf16.mxu1 %v10442_v25 }
0x1406   :  { %9609 = vmatpush3.bf16.msra.mxu0 %v10443_v36  ;;  %9631 = vmatpush3.bf16.msra.mxu1 %v10444_v39 }
0x1407   :  { %9610 = vmatprep.subr.bf16.mxu0 %v10445_v17  ;;  %9632 = vmatprep.subr.bf16.mxu1 %v10446_v26 }
0x140a   :  { %9611 = vmatpush3.bf16.msra.mxu0 %v10447_v27  ;;  %9633 = vmatpush3.bf16.msra.mxu1 %v10448_v28 }
0x140b   :  { %9612 = vmatprep.subr.bf16.mxu0 %v10449_v29  ;;  %9634 = vmatprep.subr.bf16.mxu1 %v10450_v30 }
0x140e   :  { %9613 = vmatpush3.bf16.msra.mxu0 %v10451_v31  ;;  %9635 = vmatpush3.bf16.msra.mxu1 %v10452_v32 }
0x140f   :  { %9614 = vmatprep.subr.bf16.mxu0 %v10453_v33  ;;  %9636 = vmatprep.subr.bf16.mxu1 %v10454_v35 }
0x1412   :  { %9615 = vmatpush3.bf16.msra.mxu0 %v10455_v37  ;;  %9637 = vmatpush3.bf16.msra.mxu1 %v10456_v38 }
0x14c8   :  { %v7402_v51 = vpop.f32.mrb[196].mxu0  ;;  %v7443_v58 = vpop.f32.mrb[196].mxu1 }
0x14c9   :  { %v7450_v16 = vadd.f32 %v7402_v51, %v13911_v12  ;;  %v7452_v55 = vadd.f32 %v7443_v58, %v13914_v52  ;;  %v7404_v44 = vpop.f32.mrb[197].mxu0  ;;  %v7445_v47 = vpop.f32.mrb[197].mxu1 }
0x14ca   :  { %v7451_v7 = vadd.f32 %v7404_v44, %v13917_v8  ;;  %v7453_v0 = vadd.f32 %v7445_v47, %v13920_v10  ;;  %v7406_v60 = vpop.f32.mrb[198].mxu0  ;;  %v7447_v62 = vpop.f32.mrb[198].mxu1 }
0x14cb   :  { %v7476_v9 = vadd.f32 %v7459_v11, %v7450_v16  ;;  %v7478_v34 = vadd.f32 %v7467_v63, %v7452_v55  ;;  %v7407_v1 = vpop.f32.mrb[199].mxu0  ;;  %v7448_v19 = vpop.f32.mrb[199].mxu1 }
0x14cc   :  { %v7477_v54 = vadd.f32 %v7463_v57, %v7451_v7  ;;  %v7479_v3 = vadd.f32 %v7471_v15, %v7453_v0 }
0x14cd   :  { %v7480_v59 = vmax.f32 %v7476_v9, 0.0  ;;  %v7482_v4 = vmax.f32 %v7478_v34, 0.0 }
0x14ce   :  { %v7481_v5 = vmax.f32 %v7477_v54, 0.0  ;;  %v7483_v12 = vmax.f32 %v7479_v3, 0.0 }
0x14cf   :  { %v7484_v49 = vpack.c.bf16 %v7480_v59, %v7480_v59  ;;  %v7486_v48 = vpack.c.bf16 %v7482_v4, %v7482_v4 }
0x14d0   :  { %v7485_v43 = vpack.c.bf16 %v7481_v5, %v7481_v5  ;;  %v7487_v52 = vpack.c.bf16 %v7483_v12, %v7483_v12 }
0x14d2   :  { %7783 = vmatprep.mubr.bf16.mxu0 %v7485_v43  ;;  %7823 = vmatprep.mubr.bf16.mxu1 %v7487_v52 }
0x14d3   :  { %7784 = vmatmul.mubr.bf16.vlgmr.msra.gmra.mrb[200].mxu0 %v7484_v49  ;;  %7824 = vmatmul.mubr.bf16.vlgmr.msra.gmra.mrb[200].mxu1 %v7486_v48 }
0x15a6   :  { %v9616_v8 = vpop.f32.mrb[200].mxu0  ;;  %v9638_v10 = vpop.f32.mrb[200].mxu1 }
0x15a7   :  { %v9617_v13 = vpop.f32.mrb[201].mxu0  ;;  %v9639_v50 = vpop.f32.mrb[201].mxu1 }
0x15a8   :  { %v9618_v46 = vadd.f32 %v9617_v13, %v9616_v8  ;;  %v9640_v56 = vadd.f32 %v9639_v50, %v9638_v10  ;;  %v9619_v14 = vpop.f32.mrb[202].mxu0  ;;  %v9641_v45 = vpop.f32.mrb[202].mxu1 }
0x15a9   :  { %v9620_v53 = vpop.f32.mrb[203].mxu0  ;;  %v9642_v18 = vpop.f32.mrb[203].mxu1 }
0x15aa   :  { %v7786_v20 = vadd.f32 %v9618_v46, %v8587_v2 }
0x15ac   :  { %v7826_v21 = vadd.f32 %v9640_v56, %v7786_v20 }
0x15ae   :  { %7832 = vst.msk [vmem:[#allocation2] sm:$0x3] %vm7831_vm2, %v7826_v21 }
0x15af   :  { %10615 = shalt.err (!%p10612_p4)
}
0x15b0   :  { %s10616_s13 = scalar_lea.hbm %s14048_s7, 32 }
0x15b1   :  { %p10617_p5 = scmp.ne.s32.totalorder %s14048_s7, %s10616_s13  ;;  %p10620_p6 = scmp.lt.u32.totalorder %s10616_s13, %s14048_s7 }
0x15b3   :  { %p10622_p7 = pnand %p10620_p6, %p10617_p5 }
0x15b5   :  { %10625 = shalt.err (!%p10622_p7)
}
0x15b6   :  { %7842 = dma.vmem_to_hbm [thread:$0]  %s7840_s10, 32, %s14048_s7, [#allocation3]  }
0x15b7   :  { %10626 = dma.done.wait [#allocation3], 32  }
0x15b8   :  { %10627 = vsyncadd [#allocation3], 4294967264 }
0x15b9   :  { %7846 = vsyncpa [#allocation3], 1 }

</bundles_post_ra>
